<compile_context>
chip_gen: v6e
topology: v6e:2x2x1
jax: 0.10.0
libtpu: 0.0.40
codegen_flags: <defaults>
</compile_context>

<pallas_src>
import jax
import jax.numpy as jnp
from jax.experimental import pallas as pl
from jax.experimental.pallas import tpu as pltpu

HIDDEN = 768
FC1_OUT = 384
FC2_OUT = 700


def _round_up(x, m):
    return ((x + m - 1) // m) * m


def _make_fused_kernel(tile_b: int, seq: int):
    """Embedding gather + masked mean pool + tanh pooler + folded fc1·fc2."""

    def kernel(tokens_sm, masks_sm,                       # scalar prefetch (SMEM i32)
               emb_hbm, maskf_ref, wp_ref, bp_ref,        # inputs
               w12_ref, b12_ref,
               o_ref,                                      # output  [tile_b, 700] f32
               buf, acc_ref, sem):                         # scratch
        b0 = pl.program_id(0) * tile_b

        def start_gather(s, slot):
            # Issue tile_b embedding-row gathers (HBM -> VMEM) for sequence pos s.
            for r in range(tile_b):                        # static unroll
                tok = tokens_sm[b0 + r, s]
                pltpu.make_async_copy(emb_hbm.at[tok], buf.at[slot, r],
                                      sem.at[slot, r]).start()

        def wait_gather(slot):
            for r in range(tile_b):
                pltpu.make_async_copy(emb_hbm.at[0], buf.at[slot, r],
                                      sem.at[slot, r]).wait()

        start_gather(0, 0)                                 # prime slot 0
        acc_ref[...] = jnp.zeros_like(acc_ref)

        # Stream over the sequence with a 2-slot double buffer (paged-attn pattern).
        @pl.loop(0, seq)
        def _(s):
            slot = s & 1
            wait_gather(slot)

            @pl.when(s + 1 < seq)
            def _():
                start_gather(s + 1, 1 - slot)

            cur = buf[slot]                                # (tile_b, HIDDEN) f32
            for r in range(tile_b):                        # static unroll
                @pl.when(masks_sm[b0 + r, s] != 0)
                def _(r=r):
                    acc_ref[r:r + 1, :] = acc_ref[r:r + 1, :] + cur[r:r + 1, :]

        # Masked mean: denominator computed fully vectorized from the f32 mask tile.
        denom = jnp.maximum(jnp.sum(maskf_ref[...], axis=1, keepdims=True), 1.0)
        pooled = (acc_ref[...] / denom).astype(jnp.bfloat16)        # (tile_b, 768)

        # BERT pooler stand-in: tanh(pooled @ Wp + bp)   (MXU + EUP)
        p = jnp.dot(pooled, wp_ref[...], preferred_element_type=jnp.float32)
        p = jnp.tanh(p + bp_ref[...]).astype(jnp.bfloat16)          # (tile_b, 768)

        # Folded classifier: fc2(fc1(x)) == x @ (W1 @ W2) + (b1 @ W2 + b2)
        y = jnp.dot(p, w12_ref[...], preferred_element_type=jnp.float32)
        o_ref[...] = y + b12_ref[...]                                # (tile_b, 700) f32

    return kernel


def _fused_forward(tokens_i32, masks_i32, masks_f32, emb_table,
                   wp, bp, w12, b12, *, tile_b):
    b_pad, seq = tokens_i32.shape
    n_tiles = b_pad // tile_b

    flops = 2 * b_pad * (HIDDEN * HIDDEN + HIDDEN * FC2_OUT)
    bytes_accessed = (
        b_pad * seq * HIDDEN * emb_table.dtype.itemsize          # gathered rows
        + wp.size * 2 + w12.size * 2                              # bf16 weights
        + bp.size * 4 + b12.size * 4
        + masks_f32.size * 4 + tokens_i32.size * 4 + masks_i32.size * 4
        + b_pad * FC2_OUT * 4)

    grid_spec = pltpu.PrefetchScalarGridSpec(
        num_scalar_prefetch=2,                                    # tokens, masks (SMEM)
        grid=(n_tiles,),
        in_specs=[
            pl.BlockSpec(memory_space=pl.ANY),                              # emb (HBM)
            pl.BlockSpec((tile_b, seq), lambda i, tok, msk: (i, 0)),        # masks f32
            pl.BlockSpec((HIDDEN, HIDDEN), lambda i, tok, msk: (0, 0)),     # Wp (resident)
            pl.BlockSpec((1, HIDDEN), lambda i, tok, msk: (0, 0)),          # bp
            pl.BlockSpec((HIDDEN, FC2_OUT), lambda i, tok, msk: (0, 0)),    # W12 (resident)
            pl.BlockSpec((1, FC2_OUT), lambda i, tok, msk: (0, 0)),         # b12
        ],
        out_specs=pl.BlockSpec((tile_b, FC2_OUT), lambda i, tok, msk: (i, 0)),
        scratch_shapes=[
            pltpu.VMEM((2, tile_b, HIDDEN), emb_table.dtype),   # gather double buffer
            pltpu.VMEM((tile_b, HIDDEN), jnp.float32),          # masked-sum accumulator
            pltpu.SemaphoreType.DMA((2, tile_b)),               # per-row, per-slot sems
        ],
    )

    return pl.pallas_call(
        _make_fused_kernel(tile_b, seq),
        grid_spec=grid_spec,
        out_shape=jax.ShapeDtypeStruct((b_pad, FC2_OUT), jnp.float32),
        compiler_params=pltpu.CompilerParams(
            dimension_semantics=("parallel",),        # v7x: split batch tiles over 2 TCs
            vmem_limit_bytes=32 * 1024 * 1024),       # explicit; usage <8 MB per tile
        cost_estimate=pl.CostEstimate(
            flops=flops,
            transcendentals=b_pad * HIDDEN,
            bytes_accessed=bytes_accessed),
    )(tokens_i32, masks_i32, emb_table, masks_f32, wp, bp, w12, b12)


def multiclass_classifier_forward(tokens, masks, params, *, max_tile_b=256):
    """tokens, masks: [B, S] int -> logits [B, 700] f32."""
    emb_table, wp, bp, w12, b12 = params
    b, seq = tokens.shape
    # TILE_B >= 256 recommended for production batches (MXU fill on v6e/v7x);
    # here it is padded to a multiple of 16 for bf16 sublane packing.
    tile_b = min(max_tile_b, _round_up(b, 16))
    b_pad = _round_up(b, tile_b)
    pad = b_pad - b
    tokens_i32 = jnp.pad(tokens.astype(jnp.int32), ((0, pad), (0, 0)))
    masks_i32 = jnp.pad(masks.astype(jnp.int32), ((0, pad), (0, 0)))
    masks_f32 = masks_i32.astype(jnp.float32)
    logits = _fused_forward(tokens_i32, masks_i32, masks_f32,
                            emb_table, wp, bp, w12, b12, tile_b=tile_b)
    return logits[:b]          # trim padded rows only; 700-wide feature dim untouched


def init_params(key, vocab_size=100):
    ks = jax.random.split(key, 7)
    scale = 0.02
    # Embedding table stands in for the BERT encoder sequence output (f32 rows;
    # f32 keeps the per-row gather DMA sublane-aligned).
    emb_table = scale * jax.random.normal(ks[0], (vocab_size, HIDDEN), jnp.float32)
    # pooler: Linear(768, 768) + tanh; bf16 weights, f32 bias.
    wp = (scale * jax.random.normal(ks[1], (HIDDEN, HIDDEN), jnp.float32)
          ).astype(jnp.bfloat16)
    bp = jnp.zeros((1, HIDDEN), jnp.float32)
    # fc1 / fc2 parameters (stored [in, out]), folded in f32 then cast to bf16 once.
    w1 = scale * jax.random.normal(ks[2], (HIDDEN, FC1_OUT), jnp.float32)
    b1 = scale * jax.random.normal(ks[3], (1, FC1_OUT), jnp.float32)
    w2 = scale * jax.random.normal(ks[4], (FC1_OUT, FC2_OUT), jnp.float32)
    b2 = scale * jax.random.normal(ks[5], (1, FC2_OUT), jnp.float32)
    w12 = jnp.dot(w1, w2).astype(jnp.bfloat16)          # [768, 700] bf16
    b12 = jnp.dot(b1, w2) + b2                          # [1, 700]  f32
    return emb_table, wp, bp, w12, b12


def _reference_forward(tokens, masks, params):
    """Pure-JAX reference mirroring the kernel's dtype path (f32 pool, bf16 GEMMs).
    Note: this validates the kernel, not bit-parity with the PyTorch f32 model."""
    emb_table, wp, bp, w12, b12 = params
    emb = emb_table[tokens]                                     # [B, S, 768] f32
    m = masks.astype(jnp.float32)[..., None]
    pooled = jnp.sum(emb * m, axis=1) / jnp.maximum(jnp.sum(m, axis=1), 1.0)
    x = pooled.astype(jnp.bfloat16)
    p = jnp.tanh(jnp.dot(x, wp, preferred_element_type=jnp.float32) + bp)
    y = jnp.dot(p.astype(jnp.bfloat16), w12,
                preferred_element_type=jnp.float32) + b12
    return y


if __name__ == "__main__":
    key = jax.random.PRNGKey(0)
    k_tok, k_param = jax.random.split(key)

    B, S, VOCAB = 8, 8, 100
    tokens = jax.random.randint(k_tok, (B, S), 0, VOCAB, dtype=jnp.int32)
    masks = jnp.ones((B, S), jnp.int32).at[:, S // 2:].set(
        jnp.arange(S // 2) % 2)          # deterministic partial attention mask

    params = init_params(k_param, vocab_size=VOCAB)

    logits = multiclass_classifier_forward(tokens, masks, params)
    jax.block_until_ready(logits)

    ref = _reference_forward(tokens, masks, params)

    assert logits.shape == (B, FC2_OUT)
    assert jnp.allclose(logits, ref, atol=1e-2, rtol=1e-2), \
        float(jnp.max(jnp.abs(logits - ref)))

    print("KERNEL_OK")
</pallas_src>

<mosaic_0001>
module attributes {stable_mosaic.version = 11 : i64} {
  func.func @kernel(%arg0: i32, %arg1: memref<16x8xi32, #tpu.memory_space<smem>>, %arg2: memref<16x8xi32, #tpu.memory_space<smem>>, %arg3: memref<100x768xf32, #tpu.memory_space<any>>, %arg4: memref<16x8xf32, #tpu.memory_space<vmem>>, %arg5: memref<768x768xbf16, #tpu.memory_space<vmem>>, %arg6: memref<1x768xf32, #tpu.memory_space<vmem>>, %arg7: memref<768x700xbf16, #tpu.memory_space<vmem>>, %arg8: memref<1x700xf32, #tpu.memory_space<vmem>>, %arg9: memref<16x700xf32, #tpu.memory_space<vmem>>, %arg10: memref<2x16x768xf32, #tpu.memory_space<vmem>>, %arg11: memref<16x768xf32, #tpu.memory_space<vmem>>, %arg12: memref<2x16x!tpu.dma_semaphore, #tpu.memory_space<semaphore_mem>>) attributes {dimension_semantics = [#tpu.dimension_semantics<parallel>], iteration_bounds = array<i64: 1>, scalar_prefetch = 2 : i64, scratch_operands = 3 : i64, tpu.core_type = #tpu.core_type<tc>, window_params = [{}, {transform_indices = @transform_1, window_bounds = array<i64: 16, 8>}, {pipeline_mode = #tpu.pipeline_mode<synchronous>, transform_indices = @transform_2, window_bounds = array<i64: 768, 768>}, {pipeline_mode = #tpu.pipeline_mode<synchronous>, transform_indices = @transform_3, window_bounds = array<i64: 1, 768>}, {pipeline_mode = #tpu.pipeline_mode<synchronous>, transform_indices = @transform_4, window_bounds = array<i64: 768, 700>}, {pipeline_mode = #tpu.pipeline_mode<synchronous>, transform_indices = @transform_5, window_bounds = array<i64: 1, 700>}, {transform_indices = @transform_6, window_bounds = array<i64: 16, 700>}]} {
    %c16_i32 = arith.constant 16 : i32
    %0 = arith.muli %arg0, %c16_i32 : i32
    %c0_i32 = arith.constant 0 : i32
    %1 = arith.addi %0, %c0_i32 : i32
    %2 = arith.index_cast %1 : i32 to index
    %c0 = arith.constant 0 : index
    %3 = memref.load %arg1[%2, %c0] : memref<16x8xi32, #tpu.memory_space<smem>>
    %c0_i32_0 = arith.constant 0 : i32
    %c0_i32_1 = arith.constant 0 : i32
    %c0_i32_2 = arith.constant 0 : i32
    %c0_i32_3 = arith.constant 0 : i32
    %c0_i32_4 = arith.constant 0 : i32
    %4 = tpu.memref_slice %arg3[%3, %c0_i32_4] : memref<100x768xf32, #tpu.memory_space<any>> -> memref<1x768xf32, #tpu.memory_space<any>>
    %5 = tpu.memref_squeeze %4 : memref<1x768xf32, #tpu.memory_space<any>> -> memref<768xf32, #tpu.memory_space<any>>
    %c0_i32_5 = arith.constant 0 : i32
    %6 = tpu.memref_slice %arg10[%c0_i32_0, %c0_i32_1, %c0_i32_5] : memref<2x16x768xf32, #tpu.memory_space<vmem>> -> memref<1x1x768xf32, #tpu.memory_space<vmem>>
    %7 = tpu.memref_squeeze %6 : memref<1x1x768xf32, #tpu.memory_space<vmem>> -> memref<768xf32, #tpu.memory_space<vmem>>
    %8 = tpu.memref_slice %arg12[%c0_i32_2, %c0_i32_3] : memref<2x16x!tpu.dma_semaphore, #tpu.memory_space<semaphore_mem>> -> memref<1x1x!tpu.dma_semaphore, #tpu.memory_space<semaphore_mem>>
    %9 = tpu.memref_squeeze %8 : memref<1x1x!tpu.dma_semaphore, #tpu.memory_space<semaphore_mem>> -> memref<!tpu.dma_semaphore, #tpu.memory_space<semaphore_mem>>
    tpu.enqueue_dma source(%5 : memref<768xf32, #tpu.memory_space<any>>) target(%7 : memref<768xf32, #tpu.memory_space<vmem>>) target_semaphore(%9 : memref<!tpu.dma_semaphore, #tpu.memory_space<semaphore_mem>>)
    %c1_i32 = arith.constant 1 : i32
    %10 = arith.addi %0, %c1_i32 : i32
    %11 = arith.index_cast %10 : i32 to index
    %c0_6 = arith.constant 0 : index
    %12 = memref.load %arg1[%11, %c0_6] : memref<16x8xi32, #tpu.memory_space<smem>>
    %c0_i32_7 = arith.constant 0 : i32
    %c1_i32_8 = arith.constant 1 : i32
    %c0_i32_9 = arith.constant 0 : i32
    %c1_i32_10 = arith.constant 1 : i32
    %c0_i32_11 = arith.constant 0 : i32
    %13 = tpu.memref_slice %arg3[%12, %c0_i32_11] : memref<100x768xf32, #tpu.memory_space<any>> -> memref<1x768xf32, #tpu.memory_space<any>>
    %14 = tpu.memref_squeeze %13 : memref<1x768xf32, #tpu.memory_space<any>> -> memref<768xf32, #tpu.memory_space<any>>
    %c0_i32_12 = arith.constant 0 : i32
    %15 = tpu.memref_slice %arg10[%c0_i32_7, %c1_i32_8, %c0_i32_12] : memref<2x16x768xf32, #tpu.memory_space<vmem>> -> memref<1x1x768xf32, #tpu.memory_space<vmem>>
    %16 = tpu.memref_squeeze %15 : memref<1x1x768xf32, #tpu.memory_space<vmem>> -> memref<768xf32, #tpu.memory_space<vmem>>
    %17 = tpu.memref_slice %arg12[%c0_i32_9, %c1_i32_10] : memref<2x16x!tpu.dma_semaphore, #tpu.memory_space<semaphore_mem>> -> memref<1x1x!tpu.dma_semaphore, #tpu.memory_space<semaphore_mem>>
    %18 = tpu.memref_squeeze %17 : memref<1x1x!tpu.dma_semaphore, #tpu.memory_space<semaphore_mem>> -> memref<!tpu.dma_semaphore, #tpu.memory_space<semaphore_mem>>
    tpu.enqueue_dma source(%14 : memref<768xf32, #tpu.memory_space<any>>) target(%16 : memref<768xf32, #tpu.memory_space<vmem>>) target_semaphore(%18 : memref<!tpu.dma_semaphore, #tpu.memory_space<semaphore_mem>>)
    %c2_i32 = arith.constant 2 : i32
    %19 = arith.addi %0, %c2_i32 : i32
    %20 = arith.index_cast %19 : i32 to index
    %c0_13 = arith.constant 0 : index
    %21 = memref.load %arg1[%20, %c0_13] : memref<16x8xi32, #tpu.memory_space<smem>>
    %c0_i32_14 = arith.constant 0 : i32
    %c2_i32_15 = arith.constant 2 : i32
    %c0_i32_16 = arith.constant 0 : i32
    %c2_i32_17 = arith.constant 2 : i32
    %c0_i32_18 = arith.constant 0 : i32
    %22 = tpu.memref_slice %arg3[%21, %c0_i32_18] : memref<100x768xf32, #tpu.memory_space<any>> -> memref<1x768xf32, #tpu.memory_space<any>>
    %23 = tpu.memref_squeeze %22 : memref<1x768xf32, #tpu.memory_space<any>> -> memref<768xf32, #tpu.memory_space<any>>
    %c0_i32_19 = arith.constant 0 : i32
    %24 = tpu.memref_slice %arg10[%c0_i32_14, %c2_i32_15, %c0_i32_19] : memref<2x16x768xf32, #tpu.memory_space<vmem>> -> memref<1x1x768xf32, #tpu.memory_space<vmem>>
    %25 = tpu.memref_squeeze %24 : memref<1x1x768xf32, #tpu.memory_space<vmem>> -> memref<768xf32, #tpu.memory_space<vmem>>
    %26 = tpu.memref_slice %arg12[%c0_i32_16, %c2_i32_17] : memref<2x16x!tpu.dma_semaphore, #tpu.memory_space<semaphore_mem>> -> memref<1x1x!tpu.dma_semaphore, #tpu.memory_space<semaphore_mem>>
    %27 = tpu.memref_squeeze %26 : memref<1x1x!tpu.dma_semaphore, #tpu.memory_space<semaphore_mem>> -> memref<!tpu.dma_semaphore, #tpu.memory_space<semaphore_mem>>
    tpu.enqueue_dma source(%23 : memref<768xf32, #tpu.memory_space<any>>) target(%25 : memref<768xf32, #tpu.memory_space<vmem>>) target_semaphore(%27 : memref<!tpu.dma_semaphore, #tpu.memory_space<semaphore_mem>>)
    %c3_i32 = arith.constant 3 : i32
    %28 = arith.addi %0, %c3_i32 : i32
    %29 = arith.index_cast %28 : i32 to index
    %c0_20 = arith.constant 0 : index
    %30 = memref.load %arg1[%29, %c0_20] : memref<16x8xi32, #tpu.memory_space<smem>>
    %c0_i32_21 = arith.constant 0 : i32
    %c3_i32_22 = arith.constant 3 : i32
    %c0_i32_23 = arith.constant 0 : i32
    %c3_i32_24 = arith.constant 3 : i32
    %c0_i32_25 = arith.constant 0 : i32
    %31 = tpu.memref_slice %arg3[%30, %c0_i32_25] : memref<100x768xf32, #tpu.memory_space<any>> -> memref<1x768xf32, #tpu.memory_space<any>>
    %32 = tpu.memref_squeeze %31 : memref<1x768xf32, #tpu.memory_space<any>> -> memref<768xf32, #tpu.memory_space<any>>
    %c0_i32_26 = arith.constant 0 : i32
    %33 = tpu.memref_slice %arg10[%c0_i32_21, %c3_i32_22, %c0_i32_26] : memref<2x16x768xf32, #tpu.memory_space<vmem>> -> memref<1x1x768xf32, #tpu.memory_space<vmem>>
    %34 = tpu.memref_squeeze %33 : memref<1x1x768xf32, #tpu.memory_space<vmem>> -> memref<768xf32, #tpu.memory_space<vmem>>
    %35 = tpu.memref_slice %arg12[%c0_i32_23, %c3_i32_24] : memref<2x16x!tpu.dma_semaphore, #tpu.memory_space<semaphore_mem>> -> memref<1x1x!tpu.dma_semaphore, #tpu.memory_space<semaphore_mem>>
    %36 = tpu.memref_squeeze %35 : memref<1x1x!tpu.dma_semaphore, #tpu.memory_space<semaphore_mem>> -> memref<!tpu.dma_semaphore, #tpu.memory_space<semaphore_mem>>
    tpu.enqueue_dma source(%32 : memref<768xf32, #tpu.memory_space<any>>) target(%34 : memref<768xf32, #tpu.memory_space<vmem>>) target_semaphore(%36 : memref<!tpu.dma_semaphore, #tpu.memory_space<semaphore_mem>>)
    %c4_i32 = arith.constant 4 : i32
    %37 = arith.addi %0, %c4_i32 : i32
    %38 = arith.index_cast %37 : i32 to index
    %c0_27 = arith.constant 0 : index
    %39 = memref.load %arg1[%38, %c0_27] : memref<16x8xi32, #tpu.memory_space<smem>>
    %c0_i32_28 = arith.constant 0 : i32
    %c4_i32_29 = arith.constant 4 : i32
    %c0_i32_30 = arith.constant 0 : i32
    %c4_i32_31 = arith.constant 4 : i32
    %c0_i32_32 = arith.constant 0 : i32
    %40 = tpu.memref_slice %arg3[%39, %c0_i32_32] : memref<100x768xf32, #tpu.memory_space<any>> -> memref<1x768xf32, #tpu.memory_space<any>>
    %41 = tpu.memref_squeeze %40 : memref<1x768xf32, #tpu.memory_space<any>> -> memref<768xf32, #tpu.memory_space<any>>
    %c0_i32_33 = arith.constant 0 : i32
    %42 = tpu.memref_slice %arg10[%c0_i32_28, %c4_i32_29, %c0_i32_33] : memref<2x16x768xf32, #tpu.memory_space<vmem>> -> memref<1x1x768xf32, #tpu.memory_space<vmem>>
    %43 = tpu.memref_squeeze %42 : memref<1x1x768xf32, #tpu.memory_space<vmem>> -> memref<768xf32, #tpu.memory_space<vmem>>
    %44 = tpu.memref_slice %arg12[%c0_i32_30, %c4_i32_31] : memref<2x16x!tpu.dma_semaphore, #tpu.memory_space<semaphore_mem>> -> memref<1x1x!tpu.dma_semaphore, #tpu.memory_space<semaphore_mem>>
    %45 = tpu.memref_squeeze %44 : memref<1x1x!tpu.dma_semaphore, #tpu.memory_space<semaphore_mem>> -> memref<!tpu.dma_semaphore, #tpu.memory_space<semaphore_mem>>
    tpu.enqueue_dma source(%41 : memref<768xf32, #tpu.memory_space<any>>) target(%43 : memref<768xf32, #tpu.memory_space<vmem>>) target_semaphore(%45 : memref<!tpu.dma_semaphore, #tpu.memory_space<semaphore_mem>>)
    %c5_i32 = arith.constant 5 : i32
    %46 = arith.addi %0, %c5_i32 : i32
    %47 = arith.index_cast %46 : i32 to index
    %c0_34 = arith.constant 0 : index
    %48 = memref.load %arg1[%47, %c0_34] : memref<16x8xi32, #tpu.memory_space<smem>>
    %c0_i32_35 = arith.constant 0 : i32
    %c5_i32_36 = arith.constant 5 : i32
    %c0_i32_37 = arith.constant 0 : i32
    %c5_i32_38 = arith.constant 5 : i32
    %c0_i32_39 = arith.constant 0 : i32
    %49 = tpu.memref_slice %arg3[%48, %c0_i32_39] : memref<100x768xf32, #tpu.memory_space<any>> -> memref<1x768xf32, #tpu.memory_space<any>>
    %50 = tpu.memref_squeeze %49 : memref<1x768xf32, #tpu.memory_space<any>> -> memref<768xf32, #tpu.memory_space<any>>
    %c0_i32_40 = arith.constant 0 : i32
    %51 = tpu.memref_slice %arg10[%c0_i32_35, %c5_i32_36, %c0_i32_40] : memref<2x16x768xf32, #tpu.memory_space<vmem>> -> memref<1x1x768xf32, #tpu.memory_space<vmem>>
    %52 = tpu.memref_squeeze %51 : memref<1x1x768xf32, #tpu.memory_space<vmem>> -> memref<768xf32, #tpu.memory_space<vmem>>
    %53 = tpu.memref_slice %arg12[%c0_i32_37, %c5_i32_38] : memref<2x16x!tpu.dma_semaphore, #tpu.memory_space<semaphore_mem>> -> memref<1x1x!tpu.dma_semaphore, #tpu.memory_space<semaphore_mem>>
    %54 = tpu.memref_squeeze %53 : memref<1x1x!tpu.dma_semaphore, #tpu.memory_space<semaphore_mem>> -> memref<!tpu.dma_semaphore, #tpu.memory_space<semaphore_mem>>
    tpu.enqueue_dma source(%50 : memref<768xf32, #tpu.memory_space<any>>) target(%52 : memref<768xf32, #tpu.memory_space<vmem>>) target_semaphore(%54 : memref<!tpu.dma_semaphore, #tpu.memory_space<semaphore_mem>>)
    %c6_i32 = arith.constant 6 : i32
    %55 = arith.addi %0, %c6_i32 : i32
    %56 = arith.index_cast %55 : i32 to index
    %c0_41 = arith.constant 0 : index
    %57 = memref.load %arg1[%56, %c0_41] : memref<16x8xi32, #tpu.memory_space<smem>>
    %c0_i32_42 = arith.constant 0 : i32
    %c6_i32_43 = arith.constant 6 : i32
    %c0_i32_44 = arith.constant 0 : i32
    %c6_i32_45 = arith.constant 6 : i32
    %c0_i32_46 = arith.constant 0 : i32
    %58 = tpu.memref_slice %arg3[%57, %c0_i32_46] : memref<100x768xf32, #tpu.memory_space<any>> -> memref<1x768xf32, #tpu.memory_space<any>>
    %59 = tpu.memref_squeeze %58 : memref<1x768xf32, #tpu.memory_space<any>> -> memref<768xf32, #tpu.memory_space<any>>
    %c0_i32_47 = arith.constant 0 : i32
    %60 = tpu.memref_slice %arg10[%c0_i32_42, %c6_i32_43, %c0_i32_47] : memref<2x16x768xf32, #tpu.memory_space<vmem>> -> memref<1x1x768xf32, #tpu.memory_space<vmem>>
    %61 = tpu.memref_squeeze %60 : memref<1x1x768xf32, #tpu.memory_space<vmem>> -> memref<768xf32, #tpu.memory_space<vmem>>
    %62 = tpu.memref_slice %arg12[%c0_i32_44, %c6_i32_45] : memref<2x16x!tpu.dma_semaphore, #tpu.memory_space<semaphore_mem>> -> memref<1x1x!tpu.dma_semaphore, #tpu.memory_space<semaphore_mem>>
    %63 = tpu.memref_squeeze %62 : memref<1x1x!tpu.dma_semaphore, #tpu.memory_space<semaphore_mem>> -> memref<!tpu.dma_semaphore, #tpu.memory_space<semaphore_mem>>
    tpu.enqueue_dma source(%59 : memref<768xf32, #tpu.memory_space<any>>) target(%61 : memref<768xf32, #tpu.memory_space<vmem>>) target_semaphore(%63 : memref<!tpu.dma_semaphore, #tpu.memory_space<semaphore_mem>>)
    %c7_i32 = arith.constant 7 : i32
    %64 = arith.addi %0, %c7_i32 : i32
    %65 = arith.index_cast %64 : i32 to index
    %c0_48 = arith.constant 0 : index
    %66 = memref.load %arg1[%65, %c0_48] : memref<16x8xi32, #tpu.memory_space<smem>>
    %c0_i32_49 = arith.constant 0 : i32
    %c7_i32_50 = arith.constant 7 : i32
    %c0_i32_51 = arith.constant 0 : i32
    %c7_i32_52 = arith.constant 7 : i32
    %c0_i32_53 = arith.constant 0 : i32
    %67 = tpu.memref_slice %arg3[%66, %c0_i32_53] : memref<100x768xf32, #tpu.memory_space<any>> -> memref<1x768xf32, #tpu.memory_space<any>>
    %68 = tpu.memref_squeeze %67 : memref<1x768xf32, #tpu.memory_space<any>> -> memref<768xf32, #tpu.memory_space<any>>
    %c0_i32_54 = arith.constant 0 : i32
    %69 = tpu.memref_slice %arg10[%c0_i32_49, %c7_i32_50, %c0_i32_54] : memref<2x16x768xf32, #tpu.memory_space<vmem>> -> memref<1x1x768xf32, #tpu.memory_space<vmem>>
    %70 = tpu.memref_squeeze %69 : memref<1x1x768xf32, #tpu.memory_space<vmem>> -> memref<768xf32, #tpu.memory_space<vmem>>
    %71 = tpu.memref_slice %arg12[%c0_i32_51, %c7_i32_52] : memref<2x16x!tpu.dma_semaphore, #tpu.memory_space<semaphore_mem>> -> memref<1x1x!tpu.dma_semaphore, #tpu.memory_space<semaphore_mem>>
    %72 = tpu.memref_squeeze %71 : memref<1x1x!tpu.dma_semaphore, #tpu.memory_space<semaphore_mem>> -> memref<!tpu.dma_semaphore, #tpu.memory_space<semaphore_mem>>
    tpu.enqueue_dma source(%68 : memref<768xf32, #tpu.memory_space<any>>) target(%70 : memref<768xf32, #tpu.memory_space<vmem>>) target_semaphore(%72 : memref<!tpu.dma_semaphore, #tpu.memory_space<semaphore_mem>>)
    %c8_i32 = arith.constant 8 : i32
    %73 = arith.addi %0, %c8_i32 : i32
    %74 = arith.index_cast %73 : i32 to index
    %c0_55 = arith.constant 0 : index
    %75 = memref.load %arg1[%74, %c0_55] : memref<16x8xi32, #tpu.memory_space<smem>>
    %c0_i32_56 = arith.constant 0 : i32
    %c8_i32_57 = arith.constant 8 : i32
    %c0_i32_58 = arith.constant 0 : i32
    %c8_i32_59 = arith.constant 8 : i32
    %c0_i32_60 = arith.constant 0 : i32
    %76 = tpu.memref_slice %arg3[%75, %c0_i32_60] : memref<100x768xf32, #tpu.memory_space<any>> -> memref<1x768xf32, #tpu.memory_space<any>>
    %77 = tpu.memref_squeeze %76 : memref<1x768xf32, #tpu.memory_space<any>> -> memref<768xf32, #tpu.memory_space<any>>
    %c0_i32_61 = arith.constant 0 : i32
    %78 = tpu.memref_slice %arg10[%c0_i32_56, %c8_i32_57, %c0_i32_61] : memref<2x16x768xf32, #tpu.memory_space<vmem>> -> memref<1x1x768xf32, #tpu.memory_space<vmem>>
    %79 = tpu.memref_squeeze %78 : memref<1x1x768xf32, #tpu.memory_space<vmem>> -> memref<768xf32, #tpu.memory_space<vmem>>
    %80 = tpu.memref_slice %arg12[%c0_i32_58, %c8_i32_59] : memref<2x16x!tpu.dma_semaphore, #tpu.memory_space<semaphore_mem>> -> memref<1x1x!tpu.dma_semaphore, #tpu.memory_space<semaphore_mem>>
    %81 = tpu.memref_squeeze %80 : memref<1x1x!tpu.dma_semaphore, #tpu.memory_space<semaphore_mem>> -> memref<!tpu.dma_semaphore, #tpu.memory_space<semaphore_mem>>
    tpu.enqueue_dma source(%77 : memref<768xf32, #tpu.memory_space<any>>) target(%79 : memref<768xf32, #tpu.memory_space<vmem>>) target_semaphore(%81 : memref<!tpu.dma_semaphore, #tpu.memory_space<semaphore_mem>>)
    %c9_i32 = arith.constant 9 : i32
    %82 = arith.addi %0, %c9_i32 : i32
    %83 = arith.index_cast %82 : i32 to index
    %c0_62 = arith.constant 0 : index
    %84 = memref.load %arg1[%83, %c0_62] : memref<16x8xi32, #tpu.memory_space<smem>>
    %c0_i32_63 = arith.constant 0 : i32
    %c9_i32_64 = arith.constant 9 : i32
    %c0_i32_65 = arith.constant 0 : i32
    %c9_i32_66 = arith.constant 9 : i32
    %c0_i32_67 = arith.constant 0 : i32
    %85 = tpu.memref_slice %arg3[%84, %c0_i32_67] : memref<100x768xf32, #tpu.memory_space<any>> -> memref<1x768xf32, #tpu.memory_space<any>>
    %86 = tpu.memref_squeeze %85 : memref<1x768xf32, #tpu.memory_space<any>> -> memref<768xf32, #tpu.memory_space<any>>
    %c0_i32_68 = arith.constant 0 : i32
    %87 = tpu.memref_slice %arg10[%c0_i32_63, %c9_i32_64, %c0_i32_68] : memref<2x16x768xf32, #tpu.memory_space<vmem>> -> memref<1x1x768xf32, #tpu.memory_space<vmem>>
    %88 = tpu.memref_squeeze %87 : memref<1x1x768xf32, #tpu.memory_space<vmem>> -> memref<768xf32, #tpu.memory_space<vmem>>
    %89 = tpu.memref_slice %arg12[%c0_i32_65, %c9_i32_66] : memref<2x16x!tpu.dma_semaphore, #tpu.memory_space<semaphore_mem>> -> memref<1x1x!tpu.dma_semaphore, #tpu.memory_space<semaphore_mem>>
    %90 = tpu.memref_squeeze %89 : memref<1x1x!tpu.dma_semaphore, #tpu.memory_space<semaphore_mem>> -> memref<!tpu.dma_semaphore, #tpu.memory_space<semaphore_mem>>
    tpu.enqueue_dma source(%86 : memref<768xf32, #tpu.memory_space<any>>) target(%88 : memref<768xf32, #tpu.memory_space<vmem>>) target_semaphore(%90 : memref<!tpu.dma_semaphore, #tpu.memory_space<semaphore_mem>>)
    %c10_i32 = arith.constant 10 : i32
    %91 = arith.addi %0, %c10_i32 : i32
    %92 = arith.index_cast %91 : i32 to index
    %c0_69 = arith.constant 0 : index
    %93 = memref.load %arg1[%92, %c0_69] : memref<16x8xi32, #tpu.memory_space<smem>>
    %c0_i32_70 = arith.constant 0 : i32
    %c10_i32_71 = arith.constant 10 : i32
    %c0_i32_72 = arith.constant 0 : i32
    %c10_i32_73 = arith.constant 10 : i32
    %c0_i32_74 = arith.constant 0 : i32
    %94 = tpu.memref_slice %arg3[%93, %c0_i32_74] : memref<100x768xf32, #tpu.memory_space<any>> -> memref<1x768xf32, #tpu.memory_space<any>>
    %95 = tpu.memref_squeeze %94 : memref<1x768xf32, #tpu.memory_space<any>> -> memref<768xf32, #tpu.memory_space<any>>
    %c0_i32_75 = arith.constant 0 : i32
    %96 = tpu.memref_slice %arg10[%c0_i32_70, %c10_i32_71, %c0_i32_75] : memref<2x16x768xf32, #tpu.memory_space<vmem>> -> memref<1x1x768xf32, #tpu.memory_space<vmem>>
    %97 = tpu.memref_squeeze %96 : memref<1x1x768xf32, #tpu.memory_space<vmem>> -> memref<768xf32, #tpu.memory_space<vmem>>
    %98 = tpu.memref_slice %arg12[%c0_i32_72, %c10_i32_73] : memref<2x16x!tpu.dma_semaphore, #tpu.memory_space<semaphore_mem>> -> memref<1x1x!tpu.dma_semaphore, #tpu.memory_space<semaphore_mem>>
    %99 = tpu.memref_squeeze %98 : memref<1x1x!tpu.dma_semaphore, #tpu.memory_space<semaphore_mem>> -> memref<!tpu.dma_semaphore, #tpu.memory_space<semaphore_mem>>
    tpu.enqueue_dma source(%95 : memref<768xf32, #tpu.memory_space<any>>) target(%97 : memref<768xf32, #tpu.memory_space<vmem>>) target_semaphore(%99 : memref<!tpu.dma_semaphore, #tpu.memory_space<semaphore_mem>>)
    %c11_i32 = arith.constant 11 : i32
    %100 = arith.addi %0, %c11_i32 : i32
    %101 = arith.index_cast %100 : i32 to index
    %c0_76 = arith.constant 0 : index
    %102 = memref.load %arg1[%101, %c0_76] : memref<16x8xi32, #tpu.memory_space<smem>>
    %c0_i32_77 = arith.constant 0 : i32
    %c11_i32_78 = arith.constant 11 : i32
    %c0_i32_79 = arith.constant 0 : i32
    %c11_i32_80 = arith.constant 11 : i32
    %c0_i32_81 = arith.constant 0 : i32
    %103 = tpu.memref_slice %arg3[%102, %c0_i32_81] : memref<100x768xf32, #tpu.memory_space<any>> -> memref<1x768xf32, #tpu.memory_space<any>>
    %104 = tpu.memref_squeeze %103 : memref<1x768xf32, #tpu.memory_space<any>> -> memref<768xf32, #tpu.memory_space<any>>
    %c0_i32_82 = arith.constant 0 : i32
    %105 = tpu.memref_slice %arg10[%c0_i32_77, %c11_i32_78, %c0_i32_82] : memref<2x16x768xf32, #tpu.memory_space<vmem>> -> memref<1x1x768xf32, #tpu.memory_space<vmem>>
    %106 = tpu.memref_squeeze %105 : memref<1x1x768xf32, #tpu.memory_space<vmem>> -> memref<768xf32, #tpu.memory_space<vmem>>
    %107 = tpu.memref_slice %arg12[%c0_i32_79, %c11_i32_80] : memref<2x16x!tpu.dma_semaphore, #tpu.memory_space<semaphore_mem>> -> memref<1x1x!tpu.dma_semaphore, #tpu.memory_space<semaphore_mem>>
    %108 = tpu.memref_squeeze %107 : memref<1x1x!tpu.dma_semaphore, #tpu.memory_space<semaphore_mem>> -> memref<!tpu.dma_semaphore, #tpu.memory_space<semaphore_mem>>
    tpu.enqueue_dma source(%104 : memref<768xf32, #tpu.memory_space<any>>) target(%106 : memref<768xf32, #tpu.memory_space<vmem>>) target_semaphore(%108 : memref<!tpu.dma_semaphore, #tpu.memory_space<semaphore_mem>>)
    %c12_i32 = arith.constant 12 : i32
    %109 = arith.addi %0, %c12_i32 : i32
    %110 = arith.index_cast %109 : i32 to index
    %c0_83 = arith.constant 0 : index
    %111 = memref.load %arg1[%110, %c0_83] : memref<16x8xi32, #tpu.memory_space<smem>>
    %c0_i32_84 = arith.constant 0 : i32
    %c12_i32_85 = arith.constant 12 : i32
    %c0_i32_86 = arith.constant 0 : i32
    %c12_i32_87 = arith.constant 12 : i32
    %c0_i32_88 = arith.constant 0 : i32
    %112 = tpu.memref_slice %arg3[%111, %c0_i32_88] : memref<100x768xf32, #tpu.memory_space<any>> -> memref<1x768xf32, #tpu.memory_space<any>>
    %113 = tpu.memref_squeeze %112 : memref<1x768xf32, #tpu.memory_space<any>> -> memref<768xf32, #tpu.memory_space<any>>
    %c0_i32_89 = arith.constant 0 : i32
    %114 = tpu.memref_slice %arg10[%c0_i32_84, %c12_i32_85, %c0_i32_89] : memref<2x16x768xf32, #tpu.memory_space<vmem>> -> memref<1x1x768xf32, #tpu.memory_space<vmem>>
    %115 = tpu.memref_squeeze %114 : memref<1x1x768xf32, #tpu.memory_space<vmem>> -> memref<768xf32, #tpu.memory_space<vmem>>
    %116 = tpu.memref_slice %arg12[%c0_i32_86, %c12_i32_87] : memref<2x16x!tpu.dma_semaphore, #tpu.memory_space<semaphore_mem>> -> memref<1x1x!tpu.dma_semaphore, #tpu.memory_space<semaphore_mem>>
    %117 = tpu.memref_squeeze %116 : memref<1x1x!tpu.dma_semaphore, #tpu.memory_space<semaphore_mem>> -> memref<!tpu.dma_semaphore, #tpu.memory_space<semaphore_mem>>
    tpu.enqueue_dma source(%113 : memref<768xf32, #tpu.memory_space<any>>) target(%115 : memref<768xf32, #tpu.memory_space<vmem>>) target_semaphore(%117 : memref<!tpu.dma_semaphore, #tpu.memory_space<semaphore_mem>>)
    %c13_i32 = arith.constant 13 : i32
    %118 = arith.addi %0, %c13_i32 : i32
    %119 = arith.index_cast %118 : i32 to index
    %c0_90 = arith.constant 0 : index
    %120 = memref.load %arg1[%119, %c0_90] : memref<16x8xi32, #tpu.memory_space<smem>>
    %c0_i32_91 = arith.constant 0 : i32
    %c13_i32_92 = arith.constant 13 : i32
    %c0_i32_93 = arith.constant 0 : i32
    %c13_i32_94 = arith.constant 13 : i32
    %c0_i32_95 = arith.constant 0 : i32
    %121 = tpu.memref_slice %arg3[%120, %c0_i32_95] : memref<100x768xf32, #tpu.memory_space<any>> -> memref<1x768xf32, #tpu.memory_space<any>>
    %122 = tpu.memref_squeeze %121 : memref<1x768xf32, #tpu.memory_space<any>> -> memref<768xf32, #tpu.memory_space<any>>
    %c0_i32_96 = arith.constant 0 : i32
    %123 = tpu.memref_slice %arg10[%c0_i32_91, %c13_i32_92, %c0_i32_96] : memref<2x16x768xf32, #tpu.memory_space<vmem>> -> memref<1x1x768xf32, #tpu.memory_space<vmem>>
    %124 = tpu.memref_squeeze %123 : memref<1x1x768xf32, #tpu.memory_space<vmem>> -> memref<768xf32, #tpu.memory_space<vmem>>
    %125 = tpu.memref_slice %arg12[%c0_i32_93, %c13_i32_94] : memref<2x16x!tpu.dma_semaphore, #tpu.memory_space<semaphore_mem>> -> memref<1x1x!tpu.dma_semaphore, #tpu.memory_space<semaphore_mem>>
    %126 = tpu.memref_squeeze %125 : memref<1x1x!tpu.dma_semaphore, #tpu.memory_space<semaphore_mem>> -> memref<!tpu.dma_semaphore, #tpu.memory_space<semaphore_mem>>
    tpu.enqueue_dma source(%122 : memref<768xf32, #tpu.memory_space<any>>) target(%124 : memref<768xf32, #tpu.memory_space<vmem>>) target_semaphore(%126 : memref<!tpu.dma_semaphore, #tpu.memory_space<semaphore_mem>>)
    %c14_i32 = arith.constant 14 : i32
    %127 = arith.addi %0, %c14_i32 : i32
    %128 = arith.index_cast %127 : i32 to index
    %c0_97 = arith.constant 0 : index
    %129 = memref.load %arg1[%128, %c0_97] : memref<16x8xi32, #tpu.memory_space<smem>>
    %c0_i32_98 = arith.constant 0 : i32
    %c14_i32_99 = arith.constant 14 : i32
    %c0_i32_100 = arith.constant 0 : i32
    %c14_i32_101 = arith.constant 14 : i32
    %c0_i32_102 = arith.constant 0 : i32
    %130 = tpu.memref_slice %arg3[%129, %c0_i32_102] : memref<100x768xf32, #tpu.memory_space<any>> -> memref<1x768xf32, #tpu.memory_space<any>>
    %131 = tpu.memref_squeeze %130 : memref<1x768xf32, #tpu.memory_space<any>> -> memref<768xf32, #tpu.memory_space<any>>
    %c0_i32_103 = arith.constant 0 : i32
    %132 = tpu.memref_slice %arg10[%c0_i32_98, %c14_i32_99, %c0_i32_103] : memref<2x16x768xf32, #tpu.memory_space<vmem>> -> memref<1x1x768xf32, #tpu.memory_space<vmem>>
    %133 = tpu.memref_squeeze %132 : memref<1x1x768xf32, #tpu.memory_space<vmem>> -> memref<768xf32, #tpu.memory_space<vmem>>
    %134 = tpu.memref_slice %arg12[%c0_i32_100, %c14_i32_101] : memref<2x16x!tpu.dma_semaphore, #tpu.memory_space<semaphore_mem>> -> memref<1x1x!tpu.dma_semaphore, #tpu.memory_space<semaphore_mem>>
    %135 = tpu.memref_squeeze %134 : memref<1x1x!tpu.dma_semaphore, #tpu.memory_space<semaphore_mem>> -> memref<!tpu.dma_semaphore, #tpu.memory_space<semaphore_mem>>
    tpu.enqueue_dma source(%131 : memref<768xf32, #tpu.memory_space<any>>) target(%133 : memref<768xf32, #tpu.memory_space<vmem>>) target_semaphore(%135 : memref<!tpu.dma_semaphore, #tpu.memory_space<semaphore_mem>>)
    %c15_i32 = arith.constant 15 : i32
    %136 = arith.addi %0, %c15_i32 : i32
    %137 = arith.index_cast %136 : i32 to index
    %c0_104 = arith.constant 0 : index
    %138 = memref.load %arg1[%137, %c0_104] : memref<16x8xi32, #tpu.memory_space<smem>>
    %c0_i32_105 = arith.constant 0 : i32
    %c15_i32_106 = arith.constant 15 : i32
    %c0_i32_107 = arith.constant 0 : i32
    %c15_i32_108 = arith.constant 15 : i32
    %c0_i32_109 = arith.constant 0 : i32
    %139 = tpu.memref_slice %arg3[%138, %c0_i32_109] : memref<100x768xf32, #tpu.memory_space<any>> -> memref<1x768xf32, #tpu.memory_space<any>>
    %140 = tpu.memref_squeeze %139 : memref<1x768xf32, #tpu.memory_space<any>> -> memref<768xf32, #tpu.memory_space<any>>
    %c0_i32_110 = arith.constant 0 : i32
    %141 = tpu.memref_slice %arg10[%c0_i32_105, %c15_i32_106, %c0_i32_110] : memref<2x16x768xf32, #tpu.memory_space<vmem>> -> memref<1x1x768xf32, #tpu.memory_space<vmem>>
    %142 = tpu.memref_squeeze %141 : memref<1x1x768xf32, #tpu.memory_space<vmem>> -> memref<768xf32, #tpu.memory_space<vmem>>
    %143 = tpu.memref_slice %arg12[%c0_i32_107, %c15_i32_108] : memref<2x16x!tpu.dma_semaphore, #tpu.memory_space<semaphore_mem>> -> memref<1x1x!tpu.dma_semaphore, #tpu.memory_space<semaphore_mem>>
    %144 = tpu.memref_squeeze %143 : memref<1x1x!tpu.dma_semaphore, #tpu.memory_space<semaphore_mem>> -> memref<!tpu.dma_semaphore, #tpu.memory_space<semaphore_mem>>
    tpu.enqueue_dma source(%140 : memref<768xf32, #tpu.memory_space<any>>) target(%142 : memref<768xf32, #tpu.memory_space<vmem>>) target_semaphore(%144 : memref<!tpu.dma_semaphore, #tpu.memory_space<semaphore_mem>>)
    %cst = arith.constant 0.000000e+00 : f32
    %145 = vector.broadcast %cst : f32 to vector<16x768xf32>
    %c0_111 = arith.constant 0 : index
    %c0_112 = arith.constant 0 : index
    %146 = vector.load %arg11[%c0_111, %c0_112] : memref<16x768xf32, #tpu.memory_space<vmem>>, vector<16x768xf32>
    tpu.vector_store %arg11[%c0_111, %c0_112], %145 {strides = array<i32>} : memref<16x768xf32, #tpu.memory_space<vmem>>, vector<16x768xf32>,
    %c0_i32_113 = arith.constant 0 : i32
    %c8_i32_114 = arith.constant 8 : i32
    %147 = arith.addi %c0_i32_113, %c8_i32_114 : i32
    %c1_i32_115 = arith.constant 1 : i32
    scf.for %arg13 = %c0_i32_113 to %147 step %c1_i32_115  : i32 {
      %c1_i32_135 = arith.constant 1 : i32
      %170 = arith.muli %arg13, %c1_i32_135 : i32
      %c0_i32_136 = arith.constant 0 : i32
      %171 = arith.addi %c0_i32_136, %170 : i32
      %c1_i32_137 = arith.constant 1 : i32
      %172 = arith.andi %171, %c1_i32_137 : i32
      %c0_i32_138 = arith.constant 0 : i32
      %c0_i32_139 = arith.constant 0 : i32
      %c0_i32_140 = arith.constant 0 : i32
      %c0_i32_141 = arith.constant 0 : i32
      %173 = tpu.memref_slice %arg3[%c0_i32_138, %c0_i32_141] : memref<100x768xf32, #tpu.memory_space<any>> -> memref<1x768xf32, #tpu.memory_space<any>>
      %174 = tpu.memref_squeeze %173 : memref<1x768xf32, #tpu.memory_space<any>> -> memref<768xf32, #tpu.memory_space<any>>
      %c0_i32_142 = arith.constant 0 : i32
      %175 = tpu.memref_slice %arg10[%172, %c0_i32_139, %c0_i32_142] : memref<2x16x768xf32, #tpu.memory_space<vmem>> -> memref<1x1x768xf32, #tpu.memory_space<vmem>>
      %176 = tpu.memref_squeeze %175 : memref<1x1x768xf32, #tpu.memory_space<vmem>> -> memref<768xf32, #tpu.memory_space<vmem>>
      %177 = tpu.memref_slice %arg12[%172, %c0_i32_140] : memref<2x16x!tpu.dma_semaphore, #tpu.memory_space<semaphore_mem>> -> memref<1x1x!tpu.dma_semaphore, #tpu.memory_space<semaphore_mem>>
      %178 = tpu.memref_squeeze %177 : memref<1x1x!tpu.dma_semaphore, #tpu.memory_space<semaphore_mem>> -> memref<!tpu.dma_semaphore, #tpu.memory_space<semaphore_mem>>
      tpu.wait_dma2 semaphore(%178 : memref<!tpu.dma_semaphore, #tpu.memory_space<semaphore_mem>>) src(%174 : memref<768xf32, #tpu.memory_space<any>>) dst(%176 : memref<768xf32, #tpu.memory_space<vmem>>)
      %c0_i32_143 = arith.constant 0 : i32
      %c1_i32_144 = arith.constant 1 : i32
      %c1_i32_145 = arith.constant 1 : i32
      %c0_i32_146 = arith.constant 0 : i32
      %179 = tpu.memref_slice %arg3[%c0_i32_143, %c0_i32_146] : memref<100x768xf32, #tpu.memory_space<any>> -> memref<1x768xf32, #tpu.memory_space<any>>
      %180 = tpu.memref_squeeze %179 : memref<1x768xf32, #tpu.memory_space<any>> -> memref<768xf32, #tpu.memory_space<any>>
      %c0_i32_147 = arith.constant 0 : i32
      %181 = tpu.memref_slice %arg10[%172, %c1_i32_144, %c0_i32_147] : memref<2x16x768xf32, #tpu.memory_space<vmem>> -> memref<1x1x768xf32, #tpu.memory_space<vmem>>
      %182 = tpu.memref_squeeze %181 : memref<1x1x768xf32, #tpu.memory_space<vmem>> -> memref<768xf32, #tpu.memory_space<vmem>>
      %183 = tpu.memref_slice %arg12[%172, %c1_i32_145] : memref<2x16x!tpu.dma_semaphore, #tpu.memory_space<semaphore_mem>> -> memref<1x1x!tpu.dma_semaphore, #tpu.memory_space<semaphore_mem>>
      %184 = tpu.memref_squeeze %183 : memref<1x1x!tpu.dma_semaphore, #tpu.memory_space<semaphore_mem>> -> memref<!tpu.dma_semaphore, #tpu.memory_space<semaphore_mem>>
      tpu.wait_dma2 semaphore(%184 : memref<!tpu.dma_semaphore, #tpu.memory_space<semaphore_mem>>) src(%180 : memref<768xf32, #tpu.memory_space<any>>) dst(%182 : memref<768xf32, #tpu.memory_space<vmem>>)
      %c0_i32_148 = arith.constant 0 : i32
      %c2_i32_149 = arith.constant 2 : i32
      %c2_i32_150 = arith.constant 2 : i32
      %c0_i32_151 = arith.constant 0 : i32
      %185 = tpu.memref_slice %arg3[%c0_i32_148, %c0_i32_151] : memref<100x768xf32, #tpu.memory_space<any>> -> memref<1x768xf32, #tpu.memory_space<any>>
      %186 = tpu.memref_squeeze %185 : memref<1x768xf32, #tpu.memory_space<any>> -> memref<768xf32, #tpu.memory_space<any>>
      %c0_i32_152 = arith.constant 0 : i32
      %187 = tpu.memref_slice %arg10[%172, %c2_i32_149, %c0_i32_152] : memref<2x16x768xf32, #tpu.memory_space<vmem>> -> memref<1x1x768xf32, #tpu.memory_space<vmem>>
      %188 = tpu.memref_squeeze %187 : memref<1x1x768xf32, #tpu.memory_space<vmem>> -> memref<768xf32, #tpu.memory_space<vmem>>
      %189 = tpu.memref_slice %arg12[%172, %c2_i32_150] : memref<2x16x!tpu.dma_semaphore, #tpu.memory_space<semaphore_mem>> -> memref<1x1x!tpu.dma_semaphore, #tpu.memory_space<semaphore_mem>>
      %190 = tpu.memref_squeeze %189 : memref<1x1x!tpu.dma_semaphore, #tpu.memory_space<semaphore_mem>> -> memref<!tpu.dma_semaphore, #tpu.memory_space<semaphore_mem>>
      tpu.wait_dma2 semaphore(%190 : memref<!tpu.dma_semaphore, #tpu.memory_space<semaphore_mem>>) src(%186 : memref<768xf32, #tpu.memory_space<any>>) dst(%188 : memref<768xf32, #tpu.memory_space<vmem>>)
      %c0_i32_153 = arith.constant 0 : i32
      %c3_i32_154 = arith.constant 3 : i32
      %c3_i32_155 = arith.constant 3 : i32
      %c0_i32_156 = arith.constant 0 : i32
      %191 = tpu.memref_slice %arg3[%c0_i32_153, %c0_i32_156] : memref<100x768xf32, #tpu.memory_space<any>> -> memref<1x768xf32, #tpu.memory_space<any>>
      %192 = tpu.memref_squeeze %191 : memref<1x768xf32, #tpu.memory_space<any>> -> memref<768xf32, #tpu.memory_space<any>>
      %c0_i32_157 = arith.constant 0 : i32
      %193 = tpu.memref_slice %arg10[%172, %c3_i32_154, %c0_i32_157] : memref<2x16x768xf32, #tpu.memory_space<vmem>> -> memref<1x1x768xf32, #tpu.memory_space<vmem>>
      %194 = tpu.memref_squeeze %193 : memref<1x1x768xf32, #tpu.memory_space<vmem>> -> memref<768xf32, #tpu.memory_space<vmem>>
      %195 = tpu.memref_slice %arg12[%172, %c3_i32_155] : memref<2x16x!tpu.dma_semaphore, #tpu.memory_space<semaphore_mem>> -> memref<1x1x!tpu.dma_semaphore, #tpu.memory_space<semaphore_mem>>
      %196 = tpu.memref_squeeze %195 : memref<1x1x!tpu.dma_semaphore, #tpu.memory_space<semaphore_mem>> -> memref<!tpu.dma_semaphore, #tpu.memory_space<semaphore_mem>>
      tpu.wait_dma2 semaphore(%196 : memref<!tpu.dma_semaphore, #tpu.memory_space<semaphore_mem>>) src(%192 : memref<768xf32, #tpu.memory_space<any>>) dst(%194 : memref<768xf32, #tpu.memory_space<vmem>>)
      %c0_i32_158 = arith.constant 0 : i32
      %c4_i32_159 = arith.constant 4 : i32
      %c4_i32_160 = arith.constant 4 : i32
      %c0_i32_161 = arith.constant 0 : i32
      %197 = tpu.memref_slice %arg3[%c0_i32_158, %c0_i32_161] : memref<100x768xf32, #tpu.memory_space<any>> -> memref<1x768xf32, #tpu.memory_space<any>>
      %198 = tpu.memref_squeeze %197 : memref<1x768xf32, #tpu.memory_space<any>> -> memref<768xf32, #tpu.memory_space<any>>
      %c0_i32_162 = arith.constant 0 : i32
      %199 = tpu.memref_slice %arg10[%172, %c4_i32_159, %c0_i32_162] : memref<2x16x768xf32, #tpu.memory_space<vmem>> -> memref<1x1x768xf32, #tpu.memory_space<vmem>>
      %200 = tpu.memref_squeeze %199 : memref<1x1x768xf32, #tpu.memory_space<vmem>> -> memref<768xf32, #tpu.memory_space<vmem>>
      %201 = tpu.memref_slice %arg12[%172, %c4_i32_160] : memref<2x16x!tpu.dma_semaphore, #tpu.memory_space<semaphore_mem>> -> memref<1x1x!tpu.dma_semaphore, #tpu.memory_space<semaphore_mem>>
      %202 = tpu.memref_squeeze %201 : memref<1x1x!tpu.dma_semaphore, #tpu.memory_space<semaphore_mem>> -> memref<!tpu.dma_semaphore, #tpu.memory_space<semaphore_mem>>
      tpu.wait_dma2 semaphore(%202 : memref<!tpu.dma_semaphore, #tpu.memory_space<semaphore_mem>>) src(%198 : memref<768xf32, #tpu.memory_space<any>>) dst(%200 : memref<768xf32, #tpu.memory_space<vmem>>)
      %c0_i32_163 = arith.constant 0 : i32
      %c5_i32_164 = arith.constant 5 : i32
      %c5_i32_165 = arith.constant 5 : i32
      %c0_i32_166 = arith.constant 0 : i32
      %203 = tpu.memref_slice %arg3[%c0_i32_163, %c0_i32_166] : memref<100x768xf32, #tpu.memory_space<any>> -> memref<1x768xf32, #tpu.memory_space<any>>
      %204 = tpu.memref_squeeze %203 : memref<1x768xf32, #tpu.memory_space<any>> -> memref<768xf32, #tpu.memory_space<any>>
      %c0_i32_167 = arith.constant 0 : i32
      %205 = tpu.memref_slice %arg10[%172, %c5_i32_164, %c0_i32_167] : memref<2x16x768xf32, #tpu.memory_space<vmem>> -> memref<1x1x768xf32, #tpu.memory_space<vmem>>
      %206 = tpu.memref_squeeze %205 : memref<1x1x768xf32, #tpu.memory_space<vmem>> -> memref<768xf32, #tpu.memory_space<vmem>>
      %207 = tpu.memref_slice %arg12[%172, %c5_i32_165] : memref<2x16x!tpu.dma_semaphore, #tpu.memory_space<semaphore_mem>> -> memref<1x1x!tpu.dma_semaphore, #tpu.memory_space<semaphore_mem>>
      %208 = tpu.memref_squeeze %207 : memref<1x1x!tpu.dma_semaphore, #tpu.memory_space<semaphore_mem>> -> memref<!tpu.dma_semaphore, #tpu.memory_space<semaphore_mem>>
      tpu.wait_dma2 semaphore(%208 : memref<!tpu.dma_semaphore, #tpu.memory_space<semaphore_mem>>) src(%204 : memref<768xf32, #tpu.memory_space<any>>) dst(%206 : memref<768xf32, #tpu.memory_space<vmem>>)
      %c0_i32_168 = arith.constant 0 : i32
      %c6_i32_169 = arith.constant 6 : i32
      %c6_i32_170 = arith.constant 6 : i32
      %c0_i32_171 = arith.constant 0 : i32
      %209 = tpu.memref_slice %arg3[%c0_i32_168, %c0_i32_171] : memref<100x768xf32, #tpu.memory_space<any>> -> memref<1x768xf32, #tpu.memory_space<any>>
      %210 = tpu.memref_squeeze %209 : memref<1x768xf32, #tpu.memory_space<any>> -> memref<768xf32, #tpu.memory_space<any>>
      %c0_i32_172 = arith.constant 0 : i32
      %211 = tpu.memref_slice %arg10[%172, %c6_i32_169, %c0_i32_172] : memref<2x16x768xf32, #tpu.memory_space<vmem>> -> memref<1x1x768xf32, #tpu.memory_space<vmem>>
      %212 = tpu.memref_squeeze %211 : memref<1x1x768xf32, #tpu.memory_space<vmem>> -> memref<768xf32, #tpu.memory_space<vmem>>
      %213 = tpu.memref_slice %arg12[%172, %c6_i32_170] : memref<2x16x!tpu.dma_semaphore, #tpu.memory_space<semaphore_mem>> -> memref<1x1x!tpu.dma_semaphore, #tpu.memory_space<semaphore_mem>>
      %214 = tpu.memref_squeeze %213 : memref<1x1x!tpu.dma_semaphore, #tpu.memory_space<semaphore_mem>> -> memref<!tpu.dma_semaphore, #tpu.memory_space<semaphore_mem>>
      tpu.wait_dma2 semaphore(%214 : memref<!tpu.dma_semaphore, #tpu.memory_space<semaphore_mem>>) src(%210 : memref<768xf32, #tpu.memory_space<any>>) dst(%212 : memref<768xf32, #tpu.memory_space<vmem>>)
      %c0_i32_173 = arith.constant 0 : i32
      %c7_i32_174 = arith.constant 7 : i32
      %c7_i32_175 = arith.constant 7 : i32
      %c0_i32_176 = arith.constant 0 : i32
      %215 = tpu.memref_slice %arg3[%c0_i32_173, %c0_i32_176] : memref<100x768xf32, #tpu.memory_space<any>> -> memref<1x768xf32, #tpu.memory_space<any>>
      %216 = tpu.memref_squeeze %215 : memref<1x768xf32, #tpu.memory_space<any>> -> memref<768xf32, #tpu.memory_space<any>>
      %c0_i32_177 = arith.constant 0 : i32
      %217 = tpu.memref_slice %arg10[%172, %c7_i32_174, %c0_i32_177] : memref<2x16x768xf32, #tpu.memory_space<vmem>> -> memref<1x1x768xf32, #tpu.memory_space<vmem>>
      %218 = tpu.memref_squeeze %217 : memref<1x1x768xf32, #tpu.memory_space<vmem>> -> memref<768xf32, #tpu.memory_space<vmem>>
      %219 = tpu.memref_slice %arg12[%172, %c7_i32_175] : memref<2x16x!tpu.dma_semaphore, #tpu.memory_space<semaphore_mem>> -> memref<1x1x!tpu.dma_semaphore, #tpu.memory_space<semaphore_mem>>
      %220 = tpu.memref_squeeze %219 : memref<1x1x!tpu.dma_semaphore, #tpu.memory_space<semaphore_mem>> -> memref<!tpu.dma_semaphore, #tpu.memory_space<semaphore_mem>>
      tpu.wait_dma2 semaphore(%220 : memref<!tpu.dma_semaphore, #tpu.memory_space<semaphore_mem>>) src(%216 : memref<768xf32, #tpu.memory_space<any>>) dst(%218 : memref<768xf32, #tpu.memory_space<vmem>>)
      %c0_i32_178 = arith.constant 0 : i32
      %c8_i32_179 = arith.constant 8 : i32
      %c8_i32_180 = arith.constant 8 : i32
      %c0_i32_181 = arith.constant 0 : i32
      %221 = tpu.memref_slice %arg3[%c0_i32_178, %c0_i32_181] : memref<100x768xf32, #tpu.memory_space<any>> -> memref<1x768xf32, #tpu.memory_space<any>>
      %222 = tpu.memref_squeeze %221 : memref<1x768xf32, #tpu.memory_space<any>> -> memref<768xf32, #tpu.memory_space<any>>
      %c0_i32_182 = arith.constant 0 : i32
      %223 = tpu.memref_slice %arg10[%172, %c8_i32_179, %c0_i32_182] : memref<2x16x768xf32, #tpu.memory_space<vmem>> -> memref<1x1x768xf32, #tpu.memory_space<vmem>>
      %224 = tpu.memref_squeeze %223 : memref<1x1x768xf32, #tpu.memory_space<vmem>> -> memref<768xf32, #tpu.memory_space<vmem>>
      %225 = tpu.memref_slice %arg12[%172, %c8_i32_180] : memref<2x16x!tpu.dma_semaphore, #tpu.memory_space<semaphore_mem>> -> memref<1x1x!tpu.dma_semaphore, #tpu.memory_space<semaphore_mem>>
      %226 = tpu.memref_squeeze %225 : memref<1x1x!tpu.dma_semaphore, #tpu.memory_space<semaphore_mem>> -> memref<!tpu.dma_semaphore, #tpu.memory_space<semaphore_mem>>
      tpu.wait_dma2 semaphore(%226 : memref<!tpu.dma_semaphore, #tpu.memory_space<semaphore_mem>>) src(%222 : memref<768xf32, #tpu.memory_space<any>>) dst(%224 : memref<768xf32, #tpu.memory_space<vmem>>)
      %c0_i32_183 = arith.constant 0 : i32
      %c9_i32_184 = arith.constant 9 : i32
      %c9_i32_185 = arith.constant 9 : i32
      %c0_i32_186 = arith.constant 0 : i32
      %227 = tpu.memref_slice %arg3[%c0_i32_183, %c0_i32_186] : memref<100x768xf32, #tpu.memory_space<any>> -> memref<1x768xf32, #tpu.memory_space<any>>
      %228 = tpu.memref_squeeze %227 : memref<1x768xf32, #tpu.memory_space<any>> -> memref<768xf32, #tpu.memory_space<any>>
      %c0_i32_187 = arith.constant 0 : i32
      %229 = tpu.memref_slice %arg10[%172, %c9_i32_184, %c0_i32_187] : memref<2x16x768xf32, #tpu.memory_space<vmem>> -> memref<1x1x768xf32, #tpu.memory_space<vmem>>
      %230 = tpu.memref_squeeze %229 : memref<1x1x768xf32, #tpu.memory_space<vmem>> -> memref<768xf32, #tpu.memory_space<vmem>>
      %231 = tpu.memref_slice %arg12[%172, %c9_i32_185] : memref<2x16x!tpu.dma_semaphore, #tpu.memory_space<semaphore_mem>> -> memref<1x1x!tpu.dma_semaphore, #tpu.memory_space<semaphore_mem>>
      %232 = tpu.memref_squeeze %231 : memref<1x1x!tpu.dma_semaphore, #tpu.memory_space<semaphore_mem>> -> memref<!tpu.dma_semaphore, #tpu.memory_space<semaphore_mem>>
      tpu.wait_dma2 semaphore(%232 : memref<!tpu.dma_semaphore, #tpu.memory_space<semaphore_mem>>) src(%228 : memref<768xf32, #tpu.memory_space<any>>) dst(%230 : memref<768xf32, #tpu.memory_space<vmem>>)
      %c0_i32_188 = arith.constant 0 : i32
      %c10_i32_189 = arith.constant 10 : i32
      %c10_i32_190 = arith.constant 10 : i32
      %c0_i32_191 = arith.constant 0 : i32
      %233 = tpu.memref_slice %arg3[%c0_i32_188, %c0_i32_191] : memref<100x768xf32, #tpu.memory_space<any>> -> memref<1x768xf32, #tpu.memory_space<any>>
      %234 = tpu.memref_squeeze %233 : memref<1x768xf32, #tpu.memory_space<any>> -> memref<768xf32, #tpu.memory_space<any>>
      %c0_i32_192 = arith.constant 0 : i32
      %235 = tpu.memref_slice %arg10[%172, %c10_i32_189, %c0_i32_192] : memref<2x16x768xf32, #tpu.memory_space<vmem>> -> memref<1x1x768xf32, #tpu.memory_space<vmem>>
      %236 = tpu.memref_squeeze %235 : memref<1x1x768xf32, #tpu.memory_space<vmem>> -> memref<768xf32, #tpu.memory_space<vmem>>
      %237 = tpu.memref_slice %arg12[%172, %c10_i32_190] : memref<2x16x!tpu.dma_semaphore, #tpu.memory_space<semaphore_mem>> -> memref<1x1x!tpu.dma_semaphore, #tpu.memory_space<semaphore_mem>>
      %238 = tpu.memref_squeeze %237 : memref<1x1x!tpu.dma_semaphore, #tpu.memory_space<semaphore_mem>> -> memref<!tpu.dma_semaphore, #tpu.memory_space<semaphore_mem>>
      tpu.wait_dma2 semaphore(%238 : memref<!tpu.dma_semaphore, #tpu.memory_space<semaphore_mem>>) src(%234 : memref<768xf32, #tpu.memory_space<any>>) dst(%236 : memref<768xf32, #tpu.memory_space<vmem>>)
      %c0_i32_193 = arith.constant 0 : i32
      %c11_i32_194 = arith.constant 11 : i32
      %c11_i32_195 = arith.constant 11 : i32
      %c0_i32_196 = arith.constant 0 : i32
      %239 = tpu.memref_slice %arg3[%c0_i32_193, %c0_i32_196] : memref<100x768xf32, #tpu.memory_space<any>> -> memref<1x768xf32, #tpu.memory_space<any>>
      %240 = tpu.memref_squeeze %239 : memref<1x768xf32, #tpu.memory_space<any>> -> memref<768xf32, #tpu.memory_space<any>>
      %c0_i32_197 = arith.constant 0 : i32
      %241 = tpu.memref_slice %arg10[%172, %c11_i32_194, %c0_i32_197] : memref<2x16x768xf32, #tpu.memory_space<vmem>> -> memref<1x1x768xf32, #tpu.memory_space<vmem>>
      %242 = tpu.memref_squeeze %241 : memref<1x1x768xf32, #tpu.memory_space<vmem>> -> memref<768xf32, #tpu.memory_space<vmem>>
      %243 = tpu.memref_slice %arg12[%172, %c11_i32_195] : memref<2x16x!tpu.dma_semaphore, #tpu.memory_space<semaphore_mem>> -> memref<1x1x!tpu.dma_semaphore, #tpu.memory_space<semaphore_mem>>
      %244 = tpu.memref_squeeze %243 : memref<1x1x!tpu.dma_semaphore, #tpu.memory_space<semaphore_mem>> -> memref<!tpu.dma_semaphore, #tpu.memory_space<semaphore_mem>>
      tpu.wait_dma2 semaphore(%244 : memref<!tpu.dma_semaphore, #tpu.memory_space<semaphore_mem>>) src(%240 : memref<768xf32, #tpu.memory_space<any>>) dst(%242 : memref<768xf32, #tpu.memory_space<vmem>>)
      %c0_i32_198 = arith.constant 0 : i32
      %c12_i32_199 = arith.constant 12 : i32
      %c12_i32_200 = arith.constant 12 : i32
      %c0_i32_201 = arith.constant 0 : i32
      %245 = tpu.memref_slice %arg3[%c0_i32_198, %c0_i32_201] : memref<100x768xf32, #tpu.memory_space<any>> -> memref<1x768xf32, #tpu.memory_space<any>>
      %246 = tpu.memref_squeeze %245 : memref<1x768xf32, #tpu.memory_space<any>> -> memref<768xf32, #tpu.memory_space<any>>
      %c0_i32_202 = arith.constant 0 : i32
      %247 = tpu.memref_slice %arg10[%172, %c12_i32_199, %c0_i32_202] : memref<2x16x768xf32, #tpu.memory_space<vmem>> -> memref<1x1x768xf32, #tpu.memory_space<vmem>>
      %248 = tpu.memref_squeeze %247 : memref<1x1x768xf32, #tpu.memory_space<vmem>> -> memref<768xf32, #tpu.memory_space<vmem>>
      %249 = tpu.memref_slice %arg12[%172, %c12_i32_200] : memref<2x16x!tpu.dma_semaphore, #tpu.memory_space<semaphore_mem>> -> memref<1x1x!tpu.dma_semaphore, #tpu.memory_space<semaphore_mem>>
      %250 = tpu.memref_squeeze %249 : memref<1x1x!tpu.dma_semaphore, #tpu.memory_space<semaphore_mem>> -> memref<!tpu.dma_semaphore, #tpu.memory_space<semaphore_mem>>
      tpu.wait_dma2 semaphore(%250 : memref<!tpu.dma_semaphore, #tpu.memory_space<semaphore_mem>>) src(%246 : memref<768xf32, #tpu.memory_space<any>>) dst(%248 : memref<768xf32, #tpu.memory_space<vmem>>)
      %c0_i32_203 = arith.constant 0 : i32
      %c13_i32_204 = arith.constant 13 : i32
      %c13_i32_205 = arith.constant 13 : i32
      %c0_i32_206 = arith.constant 0 : i32
      %251 = tpu.memref_slice %arg3[%c0_i32_203, %c0_i32_206] : memref<100x768xf32, #tpu.memory_space<any>> -> memref<1x768xf32, #tpu.memory_space<any>>
      %252 = tpu.memref_squeeze %251 : memref<1x768xf32, #tpu.memory_space<any>> -> memref<768xf32, #tpu.memory_space<any>>
      %c0_i32_207 = arith.constant 0 : i32
      %253 = tpu.memref_slice %arg10[%172, %c13_i32_204, %c0_i32_207] : memref<2x16x768xf32, #tpu.memory_space<vmem>> -> memref<1x1x768xf32, #tpu.memory_space<vmem>>
      %254 = tpu.memref_squeeze %253 : memref<1x1x768xf32, #tpu.memory_space<vmem>> -> memref<768xf32, #tpu.memory_space<vmem>>
      %255 = tpu.memref_slice %arg12[%172, %c13_i32_205] : memref<2x16x!tpu.dma_semaphore, #tpu.memory_space<semaphore_mem>> -> memref<1x1x!tpu.dma_semaphore, #tpu.memory_space<semaphore_mem>>
      %256 = tpu.memref_squeeze %255 : memref<1x1x!tpu.dma_semaphore, #tpu.memory_space<semaphore_mem>> -> memref<!tpu.dma_semaphore, #tpu.memory_space<semaphore_mem>>
      tpu.wait_dma2 semaphore(%256 : memref<!tpu.dma_semaphore, #tpu.memory_space<semaphore_mem>>) src(%252 : memref<768xf32, #tpu.memory_space<any>>) dst(%254 : memref<768xf32, #tpu.memory_space<vmem>>)
      %c0_i32_208 = arith.constant 0 : i32
      %c14_i32_209 = arith.constant 14 : i32
      %c14_i32_210 = arith.constant 14 : i32
      %c0_i32_211 = arith.constant 0 : i32
      %257 = tpu.memref_slice %arg3[%c0_i32_208, %c0_i32_211] : memref<100x768xf32, #tpu.memory_space<any>> -> memref<1x768xf32, #tpu.memory_space<any>>
      %258 = tpu.memref_squeeze %257 : memref<1x768xf32, #tpu.memory_space<any>> -> memref<768xf32, #tpu.memory_space<any>>
      %c0_i32_212 = arith.constant 0 : i32
      %259 = tpu.memref_slice %arg10[%172, %c14_i32_209, %c0_i32_212] : memref<2x16x768xf32, #tpu.memory_space<vmem>> -> memref<1x1x768xf32, #tpu.memory_space<vmem>>
      %260 = tpu.memref_squeeze %259 : memref<1x1x768xf32, #tpu.memory_space<vmem>> -> memref<768xf32, #tpu.memory_space<vmem>>
      %261 = tpu.memref_slice %arg12[%172, %c14_i32_210] : memref<2x16x!tpu.dma_semaphore, #tpu.memory_space<semaphore_mem>> -> memref<1x1x!tpu.dma_semaphore, #tpu.memory_space<semaphore_mem>>
      %262 = tpu.memref_squeeze %261 : memref<1x1x!tpu.dma_semaphore, #tpu.memory_space<semaphore_mem>> -> memref<!tpu.dma_semaphore, #tpu.memory_space<semaphore_mem>>
      tpu.wait_dma2 semaphore(%262 : memref<!tpu.dma_semaphore, #tpu.memory_space<semaphore_mem>>) src(%258 : memref<768xf32, #tpu.memory_space<any>>) dst(%260 : memref<768xf32, #tpu.memory_space<vmem>>)
      %c0_i32_213 = arith.constant 0 : i32
      %c15_i32_214 = arith.constant 15 : i32
      %c15_i32_215 = arith.constant 15 : i32
      %c0_i32_216 = arith.constant 0 : i32
      %263 = tpu.memref_slice %arg3[%c0_i32_213, %c0_i32_216] : memref<100x768xf32, #tpu.memory_space<any>> -> memref<1x768xf32, #tpu.memory_space<any>>
      %264 = tpu.memref_squeeze %263 : memref<1x768xf32, #tpu.memory_space<any>> -> memref<768xf32, #tpu.memory_space<any>>
      %c0_i32_217 = arith.constant 0 : i32
      %265 = tpu.memref_slice %arg10[%172, %c15_i32_214, %c0_i32_217] : memref<2x16x768xf32, #tpu.memory_space<vmem>> -> memref<1x1x768xf32, #tpu.memory_space<vmem>>
      %266 = tpu.memref_squeeze %265 : memref<1x1x768xf32, #tpu.memory_space<vmem>> -> memref<768xf32, #tpu.memory_space<vmem>>
      %267 = tpu.memref_slice %arg12[%172, %c15_i32_215] : memref<2x16x!tpu.dma_semaphore, #tpu.memory_space<semaphore_mem>> -> memref<1x1x!tpu.dma_semaphore, #tpu.memory_space<semaphore_mem>>
      %268 = tpu.memref_squeeze %267 : memref<1x1x!tpu.dma_semaphore, #tpu.memory_space<semaphore_mem>> -> memref<!tpu.dma_semaphore, #tpu.memory_space<semaphore_mem>>
      tpu.wait_dma2 semaphore(%268 : memref<!tpu.dma_semaphore, #tpu.memory_space<semaphore_mem>>) src(%264 : memref<768xf32, #tpu.memory_space<any>>) dst(%266 : memref<768xf32, #tpu.memory_space<vmem>>)
      %c1_i32_218 = arith.constant 1 : i32
      %269 = arith.addi %171, %c1_i32_218 : i32
      %c8_i32_219 = arith.constant 8 : i32
      %270 = arith.cmpi slt, %269, %c8_i32_219 : i32
      %271 = arith.extui %270 : i1 to i32
      %c0_i32_220 = arith.constant 0 : i32
      %272 = arith.cmpi ne, %271, %c0_i32_220 : i32
      scf.if %272 {
        %c1_i32_271 = arith.constant 1 : i32
        %388 = arith.addi %171, %c1_i32_271 : i32
        %c1_i32_272 = arith.constant 1 : i32
        %389 = arith.subi %c1_i32_272, %172 : i32
        %c0_i32_273 = arith.constant 0 : i32
        %390 = arith.addi %0, %c0_i32_273 : i32
        %391 = arith.index_cast %390 : i32 to index
        %392 = arith.index_cast %388 : i32 to index
        %393 = memref.load %arg1[%391, %392] : memref<16x8xi32, #tpu.memory_space<smem>>
        %c0_i32_274 = arith.constant 0 : i32
        %c0_i32_275 = arith.constant 0 : i32
        %c0_i32_276 = arith.constant 0 : i32
        %394 = tpu.memref_slice %arg3[%393, %c0_i32_276] : memref<100x768xf32, #tpu.memory_space<any>> -> memref<1x768xf32, #tpu.memory_space<any>>
        %395 = tpu.memref_squeeze %394 : memref<1x768xf32, #tpu.memory_space<any>> -> memref<768xf32, #tpu.memory_space<any>>
        %c0_i32_277 = arith.constant 0 : i32
        %396 = tpu.memref_slice %arg10[%389, %c0_i32_274, %c0_i32_277] : memref<2x16x768xf32, #tpu.memory_space<vmem>> -> memref<1x1x768xf32, #tpu.memory_space<vmem>>
        %397 = tpu.memref_squeeze %396 : memref<1x1x768xf32, #tpu.memory_space<vmem>> -> memref<768xf32, #tpu.memory_space<vmem>>
        %398 = tpu.memref_slice %arg12[%389, %c0_i32_275] : memref<2x16x!tpu.dma_semaphore, #tpu.memory_space<semaphore_mem>> -> memref<1x1x!tpu.dma_semaphore, #tpu.memory_space<semaphore_mem>>
        %399 = tpu.memref_squeeze %398 : memref<1x1x!tpu.dma_semaphore, #tpu.memory_space<semaphore_mem>> -> memref<!tpu.dma_semaphore, #tpu.memory_space<semaphore_mem>>
        tpu.enqueue_dma source(%395 : memref<768xf32, #tpu.memory_space<any>>) target(%397 : memref<768xf32, #tpu.memory_space<vmem>>) target_semaphore(%399 : memref<!tpu.dma_semaphore, #tpu.memory_space<semaphore_mem>>)
        %c1_i32_278 = arith.constant 1 : i32
        %400 = arith.addi %0, %c1_i32_278 : i32
        %401 = arith.index_cast %400 : i32 to index
        %402 = arith.index_cast %388 : i32 to index
        %403 = memref.load %arg1[%401, %402] : memref<16x8xi32, #tpu.memory_space<smem>>
        %c1_i32_279 = arith.constant 1 : i32
        %c1_i32_280 = arith.constant 1 : i32
        %c0_i32_281 = arith.constant 0 : i32
        %404 = tpu.memref_slice %arg3[%403, %c0_i32_281] : memref<100x768xf32, #tpu.memory_space<any>> -> memref<1x768xf32, #tpu.memory_space<any>>
        %405 = tpu.memref_squeeze %404 : memref<1x768xf32, #tpu.memory_space<any>> -> memref<768xf32, #tpu.memory_space<any>>
        %c0_i32_282 = arith.constant 0 : i32
        %406 = tpu.memref_slice %arg10[%389, %c1_i32_279, %c0_i32_282] : memref<2x16x768xf32, #tpu.memory_space<vmem>> -> memref<1x1x768xf32, #tpu.memory_space<vmem>>
        %407 = tpu.memref_squeeze %406 : memref<1x1x768xf32, #tpu.memory_space<vmem>> -> memref<768xf32, #tpu.memory_space<vmem>>
        %408 = tpu.memref_slice %arg12[%389, %c1_i32_280] : memref<2x16x!tpu.dma_semaphore, #tpu.memory_space<semaphore_mem>> -> memref<1x1x!tpu.dma_semaphore, #tpu.memory_space<semaphore_mem>>
        %409 = tpu.memref_squeeze %408 : memref<1x1x!tpu.dma_semaphore, #tpu.memory_space<semaphore_mem>> -> memref<!tpu.dma_semaphore, #tpu.memory_space<semaphore_mem>>
        tpu.enqueue_dma source(%405 : memref<768xf32, #tpu.memory_space<any>>) target(%407 : memref<768xf32, #tpu.memory_space<vmem>>) target_semaphore(%409 : memref<!tpu.dma_semaphore, #tpu.memory_space<semaphore_mem>>)
        %c2_i32_283 = arith.constant 2 : i32
        %410 = arith.addi %0, %c2_i32_283 : i32
        %411 = arith.index_cast %410 : i32 to index
        %412 = arith.index_cast %388 : i32 to index
        %413 = memref.load %arg1[%411, %412] : memref<16x8xi32, #tpu.memory_space<smem>>
        %c2_i32_284 = arith.constant 2 : i32
        %c2_i32_285 = arith.constant 2 : i32
        %c0_i32_286 = arith.constant 0 : i32
        %414 = tpu.memref_slice %arg3[%413, %c0_i32_286] : memref<100x768xf32, #tpu.memory_space<any>> -> memref<1x768xf32, #tpu.memory_space<any>>
        %415 = tpu.memref_squeeze %414 : memref<1x768xf32, #tpu.memory_space<any>> -> memref<768xf32, #tpu.memory_space<any>>
        %c0_i32_287 = arith.constant 0 : i32
        %416 = tpu.memref_slice %arg10[%389, %c2_i32_284, %c0_i32_287] : memref<2x16x768xf32, #tpu.memory_space<vmem>> -> memref<1x1x768xf32, #tpu.memory_space<vmem>>
        %417 = tpu.memref_squeeze %416 : memref<1x1x768xf32, #tpu.memory_space<vmem>> -> memref<768xf32, #tpu.memory_space<vmem>>
        %418 = tpu.memref_slice %arg12[%389, %c2_i32_285] : memref<2x16x!tpu.dma_semaphore, #tpu.memory_space<semaphore_mem>> -> memref<1x1x!tpu.dma_semaphore, #tpu.memory_space<semaphore_mem>>
        %419 = tpu.memref_squeeze %418 : memref<1x1x!tpu.dma_semaphore, #tpu.memory_space<semaphore_mem>> -> memref<!tpu.dma_semaphore, #tpu.memory_space<semaphore_mem>>
        tpu.enqueue_dma source(%415 : memref<768xf32, #tpu.memory_space<any>>) target(%417 : memref<768xf32, #tpu.memory_space<vmem>>) target_semaphore(%419 : memref<!tpu.dma_semaphore, #tpu.memory_space<semaphore_mem>>)
        %c3_i32_288 = arith.constant 3 : i32
        %420 = arith.addi %0, %c3_i32_288 : i32
        %421 = arith.index_cast %420 : i32 to index
        %422 = arith.index_cast %388 : i32 to index
        %423 = memref.load %arg1[%421, %422] : memref<16x8xi32, #tpu.memory_space<smem>>
        %c3_i32_289 = arith.constant 3 : i32
        %c3_i32_290 = arith.constant 3 : i32
        %c0_i32_291 = arith.constant 0 : i32
        %424 = tpu.memref_slice %arg3[%423, %c0_i32_291] : memref<100x768xf32, #tpu.memory_space<any>> -> memref<1x768xf32, #tpu.memory_space<any>>
        %425 = tpu.memref_squeeze %424 : memref<1x768xf32, #tpu.memory_space<any>> -> memref<768xf32, #tpu.memory_space<any>>
        %c0_i32_292 = arith.constant 0 : i32
        %426 = tpu.memref_slice %arg10[%389, %c3_i32_289, %c0_i32_292] : memref<2x16x768xf32, #tpu.memory_space<vmem>> -> memref<1x1x768xf32, #tpu.memory_space<vmem>>
        %427 = tpu.memref_squeeze %426 : memref<1x1x768xf32, #tpu.memory_space<vmem>> -> memref<768xf32, #tpu.memory_space<vmem>>
        %428 = tpu.memref_slice %arg12[%389, %c3_i32_290] : memref<2x16x!tpu.dma_semaphore, #tpu.memory_space<semaphore_mem>> -> memref<1x1x!tpu.dma_semaphore, #tpu.memory_space<semaphore_mem>>
        %429 = tpu.memref_squeeze %428 : memref<1x1x!tpu.dma_semaphore, #tpu.memory_space<semaphore_mem>> -> memref<!tpu.dma_semaphore, #tpu.memory_space<semaphore_mem>>
        tpu.enqueue_dma source(%425 : memref<768xf32, #tpu.memory_space<any>>) target(%427 : memref<768xf32, #tpu.memory_space<vmem>>) target_semaphore(%429 : memref<!tpu.dma_semaphore, #tpu.memory_space<semaphore_mem>>)
        %c4_i32_293 = arith.constant 4 : i32
        %430 = arith.addi %0, %c4_i32_293 : i32
        %431 = arith.index_cast %430 : i32 to index
        %432 = arith.index_cast %388 : i32 to index
        %433 = memref.load %arg1[%431, %432] : memref<16x8xi32, #tpu.memory_space<smem>>
        %c4_i32_294 = arith.constant 4 : i32
        %c4_i32_295 = arith.constant 4 : i32
        %c0_i32_296 = arith.constant 0 : i32
        %434 = tpu.memref_slice %arg3[%433, %c0_i32_296] : memref<100x768xf32, #tpu.memory_space<any>> -> memref<1x768xf32, #tpu.memory_space<any>>
        %435 = tpu.memref_squeeze %434 : memref<1x768xf32, #tpu.memory_space<any>> -> memref<768xf32, #tpu.memory_space<any>>
        %c0_i32_297 = arith.constant 0 : i32
        %436 = tpu.memref_slice %arg10[%389, %c4_i32_294, %c0_i32_297] : memref<2x16x768xf32, #tpu.memory_space<vmem>> -> memref<1x1x768xf32, #tpu.memory_space<vmem>>
        %437 = tpu.memref_squeeze %436 : memref<1x1x768xf32, #tpu.memory_space<vmem>> -> memref<768xf32, #tpu.memory_space<vmem>>
        %438 = tpu.memref_slice %arg12[%389, %c4_i32_295] : memref<2x16x!tpu.dma_semaphore, #tpu.memory_space<semaphore_mem>> -> memref<1x1x!tpu.dma_semaphore, #tpu.memory_space<semaphore_mem>>
        %439 = tpu.memref_squeeze %438 : memref<1x1x!tpu.dma_semaphore, #tpu.memory_space<semaphore_mem>> -> memref<!tpu.dma_semaphore, #tpu.memory_space<semaphore_mem>>
        tpu.enqueue_dma source(%435 : memref<768xf32, #tpu.memory_space<any>>) target(%437 : memref<768xf32, #tpu.memory_space<vmem>>) target_semaphore(%439 : memref<!tpu.dma_semaphore, #tpu.memory_space<semaphore_mem>>)
        %c5_i32_298 = arith.constant 5 : i32
        %440 = arith.addi %0, %c5_i32_298 : i32
        %441 = arith.index_cast %440 : i32 to index
        %442 = arith.index_cast %388 : i32 to index
        %443 = memref.load %arg1[%441, %442] : memref<16x8xi32, #tpu.memory_space<smem>>
        %c5_i32_299 = arith.constant 5 : i32
        %c5_i32_300 = arith.constant 5 : i32
        %c0_i32_301 = arith.constant 0 : i32
        %444 = tpu.memref_slice %arg3[%443, %c0_i32_301] : memref<100x768xf32, #tpu.memory_space<any>> -> memref<1x768xf32, #tpu.memory_space<any>>
        %445 = tpu.memref_squeeze %444 : memref<1x768xf32, #tpu.memory_space<any>> -> memref<768xf32, #tpu.memory_space<any>>
        %c0_i32_302 = arith.constant 0 : i32
        %446 = tpu.memref_slice %arg10[%389, %c5_i32_299, %c0_i32_302] : memref<2x16x768xf32, #tpu.memory_space<vmem>> -> memref<1x1x768xf32, #tpu.memory_space<vmem>>
        %447 = tpu.memref_squeeze %446 : memref<1x1x768xf32, #tpu.memory_space<vmem>> -> memref<768xf32, #tpu.memory_space<vmem>>
        %448 = tpu.memref_slice %arg12[%389, %c5_i32_300] : memref<2x16x!tpu.dma_semaphore, #tpu.memory_space<semaphore_mem>> -> memref<1x1x!tpu.dma_semaphore, #tpu.memory_space<semaphore_mem>>
        %449 = tpu.memref_squeeze %448 : memref<1x1x!tpu.dma_semaphore, #tpu.memory_space<semaphore_mem>> -> memref<!tpu.dma_semaphore, #tpu.memory_space<semaphore_mem>>
        tpu.enqueue_dma source(%445 : memref<768xf32, #tpu.memory_space<any>>) target(%447 : memref<768xf32, #tpu.memory_space<vmem>>) target_semaphore(%449 : memref<!tpu.dma_semaphore, #tpu.memory_space<semaphore_mem>>)
        %c6_i32_303 = arith.constant 6 : i32
        %450 = arith.addi %0, %c6_i32_303 : i32
        %451 = arith.index_cast %450 : i32 to index
        %452 = arith.index_cast %388 : i32 to index
        %453 = memref.load %arg1[%451, %452] : memref<16x8xi32, #tpu.memory_space<smem>>
        %c6_i32_304 = arith.constant 6 : i32
        %c6_i32_305 = arith.constant 6 : i32
        %c0_i32_306 = arith.constant 0 : i32
        %454 = tpu.memref_slice %arg3[%453, %c0_i32_306] : memref<100x768xf32, #tpu.memory_space<any>> -> memref<1x768xf32, #tpu.memory_space<any>>
        %455 = tpu.memref_squeeze %454 : memref<1x768xf32, #tpu.memory_space<any>> -> memref<768xf32, #tpu.memory_space<any>>
        %c0_i32_307 = arith.constant 0 : i32
        %456 = tpu.memref_slice %arg10[%389, %c6_i32_304, %c0_i32_307] : memref<2x16x768xf32, #tpu.memory_space<vmem>> -> memref<1x1x768xf32, #tpu.memory_space<vmem>>
        %457 = tpu.memref_squeeze %456 : memref<1x1x768xf32, #tpu.memory_space<vmem>> -> memref<768xf32, #tpu.memory_space<vmem>>
        %458 = tpu.memref_slice %arg12[%389, %c6_i32_305] : memref<2x16x!tpu.dma_semaphore, #tpu.memory_space<semaphore_mem>> -> memref<1x1x!tpu.dma_semaphore, #tpu.memory_space<semaphore_mem>>
        %459 = tpu.memref_squeeze %458 : memref<1x1x!tpu.dma_semaphore, #tpu.memory_space<semaphore_mem>> -> memref<!tpu.dma_semaphore, #tpu.memory_space<semaphore_mem>>
        tpu.enqueue_dma source(%455 : memref<768xf32, #tpu.memory_space<any>>) target(%457 : memref<768xf32, #tpu.memory_space<vmem>>) target_semaphore(%459 : memref<!tpu.dma_semaphore, #tpu.memory_space<semaphore_mem>>)
        %c7_i32_308 = arith.constant 7 : i32
        %460 = arith.addi %0, %c7_i32_308 : i32
        %461 = arith.index_cast %460 : i32 to index
        %462 = arith.index_cast %388 : i32 to index
        %463 = memref.load %arg1[%461, %462] : memref<16x8xi32, #tpu.memory_space<smem>>
        %c7_i32_309 = arith.constant 7 : i32
        %c7_i32_310 = arith.constant 7 : i32
        %c0_i32_311 = arith.constant 0 : i32
        %464 = tpu.memref_slice %arg3[%463, %c0_i32_311] : memref<100x768xf32, #tpu.memory_space<any>> -> memref<1x768xf32, #tpu.memory_space<any>>
        %465 = tpu.memref_squeeze %464 : memref<1x768xf32, #tpu.memory_space<any>> -> memref<768xf32, #tpu.memory_space<any>>
        %c0_i32_312 = arith.constant 0 : i32
        %466 = tpu.memref_slice %arg10[%389, %c7_i32_309, %c0_i32_312] : memref<2x16x768xf32, #tpu.memory_space<vmem>> -> memref<1x1x768xf32, #tpu.memory_space<vmem>>
        %467 = tpu.memref_squeeze %466 : memref<1x1x768xf32, #tpu.memory_space<vmem>> -> memref<768xf32, #tpu.memory_space<vmem>>
        %468 = tpu.memref_slice %arg12[%389, %c7_i32_310] : memref<2x16x!tpu.dma_semaphore, #tpu.memory_space<semaphore_mem>> -> memref<1x1x!tpu.dma_semaphore, #tpu.memory_space<semaphore_mem>>
        %469 = tpu.memref_squeeze %468 : memref<1x1x!tpu.dma_semaphore, #tpu.memory_space<semaphore_mem>> -> memref<!tpu.dma_semaphore, #tpu.memory_space<semaphore_mem>>
        tpu.enqueue_dma source(%465 : memref<768xf32, #tpu.memory_space<any>>) target(%467 : memref<768xf32, #tpu.memory_space<vmem>>) target_semaphore(%469 : memref<!tpu.dma_semaphore, #tpu.memory_space<semaphore_mem>>)
        %c8_i32_313 = arith.constant 8 : i32
        %470 = arith.addi %0, %c8_i32_313 : i32
        %471 = arith.index_cast %470 : i32 to index
        %472 = arith.index_cast %388 : i32 to index
        %473 = memref.load %arg1[%471, %472] : memref<16x8xi32, #tpu.memory_space<smem>>
        %c8_i32_314 = arith.constant 8 : i32
        %c8_i32_315 = arith.constant 8 : i32
        %c0_i32_316 = arith.constant 0 : i32
        %474 = tpu.memref_slice %arg3[%473, %c0_i32_316] : memref<100x768xf32, #tpu.memory_space<any>> -> memref<1x768xf32, #tpu.memory_space<any>>
        %475 = tpu.memref_squeeze %474 : memref<1x768xf32, #tpu.memory_space<any>> -> memref<768xf32, #tpu.memory_space<any>>
        %c0_i32_317 = arith.constant 0 : i32
        %476 = tpu.memref_slice %arg10[%389, %c8_i32_314, %c0_i32_317] : memref<2x16x768xf32, #tpu.memory_space<vmem>> -> memref<1x1x768xf32, #tpu.memory_space<vmem>>
        %477 = tpu.memref_squeeze %476 : memref<1x1x768xf32, #tpu.memory_space<vmem>> -> memref<768xf32, #tpu.memory_space<vmem>>
        %478 = tpu.memref_slice %arg12[%389, %c8_i32_315] : memref<2x16x!tpu.dma_semaphore, #tpu.memory_space<semaphore_mem>> -> memref<1x1x!tpu.dma_semaphore, #tpu.memory_space<semaphore_mem>>
        %479 = tpu.memref_squeeze %478 : memref<1x1x!tpu.dma_semaphore, #tpu.memory_space<semaphore_mem>> -> memref<!tpu.dma_semaphore, #tpu.memory_space<semaphore_mem>>
        tpu.enqueue_dma source(%475 : memref<768xf32, #tpu.memory_space<any>>) target(%477 : memref<768xf32, #tpu.memory_space<vmem>>) target_semaphore(%479 : memref<!tpu.dma_semaphore, #tpu.memory_space<semaphore_mem>>)
        %c9_i32_318 = arith.constant 9 : i32
        %480 = arith.addi %0, %c9_i32_318 : i32
        %481 = arith.index_cast %480 : i32 to index
        %482 = arith.index_cast %388 : i32 to index
        %483 = memref.load %arg1[%481, %482] : memref<16x8xi32, #tpu.memory_space<smem>>
        %c9_i32_319 = arith.constant 9 : i32
        %c9_i32_320 = arith.constant 9 : i32
        %c0_i32_321 = arith.constant 0 : i32
        %484 = tpu.memref_slice %arg3[%483, %c0_i32_321] : memref<100x768xf32, #tpu.memory_space<any>> -> memref<1x768xf32, #tpu.memory_space<any>>
        %485 = tpu.memref_squeeze %484 : memref<1x768xf32, #tpu.memory_space<any>> -> memref<768xf32, #tpu.memory_space<any>>
        %c0_i32_322 = arith.constant 0 : i32
        %486 = tpu.memref_slice %arg10[%389, %c9_i32_319, %c0_i32_322] : memref<2x16x768xf32, #tpu.memory_space<vmem>> -> memref<1x1x768xf32, #tpu.memory_space<vmem>>
        %487 = tpu.memref_squeeze %486 : memref<1x1x768xf32, #tpu.memory_space<vmem>> -> memref<768xf32, #tpu.memory_space<vmem>>
        %488 = tpu.memref_slice %arg12[%389, %c9_i32_320] : memref<2x16x!tpu.dma_semaphore, #tpu.memory_space<semaphore_mem>> -> memref<1x1x!tpu.dma_semaphore, #tpu.memory_space<semaphore_mem>>
        %489 = tpu.memref_squeeze %488 : memref<1x1x!tpu.dma_semaphore, #tpu.memory_space<semaphore_mem>> -> memref<!tpu.dma_semaphore, #tpu.memory_space<semaphore_mem>>
        tpu.enqueue_dma source(%485 : memref<768xf32, #tpu.memory_space<any>>) target(%487 : memref<768xf32, #tpu.memory_space<vmem>>) target_semaphore(%489 : memref<!tpu.dma_semaphore, #tpu.memory_space<semaphore_mem>>)
        %c10_i32_323 = arith.constant 10 : i32
        %490 = arith.addi %0, %c10_i32_323 : i32
        %491 = arith.index_cast %490 : i32 to index
        %492 = arith.index_cast %388 : i32 to index
        %493 = memref.load %arg1[%491, %492] : memref<16x8xi32, #tpu.memory_space<smem>>
        %c10_i32_324 = arith.constant 10 : i32
        %c10_i32_325 = arith.constant 10 : i32
        %c0_i32_326 = arith.constant 0 : i32
        %494 = tpu.memref_slice %arg3[%493, %c0_i32_326] : memref<100x768xf32, #tpu.memory_space<any>> -> memref<1x768xf32, #tpu.memory_space<any>>
        %495 = tpu.memref_squeeze %494 : memref<1x768xf32, #tpu.memory_space<any>> -> memref<768xf32, #tpu.memory_space<any>>
        %c0_i32_327 = arith.constant 0 : i32
        %496 = tpu.memref_slice %arg10[%389, %c10_i32_324, %c0_i32_327] : memref<2x16x768xf32, #tpu.memory_space<vmem>> -> memref<1x1x768xf32, #tpu.memory_space<vmem>>
        %497 = tpu.memref_squeeze %496 : memref<1x1x768xf32, #tpu.memory_space<vmem>> -> memref<768xf32, #tpu.memory_space<vmem>>
        %498 = tpu.memref_slice %arg12[%389, %c10_i32_325] : memref<2x16x!tpu.dma_semaphore, #tpu.memory_space<semaphore_mem>> -> memref<1x1x!tpu.dma_semaphore, #tpu.memory_space<semaphore_mem>>
        %499 = tpu.memref_squeeze %498 : memref<1x1x!tpu.dma_semaphore, #tpu.memory_space<semaphore_mem>> -> memref<!tpu.dma_semaphore, #tpu.memory_space<semaphore_mem>>
        tpu.enqueue_dma source(%495 : memref<768xf32, #tpu.memory_space<any>>) target(%497 : memref<768xf32, #tpu.memory_space<vmem>>) target_semaphore(%499 : memref<!tpu.dma_semaphore, #tpu.memory_space<semaphore_mem>>)
        %c11_i32_328 = arith.constant 11 : i32
        %500 = arith.addi %0, %c11_i32_328 : i32
        %501 = arith.index_cast %500 : i32 to index
        %502 = arith.index_cast %388 : i32 to index
        %503 = memref.load %arg1[%501, %502] : memref<16x8xi32, #tpu.memory_space<smem>>
        %c11_i32_329 = arith.constant 11 : i32
        %c11_i32_330 = arith.constant 11 : i32
        %c0_i32_331 = arith.constant 0 : i32
        %504 = tpu.memref_slice %arg3[%503, %c0_i32_331] : memref<100x768xf32, #tpu.memory_space<any>> -> memref<1x768xf32, #tpu.memory_space<any>>
        %505 = tpu.memref_squeeze %504 : memref<1x768xf32, #tpu.memory_space<any>> -> memref<768xf32, #tpu.memory_space<any>>
        %c0_i32_332 = arith.constant 0 : i32
        %506 = tpu.memref_slice %arg10[%389, %c11_i32_329, %c0_i32_332] : memref<2x16x768xf32, #tpu.memory_space<vmem>> -> memref<1x1x768xf32, #tpu.memory_space<vmem>>
        %507 = tpu.memref_squeeze %506 : memref<1x1x768xf32, #tpu.memory_space<vmem>> -> memref<768xf32, #tpu.memory_space<vmem>>
        %508 = tpu.memref_slice %arg12[%389, %c11_i32_330] : memref<2x16x!tpu.dma_semaphore, #tpu.memory_space<semaphore_mem>> -> memref<1x1x!tpu.dma_semaphore, #tpu.memory_space<semaphore_mem>>
        %509 = tpu.memref_squeeze %508 : memref<1x1x!tpu.dma_semaphore, #tpu.memory_space<semaphore_mem>> -> memref<!tpu.dma_semaphore, #tpu.memory_space<semaphore_mem>>
        tpu.enqueue_dma source(%505 : memref<768xf32, #tpu.memory_space<any>>) target(%507 : memref<768xf32, #tpu.memory_space<vmem>>) target_semaphore(%509 : memref<!tpu.dma_semaphore, #tpu.memory_space<semaphore_mem>>)
        %c12_i32_333 = arith.constant 12 : i32
        %510 = arith.addi %0, %c12_i32_333 : i32
        %511 = arith.index_cast %510 : i32 to index
        %512 = arith.index_cast %388 : i32 to index
        %513 = memref.load %arg1[%511, %512] : memref<16x8xi32, #tpu.memory_space<smem>>
        %c12_i32_334 = arith.constant 12 : i32
        %c12_i32_335 = arith.constant 12 : i32
        %c0_i32_336 = arith.constant 0 : i32
        %514 = tpu.memref_slice %arg3[%513, %c0_i32_336] : memref<100x768xf32, #tpu.memory_space<any>> -> memref<1x768xf32, #tpu.memory_space<any>>
        %515 = tpu.memref_squeeze %514 : memref<1x768xf32, #tpu.memory_space<any>> -> memref<768xf32, #tpu.memory_space<any>>
        %c0_i32_337 = arith.constant 0 : i32
        %516 = tpu.memref_slice %arg10[%389, %c12_i32_334, %c0_i32_337] : memref<2x16x768xf32, #tpu.memory_space<vmem>> -> memref<1x1x768xf32, #tpu.memory_space<vmem>>
        %517 = tpu.memref_squeeze %516 : memref<1x1x768xf32, #tpu.memory_space<vmem>> -> memref<768xf32, #tpu.memory_space<vmem>>
        %518 = tpu.memref_slice %arg12[%389, %c12_i32_335] : memref<2x16x!tpu.dma_semaphore, #tpu.memory_space<semaphore_mem>> -> memref<1x1x!tpu.dma_semaphore, #tpu.memory_space<semaphore_mem>>
        %519 = tpu.memref_squeeze %518 : memref<1x1x!tpu.dma_semaphore, #tpu.memory_space<semaphore_mem>> -> memref<!tpu.dma_semaphore, #tpu.memory_space<semaphore_mem>>
        tpu.enqueue_dma source(%515 : memref<768xf32, #tpu.memory_space<any>>) target(%517 : memref<768xf32, #tpu.memory_space<vmem>>) target_semaphore(%519 : memref<!tpu.dma_semaphore, #tpu.memory_space<semaphore_mem>>)
        %c13_i32_338 = arith.constant 13 : i32
        %520 = arith.addi %0, %c13_i32_338 : i32
        %521 = arith.index_cast %520 : i32 to index
        %522 = arith.index_cast %388 : i32 to index
        %523 = memref.load %arg1[%521, %522] : memref<16x8xi32, #tpu.memory_space<smem>>
        %c13_i32_339 = arith.constant 13 : i32
        %c13_i32_340 = arith.constant 13 : i32
        %c0_i32_341 = arith.constant 0 : i32
        %524 = tpu.memref_slice %arg3[%523, %c0_i32_341] : memref<100x768xf32, #tpu.memory_space<any>> -> memref<1x768xf32, #tpu.memory_space<any>>
        %525 = tpu.memref_squeeze %524 : memref<1x768xf32, #tpu.memory_space<any>> -> memref<768xf32, #tpu.memory_space<any>>
        %c0_i32_342 = arith.constant 0 : i32
        %526 = tpu.memref_slice %arg10[%389, %c13_i32_339, %c0_i32_342] : memref<2x16x768xf32, #tpu.memory_space<vmem>> -> memref<1x1x768xf32, #tpu.memory_space<vmem>>
        %527 = tpu.memref_squeeze %526 : memref<1x1x768xf32, #tpu.memory_space<vmem>> -> memref<768xf32, #tpu.memory_space<vmem>>
        %528 = tpu.memref_slice %arg12[%389, %c13_i32_340] : memref<2x16x!tpu.dma_semaphore, #tpu.memory_space<semaphore_mem>> -> memref<1x1x!tpu.dma_semaphore, #tpu.memory_space<semaphore_mem>>
        %529 = tpu.memref_squeeze %528 : memref<1x1x!tpu.dma_semaphore, #tpu.memory_space<semaphore_mem>> -> memref<!tpu.dma_semaphore, #tpu.memory_space<semaphore_mem>>
        tpu.enqueue_dma source(%525 : memref<768xf32, #tpu.memory_space<any>>) target(%527 : memref<768xf32, #tpu.memory_space<vmem>>) target_semaphore(%529 : memref<!tpu.dma_semaphore, #tpu.memory_space<semaphore_mem>>)
        %c14_i32_343 = arith.constant 14 : i32
        %530 = arith.addi %0, %c14_i32_343 : i32
        %531 = arith.index_cast %530 : i32 to index
        %532 = arith.index_cast %388 : i32 to index
        %533 = memref.load %arg1[%531, %532] : memref<16x8xi32, #tpu.memory_space<smem>>
        %c14_i32_344 = arith.constant 14 : i32
        %c14_i32_345 = arith.constant 14 : i32
        %c0_i32_346 = arith.constant 0 : i32
        %534 = tpu.memref_slice %arg3[%533, %c0_i32_346] : memref<100x768xf32, #tpu.memory_space<any>> -> memref<1x768xf32, #tpu.memory_space<any>>
        %535 = tpu.memref_squeeze %534 : memref<1x768xf32, #tpu.memory_space<any>> -> memref<768xf32, #tpu.memory_space<any>>
        %c0_i32_347 = arith.constant 0 : i32
        %536 = tpu.memref_slice %arg10[%389, %c14_i32_344, %c0_i32_347] : memref<2x16x768xf32, #tpu.memory_space<vmem>> -> memref<1x1x768xf32, #tpu.memory_space<vmem>>
        %537 = tpu.memref_squeeze %536 : memref<1x1x768xf32, #tpu.memory_space<vmem>> -> memref<768xf32, #tpu.memory_space<vmem>>
        %538 = tpu.memref_slice %arg12[%389, %c14_i32_345] : memref<2x16x!tpu.dma_semaphore, #tpu.memory_space<semaphore_mem>> -> memref<1x1x!tpu.dma_semaphore, #tpu.memory_space<semaphore_mem>>
        %539 = tpu.memref_squeeze %538 : memref<1x1x!tpu.dma_semaphore, #tpu.memory_space<semaphore_mem>> -> memref<!tpu.dma_semaphore, #tpu.memory_space<semaphore_mem>>
        tpu.enqueue_dma source(%535 : memref<768xf32, #tpu.memory_space<any>>) target(%537 : memref<768xf32, #tpu.memory_space<vmem>>) target_semaphore(%539 : memref<!tpu.dma_semaphore, #tpu.memory_space<semaphore_mem>>)
        %c15_i32_348 = arith.constant 15 : i32
        %540 = arith.addi %0, %c15_i32_348 : i32
        %541 = arith.index_cast %540 : i32 to index
        %542 = arith.index_cast %388 : i32 to index
        %543 = memref.load %arg1[%541, %542] : memref<16x8xi32, #tpu.memory_space<smem>>
        %c15_i32_349 = arith.constant 15 : i32
        %c15_i32_350 = arith.constant 15 : i32
        %c0_i32_351 = arith.constant 0 : i32
        %544 = tpu.memref_slice %arg3[%543, %c0_i32_351] : memref<100x768xf32, #tpu.memory_space<any>> -> memref<1x768xf32, #tpu.memory_space<any>>
        %545 = tpu.memref_squeeze %544 : memref<1x768xf32, #tpu.memory_space<any>> -> memref<768xf32, #tpu.memory_space<any>>
        %c0_i32_352 = arith.constant 0 : i32
        %546 = tpu.memref_slice %arg10[%389, %c15_i32_349, %c0_i32_352] : memref<2x16x768xf32, #tpu.memory_space<vmem>> -> memref<1x1x768xf32, #tpu.memory_space<vmem>>
        %547 = tpu.memref_squeeze %546 : memref<1x1x768xf32, #tpu.memory_space<vmem>> -> memref<768xf32, #tpu.memory_space<vmem>>
        %548 = tpu.memref_slice %arg12[%389, %c15_i32_350] : memref<2x16x!tpu.dma_semaphore, #tpu.memory_space<semaphore_mem>> -> memref<1x1x!tpu.dma_semaphore, #tpu.memory_space<semaphore_mem>>
        %549 = tpu.memref_squeeze %548 : memref<1x1x!tpu.dma_semaphore, #tpu.memory_space<semaphore_mem>> -> memref<!tpu.dma_semaphore, #tpu.memory_space<semaphore_mem>>
        tpu.enqueue_dma source(%545 : memref<768xf32, #tpu.memory_space<any>>) target(%547 : memref<768xf32, #tpu.memory_space<vmem>>) target_semaphore(%549 : memref<!tpu.dma_semaphore, #tpu.memory_space<semaphore_mem>>)
      } else {
      }
      %273 = arith.index_cast %172 : i32 to index
      %c0_221 = arith.constant 0 : index
      %c0_222 = arith.constant 0 : index
      %274 = vector.load %arg10[%273, %c0_221, %c0_222] : memref<2x16x768xf32, #tpu.memory_space<vmem>>, vector<1x16x768xf32>
      %275 = vector.shape_cast %274 : vector<1x16x768xf32> to vector<16x768xf32>
      %c0_i32_223 = arith.constant 0 : i32
      %276 = arith.addi %0, %c0_i32_223 : i32
      %277 = arith.index_cast %276 : i32 to index
      %278 = arith.index_cast %171 : i32 to index
      %279 = memref.load %arg2[%277, %278] : memref<16x8xi32, #tpu.memory_space<smem>>
      %c0_i32_224 = arith.constant 0 : i32
      %280 = arith.cmpi ne, %279, %c0_i32_224 : i32
      %281 = arith.extui %280 : i1 to i32
      %c0_i32_225 = arith.constant 0 : i32
      %282 = arith.cmpi ne, %281, %c0_i32_225 : i32
      scf.if %282 {
        %c0_271 = arith.constant 0 : index
        %c0_272 = arith.constant 0 : index
        %388 = vector.load %arg11[%c0_271, %c0_272] : memref<16x768xf32, #tpu.memory_space<vmem>>, vector<1x768xf32>
        %389 = vector.extract_strided_slice %275 {offsets = [0, 0], sizes = [1, 768], strides = [1, 1]} : vector<16x768xf32> to vector<1x768xf32>
        %390 = arith.addf %388, %389 : vector<1x768xf32>
        %c0_273 = arith.constant 0 : index
        %c0_274 = arith.constant 0 : index
        %391 = vector.load %arg11[%c0_273, %c0_274] : memref<16x768xf32, #tpu.memory_space<vmem>>, vector<1x768xf32>
        tpu.vector_store %arg11[%c0_273, %c0_274], %390 {strides = array<i32>} : memref<16x768xf32, #tpu.memory_space<vmem>>, vector<1x768xf32>,
      } else {
      }
      %c1_i32_226 = arith.constant 1 : i32
      %283 = arith.addi %0, %c1_i32_226 : i32
      %284 = arith.index_cast %283 : i32 to index
      %285 = arith.index_cast %171 : i32 to index
      %286 = memref.load %arg2[%284, %285] : memref<16x8xi32, #tpu.memory_space<smem>>
      %c0_i32_227 = arith.constant 0 : i32
      %287 = arith.cmpi ne, %286, %c0_i32_227 : i32
      %288 = arith.extui %287 : i1 to i32
      %c0_i32_228 = arith.constant 0 : i32
      %289 = arith.cmpi ne, %288, %c0_i32_228 : i32
      scf.if %289 {
        %c1 = arith.constant 1 : index
        %c0_271 = arith.constant 0 : index
        %388 = vector.load %arg11[%c1, %c0_271] : memref<16x768xf32, #tpu.memory_space<vmem>>, vector<1x768xf32>
        %389 = vector.extract_strided_slice %275 {offsets = [1, 0], sizes = [1, 768], strides = [1, 1]} : vector<16x768xf32> to vector<1x768xf32>
        %390 = arith.addf %388, %389 : vector<1x768xf32>
        %c1_272 = arith.constant 1 : index
        %c0_273 = arith.constant 0 : index
        %391 = vector.load %arg11[%c1_272, %c0_273] : memref<16x768xf32, #tpu.memory_space<vmem>>, vector<1x768xf32>
        tpu.vector_store %arg11[%c1_272, %c0_273], %390 {strides = array<i32>} : memref<16x768xf32, #tpu.memory_space<vmem>>, vector<1x768xf32>,
      } else {
      }
      %c2_i32_229 = arith.constant 2 : i32
      %290 = arith.addi %0, %c2_i32_229 : i32
      %291 = arith.index_cast %290 : i32 to index
      %292 = arith.index_cast %171 : i32 to index
      %293 = memref.load %arg2[%291, %292] : memref<16x8xi32, #tpu.memory_space<smem>>
      %c0_i32_230 = arith.constant 0 : i32
      %294 = arith.cmpi ne, %293, %c0_i32_230 : i32
      %295 = arith.extui %294 : i1 to i32
      %c0_i32_231 = arith.constant 0 : i32
      %296 = arith.cmpi ne, %295, %c0_i32_231 : i32
      scf.if %296 {
        %c2 = arith.constant 2 : index
        %c0_271 = arith.constant 0 : index
        %388 = vector.load %arg11[%c2, %c0_271] : memref<16x768xf32, #tpu.memory_space<vmem>>, vector<1x768xf32>
        %389 = vector.extract_strided_slice %275 {offsets = [2, 0], sizes = [1, 768], strides = [1, 1]} : vector<16x768xf32> to vector<1x768xf32>
        %390 = arith.addf %388, %389 : vector<1x768xf32>
        %c2_272 = arith.constant 2 : index
        %c0_273 = arith.constant 0 : index
        %391 = vector.load %arg11[%c2_272, %c0_273] : memref<16x768xf32, #tpu.memory_space<vmem>>, vector<1x768xf32>
        tpu.vector_store %arg11[%c2_272, %c0_273], %390 {strides = array<i32>} : memref<16x768xf32, #tpu.memory_space<vmem>>, vector<1x768xf32>,
      } else {
      }
      %c3_i32_232 = arith.constant 3 : i32
      %297 = arith.addi %0, %c3_i32_232 : i32
      %298 = arith.index_cast %297 : i32 to index
      %299 = arith.index_cast %171 : i32 to index
      %300 = memref.load %arg2[%298, %299] : memref<16x8xi32, #tpu.memory_space<smem>>
      %c0_i32_233 = arith.constant 0 : i32
      %301 = arith.cmpi ne, %300, %c0_i32_233 : i32
      %302 = arith.extui %301 : i1 to i32
      %c0_i32_234 = arith.constant 0 : i32
      %303 = arith.cmpi ne, %302, %c0_i32_234 : i32
      scf.if %303 {
        %c3 = arith.constant 3 : index
        %c0_271 = arith.constant 0 : index
        %388 = vector.load %arg11[%c3, %c0_271] : memref<16x768xf32, #tpu.memory_space<vmem>>, vector<1x768xf32>
        %389 = vector.extract_strided_slice %275 {offsets = [3, 0], sizes = [1, 768], strides = [1, 1]} : vector<16x768xf32> to vector<1x768xf32>
        %390 = arith.addf %388, %389 : vector<1x768xf32>
        %c3_272 = arith.constant 3 : index
        %c0_273 = arith.constant 0 : index
        %391 = vector.load %arg11[%c3_272, %c0_273] : memref<16x768xf32, #tpu.memory_space<vmem>>, vector<1x768xf32>
        tpu.vector_store %arg11[%c3_272, %c0_273], %390 {strides = array<i32>} : memref<16x768xf32, #tpu.memory_space<vmem>>, vector<1x768xf32>,
      } else {
      }
      %c4_i32_235 = arith.constant 4 : i32
      %304 = arith.addi %0, %c4_i32_235 : i32
      %305 = arith.index_cast %304 : i32 to index
      %306 = arith.index_cast %171 : i32 to index
      %307 = memref.load %arg2[%305, %306] : memref<16x8xi32, #tpu.memory_space<smem>>
      %c0_i32_236 = arith.constant 0 : i32
      %308 = arith.cmpi ne, %307, %c0_i32_236 : i32
      %309 = arith.extui %308 : i1 to i32
      %c0_i32_237 = arith.constant 0 : i32
      %310 = arith.cmpi ne, %309, %c0_i32_237 : i32
      scf.if %310 {
        %c4 = arith.constant 4 : index
        %c0_271 = arith.constant 0 : index
        %388 = vector.load %arg11[%c4, %c0_271] : memref<16x768xf32, #tpu.memory_space<vmem>>, vector<1x768xf32>
        %389 = vector.extract_strided_slice %275 {offsets = [4, 0], sizes = [1, 768], strides = [1, 1]} : vector<16x768xf32> to vector<1x768xf32>
        %390 = arith.addf %388, %389 : vector<1x768xf32>
        %c4_272 = arith.constant 4 : index
        %c0_273 = arith.constant 0 : index
        %391 = vector.load %arg11[%c4_272, %c0_273] : memref<16x768xf32, #tpu.memory_space<vmem>>, vector<1x768xf32>
        tpu.vector_store %arg11[%c4_272, %c0_273], %390 {strides = array<i32>} : memref<16x768xf32, #tpu.memory_space<vmem>>, vector<1x768xf32>,
      } else {
      }
      %c5_i32_238 = arith.constant 5 : i32
      %311 = arith.addi %0, %c5_i32_238 : i32
      %312 = arith.index_cast %311 : i32 to index
      %313 = arith.index_cast %171 : i32 to index
      %314 = memref.load %arg2[%312, %313] : memref<16x8xi32, #tpu.memory_space<smem>>
      %c0_i32_239 = arith.constant 0 : i32
      %315 = arith.cmpi ne, %314, %c0_i32_239 : i32
      %316 = arith.extui %315 : i1 to i32
      %c0_i32_240 = arith.constant 0 : i32
      %317 = arith.cmpi ne, %316, %c0_i32_240 : i32
      scf.if %317 {
        %c5 = arith.constant 5 : index
        %c0_271 = arith.constant 0 : index
        %388 = vector.load %arg11[%c5, %c0_271] : memref<16x768xf32, #tpu.memory_space<vmem>>, vector<1x768xf32>
        %389 = vector.extract_strided_slice %275 {offsets = [5, 0], sizes = [1, 768], strides = [1, 1]} : vector<16x768xf32> to vector<1x768xf32>
        %390 = arith.addf %388, %389 : vector<1x768xf32>
        %c5_272 = arith.constant 5 : index
        %c0_273 = arith.constant 0 : index
        %391 = vector.load %arg11[%c5_272, %c0_273] : memref<16x768xf32, #tpu.memory_space<vmem>>, vector<1x768xf32>
        tpu.vector_store %arg11[%c5_272, %c0_273], %390 {strides = array<i32>} : memref<16x768xf32, #tpu.memory_space<vmem>>, vector<1x768xf32>,
      } else {
      }
      %c6_i32_241 = arith.constant 6 : i32
      %318 = arith.addi %0, %c6_i32_241 : i32
      %319 = arith.index_cast %318 : i32 to index
      %320 = arith.index_cast %171 : i32 to index
      %321 = memref.load %arg2[%319, %320] : memref<16x8xi32, #tpu.memory_space<smem>>
      %c0_i32_242 = arith.constant 0 : i32
      %322 = arith.cmpi ne, %321, %c0_i32_242 : i32
      %323 = arith.extui %322 : i1 to i32
      %c0_i32_243 = arith.constant 0 : i32
      %324 = arith.cmpi ne, %323, %c0_i32_243 : i32
      scf.if %324 {
        %c6 = arith.constant 6 : index
        %c0_271 = arith.constant 0 : index
        %388 = vector.load %arg11[%c6, %c0_271] : memref<16x768xf32, #tpu.memory_space<vmem>>, vector<1x768xf32>
        %389 = vector.extract_strided_slice %275 {offsets = [6, 0], sizes = [1, 768], strides = [1, 1]} : vector<16x768xf32> to vector<1x768xf32>
        %390 = arith.addf %388, %389 : vector<1x768xf32>
        %c6_272 = arith.constant 6 : index
        %c0_273 = arith.constant 0 : index
        %391 = vector.load %arg11[%c6_272, %c0_273] : memref<16x768xf32, #tpu.memory_space<vmem>>, vector<1x768xf32>
        tpu.vector_store %arg11[%c6_272, %c0_273], %390 {strides = array<i32>} : memref<16x768xf32, #tpu.memory_space<vmem>>, vector<1x768xf32>,
      } else {
      }
      %c7_i32_244 = arith.constant 7 : i32
      %325 = arith.addi %0, %c7_i32_244 : i32
      %326 = arith.index_cast %325 : i32 to index
      %327 = arith.index_cast %171 : i32 to index
      %328 = memref.load %arg2[%326, %327] : memref<16x8xi32, #tpu.memory_space<smem>>
      %c0_i32_245 = arith.constant 0 : i32
      %329 = arith.cmpi ne, %328, %c0_i32_245 : i32
      %330 = arith.extui %329 : i1 to i32
      %c0_i32_246 = arith.constant 0 : i32
      %331 = arith.cmpi ne, %330, %c0_i32_246 : i32
      scf.if %331 {
        %c7 = arith.constant 7 : index
        %c0_271 = arith.constant 0 : index
        %388 = vector.load %arg11[%c7, %c0_271] : memref<16x768xf32, #tpu.memory_space<vmem>>, vector<1x768xf32>
        %389 = vector.extract_strided_slice %275 {offsets = [7, 0], sizes = [1, 768], strides = [1, 1]} : vector<16x768xf32> to vector<1x768xf32>
        %390 = arith.addf %388, %389 : vector<1x768xf32>
        %c7_272 = arith.constant 7 : index
        %c0_273 = arith.constant 0 : index
        %391 = vector.load %arg11[%c7_272, %c0_273] : memref<16x768xf32, #tpu.memory_space<vmem>>, vector<1x768xf32>
        tpu.vector_store %arg11[%c7_272, %c0_273], %390 {strides = array<i32>} : memref<16x768xf32, #tpu.memory_space<vmem>>, vector<1x768xf32>,
      } else {
      }
      %c8_i32_247 = arith.constant 8 : i32
      %332 = arith.addi %0, %c8_i32_247 : i32
      %333 = arith.index_cast %332 : i32 to index
      %334 = arith.index_cast %171 : i32 to index
      %335 = memref.load %arg2[%333, %334] : memref<16x8xi32, #tpu.memory_space<smem>>
      %c0_i32_248 = arith.constant 0 : i32
      %336 = arith.cmpi ne, %335, %c0_i32_248 : i32
      %337 = arith.extui %336 : i1 to i32
      %c0_i32_249 = arith.constant 0 : i32
      %338 = arith.cmpi ne, %337, %c0_i32_249 : i32
      scf.if %338 {
        %c8 = arith.constant 8 : index
        %c0_271 = arith.constant 0 : index
        %388 = vector.load %arg11[%c8, %c0_271] : memref<16x768xf32, #tpu.memory_space<vmem>>, vector<1x768xf32>
        %389 = vector.extract_strided_slice %275 {offsets = [8, 0], sizes = [1, 768], strides = [1, 1]} : vector<16x768xf32> to vector<1x768xf32>
        %390 = arith.addf %388, %389 : vector<1x768xf32>
        %c8_272 = arith.constant 8 : index
        %c0_273 = arith.constant 0 : index
        %391 = vector.load %arg11[%c8_272, %c0_273] : memref<16x768xf32, #tpu.memory_space<vmem>>, vector<1x768xf32>
        tpu.vector_store %arg11[%c8_272, %c0_273], %390 {strides = array<i32>} : memref<16x768xf32, #tpu.memory_space<vmem>>, vector<1x768xf32>,
      } else {
      }
      %c9_i32_250 = arith.constant 9 : i32
      %339 = arith.addi %0, %c9_i32_250 : i32
      %340 = arith.index_cast %339 : i32 to index
      %341 = arith.index_cast %171 : i32 to index
      %342 = memref.load %arg2[%340, %341] : memref<16x8xi32, #tpu.memory_space<smem>>
      %c0_i32_251 = arith.constant 0 : i32
      %343 = arith.cmpi ne, %342, %c0_i32_251 : i32
      %344 = arith.extui %343 : i1 to i32
      %c0_i32_252 = arith.constant 0 : i32
      %345 = arith.cmpi ne, %344, %c0_i32_252 : i32
      scf.if %345 {
        %c9 = arith.constant 9 : index
        %c0_271 = arith.constant 0 : index
        %388 = vector.load %arg11[%c9, %c0_271] : memref<16x768xf32, #tpu.memory_space<vmem>>, vector<1x768xf32>
        %389 = vector.extract_strided_slice %275 {offsets = [9, 0], sizes = [1, 768], strides = [1, 1]} : vector<16x768xf32> to vector<1x768xf32>
        %390 = arith.addf %388, %389 : vector<1x768xf32>
        %c9_272 = arith.constant 9 : index
        %c0_273 = arith.constant 0 : index
        %391 = vector.load %arg11[%c9_272, %c0_273] : memref<16x768xf32, #tpu.memory_space<vmem>>, vector<1x768xf32>
        tpu.vector_store %arg11[%c9_272, %c0_273], %390 {strides = array<i32>} : memref<16x768xf32, #tpu.memory_space<vmem>>, vector<1x768xf32>,
      } else {
      }
      %c10_i32_253 = arith.constant 10 : i32
      %346 = arith.addi %0, %c10_i32_253 : i32
      %347 = arith.index_cast %346 : i32 to index
      %348 = arith.index_cast %171 : i32 to index
      %349 = memref.load %arg2[%347, %348] : memref<16x8xi32, #tpu.memory_space<smem>>
      %c0_i32_254 = arith.constant 0 : i32
      %350 = arith.cmpi ne, %349, %c0_i32_254 : i32
      %351 = arith.extui %350 : i1 to i32
      %c0_i32_255 = arith.constant 0 : i32
      %352 = arith.cmpi ne, %351, %c0_i32_255 : i32
      scf.if %352 {
        %c10 = arith.constant 10 : index
        %c0_271 = arith.constant 0 : index
        %388 = vector.load %arg11[%c10, %c0_271] : memref<16x768xf32, #tpu.memory_space<vmem>>, vector<1x768xf32>
        %389 = vector.extract_strided_slice %275 {offsets = [10, 0], sizes = [1, 768], strides = [1, 1]} : vector<16x768xf32> to vector<1x768xf32>
        %390 = arith.addf %388, %389 : vector<1x768xf32>
        %c10_272 = arith.constant 10 : index
        %c0_273 = arith.constant 0 : index
        %391 = vector.load %arg11[%c10_272, %c0_273] : memref<16x768xf32, #tpu.memory_space<vmem>>, vector<1x768xf32>
        tpu.vector_store %arg11[%c10_272, %c0_273], %390 {strides = array<i32>} : memref<16x768xf32, #tpu.memory_space<vmem>>, vector<1x768xf32>,
      } else {
      }
      %c11_i32_256 = arith.constant 11 : i32
      %353 = arith.addi %0, %c11_i32_256 : i32
      %354 = arith.index_cast %353 : i32 to index
      %355 = arith.index_cast %171 : i32 to index
      %356 = memref.load %arg2[%354, %355] : memref<16x8xi32, #tpu.memory_space<smem>>
      %c0_i32_257 = arith.constant 0 : i32
      %357 = arith.cmpi ne, %356, %c0_i32_257 : i32
      %358 = arith.extui %357 : i1 to i32
      %c0_i32_258 = arith.constant 0 : i32
      %359 = arith.cmpi ne, %358, %c0_i32_258 : i32
      scf.if %359 {
        %c11 = arith.constant 11 : index
        %c0_271 = arith.constant 0 : index
        %388 = vector.load %arg11[%c11, %c0_271] : memref<16x768xf32, #tpu.memory_space<vmem>>, vector<1x768xf32>
        %389 = vector.extract_strided_slice %275 {offsets = [11, 0], sizes = [1, 768], strides = [1, 1]} : vector<16x768xf32> to vector<1x768xf32>
        %390 = arith.addf %388, %389 : vector<1x768xf32>
        %c11_272 = arith.constant 11 : index
        %c0_273 = arith.constant 0 : index
        %391 = vector.load %arg11[%c11_272, %c0_273] : memref<16x768xf32, #tpu.memory_space<vmem>>, vector<1x768xf32>
        tpu.vector_store %arg11[%c11_272, %c0_273], %390 {strides = array<i32>} : memref<16x768xf32, #tpu.memory_space<vmem>>, vector<1x768xf32>,
      } else {
      }
      %c12_i32_259 = arith.constant 12 : i32
      %360 = arith.addi %0, %c12_i32_259 : i32
      %361 = arith.index_cast %360 : i32 to index
      %362 = arith.index_cast %171 : i32 to index
      %363 = memref.load %arg2[%361, %362] : memref<16x8xi32, #tpu.memory_space<smem>>
      %c0_i32_260 = arith.constant 0 : i32
      %364 = arith.cmpi ne, %363, %c0_i32_260 : i32
      %365 = arith.extui %364 : i1 to i32
      %c0_i32_261 = arith.constant 0 : i32
      %366 = arith.cmpi ne, %365, %c0_i32_261 : i32
      scf.if %366 {
        %c12 = arith.constant 12 : index
        %c0_271 = arith.constant 0 : index
        %388 = vector.load %arg11[%c12, %c0_271] : memref<16x768xf32, #tpu.memory_space<vmem>>, vector<1x768xf32>
        %389 = vector.extract_strided_slice %275 {offsets = [12, 0], sizes = [1, 768], strides = [1, 1]} : vector<16x768xf32> to vector<1x768xf32>
        %390 = arith.addf %388, %389 : vector<1x768xf32>
        %c12_272 = arith.constant 12 : index
        %c0_273 = arith.constant 0 : index
        %391 = vector.load %arg11[%c12_272, %c0_273] : memref<16x768xf32, #tpu.memory_space<vmem>>, vector<1x768xf32>
        tpu.vector_store %arg11[%c12_272, %c0_273], %390 {strides = array<i32>} : memref<16x768xf32, #tpu.memory_space<vmem>>, vector<1x768xf32>,
      } else {
      }
      %c13_i32_262 = arith.constant 13 : i32
      %367 = arith.addi %0, %c13_i32_262 : i32
      %368 = arith.index_cast %367 : i32 to index
      %369 = arith.index_cast %171 : i32 to index
      %370 = memref.load %arg2[%368, %369] : memref<16x8xi32, #tpu.memory_space<smem>>
      %c0_i32_263 = arith.constant 0 : i32
      %371 = arith.cmpi ne, %370, %c0_i32_263 : i32
      %372 = arith.extui %371 : i1 to i32
      %c0_i32_264 = arith.constant 0 : i32
      %373 = arith.cmpi ne, %372, %c0_i32_264 : i32
      scf.if %373 {
        %c13 = arith.constant 13 : index
        %c0_271 = arith.constant 0 : index
        %388 = vector.load %arg11[%c13, %c0_271] : memref<16x768xf32, #tpu.memory_space<vmem>>, vector<1x768xf32>
        %389 = vector.extract_strided_slice %275 {offsets = [13, 0], sizes = [1, 768], strides = [1, 1]} : vector<16x768xf32> to vector<1x768xf32>
        %390 = arith.addf %388, %389 : vector<1x768xf32>
        %c13_272 = arith.constant 13 : index
        %c0_273 = arith.constant 0 : index
        %391 = vector.load %arg11[%c13_272, %c0_273] : memref<16x768xf32, #tpu.memory_space<vmem>>, vector<1x768xf32>
        tpu.vector_store %arg11[%c13_272, %c0_273], %390 {strides = array<i32>} : memref<16x768xf32, #tpu.memory_space<vmem>>, vector<1x768xf32>,
      } else {
      }
      %c14_i32_265 = arith.constant 14 : i32
      %374 = arith.addi %0, %c14_i32_265 : i32
      %375 = arith.index_cast %374 : i32 to index
      %376 = arith.index_cast %171 : i32 to index
      %377 = memref.load %arg2[%375, %376] : memref<16x8xi32, #tpu.memory_space<smem>>
      %c0_i32_266 = arith.constant 0 : i32
      %378 = arith.cmpi ne, %377, %c0_i32_266 : i32
      %379 = arith.extui %378 : i1 to i32
      %c0_i32_267 = arith.constant 0 : i32
      %380 = arith.cmpi ne, %379, %c0_i32_267 : i32
      scf.if %380 {
        %c14 = arith.constant 14 : index
        %c0_271 = arith.constant 0 : index
        %388 = vector.load %arg11[%c14, %c0_271] : memref<16x768xf32, #tpu.memory_space<vmem>>, vector<1x768xf32>
        %389 = vector.extract_strided_slice %275 {offsets = [14, 0], sizes = [1, 768], strides = [1, 1]} : vector<16x768xf32> to vector<1x768xf32>
        %390 = arith.addf %388, %389 : vector<1x768xf32>
        %c14_272 = arith.constant 14 : index
        %c0_273 = arith.constant 0 : index
        %391 = vector.load %arg11[%c14_272, %c0_273] : memref<16x768xf32, #tpu.memory_space<vmem>>, vector<1x768xf32>
        tpu.vector_store %arg11[%c14_272, %c0_273], %390 {strides = array<i32>} : memref<16x768xf32, #tpu.memory_space<vmem>>, vector<1x768xf32>,
      } else {
      }
      %c15_i32_268 = arith.constant 15 : i32
      %381 = arith.addi %0, %c15_i32_268 : i32
      %382 = arith.index_cast %381 : i32 to index
      %383 = arith.index_cast %171 : i32 to index
      %384 = memref.load %arg2[%382, %383] : memref<16x8xi32, #tpu.memory_space<smem>>
      %c0_i32_269 = arith.constant 0 : i32
      %385 = arith.cmpi ne, %384, %c0_i32_269 : i32
      %386 = arith.extui %385 : i1 to i32
      %c0_i32_270 = arith.constant 0 : i32
      %387 = arith.cmpi ne, %386, %c0_i32_270 : i32
      scf.if %387 {
        %c15 = arith.constant 15 : index
        %c0_271 = arith.constant 0 : index
        %388 = vector.load %arg11[%c15, %c0_271] : memref<16x768xf32, #tpu.memory_space<vmem>>, vector<1x768xf32>
        %389 = vector.extract_strided_slice %275 {offsets = [15, 0], sizes = [1, 768], strides = [1, 1]} : vector<16x768xf32> to vector<1x768xf32>
        %390 = arith.addf %388, %389 : vector<1x768xf32>
        %c15_272 = arith.constant 15 : index
        %c0_273 = arith.constant 0 : index
        %391 = vector.load %arg11[%c15_272, %c0_273] : memref<16x768xf32, #tpu.memory_space<vmem>>, vector<1x768xf32>
        tpu.vector_store %arg11[%c15_272, %c0_273], %390 {strides = array<i32>} : memref<16x768xf32, #tpu.memory_space<vmem>>, vector<1x768xf32>,
      } else {
      }
    }
    %c8_i32_116 = arith.constant 8 : i32
    %c0_117 = arith.constant 0 : index
    %c0_118 = arith.constant 0 : index
    %148 = vector.load %arg4[%c0_117, %c0_118] : memref<16x8xf32, #tpu.memory_space<vmem>>, vector<16x8xf32>
    %cst_119 = arith.constant dense<0.000000e+00> : vector<16xf32>
    %149 = vector.multi_reduction <add>, %148, %cst_119 [1] : vector<16x8xf32> to vector<16xf32>
    %150 = vector.shape_cast %149 : vector<16xf32> to vector<16x1xf32>
    %cst_120 = arith.constant 1.000000e+00 : f32
    %151 = vector.broadcast %cst_120 : f32 to vector<16x1xf32>
    %152 = arith.maximumf %150, %151 : vector<16x1xf32>
    %c0_121 = arith.constant 0 : index
    %c0_122 = arith.constant 0 : index
    %153 = vector.load %arg11[%c0_121, %c0_122] : memref<16x768xf32, #tpu.memory_space<vmem>>, vector<16x768xf32>
    %154 = vector.broadcast %152 : vector<16x1xf32> to vector<16x768xf32>
    %155 = arith.divf %153, %154 : vector<16x768xf32>
    %156 = arith.truncf %155 : vector<16x768xf32> to vector<16x768xbf16>
    %c0_123 = arith.constant 0 : index
    %c0_124 = arith.constant 0 : index
    %157 = vector.load %arg5[%c0_123, %c0_124] : memref<768x768xbf16, #tpu.memory_space<vmem>>, vector<768x768xbf16>
    %cst_125 = arith.constant dense<0.000000e+00> : vector<16x768xf32>
    %158 = tpu.matmul %156, %157, %cst_125 {dimension_numbers = #tpu.dot_dimension_numbers<[1], [0], [0], [1], [0, 0, 1, 1], [], []>} : vector<16x768xbf16>, vector<768x768xbf16>, vector<16x768xf32> -> vector<16x768xf32>
    %c0_126 = arith.constant 0 : index
    %c0_127 = arith.constant 0 : index
    %159 = vector.load %arg6[%c0_126, %c0_127] : memref<1x768xf32, #tpu.memory_space<vmem>>, vector<1x768xf32>
    %160 = vector.broadcast %159 : vector<1x768xf32> to vector<16x768xf32>
    %161 = arith.addf %158, %160 : vector<16x768xf32>
    %162 = math.tanh %161 : vector<16x768xf32>
    %163 = arith.truncf %162 : vector<16x768xf32> to vector<16x768xbf16>
    %c0_128 = arith.constant 0 : index
    %c0_129 = arith.constant 0 : index
    %164 = vector.load %arg7[%c0_128, %c0_129] : memref<768x700xbf16, #tpu.memory_space<vmem>>, vector<768x700xbf16>
    %cst_130 = arith.constant dense<0.000000e+00> : vector<16x700xf32>
    %165 = tpu.matmul %163, %164, %cst_130 {dimension_numbers = #tpu.dot_dimension_numbers<[1], [0], [0], [1], [0, 0, 1, 1], [], []>} : vector<16x768xbf16>, vector<768x700xbf16>, vector<16x700xf32> -> vector<16x700xf32>
    %c0_131 = arith.constant 0 : index
    %c0_132 = arith.constant 0 : index
    %166 = vector.load %arg8[%c0_131, %c0_132] : memref<1x700xf32, #tpu.memory_space<vmem>>, vector<1x700xf32>
    %167 = vector.broadcast %166 : vector<1x700xf32> to vector<16x700xf32>
    %168 = arith.addf %165, %167 : vector<16x700xf32>
    %c0_133 = arith.constant 0 : index
    %c0_134 = arith.constant 0 : index
    %169 = vector.load %arg9[%c0_133, %c0_134] : memref<16x700xf32, #tpu.memory_space<vmem>>, vector<16x700xf32>
    tpu.vector_store %arg9[%c0_133, %c0_134], %168 {strides = array<i32>} : memref<16x700xf32, #tpu.memory_space<vmem>>, vector<16x700xf32>,
    return
  }
  func.func @transform_1(%arg0: i32, %arg1: memref<16x8xi32, #tpu.memory_space<smem>>, %arg2: memref<16x8xi32, #tpu.memory_space<smem>>) -> (i32, i32) {
    %c0_i32 = arith.constant 0 : i32
    %c0_i32_0 = arith.constant 0 : i32
    return %arg0, %c0_i32 : i32, i32
  }
  func.func @transform_2(%arg0: i32, %arg1: memref<16x8xi32, #tpu.memory_space<smem>>, %arg2: memref<16x8xi32, #tpu.memory_space<smem>>) -> (i32, i32) {
    %c0_i32 = arith.constant 0 : i32
    %c0_i32_0 = arith.constant 0 : i32
    %c0_i32_1 = arith.constant 0 : i32
    return %c0_i32, %c0_i32_0 : i32, i32
  }
  func.func @transform_3(%arg0: i32, %arg1: memref<16x8xi32, #tpu.memory_space<smem>>, %arg2: memref<16x8xi32, #tpu.memory_space<smem>>) -> (i32, i32) {
    %c0_i32 = arith.constant 0 : i32
    %c0_i32_0 = arith.constant 0 : i32
    %c0_i32_1 = arith.constant 0 : i32
    return %c0_i32, %c0_i32_0 : i32, i32
  }
  func.func @transform_4(%arg0: i32, %arg1: memref<16x8xi32, #tpu.memory_space<smem>>, %arg2: memref<16x8xi32, #tpu.memory_space<smem>>) -> (i32, i32) {
    %c0_i32 = arith.constant 0 : i32
    %c0_i32_0 = arith.constant 0 : i32
    %c0_i32_1 = arith.constant 0 : i32
    return %c0_i32, %c0_i32_0 : i32, i32
  }
  func.func @transform_5(%arg0: i32, %arg1: memref<16x8xi32, #tpu.memory_space<smem>>, %arg2: memref<16x8xi32, #tpu.memory_space<smem>>) -> (i32, i32) {
    %c0_i32 = arith.constant 0 : i32
    %c0_i32_0 = arith.constant 0 : i32
    %c0_i32_1 = arith.constant 0 : i32
    return %c0_i32, %c0_i32_0 : i32, i32
  }
  func.func @transform_6(%arg0: i32, %arg1: memref<16x8xi32, #tpu.memory_space<smem>>, %arg2: memref<16x8xi32, #tpu.memory_space<smem>>) -> (i32, i32) {
    %c0_i32 = arith.constant 0 : i32
    %c0_i32_0 = arith.constant 0 : i32
    return %arg0, %c0_i32 : i32, i32
  }
}

</mosaic_0001>

<bundles_post_ra>
// kernel: tpu_custom_call.1
= control target key start
LH: loop header
LB: loop body
LE: loop exit
PB: predicated region body
PF: predicated region fallthrough
CT: control target
= control target key end

     0   :  { %s13217_s0 = inlined_call_operand.vmem [shape: s32[16,8], index: 0, kind: input, shape index: {}]   ;;  %s13218_s2 = inlined_call_operand.vmem [shape: f32[100,768], index: 2, kind: input, shape index: {}]   ;;  %s13219_s3 = inlined_call_operand.vmem [shape: f32[16,8], index: 3, kind: input, shape index: {}]   ;;  %s13220_s4 = inlined_call_operand.vmem [shape: bf16[768,768], index: 4, kind: input, shape index: {}]   ;;  %s13221_s5 = inlined_call_operand.vmem [shape: f32[1,768], index: 5, kind: input, shape index: {}]   ;;  %s13222_s6 = inlined_call_operand.vmem [shape: bf16[768,700], index: 6, kind: input, shape index: {}]   ;;  %s13223_s7 = inlined_call_operand.vmem [shape: f32[1,700], index: 7, kind: input, shape index: {}]   ;;  %s13224_s8 = inlined_call_operand.hbm [shape: f32[16,700], index: 8, kind: output, shape index: {}]   ;;  %s13225_s1 = inlined_call_operand.vmem [shape: s32[16,8], index: 1, kind: input, shape index: {}]  }
   0x1   :  { %s13_s29 = sshll.u32 %s13217_s0, 4  ;;  %s17_s10 = sshll.u32 %s13225_s1, 4  ;;  %s14_s29 = int_to_ptr.vmem [resolvable:$true] %s13_s29  ;;  %s18_s10 = int_to_ptr.vmem [resolvable:$true] %s17_s10 }
   0x2   :  { %s10756_s11 = scalar_lea.vmem %s14_s29, 256  ;;  %p10761_p1 = scmp.lt.s32.totalorder %s14_s29, %s14_s29 }
   0x3   :  { %p10757_p0 = scmp.ne.s32.totalorder %s14_s29, %s10756_s11  ;;  %p10762_p2 = scmp.lt.s32.totalorder %s10756_s11, %s10756_s11 }
   0x5   :  { %p10763_p3 = por %p10762_p2, %p10761_p1 }
   0x7   :  { %p10764_p4 = pnand %p10763_p3, %p10757_p0 }
   0x9   :  { %10767 = shalt.err (!%p10764_p4)  }
   0xa   :  { %s10844_s12 = smov [#allocation6]   ;;  %s10768_s13 = scalar_lea.vmem %s18_s10, 256 }
   0xb   :  { %16 = dma.vmem_to_smem %s14_s29, 256, %s10844_s12, [#allocation5] }
   0xc   :  { %p10769_p5 = scmp.ne.s32.totalorder %s18_s10, %s10768_s13  ;;  %p10773_p6 = scmp.lt.s32.totalorder %s18_s10, %s18_s10 }
   0xd   :  { %p10774_p7 = scmp.lt.s32.totalorder %s10768_s13, %s10768_s13 }
   0xf   :  { %p10775_p8 = por %p10774_p7, %p10773_p6 }
  0x11   :  { %p10776_p9 = pnand %p10775_p8, %p10769_p5 }
  0x13   :  { %10779 = shalt.err (!%p10776_p9)  }
  0x14   :  { %s10845_s0 = smov [#allocation7]  }
  0x15   :  { %20 = dma.vmem_to_smem %s18_s10, 256, %s10845_s0, [#allocation5] }
  0x16   :  { %10804 = dma.done.wait [#allocation5], 512 }
  0x17   :  { %10805 = vsyncadd [#allocation5], 4294966784 }
  0x18   :  { %22 = sfence }
  0x19   :  { %23 = vsyncpa [#allocation9], 0  ;;  %s36_s1 = sld [smem:[#allocation6]] }
  0x1f   :  { %s37_s14 = sshrl.u32 %s36_s1, 3  ;;  %s38_s15 = sand.u32 7, %s36_s1  }
  0x20   :  { %s39_s16 = smul.u32 48, %s37_s14 }
  0x22   :  { %s40_s17 = sadd.s32 %s39_s16, %s38_s15 }
  0x23   :  { %s41_s20 = scalar_lea.vmem %s13218_s2, %s40_s17 }
  0x24   :  { %v60_v0 = vld [vmem:[%s41_s20] sm:$0x1]  ;;  %v62_v1 = vld [vmem:[%s41_s20 + $0x8] sm:$0x1]  ;;  %v64_v2 = vld [vmem:[%s41_s20 + $0x10] sm:$0x1] }
  0x25   :  { %61 = vst [vmem:[#allocation2] sm:$0x1] %v60_v0  ;;  %63 = vst [vmem:[#allocation2 + $0x8] sm:$0x1] %v62_v1  ;;  %v66_v3 = vld [vmem:[%s41_s20 + $0x18] sm:$0x1] }
  0x26   :  { %65 = vst [vmem:[#allocation2 + $0x10] sm:$0x1] %v64_v2  ;;  %v68_v4 = vld [vmem:[%s41_s20 + $0x20] sm:$0x1]  ;;  %v70_v5 = vld [vmem:[%s41_s20 + $0x28] sm:$0x1] }
  0x27   :  { %67 = vst [vmem:[#allocation2 + $0x18] sm:$0x1] %v66_v3  ;;  %69 = vst [vmem:[#allocation2 + $0x20] sm:$0x1] %v68_v4 }
  0x28   :  { %71 = vst [vmem:[#allocation2 + $0x28] sm:$0x1] %v70_v5 }
  0x29   :  { %107 = vsyncadd [#allocation4], 96  ;;  %s8888_s21 = sld [smem:[#allocation6 + $0x80]] }
  0x2f   :  { %s111_s22 = sshrl.u32 %s8888_s21, 3  ;;  %s112_s23 = sand.u32 7, %s8888_s21  }
  0x30   :  { %s113_s24 = smul.u32 48, %s111_s22 }
  0x32   :  { %s114_s25 = sadd.s32 %s113_s24, %s112_s23 }
  0x33   :  { %s115_s28 = scalar_lea.vmem %s13218_s2, %s114_s25 }
  0x34   :  { %v136_v6 = vld [vmem:[%s115_s28] sm:$0x1]  ;;  %v138_v7 = vld [vmem:[%s115_s28 + $0x8] sm:$0x1]  ;;  %v140_v8 = vld [vmem:[%s115_s28 + $0x10] sm:$0x1] }
  0x35   :  { %137 = vst [vmem:[#allocation2 + $0x1] sm:$0x1] %v136_v6  ;;  %139 = vst [vmem:[#allocation2 + $0x9] sm:$0x1] %v138_v7  ;;  %v142_v9 = vld [vmem:[%s115_s28 + $0x18] sm:$0x1] }
  0x36   :  { %141 = vst [vmem:[#allocation2 + $0x11] sm:$0x1] %v140_v8  ;;  %v144_v10 = vld [vmem:[%s115_s28 + $0x20] sm:$0x1]  ;;  %v146_v11 = vld [vmem:[%s115_s28 + $0x28] sm:$0x1] }
  0x37   :  { %143 = vst [vmem:[#allocation2 + $0x19] sm:$0x1] %v142_v9  ;;  %145 = vst [vmem:[#allocation2 + $0x21] sm:$0x1] %v144_v10 }
  0x38   :  { %147 = vst [vmem:[#allocation2 + $0x29] sm:$0x1] %v146_v11 }
  0x39   :  { %183 = vsyncadd [#allocation4 + $0x1], 96  ;;  %s8889_s29 = sld [smem:[#allocation6 + $0x100]] }
  0x3f   :  { %s187_s30 = sshrl.u32 %s8889_s29, 3  ;;  %s188_s9 = sand.u32 7, %s8889_s29  }
  0x40   :  { %s189_s10 = smul.u32 48, %s187_s30 }
  0x42   :  { %s190_s11 = sadd.s32 %s189_s10, %s188_s9 }
  0x43   :  { %s191_s0 = scalar_lea.vmem %s13218_s2, %s190_s11 }
  0x44   :  { %v212_v12 = vld [vmem:[%s191_s0] sm:$0x1]  ;;  %v214_v13 = vld [vmem:[%s191_s0 + $0x8] sm:$0x1]  ;;  %v216_v14 = vld [vmem:[%s191_s0 + $0x10] sm:$0x1] }
  0x45   :  { %213 = vst [vmem:[#allocation2 + $0x2] sm:$0x1] %v212_v12  ;;  %215 = vst [vmem:[#allocation2 + $0xa] sm:$0x1] %v214_v13  ;;  %v218_v15 = vld [vmem:[%s191_s0 + $0x18] sm:$0x1] }
  0x46   :  { %217 = vst [vmem:[#allocation2 + $0x12] sm:$0x1] %v216_v14  ;;  %v220_v16 = vld [vmem:[%s191_s0 + $0x20] sm:$0x1]  ;;  %v222_v17 = vld [vmem:[%s191_s0 + $0x28] sm:$0x1] }
  0x47   :  { %219 = vst [vmem:[#allocation2 + $0x1a] sm:$0x1] %v218_v15  ;;  %221 = vst [vmem:[#allocation2 + $0x22] sm:$0x1] %v220_v16 }
  0x48   :  { %223 = vst [vmem:[#allocation2 + $0x2a] sm:$0x1] %v222_v17 }
  0x49   :  { %259 = vsyncadd [#allocation4 + $0x2], 96  ;;  %s8890_s1 = sld [smem:[#allocation6 + $0x180]] }
  0x4f   :  { %s263_s14 = sshrl.u32 %s8890_s1, 3  ;;  %s264_s15 = sand.u32 7, %s8890_s1  }
  0x50   :  { %s265_s16 = smul.u32 48, %s263_s14 }
  0x52   :  { %s266_s17 = sadd.s32 %s265_s16, %s264_s15 }
  0x53   :  { %s267_s20 = scalar_lea.vmem %s13218_s2, %s266_s17 }
  0x54   :  { %v288_v18 = vld [vmem:[%s267_s20] sm:$0x1]  ;;  %v290_v19 = vld [vmem:[%s267_s20 + $0x8] sm:$0x1]  ;;  %v292_v20 = vld [vmem:[%s267_s20 + $0x10] sm:$0x1] }
  0x55   :  { %289 = vst [vmem:[#allocation2 + $0x3] sm:$0x1] %v288_v18  ;;  %291 = vst [vmem:[#allocation2 + $0xb] sm:$0x1] %v290_v19  ;;  %v294_v21 = vld [vmem:[%s267_s20 + $0x18] sm:$0x1] }
  0x56   :  { %293 = vst [vmem:[#allocation2 + $0x13] sm:$0x1] %v292_v20  ;;  %v296_v22 = vld [vmem:[%s267_s20 + $0x20] sm:$0x1]  ;;  %v298_v23 = vld [vmem:[%s267_s20 + $0x28] sm:$0x1] }
  0x57   :  { %295 = vst [vmem:[#allocation2 + $0x1b] sm:$0x1] %v294_v21  ;;  %297 = vst [vmem:[#allocation2 + $0x23] sm:$0x1] %v296_v22 }
  0x58   :  { %299 = vst [vmem:[#allocation2 + $0x2b] sm:$0x1] %v298_v23 }
  0x59   :  { %335 = vsyncadd [#allocation4 + $0x3], 96  ;;  %s8891_s21 = sld [smem:[#allocation6 + $0x200]] }
  0x5f   :  { %s339_s22 = sshrl.u32 %s8891_s21, 3  ;;  %s340_s23 = sand.u32 7, %s8891_s21  }
  0x60   :  { %s341_s24 = smul.u32 48, %s339_s22 }
  0x62   :  { %s342_s25 = sadd.s32 %s341_s24, %s340_s23 }
  0x63   :  { %s343_s28 = scalar_lea.vmem %s13218_s2, %s342_s25 }
  0x64   :  { %v364_v24 = vld [vmem:[%s343_s28] sm:$0x1]  ;;  %v366_v25 = vld [vmem:[%s343_s28 + $0x8] sm:$0x1]  ;;  %v368_v26 = vld [vmem:[%s343_s28 + $0x10] sm:$0x1] }
  0x65   :  { %365 = vst [vmem:[#allocation2 + $0x4] sm:$0x1] %v364_v24  ;;  %367 = vst [vmem:[#allocation2 + $0xc] sm:$0x1] %v366_v25  ;;  %v370_v27 = vld [vmem:[%s343_s28 + $0x18] sm:$0x1] }
  0x66   :  { %369 = vst [vmem:[#allocation2 + $0x14] sm:$0x1] %v368_v26  ;;  %v372_v28 = vld [vmem:[%s343_s28 + $0x20] sm:$0x1]  ;;  %v374_v29 = vld [vmem:[%s343_s28 + $0x28] sm:$0x1] }
  0x67   :  { %371 = vst [vmem:[#allocation2 + $0x1c] sm:$0x1] %v370_v27  ;;  %373 = vst [vmem:[#allocation2 + $0x24] sm:$0x1] %v372_v28 }
  0x68   :  { %375 = vst [vmem:[#allocation2 + $0x2c] sm:$0x1] %v374_v29 }
  0x69   :  { %411 = vsyncadd [#allocation4 + $0x4], 96  ;;  %s8892_s29 = sld [smem:[#allocation6 + $0x280]] }
  0x6f   :  { %s415_s30 = sshrl.u32 %s8892_s29, 3  ;;  %s416_s9 = sand.u32 7, %s8892_s29  }
  0x70   :  { %s417_s10 = smul.u32 48, %s415_s30 }
  0x72   :  { %s418_s11 = sadd.s32 %s417_s10, %s416_s9 }
  0x73   :  { %s419_s0 = scalar_lea.vmem %s13218_s2, %s418_s11 }
  0x74   :  { %v440_v30 = vld [vmem:[%s419_s0] sm:$0x1]  ;;  %v442_v31 = vld [vmem:[%s419_s0 + $0x8] sm:$0x1]  ;;  %v444_v32 = vld [vmem:[%s419_s0 + $0x10] sm:$0x1] }
  0x75   :  { %441 = vst [vmem:[#allocation2 + $0x5] sm:$0x1] %v440_v30  ;;  %443 = vst [vmem:[#allocation2 + $0xd] sm:$0x1] %v442_v31  ;;  %v446_v33 = vld [vmem:[%s419_s0 + $0x18] sm:$0x1] }
  0x76   :  { %445 = vst [vmem:[#allocation2 + $0x15] sm:$0x1] %v444_v32  ;;  %v448_v34 = vld [vmem:[%s419_s0 + $0x20] sm:$0x1]  ;;  %v450_v35 = vld [vmem:[%s419_s0 + $0x28] sm:$0x1] }
  0x77   :  { %447 = vst [vmem:[#allocation2 + $0x1d] sm:$0x1] %v446_v33  ;;  %449 = vst [vmem:[#allocation2 + $0x25] sm:$0x1] %v448_v34 }
  0x78   :  { %451 = vst [vmem:[#allocation2 + $0x2d] sm:$0x1] %v450_v35 }
  0x79   :  { %487 = vsyncadd [#allocation4 + $0x5], 96  ;;  %s8893_s1 = sld [smem:[#allocation6 + $0x300]] }
  0x7f   :  { %s491_s14 = sshrl.u32 %s8893_s1, 3  ;;  %s492_s15 = sand.u32 7, %s8893_s1  }
  0x80   :  { %s493_s16 = smul.u32 48, %s491_s14 }
  0x82   :  { %s494_s17 = sadd.s32 %s493_s16, %s492_s15 }
  0x83   :  { %s495_s20 = scalar_lea.vmem %s13218_s2, %s494_s17 }
  0x84   :  { %v516_v36 = vld [vmem:[%s495_s20] sm:$0x1]  ;;  %v518_v37 = vld [vmem:[%s495_s20 + $0x8] sm:$0x1]  ;;  %v520_v38 = vld [vmem:[%s495_s20 + $0x10] sm:$0x1] }
  0x85   :  { %517 = vst [vmem:[#allocation2 + $0x6] sm:$0x1] %v516_v36  ;;  %519 = vst [vmem:[#allocation2 + $0xe] sm:$0x1] %v518_v37  ;;  %v522_v39 = vld [vmem:[%s495_s20 + $0x18] sm:$0x1] }
  0x86   :  { %521 = vst [vmem:[#allocation2 + $0x16] sm:$0x1] %v520_v38  ;;  %v524_v40 = vld [vmem:[%s495_s20 + $0x20] sm:$0x1]  ;;  %v526_v41 = vld [vmem:[%s495_s20 + $0x28] sm:$0x1] }
  0x87   :  { %523 = vst [vmem:[#allocation2 + $0x1e] sm:$0x1] %v522_v39  ;;  %525 = vst [vmem:[#allocation2 + $0x26] sm:$0x1] %v524_v40 }
  0x88   :  { %527 = vst [vmem:[#allocation2 + $0x2e] sm:$0x1] %v526_v41 }
  0x89   :  { %563 = vsyncadd [#allocation4 + $0x6], 96  ;;  %s8894_s21 = sld [smem:[#allocation6 + $0x380]] }
  0x8f   :  { %s567_s22 = sshrl.u32 %s8894_s21, 3  ;;  %s568_s23 = sand.u32 7, %s8894_s21  }
  0x90   :  { %s569_s24 = smul.u32 48, %s567_s22 }
  0x92   :  { %s570_s25 = sadd.s32 %s569_s24, %s568_s23 }
  0x93   :  { %s571_s28 = scalar_lea.vmem %s13218_s2, %s570_s25 }
  0x94   :  { %v592_v42 = vld [vmem:[%s571_s28] sm:$0x1]  ;;  %v594_v43 = vld [vmem:[%s571_s28 + $0x8] sm:$0x1]  ;;  %v596_v44 = vld [vmem:[%s571_s28 + $0x10] sm:$0x1] }
  0x95   :  { %593 = vst [vmem:[#allocation2 + $0x7] sm:$0x1] %v592_v42  ;;  %595 = vst [vmem:[#allocation2 + $0xf] sm:$0x1] %v594_v43  ;;  %v598_v45 = vld [vmem:[%s571_s28 + $0x18] sm:$0x1] }
  0x96   :  { %597 = vst [vmem:[#allocation2 + $0x17] sm:$0x1] %v596_v44  ;;  %v600_v46 = vld [vmem:[%s571_s28 + $0x20] sm:$0x1]  ;;  %v602_v47 = vld [vmem:[%s571_s28 + $0x28] sm:$0x1] }
  0x97   :  { %599 = vst [vmem:[#allocation2 + $0x1f] sm:$0x1] %v598_v45  ;;  %601 = vst [vmem:[#allocation2 + $0x27] sm:$0x1] %v600_v46 }
  0x98   :  { %603 = vst [vmem:[#allocation2 + $0x2f] sm:$0x1] %v602_v47 }
  0x99   :  { %639 = vsyncadd [#allocation4 + $0x7], 96  ;;  %s8895_s29 = sld [smem:[#allocation6 + $0x400]] }
  0x9f   :  { %s643_s30 = sshrl.u32 %s8895_s29, 3  ;;  %s644_s9 = sand.u32 7, %s8895_s29  }
  0xa0   :  { %s645_s10 = smul.u32 48, %s643_s30 }
  0xa2   :  { %s646_s11 = sadd.s32 %s645_s10, %s644_s9 }
  0xa3   :  { %s647_s0 = scalar_lea.vmem %s13218_s2, %s646_s11 }
  0xa4   :  { %v668_v48 = vld [vmem:[%s647_s0] sm:$0x1]  ;;  %v670_v49 = vld [vmem:[%s647_s0 + $0x8] sm:$0x1]  ;;  %v672_v50 = vld [vmem:[%s647_s0 + $0x10] sm:$0x1] }
  0xa5   :  { %669 = vst [vmem:[#allocation2 + $0x30] sm:$0x1] %v668_v48  ;;  %671 = vst [vmem:[#allocation2 + $0x38] sm:$0x1] %v670_v49  ;;  %v674_v51 = vld [vmem:[%s647_s0 + $0x18] sm:$0x1] }
  0xa6   :  { %673 = vst [vmem:[#allocation2 + $0x40] sm:$0x1] %v672_v50  ;;  %v676_v52 = vld [vmem:[%s647_s0 + $0x20] sm:$0x1]  ;;  %v678_v53 = vld [vmem:[%s647_s0 + $0x28] sm:$0x1] }
  0xa7   :  { %675 = vst [vmem:[#allocation2 + $0x48] sm:$0x1] %v674_v51  ;;  %677 = vst [vmem:[#allocation2 + $0x50] sm:$0x1] %v676_v52 }
  0xa8   :  { %679 = vst [vmem:[#allocation2 + $0x58] sm:$0x1] %v678_v53 }
  0xa9   :  { %715 = vsyncadd [#allocation4 + $0x8], 96  ;;  %s8896_s1 = sld [smem:[#allocation6 + $0x480]] }
  0xaf   :  { %s719_s14 = sshrl.u32 %s8896_s1, 3  ;;  %s720_s15 = sand.u32 7, %s8896_s1  }
  0xb0   :  { %s721_s16 = smul.u32 48, %s719_s14 }
  0xb2   :  { %s722_s17 = sadd.s32 %s721_s16, %s720_s15 }
  0xb3   :  { %s723_s20 = scalar_lea.vmem %s13218_s2, %s722_s17 }
  0xb4   :  { %v744_v54 = vld [vmem:[%s723_s20] sm:$0x1]  ;;  %v746_v55 = vld [vmem:[%s723_s20 + $0x8] sm:$0x1]  ;;  %v748_v56 = vld [vmem:[%s723_s20 + $0x10] sm:$0x1] }
  0xb5   :  { %745 = vst [vmem:[#allocation2 + $0x31] sm:$0x1] %v744_v54  ;;  %747 = vst [vmem:[#allocation2 + $0x39] sm:$0x1] %v746_v55  ;;  %v750_v57 = vld [vmem:[%s723_s20 + $0x18] sm:$0x1] }
  0xb6   :  { %749 = vst [vmem:[#allocation2 + $0x41] sm:$0x1] %v748_v56  ;;  %v752_v58 = vld [vmem:[%s723_s20 + $0x20] sm:$0x1]  ;;  %v754_v59 = vld [vmem:[%s723_s20 + $0x28] sm:$0x1] }
  0xb7   :  { %751 = vst [vmem:[#allocation2 + $0x49] sm:$0x1] %v750_v57  ;;  %753 = vst [vmem:[#allocation2 + $0x51] sm:$0x1] %v752_v58 }
  0xb8   :  { %755 = vst [vmem:[#allocation2 + $0x59] sm:$0x1] %v754_v59 }
  0xb9   :  { %791 = vsyncadd [#allocation4 + $0x9], 96  ;;  %s8897_s21 = sld [smem:[#allocation6 + $0x500]] }
  0xbf   :  { %s795_s22 = sshrl.u32 %s8897_s21, 3  ;;  %s796_s23 = sand.u32 7, %s8897_s21  }
  0xc0   :  { %s797_s24 = smul.u32 48, %s795_s22 }
  0xc2   :  { %s798_s25 = sadd.s32 %s797_s24, %s796_s23 }
  0xc3   :  { %s799_s28 = scalar_lea.vmem %s13218_s2, %s798_s25 }
  0xc4   :  { %v820_v60 = vld [vmem:[%s799_s28] sm:$0x1]  ;;  %v822_v61 = vld [vmem:[%s799_s28 + $0x8] sm:$0x1]  ;;  %v824_v62 = vld [vmem:[%s799_s28 + $0x10] sm:$0x1] }
  0xc5   :  { %821 = vst [vmem:[#allocation2 + $0x32] sm:$0x1] %v820_v60  ;;  %823 = vst [vmem:[#allocation2 + $0x3a] sm:$0x1] %v822_v61  ;;  %v826_v63 = vld [vmem:[%s799_s28 + $0x18] sm:$0x1] }
  0xc6   :  { %825 = vst [vmem:[#allocation2 + $0x42] sm:$0x1] %v824_v62  ;;  %v828_v0 = vld [vmem:[%s799_s28 + $0x20] sm:$0x1]  ;;  %v830_v1 = vld [vmem:[%s799_s28 + $0x28] sm:$0x1] }
  0xc7   :  { %827 = vst [vmem:[#allocation2 + $0x4a] sm:$0x1] %v826_v63  ;;  %829 = vst [vmem:[#allocation2 + $0x52] sm:$0x1] %v828_v0 }
  0xc8   :  { %831 = vst [vmem:[#allocation2 + $0x5a] sm:$0x1] %v830_v1 }
  0xc9   :  { %867 = vsyncadd [#allocation4 + $0xa], 96  ;;  %s8898_s29 = sld [smem:[#allocation6 + $0x580]] }
  0xcf   :  { %s871_s30 = sshrl.u32 %s8898_s29, 3  ;;  %s872_s9 = sand.u32 7, %s8898_s29  }
  0xd0   :  { %s873_s10 = smul.u32 48, %s871_s30 }
  0xd2   :  { %s874_s11 = sadd.s32 %s873_s10, %s872_s9 }
  0xd3   :  { %s875_s0 = scalar_lea.vmem %s13218_s2, %s874_s11 }
  0xd4   :  { %v896_v2 = vld [vmem:[%s875_s0] sm:$0x1]  ;;  %v898_v3 = vld [vmem:[%s875_s0 + $0x8] sm:$0x1]  ;;  %v900_v4 = vld [vmem:[%s875_s0 + $0x10] sm:$0x1] }
  0xd5   :  { %897 = vst [vmem:[#allocation2 + $0x33] sm:$0x1] %v896_v2  ;;  %899 = vst [vmem:[#allocation2 + $0x3b] sm:$0x1] %v898_v3  ;;  %v902_v5 = vld [vmem:[%s875_s0 + $0x18] sm:$0x1] }
  0xd6   :  { %901 = vst [vmem:[#allocation2 + $0x43] sm:$0x1] %v900_v4  ;;  %v904_v6 = vld [vmem:[%s875_s0 + $0x20] sm:$0x1]  ;;  %v906_v7 = vld [vmem:[%s875_s0 + $0x28] sm:$0x1] }
  0xd7   :  { %903 = vst [vmem:[#allocation2 + $0x4b] sm:$0x1] %v902_v5  ;;  %905 = vst [vmem:[#allocation2 + $0x53] sm:$0x1] %v904_v6 }
  0xd8   :  { %907 = vst [vmem:[#allocation2 + $0x5b] sm:$0x1] %v906_v7 }
  0xd9   :  { %943 = vsyncadd [#allocation4 + $0xb], 96  ;;  %s8899_s1 = sld [smem:[#allocation6 + $0x600]] }
  0xdf   :  { %s947_s14 = sshrl.u32 %s8899_s1, 3  ;;  %s948_s15 = sand.u32 7, %s8899_s1  }
  0xe0   :  { %s949_s16 = smul.u32 48, %s947_s14 }
  0xe2   :  { %s950_s17 = sadd.s32 %s949_s16, %s948_s15 }
  0xe3   :  { %s951_s20 = scalar_lea.vmem %s13218_s2, %s950_s17 }
  0xe4   :  { %v972_v8 = vld [vmem:[%s951_s20] sm:$0x1]  ;;  %v974_v9 = vld [vmem:[%s951_s20 + $0x8] sm:$0x1]  ;;  %v976_v10 = vld [vmem:[%s951_s20 + $0x10] sm:$0x1] }
  0xe5   :  { %973 = vst [vmem:[#allocation2 + $0x34] sm:$0x1] %v972_v8  ;;  %975 = vst [vmem:[#allocation2 + $0x3c] sm:$0x1] %v974_v9  ;;  %v978_v11 = vld [vmem:[%s951_s20 + $0x18] sm:$0x1] }
  0xe6   :  { %977 = vst [vmem:[#allocation2 + $0x44] sm:$0x1] %v976_v10  ;;  %v980_v12 = vld [vmem:[%s951_s20 + $0x20] sm:$0x1]  ;;  %v982_v13 = vld [vmem:[%s951_s20 + $0x28] sm:$0x1] }
  0xe7   :  { %979 = vst [vmem:[#allocation2 + $0x4c] sm:$0x1] %v978_v11  ;;  %981 = vst [vmem:[#allocation2 + $0x54] sm:$0x1] %v980_v12 }
  0xe8   :  { %983 = vst [vmem:[#allocation2 + $0x5c] sm:$0x1] %v982_v13 }
  0xe9   :  { %1019 = vsyncadd [#allocation4 + $0xc], 96  ;;  %s8900_s21 = sld [smem:[#allocation6 + $0x680]] }
  0xef   :  { %s1023_s22 = sshrl.u32 %s8900_s21, 3  ;;  %s1024_s23 = sand.u32 7, %s8900_s21  }
  0xf0   :  { %s1025_s24 = smul.u32 48, %s1023_s22 }
  0xf2   :  { %s1026_s25 = sadd.s32 %s1025_s24, %s1024_s23 }
  0xf3   :  { %s1027_s28 = scalar_lea.vmem %s13218_s2, %s1026_s25 }
  0xf4   :  { %v1048_v14 = vld [vmem:[%s1027_s28] sm:$0x1]  ;;  %v1050_v15 = vld [vmem:[%s1027_s28 + $0x8] sm:$0x1]  ;;  %v1052_v16 = vld [vmem:[%s1027_s28 + $0x10] sm:$0x1] }
  0xf5   :  { %1049 = vst [vmem:[#allocation2 + $0x35] sm:$0x1] %v1048_v14  ;;  %1051 = vst [vmem:[#allocation2 + $0x3d] sm:$0x1] %v1050_v15  ;;  %v1054_v17 = vld [vmem:[%s1027_s28 + $0x18] sm:$0x1] }
  0xf6   :  { %1053 = vst [vmem:[#allocation2 + $0x45] sm:$0x1] %v1052_v16  ;;  %v1056_v18 = vld [vmem:[%s1027_s28 + $0x20] sm:$0x1]  ;;  %v1058_v19 = vld [vmem:[%s1027_s28 + $0x28] sm:$0x1] }
  0xf7   :  { %1055 = vst [vmem:[#allocation2 + $0x4d] sm:$0x1] %v1054_v17  ;;  %1057 = vst [vmem:[#allocation2 + $0x55] sm:$0x1] %v1056_v18 }
  0xf8   :  { %1059 = vst [vmem:[#allocation2 + $0x5d] sm:$0x1] %v1058_v19 }
  0xf9   :  { %1095 = vsyncadd [#allocation4 + $0xd], 96  ;;  %s8901_s29 = sld [smem:[#allocation6 + $0x700]] }
  0xff   :  { %s1099_s30 = sshrl.u32 %s8901_s29, 3  ;;  %s1100_s9 = sand.u32 7, %s8901_s29  }
 0x100   :  { %s1101_s10 = smul.u32 48, %s1099_s30 }
 0x102   :  { %s1102_s11 = sadd.s32 %s1101_s10, %s1100_s9 }
 0x103   :  { %s1103_s0 = scalar_lea.vmem %s13218_s2, %s1102_s11 }
 0x104   :  { %v1124_v20 = vld [vmem:[%s1103_s0] sm:$0x1]  ;;  %v1126_v21 = vld [vmem:[%s1103_s0 + $0x8] sm:$0x1]  ;;  %v1128_v22 = vld [vmem:[%s1103_s0 + $0x10] sm:$0x1] }
 0x105   :  { %1125 = vst [vmem:[#allocation2 + $0x36] sm:$0x1] %v1124_v20  ;;  %1127 = vst [vmem:[#allocation2 + $0x3e] sm:$0x1] %v1126_v21  ;;  %v1130_v23 = vld [vmem:[%s1103_s0 + $0x18] sm:$0x1] }
 0x106   :  { %1129 = vst [vmem:[#allocation2 + $0x46] sm:$0x1] %v1128_v22  ;;  %v1132_v24 = vld [vmem:[%s1103_s0 + $0x20] sm:$0x1]  ;;  %v1134_v25 = vld [vmem:[%s1103_s0 + $0x28] sm:$0x1] }
 0x107   :  { %1131 = vst [vmem:[#allocation2 + $0x4e] sm:$0x1] %v1130_v23  ;;  %1133 = vst [vmem:[#allocation2 + $0x56] sm:$0x1] %v1132_v24 }
 0x108   :  { %1135 = vst [vmem:[#allocation2 + $0x5e] sm:$0x1] %v1134_v25 }
 0x109   :  { %1171 = vsyncadd [#allocation4 + $0xe], 96  ;;  %s8902_s1 = sld [smem:[#allocation6 + $0x780]] }
 0x10f   :  { %s1175_s14 = sshrl.u32 %s8902_s1, 3  ;;  %s1176_s15 = sand.u32 7, %s8902_s1  }
 0x110   :  { %s1177_s16 = smul.u32 48, %s1175_s14 }
 0x112   :  { %s1178_s17 = sadd.s32 %s1177_s16, %s1176_s15 }
 0x113   :  { %s1179_s20 = scalar_lea.vmem %s13218_s2, %s1178_s17 }
 0x114   :  { %v1200_v26 = vld [vmem:[%s1179_s20] sm:$0x1]  ;;  %v1202_v27 = vld [vmem:[%s1179_s20 + $0x8] sm:$0x1]  ;;  %v1204_v28 = vld [vmem:[%s1179_s20 + $0x10] sm:$0x1] }
 0x115   :  { %1201 = vst [vmem:[#allocation2 + $0x37] sm:$0x1] %v1200_v26  ;;  %1203 = vst [vmem:[#allocation2 + $0x3f] sm:$0x1] %v1202_v27  ;;  %v1206_v29 = vld [vmem:[%s1179_s20 + $0x18] sm:$0x1] }
 0x116   :  { %1205 = vst [vmem:[#allocation2 + $0x47] sm:$0x1] %v1204_v28  ;;  %v1208_v30 = vld [vmem:[%s1179_s20 + $0x20] sm:$0x1]  ;;  %v1210_v31 = vld [vmem:[%s1179_s20 + $0x28] sm:$0x1] }
 0x117   :  { %1207 = vst [vmem:[#allocation2 + $0x4f] sm:$0x1] %v1206_v29  ;;  %1209 = vst [vmem:[#allocation2 + $0x57] sm:$0x1] %v1208_v30 }
 0x118   :  { %1211 = vst [vmem:[#allocation2 + $0x5f] sm:$0x1] %v1210_v31 }
 0x119   :  { %1247 = vsyncadd [#allocation4 + $0xf], 96  ;;  %v10846_v32 = vmov 0.0   ;;  %s10965_s21 = smov 0  }
 0x11a   :  { %1248 = vst [vmem:[#allocation3] sm:$0xff] %v10846_v32  ;;  %1249 = vst [vmem:[#allocation3 + $0x8] sm:$0xff] %v10846_v32 }
 0x11b   :  { %1250 = vst [vmem:[#allocation3 + $0x10] sm:$0xff] %v10846_v32  ;;  %1251 = vst [vmem:[#allocation3 + $0x18] sm:$0xff] %v10846_v32 }
 0x11c   :  { %1252 = vst [vmem:[#allocation3 + $0x20] sm:$0xff] %v10846_v32  ;;  %1253 = vst [vmem:[#allocation3 + $0x28] sm:$0xff] %v10846_v32 }
 0x11d   :  { %1254 = vst [vmem:[#allocation3 + $0x30] sm:$0xff] %v10846_v32  ;;  %1255 = vst [vmem:[#allocation3 + $0x38] sm:$0xff] %v10846_v32 }
 0x11e   :  { %1256 = vst [vmem:[#allocation3 + $0x40] sm:$0xff] %v10846_v32  ;;  %1257 = vst [vmem:[#allocation3 + $0x48] sm:$0xff] %v10846_v32 }
 0x11f   :  { %1258 = vst [vmem:[#allocation3 + $0x50] sm:$0xff] %v10846_v32  ;;  %1259 = vst [vmem:[#allocation3 + $0x58] sm:$0xff] %v10846_v32 }
 0x120 LB: > { %s10971_s22 = sand.u32 1, %s10842_s21  ;;  %s10842_s21 = sphi %s10965_s21, %s13226_s21  }
 0x121   : > { %s8903_s23 = sshll.u32 %s10971_s22, 4 }
 0x122   : > { %s10974_s24 = scalar_lea.sflag [#allocation4], %s8903_s23 }
 0x123   : > { %10806 = dma.done.wait %s10974_s24, 96 }
 0x124   : > { %10807 = vsyncadd %s10974_s24, 4294967200  ;;  %s8393_s25 = scalar_lea.sflag %s10974_s24, 1 [#allocation4] }
 0x125   : > { %10808 = dma.done.wait %s8393_s25, 96 }
 0x126   : > { %10809 = vsyncadd %s8393_s25, 4294967200  ;;  %s8396_s26 = scalar_lea.sflag %s10974_s24, 2 [#allocation4] }
 0x127   : > { %10810 = dma.done.wait %s8396_s26, 96 }
 0x128   : > { %10811 = vsyncadd %s8396_s26, 4294967200  ;;  %s8399_s27 = scalar_lea.sflag %s10974_s24, 3 [#allocation4] }
 0x129   : > { %10812 = dma.done.wait %s8399_s27, 96 }
 0x12a   : > { %10813 = vsyncadd %s8399_s27, 4294967200  ;;  %s8402_s28 = scalar_lea.sflag %s10974_s24, 4 [#allocation4] }
 0x12b   : > { %10814 = dma.done.wait %s8402_s28, 96 }
 0x12c   : > { %10815 = vsyncadd %s8402_s28, 4294967200  ;;  %s8405_s29 = scalar_lea.sflag %s10974_s24, 5 [#allocation4] }
 0x12d   : > { %10816 = dma.done.wait %s8405_s29, 96 }
 0x12e   : > { %10817 = vsyncadd %s8405_s29, 4294967200  ;;  %s8408_s30 = scalar_lea.sflag %s10974_s24, 6 [#allocation4] }
 0x12f   : > { %10818 = dma.done.wait %s8408_s30, 96 }
 0x130   : > { %10819 = vsyncadd %s8408_s30, 4294967200  ;;  %s8411_s9 = scalar_lea.sflag %s10974_s24, 7 [#allocation4] }
 0x131   : > { %10820 = dma.done.wait %s8411_s9, 96 }
 0x132   : > { %10821 = vsyncadd %s8411_s9, 4294967200  ;;  %s8414_s10 = scalar_lea.sflag %s10974_s24, 8 [#allocation4] }
 0x133   : > { %10822 = dma.done.wait %s8414_s10, 96 }
 0x134   : > { %10823 = vsyncadd %s8414_s10, 4294967200  ;;  %s8417_s11 = scalar_lea.sflag %s10974_s24, 9 [#allocation4] }
 0x135   : > { %10824 = dma.done.wait %s8417_s11, 96 }
 0x136   : > { %10825 = vsyncadd %s8417_s11, 4294967200  ;;  %s8420_s12 = scalar_lea.sflag %s10974_s24, 10 [#allocation4] }
 0x137   : > { %10826 = dma.done.wait %s8420_s12, 96 }
 0x138   : > { %10827 = vsyncadd %s8420_s12, 4294967200  ;;  %s8423_s13 = scalar_lea.sflag %s10974_s24, 11 [#allocation4] }
 0x139   : > { %10828 = dma.done.wait %s8423_s13, 96 }
 0x13a   : > { %10829 = vsyncadd %s8423_s13, 4294967200  ;;  %s8426_s0 = scalar_lea.sflag %s10974_s24, 12 [#allocation4] }
 0x13b   : > { %10830 = dma.done.wait %s8426_s0, 96 }
 0x13c   : > { %10831 = vsyncadd %s8426_s0, 4294967200  ;;  %s8429_s1 = scalar_lea.sflag %s10974_s24, 13 [#allocation4] }
 0x13d   : > { %10832 = dma.done.wait %s8429_s1, 96 }
 0x13e   : > { %10833 = vsyncadd %s8429_s1, 4294967200  ;;  %s8432_s14 = scalar_lea.sflag %s10974_s24, 14 [#allocation4] }
 0x13f   : > { %10834 = dma.done.wait %s8432_s14, 96 }
 0x140   : > { %10835 = vsyncadd %s8432_s14, 4294967200  ;;  %s8435_s15 = scalar_lea.sflag %s10974_s24, 15 [#allocation4] }
 0x141   : > { %10836 = dma.done.wait %s8435_s15, 96 }
 0x142   : > { %10837 = vsyncadd %s8435_s15, 4294967200  ;;  %s10994_s16 = sadd.s32 1, %s10842_s21  }
 0x143   : > { %p8919_p10 = scmp.ge.s32.totalorder %s10994_s16, 8 }
 0x144   : > { %s1337_s17 = sshra.s32 (!%p8919_p10), %s10994_s16, 7  ;;  %s11003_s19 = sand.u32 (!%p8919_p10), 127, %s10994_s16 }
 0x145   : > { %1335 = sbr.rel (%p8919_p10) target bundleno = 614 (0x266), region = 512  ;;  %s11000_s18 = sshll.u32 (!%p8919_p10), %s1337_s17, 7 }
 0x146   : > { %s1336_s20 = ssub.s32 (!%p8919_p10), 1, %s10971_s22  ;;  %s1343_s23 = sadd.s32 (!%p8919_p10), %s11000_s18, %s11003_s19 }
 0x147   : > { %s1344_s24 = sld [smem:[#allocation6 + %s1343_s23]] (!%p8919_p10)  ;;  %s8921_s25 = sshll.u32 (!%p8919_p10), %s1336_s20, 4 }
 0x148   : > { %s1350_s26 = smul.u32 (!%p8919_p10), 96, %s1336_s20  ;;  %s11019_s13 = scalar_lea.sflag (!%p8919_p10), [#allocation4], %s8921_s25 }
 0x14a   : > { %s11011_s12 = scalar_lea.vmem [#allocation2], %s1350_s26 }
 0x14d   : > { %s1345_s27 = sshrl.u32 %s1344_s24, 3  ;;  %s1346_s28 = sand.u32 7, %s1344_s24  }
 0x14e   : > { %s1347_s29 = smul.u32 48, %s1345_s27 }
 0x150   : > { %s1348_s30 = sadd.s32 %s1347_s29, %s1346_s28 }
 0x151   : > { %s1349_s11 = scalar_lea.vmem %s13218_s2, %s1348_s30 }
 0x152   : > { %v1372_v33 = vld [vmem:[%s1349_s11] sm:$0x1]  ;;  %v1374_v34 = vld [vmem:[%s1349_s11 + $0x8] sm:$0x1]  ;;  %v1376_v35 = vld [vmem:[%s1349_s11 + $0x10] sm:$0x1] }
 0x153   : > { %1373 = vst [vmem:[%s11011_s12] sm:$0x1] %v1372_v33  ;;  %1375 = vst [vmem:[%s11011_s12 + $0x8] sm:$0x1] %v1374_v34  ;;  %v1378_v36 = vld [vmem:[%s1349_s11 + $0x18] sm:$0x1] }
 0x154   : > { %1377 = vst [vmem:[%s11011_s12 + $0x10] sm:$0x1] %v1376_v35  ;;  %v1380_v37 = vld [vmem:[%s1349_s11 + $0x20] sm:$0x1]  ;;  %v1382_v38 = vld [vmem:[%s1349_s11 + $0x28] sm:$0x1] }
 0x155   : > { %1379 = vst [vmem:[%s11011_s12 + $0x18] sm:$0x1] %v1378_v36  ;;  %1381 = vst [vmem:[%s11011_s12 + $0x20] sm:$0x1] %v1380_v37 }
 0x156   : > { %1383 = vst [vmem:[%s11011_s12 + $0x28] sm:$0x1] %v1382_v38 }
 0x157   : > { %1419 = vsyncadd %s11019_s13, 96  ;;  %s9774_s0 = sadd.s32 128, %s11000_s18  ;;  %s8453_s1 = scalar_lea.sflag %s11019_s13, 1 [#allocation4] }
 0x158   : > { %s1422_s14 = sadd.s32 %s9774_s0, %s11003_s19 }
 0x159   : > { %s1423_s15 = sld [smem:[#allocation6 + %s1422_s14]] }
 0x15f   : > { %s1424_s17 = sshrl.u32 %s1423_s15, 3  ;;  %s1425_s20 = sand.u32 7, %s1423_s15  }
 0x160   : > { %s1426_s23 = smul.u32 48, %s1424_s17 }
 0x162   : > { %s1427_s24 = sadd.s32 %s1426_s23, %s1425_s20 }
 0x163   : > { %s1428_s27 = scalar_lea.vmem %s13218_s2, %s1427_s24 }
 0x164   : > { %v1451_v39 = vld [vmem:[%s1428_s27] sm:$0x1]  ;;  %v1453_v40 = vld [vmem:[%s1428_s27 + $0x8] sm:$0x1]  ;;  %v1455_v41 = vld [vmem:[%s1428_s27 + $0x10] sm:$0x1] }
 0x165   : > { %8930 = vst [vmem:[%s11011_s12 + $0x1] sm:$0x1] %v1451_v39  ;;  %8931 = vst [vmem:[%s11011_s12 + $0x9] sm:$0x1] %v1453_v40  ;;  %v1457_v42 = vld [vmem:[%s1428_s27 + $0x18] sm:$0x1] }
 0x166   : > { %8932 = vst [vmem:[%s11011_s12 + $0x11] sm:$0x1] %v1455_v41  ;;  %v1459_v43 = vld [vmem:[%s1428_s27 + $0x20] sm:$0x1]  ;;  %v1461_v44 = vld [vmem:[%s1428_s27 + $0x28] sm:$0x1] }
 0x167   : > { %8933 = vst [vmem:[%s11011_s12 + $0x19] sm:$0x1] %v1457_v42  ;;  %8934 = vst [vmem:[%s11011_s12 + $0x21] sm:$0x1] %v1459_v43 }
 0x168   : > { %8935 = vst [vmem:[%s11011_s12 + $0x29] sm:$0x1] %v1461_v44 }
 0x169   : > { %1498 = vsyncadd %s8453_s1, 96  ;;  %s9776_s28 = sadd.s32 256, %s11000_s18  ;;  %s8465_s29 = scalar_lea.sflag %s11019_s13, 2 [#allocation4] }
 0x16a   : > { %s1501_s30 = sadd.s32 %s9776_s28, %s11003_s19 }
 0x16b   : > { %s1502_s9 = sld [smem:[#allocation6 + %s1501_s30]] }
 0x171   : > { %s1503_s10 = sshrl.u32 %s1502_s9, 3  ;;  %s1504_s11 = sand.u32 7, %s1502_s9  }
 0x172   : > { %s1505_s0 = smul.u32 48, %s1503_s10 }
 0x174   : > { %s1506_s14 = sadd.s32 %s1505_s0, %s1504_s11 }
 0x175   : > { %s1507_s1 = scalar_lea.vmem %s13218_s2, %s1506_s14 }
 0x176   : > { %v1530_v45 = vld [vmem:[%s1507_s1] sm:$0x1]  ;;  %v1532_v46 = vld [vmem:[%s1507_s1 + $0x8] sm:$0x1]  ;;  %v1534_v47 = vld [vmem:[%s1507_s1 + $0x10] sm:$0x1] }
 0x177   : > { %8944 = vst [vmem:[%s11011_s12 + $0x2] sm:$0x1] %v1530_v45  ;;  %8945 = vst [vmem:[%s11011_s12 + $0xa] sm:$0x1] %v1532_v46  ;;  %v1536_v48 = vld [vmem:[%s1507_s1 + $0x18] sm:$0x1] }
 0x178   : > { %8946 = vst [vmem:[%s11011_s12 + $0x12] sm:$0x1] %v1534_v47  ;;  %v1538_v49 = vld [vmem:[%s1507_s1 + $0x20] sm:$0x1]  ;;  %v1540_v50 = vld [vmem:[%s1507_s1 + $0x28] sm:$0x1] }
 0x179   : > { %8947 = vst [vmem:[%s11011_s12 + $0x1a] sm:$0x1] %v1536_v48  ;;  %8948 = vst [vmem:[%s11011_s12 + $0x22] sm:$0x1] %v1538_v49 }
 0x17a   : > { %8949 = vst [vmem:[%s11011_s12 + $0x2a] sm:$0x1] %v1540_v50 }
 0x17b   : > { %1577 = vsyncadd %s8465_s29, 96  ;;  %s9778_s20 = sadd.s32 384, %s11000_s18  ;;  %s8477_s23 = scalar_lea.sflag %s11019_s13, 3 [#allocation4] }
 0x17c   : > { %s1580_s24 = sadd.s32 %s9778_s20, %s11003_s19 }
 0x17d   : > { %s1581_s25 = sld [smem:[#allocation6 + %s1580_s24]] }
 0x183   : > { %s1582_s26 = sshrl.u32 %s1581_s25, 3  ;;  %s1583_s27 = sand.u32 7, %s1581_s25  }
 0x184   : > { %s1584_s28 = smul.u32 48, %s1582_s26 }
 0x186   : > { %s1585_s30 = sadd.s32 %s1584_s28, %s1583_s27 }
 0x187   : > { %s1586_s29 = scalar_lea.vmem %s13218_s2, %s1585_s30 }
 0x188   : > { %v1609_v51 = vld [vmem:[%s1586_s29] sm:$0x1]  ;;  %v1611_v52 = vld [vmem:[%s1586_s29 + $0x8] sm:$0x1]  ;;  %v1613_v53 = vld [vmem:[%s1586_s29 + $0x10] sm:$0x1] }
 0x189   : > { %8958 = vst [vmem:[%s11011_s12 + $0x3] sm:$0x1] %v1609_v51  ;;  %8959 = vst [vmem:[%s11011_s12 + $0xb] sm:$0x1] %v1611_v52  ;;  %v1615_v54 = vld [vmem:[%s1586_s29 + $0x18] sm:$0x1] }
 0x18a   : > { %8960 = vst [vmem:[%s11011_s12 + $0x13] sm:$0x1] %v1613_v53  ;;  %v1617_v55 = vld [vmem:[%s1586_s29 + $0x20] sm:$0x1]  ;;  %v1619_v56 = vld [vmem:[%s1586_s29 + $0x28] sm:$0x1] }
 0x18b   : > { %8961 = vst [vmem:[%s11011_s12 + $0x1b] sm:$0x1] %v1615_v54  ;;  %8962 = vst [vmem:[%s11011_s12 + $0x23] sm:$0x1] %v1617_v55 }
 0x18c   : > { %8963 = vst [vmem:[%s11011_s12 + $0x2b] sm:$0x1] %v1619_v56 }
 0x18d   : > { %1656 = vsyncadd %s8477_s23, 96  ;;  %s9780_s11 = sadd.s32 512, %s11000_s18  ;;  %s8489_s0 = scalar_lea.sflag %s11019_s13, 4 [#allocation4] }
 0x18e   : > { %s1659_s14 = sadd.s32 %s9780_s11, %s11003_s19 }
 0x18f   : > { %s1660_s15 = sld [smem:[#allocation6 + %s1659_s14]] }
 0x195   : > { %s1661_s17 = sshrl.u32 %s1660_s15, 3  ;;  %s1662_s1 = sand.u32 7, %s1660_s15  }
 0x196   : > { %s1663_s20 = smul.u32 48, %s1661_s17 }
 0x198   : > { %s1664_s24 = sadd.s32 %s1663_s20, %s1662_s1 }
 0x199   : > { %s1665_s23 = scalar_lea.vmem %s13218_s2, %s1664_s24 }
 0x19a   : > { %v1688_v57 = vld [vmem:[%s1665_s23] sm:$0x1]  ;;  %v1690_v58 = vld [vmem:[%s1665_s23 + $0x8] sm:$0x1]  ;;  %v1692_v59 = vld [vmem:[%s1665_s23 + $0x10] sm:$0x1] }
 0x19b   : > { %8972 = vst [vmem:[%s11011_s12 + $0x4] sm:$0x1] %v1688_v57  ;;  %8973 = vst [vmem:[%s11011_s12 + $0xc] sm:$0x1] %v1690_v58  ;;  %v1694_v60 = vld [vmem:[%s1665_s23 + $0x18] sm:$0x1] }
 0x19c   : > { %8974 = vst [vmem:[%s11011_s12 + $0x14] sm:$0x1] %v1692_v59  ;;  %v1696_v61 = vld [vmem:[%s1665_s23 + $0x20] sm:$0x1]  ;;  %v1698_v62 = vld [vmem:[%s1665_s23 + $0x28] sm:$0x1] }
 0x19d   : > { %8975 = vst [vmem:[%s11011_s12 + $0x1c] sm:$0x1] %v1694_v60  ;;  %8976 = vst [vmem:[%s11011_s12 + $0x24] sm:$0x1] %v1696_v61 }
 0x19e   : > { %8977 = vst [vmem:[%s11011_s12 + $0x2c] sm:$0x1] %v1698_v62 }
 0x19f   : > { %1735 = vsyncadd %s8489_s0, 96  ;;  %s9782_s27 = sadd.s32 640, %s11000_s18  ;;  %s8501_s28 = scalar_lea.sflag %s11019_s13, 5 [#allocation4] }
 0x1a0   : > { %s1738_s30 = sadd.s32 %s9782_s27, %s11003_s19 }
 0x1a1   : > { %s1739_s9 = sld [smem:[#allocation6 + %s1738_s30]] }
 0x1a7   : > { %s1740_s10 = sshrl.u32 %s1739_s9, 3  ;;  %s1741_s29 = sand.u32 7, %s1739_s9  }
 0x1a8   : > { %s1742_s11 = smul.u32 48, %s1740_s10 }
 0x1aa   : > { %s1743_s14 = sadd.s32 %s1742_s11, %s1741_s29 }
 0x1ab   : > { %s1744_s0 = scalar_lea.vmem %s13218_s2, %s1743_s14 }
 0x1ac   : > { %v1767_v63 = vld [vmem:[%s1744_s0] sm:$0x1]  ;;  %v1769_v0 = vld [vmem:[%s1744_s0 + $0x8] sm:$0x1]  ;;  %v1771_v1 = vld [vmem:[%s1744_s0 + $0x10] sm:$0x1] }
 0x1ad   : > { %8986 = vst [vmem:[%s11011_s12 + $0x5] sm:$0x1] %v1767_v63  ;;  %8987 = vst [vmem:[%s11011_s12 + $0xd] sm:$0x1] %v1769_v0  ;;  %v1773_v2 = vld [vmem:[%s1744_s0 + $0x18] sm:$0x1] }
 0x1ae   : > { %8988 = vst [vmem:[%s11011_s12 + $0x15] sm:$0x1] %v1771_v1  ;;  %v1775_v3 = vld [vmem:[%s1744_s0 + $0x20] sm:$0x1]  ;;  %v1777_v4 = vld [vmem:[%s1744_s0 + $0x28] sm:$0x1] }
 0x1af   : > { %8989 = vst [vmem:[%s11011_s12 + $0x1d] sm:$0x1] %v1773_v2  ;;  %8990 = vst [vmem:[%s11011_s12 + $0x25] sm:$0x1] %v1775_v3 }
 0x1b0   : > { %8991 = vst [vmem:[%s11011_s12 + $0x2d] sm:$0x1] %v1777_v4 }
 0x1b1   : > { %1814 = vsyncadd %s8501_s28, 96  ;;  %s9784_s1 = sadd.s32 768, %s11000_s18  ;;  %s8513_s20 = scalar_lea.sflag %s11019_s13, 6 [#allocation4] }
 0x1b2   : > { %s1817_s24 = sadd.s32 %s9784_s1, %s11003_s19 }
 0x1b3   : > { %s1818_s25 = sld [smem:[#allocation6 + %s1817_s24]] }
 0x1b9   : > { %s1819_s26 = sshrl.u32 %s1818_s25, 3  ;;  %s1820_s23 = sand.u32 7, %s1818_s25  }
 0x1ba   : > { %s1821_s27 = smul.u32 48, %s1819_s26 }
 0x1bc   : > { %s1822_s30 = sadd.s32 %s1821_s27, %s1820_s23 }
 0x1bd   : > { %s1823_s28 = scalar_lea.vmem %s13218_s2, %s1822_s30 }
 0x1be   : > { %v1846_v5 = vld [vmem:[%s1823_s28] sm:$0x1]  ;;  %v1848_v6 = vld [vmem:[%s1823_s28 + $0x8] sm:$0x1]  ;;  %v1850_v7 = vld [vmem:[%s1823_s28 + $0x10] sm:$0x1] }
 0x1bf   : > { %9000 = vst [vmem:[%s11011_s12 + $0x6] sm:$0x1] %v1846_v5  ;;  %9001 = vst [vmem:[%s11011_s12 + $0xe] sm:$0x1] %v1848_v6  ;;  %v1852_v8 = vld [vmem:[%s1823_s28 + $0x18] sm:$0x1] }
 0x1c0   : > { %9002 = vst [vmem:[%s11011_s12 + $0x16] sm:$0x1] %v1850_v7  ;;  %v1854_v9 = vld [vmem:[%s1823_s28 + $0x20] sm:$0x1]  ;;  %v1856_v10 = vld [vmem:[%s1823_s28 + $0x28] sm:$0x1] }
 0x1c1   : > { %9003 = vst [vmem:[%s11011_s12 + $0x1e] sm:$0x1] %v1852_v8  ;;  %9004 = vst [vmem:[%s11011_s12 + $0x26] sm:$0x1] %v1854_v9 }
 0x1c2   : > { %9005 = vst [vmem:[%s11011_s12 + $0x2e] sm:$0x1] %v1856_v10 }
 0x1c3   : > { %1893 = vsyncadd %s8513_s20, 96  ;;  %s9786_s29 = sadd.s32 896, %s11000_s18  ;;  %s8525_s11 = scalar_lea.sflag %s11019_s13, 7 [#allocation4] }
 0x1c4   : > { %s1896_s14 = sadd.s32 %s9786_s29, %s11003_s19 }
 0x1c5   : > { %s1897_s15 = sld [smem:[#allocation6 + %s1896_s14]] }
 0x1cb   : > { %s1898_s17 = sshrl.u32 %s1897_s15, 3  ;;  %s1899_s0 = sand.u32 7, %s1897_s15  }
 0x1cc   : > { %s1900_s1 = smul.u32 48, %s1898_s17 }
 0x1ce   : > { %s1901_s24 = sadd.s32 %s1900_s1, %s1899_s0 }
 0x1cf   : > { %s1902_s20 = scalar_lea.vmem %s13218_s2, %s1901_s24 }
 0x1d0   : > { %v1925_v11 = vld [vmem:[%s1902_s20] sm:$0x1]  ;;  %v1927_v12 = vld [vmem:[%s1902_s20 + $0x8] sm:$0x1]  ;;  %v1929_v13 = vld [vmem:[%s1902_s20 + $0x10] sm:$0x1] }
 0x1d1   : > { %9014 = vst [vmem:[%s11011_s12 + $0x7] sm:$0x1] %v1925_v11  ;;  %9015 = vst [vmem:[%s11011_s12 + $0xf] sm:$0x1] %v1927_v12  ;;  %v1931_v14 = vld [vmem:[%s1902_s20 + $0x18] sm:$0x1] }
 0x1d2   : > { %9016 = vst [vmem:[%s11011_s12 + $0x17] sm:$0x1] %v1929_v13  ;;  %v1933_v15 = vld [vmem:[%s1902_s20 + $0x20] sm:$0x1]  ;;  %v1935_v16 = vld [vmem:[%s1902_s20 + $0x28] sm:$0x1] }
 0x1d3   : > { %9017 = vst [vmem:[%s11011_s12 + $0x1f] sm:$0x1] %v1931_v14  ;;  %9018 = vst [vmem:[%s11011_s12 + $0x27] sm:$0x1] %v1933_v15 }
 0x1d4   : > { %9019 = vst [vmem:[%s11011_s12 + $0x2f] sm:$0x1] %v1935_v16 }
 0x1d5   : > { %1972 = vsyncadd %s8525_s11, 96  ;;  %s9788_s23 = sadd.s32 1024, %s11000_s18  ;;  %s8537_s27 = scalar_lea.sflag %s11019_s13, 8 [#allocation4] }
 0x1d6   : > { %s1975_s30 = sadd.s32 %s9788_s23, %s11003_s19 }
 0x1d7   : > { %s1976_s9 = sld [smem:[#allocation6 + %s1975_s30]] }
 0x1dd   : > { %s1977_s10 = sshrl.u32 %s1976_s9, 3  ;;  %s1978_s28 = sand.u32 7, %s1976_s9  }
 0x1de   : > { %s1979_s29 = smul.u32 48, %s1977_s10 }
 0x1e0   : > { %s1980_s14 = sadd.s32 %s1979_s29, %s1978_s28 }
 0x1e1   : > { %s1981_s11 = scalar_lea.vmem %s13218_s2, %s1980_s14 }
 0x1e2   : > { %v2004_v17 = vld [vmem:[%s1981_s11] sm:$0x1]  ;;  %v2006_v18 = vld [vmem:[%s1981_s11 + $0x8] sm:$0x1]  ;;  %v2008_v19 = vld [vmem:[%s1981_s11 + $0x10] sm:$0x1] }
 0x1e3   : > { %9028 = vst [vmem:[%s11011_s12 + $0x30] sm:$0x1] %v2004_v17  ;;  %9029 = vst [vmem:[%s11011_s12 + $0x38] sm:$0x1] %v2006_v18  ;;  %v2010_v20 = vld [vmem:[%s1981_s11 + $0x18] sm:$0x1] }
 0x1e4   : > { %9030 = vst [vmem:[%s11011_s12 + $0x40] sm:$0x1] %v2008_v19  ;;  %v2012_v21 = vld [vmem:[%s1981_s11 + $0x20] sm:$0x1]  ;;  %v2014_v22 = vld [vmem:[%s1981_s11 + $0x28] sm:$0x1] }
 0x1e5   : > { %9031 = vst [vmem:[%s11011_s12 + $0x48] sm:$0x1] %v2010_v20  ;;  %9032 = vst [vmem:[%s11011_s12 + $0x50] sm:$0x1] %v2012_v21 }
 0x1e6   : > { %9033 = vst [vmem:[%s11011_s12 + $0x58] sm:$0x1] %v2014_v22 }
 0x1e7   : > { %2051 = vsyncadd %s8537_s27, 96  ;;  %s9790_s0 = sadd.s32 1152, %s11000_s18  ;;  %s8549_s1 = scalar_lea.sflag %s11019_s13, 9 [#allocation4] }
 0x1e8   : > { %s2054_s24 = sadd.s32 %s9790_s0, %s11003_s19 }
 0x1e9   : > { %s2055_s25 = sld [smem:[#allocation6 + %s2054_s24]] }
 0x1ef   : > { %s2056_s26 = sshrl.u32 %s2055_s25, 3  ;;  %s2057_s20 = sand.u32 7, %s2055_s25  }
 0x1f0   : > { %s2058_s23 = smul.u32 48, %s2056_s26 }
 0x1f2   : > { %s2059_s30 = sadd.s32 %s2058_s23, %s2057_s20 }
 0x1f3   : > { %s2060_s27 = scalar_lea.vmem %s13218_s2, %s2059_s30 }
 0x1f4   : > { %v2083_v23 = vld [vmem:[%s2060_s27] sm:$0x1]  ;;  %v2085_v24 = vld [vmem:[%s2060_s27 + $0x8] sm:$0x1]  ;;  %v2087_v25 = vld [vmem:[%s2060_s27 + $0x10] sm:$0x1] }
 0x1f5   : > { %9042 = vst [vmem:[%s11011_s12 + $0x31] sm:$0x1] %v2083_v23  ;;  %9043 = vst [vmem:[%s11011_s12 + $0x39] sm:$0x1] %v2085_v24  ;;  %v2089_v26 = vld [vmem:[%s2060_s27 + $0x18] sm:$0x1] }
 0x1f6   : > { %9044 = vst [vmem:[%s11011_s12 + $0x41] sm:$0x1] %v2087_v25  ;;  %v2091_v27 = vld [vmem:[%s2060_s27 + $0x20] sm:$0x1]  ;;  %v2093_v28 = vld [vmem:[%s2060_s27 + $0x28] sm:$0x1] }
 0x1f7   : > { %9045 = vst [vmem:[%s11011_s12 + $0x49] sm:$0x1] %v2089_v26  ;;  %9046 = vst [vmem:[%s11011_s12 + $0x51] sm:$0x1] %v2091_v27 }
 0x1f8   : > { %9047 = vst [vmem:[%s11011_s12 + $0x59] sm:$0x1] %v2093_v28 }
 0x1f9   : > { %2130 = vsyncadd %s8549_s1, 96  ;;  %s9792_s28 = sadd.s32 1280, %s11000_s18  ;;  %s8561_s29 = scalar_lea.sflag %s11019_s13, 10 [#allocation4] }
 0x1fa   : > { %s2133_s14 = sadd.s32 %s9792_s28, %s11003_s19 }
 0x1fb   : > { %s2134_s15 = sld [smem:[#allocation6 + %s2133_s14]] }
 0x201   : > { %s2135_s17 = sshrl.u32 %s2134_s15, 3  ;;  %s2136_s11 = sand.u32 7, %s2134_s15  }
 0x202   : > { %s2137_s0 = smul.u32 48, %s2135_s17 }
 0x204   : > { %s2138_s24 = sadd.s32 %s2137_s0, %s2136_s11 }
 0x205   : > { %s2139_s1 = scalar_lea.vmem %s13218_s2, %s2138_s24 }
 0x206   : > { %v2162_v29 = vld [vmem:[%s2139_s1] sm:$0x1]  ;;  %v2164_v30 = vld [vmem:[%s2139_s1 + $0x8] sm:$0x1]  ;;  %v2166_v31 = vld [vmem:[%s2139_s1 + $0x10] sm:$0x1] }
 0x207   : > { %9056 = vst [vmem:[%s11011_s12 + $0x32] sm:$0x1] %v2162_v29  ;;  %9057 = vst [vmem:[%s11011_s12 + $0x3a] sm:$0x1] %v2164_v30  ;;  %v2168_v32 = vld [vmem:[%s2139_s1 + $0x18] sm:$0x1] }
 0x208   : > { %9058 = vst [vmem:[%s11011_s12 + $0x42] sm:$0x1] %v2166_v31  ;;  %v2170_v33 = vld [vmem:[%s2139_s1 + $0x20] sm:$0x1]  ;;  %v2172_v34 = vld [vmem:[%s2139_s1 + $0x28] sm:$0x1] }
 0x209   : > { %9059 = vst [vmem:[%s11011_s12 + $0x4a] sm:$0x1] %v2168_v32  ;;  %9060 = vst [vmem:[%s11011_s12 + $0x52] sm:$0x1] %v2170_v33 }
 0x20a   : > { %9061 = vst [vmem:[%s11011_s12 + $0x5a] sm:$0x1] %v2172_v34 }
 0x20b   : > { %2209 = vsyncadd %s8561_s29, 96  ;;  %s9794_s20 = sadd.s32 1408, %s11000_s18  ;;  %s8573_s23 = scalar_lea.sflag %s11019_s13, 11 [#allocation4] }
 0x20c   : > { %s2212_s30 = sadd.s32 %s9794_s20, %s11003_s19 }
 0x20d   : > { %s2213_s9 = sld [smem:[#allocation6 + %s2212_s30]] }
 0x213   : > { %s2214_s10 = sshrl.u32 %s2213_s9, 3  ;;  %s2215_s27 = sand.u32 7, %s2213_s9  }
 0x214   : > { %s2216_s28 = smul.u32 48, %s2214_s10 }
 0x216   : > { %s2217_s14 = sadd.s32 %s2216_s28, %s2215_s27 }
 0x217   : > { %s2218_s29 = scalar_lea.vmem %s13218_s2, %s2217_s14 }
 0x218   : > { %v2241_v35 = vld [vmem:[%s2218_s29] sm:$0x1]  ;;  %v2243_v36 = vld [vmem:[%s2218_s29 + $0x8] sm:$0x1]  ;;  %v2245_v37 = vld [vmem:[%s2218_s29 + $0x10] sm:$0x1] }
 0x219   : > { %9070 = vst [vmem:[%s11011_s12 + $0x33] sm:$0x1] %v2241_v35  ;;  %9071 = vst [vmem:[%s11011_s12 + $0x3b] sm:$0x1] %v2243_v36  ;;  %v2247_v38 = vld [vmem:[%s2218_s29 + $0x18] sm:$0x1] }
 0x21a   : > { %9072 = vst [vmem:[%s11011_s12 + $0x43] sm:$0x1] %v2245_v37  ;;  %v2249_v39 = vld [vmem:[%s2218_s29 + $0x20] sm:$0x1]  ;;  %v2251_v40 = vld [vmem:[%s2218_s29 + $0x28] sm:$0x1] }
 0x21b   : > { %9073 = vst [vmem:[%s11011_s12 + $0x4b] sm:$0x1] %v2247_v38  ;;  %9074 = vst [vmem:[%s11011_s12 + $0x53] sm:$0x1] %v2249_v39 }
 0x21c   : > { %9075 = vst [vmem:[%s11011_s12 + $0x5b] sm:$0x1] %v2251_v40 }
 0x21d   : > { %2288 = vsyncadd %s8573_s23, 96  ;;  %s9796_s11 = sadd.s32 1536, %s11000_s18  ;;  %s8585_s0 = scalar_lea.sflag %s11019_s13, 12 [#allocation4] }
 0x21e   : > { %s2291_s24 = sadd.s32 %s9796_s11, %s11003_s19 }
 0x21f   : > { %s2292_s25 = sld [smem:[#allocation6 + %s2291_s24]] }
 0x225   : > { %s2293_s26 = sshrl.u32 %s2292_s25, 3  ;;  %s2294_s1 = sand.u32 7, %s2292_s25  }
 0x226   : > { %s2295_s20 = smul.u32 48, %s2293_s26 }
 0x228   : > { %s2296_s30 = sadd.s32 %s2295_s20, %s2294_s1 }
 0x229   : > { %s2297_s23 = scalar_lea.vmem %s13218_s2, %s2296_s30 }
 0x22a   : > { %v2320_v41 = vld [vmem:[%s2297_s23] sm:$0x1]  ;;  %v2322_v42 = vld [vmem:[%s2297_s23 + $0x8] sm:$0x1]  ;;  %v2324_v43 = vld [vmem:[%s2297_s23 + $0x10] sm:$0x1] }
 0x22b   : > { %9084 = vst [vmem:[%s11011_s12 + $0x34] sm:$0x1] %v2320_v41  ;;  %9085 = vst [vmem:[%s11011_s12 + $0x3c] sm:$0x1] %v2322_v42  ;;  %v2326_v44 = vld [vmem:[%s2297_s23 + $0x18] sm:$0x1] }
 0x22c   : > { %9086 = vst [vmem:[%s11011_s12 + $0x44] sm:$0x1] %v2324_v43  ;;  %v2328_v45 = vld [vmem:[%s2297_s23 + $0x20] sm:$0x1]  ;;  %v2330_v46 = vld [vmem:[%s2297_s23 + $0x28] sm:$0x1] }
 0x22d   : > { %9087 = vst [vmem:[%s11011_s12 + $0x4c] sm:$0x1] %v2326_v44  ;;  %9088 = vst [vmem:[%s11011_s12 + $0x54] sm:$0x1] %v2328_v45 }
 0x22e   : > { %9089 = vst [vmem:[%s11011_s12 + $0x5c] sm:$0x1] %v2330_v46 }
 0x22f   : > { %2367 = vsyncadd %s8585_s0, 96  ;;  %s9798_s27 = sadd.s32 1664, %s11000_s18  ;;  %s8597_s28 = scalar_lea.sflag %s11019_s13, 13 [#allocation4] }
 0x230   : > { %s2370_s14 = sadd.s32 %s9798_s27, %s11003_s19 }
 0x231   : > { %s2371_s15 = sld [smem:[#allocation6 + %s2370_s14]] }
 0x237   : > { %s2372_s17 = sshrl.u32 %s2371_s15, 3  ;;  %s2373_s29 = sand.u32 7, %s2371_s15  }
 0x238   : > { %s2374_s11 = smul.u32 48, %s2372_s17 }
 0x23a   : > { %s2375_s24 = sadd.s32 %s2374_s11, %s2373_s29 }
 0x23b   : > { %s2376_s0 = scalar_lea.vmem %s13218_s2, %s2375_s24 }
 0x23c   : > { %v2399_v47 = vld [vmem:[%s2376_s0] sm:$0x1]  ;;  %v2401_v48 = vld [vmem:[%s2376_s0 + $0x8] sm:$0x1]  ;;  %v2403_v49 = vld [vmem:[%s2376_s0 + $0x10] sm:$0x1] }
 0x23d   : > { %9098 = vst [vmem:[%s11011_s12 + $0x35] sm:$0x1] %v2399_v47  ;;  %9099 = vst [vmem:[%s11011_s12 + $0x3d] sm:$0x1] %v2401_v48  ;;  %v2405_v50 = vld [vmem:[%s2376_s0 + $0x18] sm:$0x1] }
 0x23e   : > { %9100 = vst [vmem:[%s11011_s12 + $0x45] sm:$0x1] %v2403_v49  ;;  %v2407_v51 = vld [vmem:[%s2376_s0 + $0x20] sm:$0x1]  ;;  %v2409_v52 = vld [vmem:[%s2376_s0 + $0x28] sm:$0x1] }
 0x23f   : > { %9101 = vst [vmem:[%s11011_s12 + $0x4d] sm:$0x1] %v2405_v50  ;;  %9102 = vst [vmem:[%s11011_s12 + $0x55] sm:$0x1] %v2407_v51 }
 0x240   : > { %9103 = vst [vmem:[%s11011_s12 + $0x5d] sm:$0x1] %v2409_v52 }
 0x241   : > { %2446 = vsyncadd %s8597_s28, 96  ;;  %s9800_s1 = sadd.s32 1792, %s11000_s18  ;;  %s8609_s20 = scalar_lea.sflag %s11019_s13, 14 [#allocation4] }
 0x242   : > { %s2449_s30 = sadd.s32 %s9800_s1, %s11003_s19 }
 0x243   : > { %s2450_s9 = sld [smem:[#allocation6 + %s2449_s30]] }
 0x249   : > { %s2451_s10 = sshrl.u32 %s2450_s9, 3  ;;  %s2452_s23 = sand.u32 7, %s2450_s9  }
 0x24a   : > { %s2453_s27 = smul.u32 48, %s2451_s10 }
 0x24c   : > { %s2454_s14 = sadd.s32 %s2453_s27, %s2452_s23 }
 0x24d   : > { %s2455_s28 = scalar_lea.vmem %s13218_s2, %s2454_s14 }
 0x24e   : > { %v2478_v53 = vld [vmem:[%s2455_s28] sm:$0x1]  ;;  %v2480_v54 = vld [vmem:[%s2455_s28 + $0x8] sm:$0x1]  ;;  %v2482_v55 = vld [vmem:[%s2455_s28 + $0x10] sm:$0x1] }
 0x24f   : > { %9112 = vst [vmem:[%s11011_s12 + $0x36] sm:$0x1] %v2478_v53  ;;  %9113 = vst [vmem:[%s11011_s12 + $0x3e] sm:$0x1] %v2480_v54  ;;  %v2484_v56 = vld [vmem:[%s2455_s28 + $0x18] sm:$0x1] }
 0x250   : > { %9114 = vst [vmem:[%s11011_s12 + $0x46] sm:$0x1] %v2482_v55  ;;  %v2486_v57 = vld [vmem:[%s2455_s28 + $0x20] sm:$0x1]  ;;  %v2488_v58 = vld [vmem:[%s2455_s28 + $0x28] sm:$0x1] }
 0x251   : > { %9115 = vst [vmem:[%s11011_s12 + $0x4e] sm:$0x1] %v2484_v56  ;;  %9116 = vst [vmem:[%s11011_s12 + $0x56] sm:$0x1] %v2486_v57 }
 0x252   : > { %9117 = vst [vmem:[%s11011_s12 + $0x5e] sm:$0x1] %v2488_v58 }
 0x253   : > { %2525 = vsyncadd %s8609_s20, 96  ;;  %s9802_s29 = sadd.s32 1920, %s11000_s18  ;;  %s8621_s11 = scalar_lea.sflag %s11019_s13, 15 [#allocation4] }
 0x254   : > { %s2528_s24 = sadd.s32 %s9802_s29, %s11003_s19 }
 0x255   : > { %s2529_s25 = sld [smem:[#allocation6 + %s2528_s24]] }
 0x25b   : > { %s2530_s26 = sshrl.u32 %s2529_s25, 3  ;;  %s2531_s0 = sand.u32 7, %s2529_s25  }
 0x25c   : > { %s2532_s1 = smul.u32 48, %s2530_s26 }
 0x25e   : > { %s2533_s30 = sadd.s32 %s2532_s1, %s2531_s0 }
 0x25f   : > { %s2534_s20 = scalar_lea.vmem %s13218_s2, %s2533_s30 }
 0x260   : > { %v2557_v59 = vld [vmem:[%s2534_s20] sm:$0x1]  ;;  %v2559_v60 = vld [vmem:[%s2534_s20 + $0x8] sm:$0x1]  ;;  %v2561_v61 = vld [vmem:[%s2534_s20 + $0x10] sm:$0x1] }
 0x261   : > { %9126 = vst [vmem:[%s11011_s12 + $0x37] sm:$0x1] %v2557_v59  ;;  %9127 = vst [vmem:[%s11011_s12 + $0x3f] sm:$0x1] %v2559_v60  ;;  %v2563_v62 = vld [vmem:[%s2534_s20 + $0x18] sm:$0x1] }
 0x262   : > { %9128 = vst [vmem:[%s11011_s12 + $0x47] sm:$0x1] %v2561_v61  ;;  %v2565_v63 = vld [vmem:[%s2534_s20 + $0x20] sm:$0x1]  ;;  %v2567_v0 = vld [vmem:[%s2534_s20 + $0x28] sm:$0x1] }
 0x263   : > { %9129 = vst [vmem:[%s11011_s12 + $0x4f] sm:$0x1] %v2563_v62  ;;  %9130 = vst [vmem:[%s11011_s12 + $0x57] sm:$0x1] %v2565_v63 }
 0x264   : > { %9131 = vst [vmem:[%s11011_s12 + $0x5f] sm:$0x1] %v2567_v0 }
 0x265   : > { %2604 = vsyncadd %s8621_s11, 96 }
 0x266 PF: > { %s9803_s18 = smul.u32 96, %s10971_s22  ;;  %s2620_s19 = sshra.s32 %s10842_s21, 7 }
 0x267   : > { %s11204_s13 = sshll.u32 %s2620_s19, 7  ;;  %s11207_s23 = sand.u32 127, %s10842_s21 }
 0x268   : > { %s2626_s27 = sadd.s32 %s11204_s13, %s11207_s23  ;;  %s2607_s14 = scalar_lea.vmem [#allocation2], %s9803_s18 }
 0x269   : > { %s2627_s12 = sld [smem:[#allocation7 + %s2626_s27]] }
 0x26b   : > { %v11211_v1 = vld [vmem:[%s2607_s14] sm:$0xff]  ;;  %v11213_v2 = vld [vmem:[%s2607_s14 + $0x8] sm:$0xff]  ;;  %v11215_v3 = vld [vmem:[%s2607_s14 + $0x10] sm:$0xff] }
 0x26c   : > { %v11217_v4 = vld [vmem:[%s2607_s14 + $0x18] sm:$0xff]  ;;  %v11219_v5 = vld [vmem:[%s2607_s14 + $0x20] sm:$0xff]  ;;  %v11221_v6 = vld [vmem:[%s2607_s14 + $0x28] sm:$0xff] }
 0x26d   : > { %v11223_v7 = vld [vmem:[%s2607_s14 + $0x30] sm:$0xff]  ;;  %v11225_v8 = vld [vmem:[%s2607_s14 + $0x38] sm:$0xff]  ;;  %v11227_v9 = vld [vmem:[%s2607_s14 + $0x40] sm:$0xff] }
 0x26e   : > { %v11229_v10 = vld [vmem:[%s2607_s14 + $0x48] sm:$0xff]  ;;  %v11231_v11 = vld [vmem:[%s2607_s14 + $0x50] sm:$0xff]  ;;  %v11233_v12 = vld [vmem:[%s2607_s14 + $0x58] sm:$0xff] }
 0x26f   : > { %p9134_p11 = scmp.eq.s32.totalorder %s2627_s12, 0 }
 0x271   : > { %2631 = sbr.rel (%p9134_p11) target bundleno = 648 (0x288), region = 996 }
 0x276   : > { %v2647_v13 = vlaneseq  ;;  %v10847_v14 = vmov 1966171168   ;;  %v2641_v17 = vcombine.low %v11211_v1, %v11213_v2  ;;  %v2642_v18 = vcombine.low %v11215_v3, %v11217_v4  ;;  %v2632_v25 = vld [vmem:[#allocation3] ss:$8 sm:$0xf] }
 0x277   : > { %v2645_v15 = vunpack.c.l.s4 %v10847_v14  ;;  %v2643_v19 = vcombine.low %v11219_v5, %v11221_v6  ;;  %v2633_v26 = vld [vmem:[#allocation3] ss:$8 sm:$0x30] }
 0x278   : > { %v2648_v16 = vshrl.u32 %v2647_v13, 7  ;;  %v2634_v29 = vor.u32 %v2633_v26, %v2632_v25  ;;  %vm2685_vm0 = vcmp.lt.s32.totalorder %v2647_v13, 768 }
 0x279   : > { %v2646_v20 = vunpack.c.0.s8 %v2645_v15 }
 0x27b   : > { %v2649_v21 = vsub.s32 %v2646_v20, %v2648_v16 }
 0x27d   : > { %v2650_v22 = vrot.slane %v2641_v17, %v2649_v21  ;;  %v2657_v23 = vrot.slane %v2642_v18, %v2649_v21  ;;  %v2664_v24 = vrot.slane %v2643_v19, %v2649_v21 }
 0x27f   : > { %v2665_v27 = vcombine.low %v2650_v22, %v2657_v23  ;;  %v2679_v28 = vrot.slane %v2664_v24, %v2649_v21 }
 0x281   : > { %v2672_v30 = vrot.slane %v2665_v27, %v2649_v21 }
 0x283   : > { %v2680_v31 = vcombine.low %v2672_v30, %v2679_v28 }
 0x285   : > { %v2682_v32 = vadd.f32 %v2680_v31, %v2634_v29 }
 0x287   : > { %2687 = vst.msk [vmem:[#allocation3] ss:$8 sm:$0xf] %vm2685_vm0, %v2682_v32  ;;  %2688 = vst.msk [vmem:[#allocation3] ss:$8 sm:$0x30] %vm2685_vm0, %v2682_v32 }
 0x288 PF: > { %s9805_s21 = sadd.s32 128, %s11204_s13 }
 0x289   : > { %s2691_s22 = sadd.s32 %s9805_s21, %s11207_s23 }
 0x28a   : > { %s2692_s15 = sld [smem:[#allocation7 + %s2691_s22]] }
 0x290   : > { %p9136_p12 = scmp.eq.s32.totalorder %s2692_s15, 0 }
 0x292   : > { %2696 = sbr.rel (%p9136_p12) target bundleno = 681 (0x2a9), region = 1000 }
 0x297   : > { %v2713_v33 = vlaneseq  ;;  %v10848_v34 = vmov 1966171168   ;;  %v2707_v37 = vcombine.low %v11211_v1, %v11213_v2  ;;  %v2708_v38 = vcombine.low %v11215_v3, %v11217_v4  ;;  %v2698_v45 = vld [vmem:[#allocation3 + $0x1] ss:$8 sm:$0xf] }
 0x298   : > { %v2711_v35 = vunpack.c.l.s4 %v10848_v34  ;;  %v2709_v39 = vcombine.low %v11219_v5, %v11221_v6  ;;  %v2699_v46 = vld [vmem:[#allocation3 + $0x1] ss:$8 sm:$0x30] }
 0x299   : > { %v2714_v36 = vshrl.u32 %v2713_v33, 7  ;;  %v2700_v49 = vor.u32 %v2699_v46, %v2698_v45  ;;  %vm2752_vm1 = vcmp.lt.s32.totalorder %v2713_v33, 768 }
 0x29a   : > { %v2712_v40 = vunpack.c.0.s8 %v2711_v35 }
 0x29c   : > { %v2715_v41 = vsub.s32 %v2712_v40, %v2714_v36 }
 0x29e   : > { %v2716_v42 = vrot.slane %v2707_v37, %v2715_v41  ;;  %v2723_v43 = vrot.slane %v2708_v38, %v2715_v41  ;;  %v2730_v44 = vrot.slane %v2709_v39, %v2715_v41 }
 0x2a0   : > { %v2731_v47 = vcombine.high %v2716_v42, %v2723_v43  ;;  %v2732_v48 = vcombine.high %v2730_v44, %v2730_v44 }
 0x2a2   : > { %v2739_v50 = vrot.slane %v2731_v47, %v2715_v41  ;;  %v2746_v51 = vrot.slane %v2732_v48, %v2715_v41 }
 0x2a4   : > { %v2747_v52 = vcombine.low %v2739_v50, %v2746_v51 }
 0x2a6   : > { %v2749_v53 = vadd.f32 %v2747_v52, %v2700_v49 }
 0x2a8   : > { %2754 = vst.msk [vmem:[#allocation3 + $0x1] ss:$8 sm:$0xf] %vm2752_vm1, %v2749_v53  ;;  %2755 = vst.msk [vmem:[#allocation3 + $0x1] ss:$8 sm:$0x30] %vm2752_vm1, %v2749_v53 }
 0x2a9 PF: > { %s9807_s17 = sadd.s32 256, %s11204_s13 }
 0x2aa   : > { %s2758_s28 = sadd.s32 %s9807_s17, %s11207_s23 }
 0x2ab   : > { %s2759_s29 = sld [smem:[#allocation7 + %s2758_s28]] }
 0x2b1   : > { %p9138_p13 = scmp.eq.s32.totalorder %s2759_s29, 0 }
 0x2b3   : > { %2763 = sbr.rel (%p9138_p13) target bundleno = 714 (0x2ca), region = 1004 }
 0x2b8   : > { %v2780_v54 = vlaneseq  ;;  %v10849_v55 = vmov 1966171168   ;;  %v2774_v58 = vcombine.low %v11211_v1, %v11213_v2  ;;  %v2775_v59 = vcombine.low %v11215_v3, %v11217_v4  ;;  %v2765_v14 = vld [vmem:[#allocation3 + $0x2] ss:$8 sm:$0xf] }
 0x2b9   : > { %v2778_v56 = vunpack.c.l.s4 %v10849_v55  ;;  %v2776_v60 = vcombine.low %v11219_v5, %v11221_v6  ;;  %v2766_v15 = vld [vmem:[#allocation3 + $0x2] ss:$8 sm:$0x30] }
 0x2ba   : > { %v2781_v57 = vshrl.u32 %v2780_v54, 7  ;;  %v2767_v18 = vor.u32 %v2766_v15, %v2765_v14  ;;  %vm2818_vm2 = vcmp.lt.s32.totalorder %v2780_v54, 768 }
 0x2bb   : > { %v2779_v61 = vunpack.c.0.s8 %v2778_v56 }
 0x2bd   : > { %v2782_v62 = vsub.s32 %v2779_v61, %v2781_v57 }
 0x2bf   : > { %v2783_v63 = vrot.slane %v2774_v58, %v2782_v62  ;;  %v2790_v0 = vrot.slane %v2775_v59, %v2782_v62  ;;  %v2797_v13 = vrot.slane %v2776_v60, %v2782_v62 }
 0x2c1   : > { %v2798_v16 = vcombine.low %v2783_v63, %v2790_v0  ;;  %v2812_v17 = vrot.slane %v2797_v13, %v2782_v62 }
 0x2c3   : > { %v2805_v19 = vrot.slane %v2798_v16, %v2782_v62 }
 0x2c5   : > { %v2813_v20 = vcombine.high %v2805_v19, %v2812_v17 }
 0x2c7   : > { %v2815_v21 = vadd.f32 %v2813_v20, %v2767_v18 }
 0x2c9   : > { %2820 = vst.msk [vmem:[#allocation3 + $0x2] ss:$8 sm:$0xf] %vm2818_vm2, %v2815_v21  ;;  %2821 = vst.msk [vmem:[#allocation3 + $0x2] ss:$8 sm:$0x30] %vm2818_vm2, %v2815_v21 }
 0x2ca PF: > { %s9809_s11 = sadd.s32 384, %s11204_s13 }
 0x2cb   : > { %s2824_s24 = sadd.s32 %s9809_s11, %s11207_s23 }
 0x2cc   : > { %s2825_s25 = sld [smem:[#allocation7 + %s2824_s24]] }
 0x2d2   : > { %p9140_p0 = scmp.eq.s32.totalorder %s2825_s25, 0 }
 0x2d4   : > { %2829 = sbr.rel (%p9140_p0) target bundleno = 747 (0x2eb), region = 1008 }
 0x2d9   : > { %v2846_v22 = vlaneseq  ;;  %v10850_v23 = vmov 1966171168   ;;  %v2840_v26 = vcombine.low %v11211_v1, %v11213_v2  ;;  %v2841_v27 = vcombine.low %v11215_v3, %v11217_v4  ;;  %v2831_v34 = vld [vmem:[#allocation3 + $0x3] ss:$8 sm:$0xf] }
 0x2da   : > { %v2844_v24 = vunpack.c.l.s4 %v10850_v23  ;;  %v2842_v28 = vcombine.low %v11219_v5, %v11221_v6  ;;  %v2832_v35 = vld [vmem:[#allocation3 + $0x3] ss:$8 sm:$0x30] }
 0x2db   : > { %v2847_v25 = vshrl.u32 %v2846_v22, 7  ;;  %v2833_v38 = vor.u32 %v2832_v35, %v2831_v34  ;;  %vm2885_vm3 = vcmp.lt.s32.totalorder %v2846_v22, 768 }
 0x2dc   : > { %v2845_v29 = vunpack.c.0.s8 %v2844_v24 }
 0x2de   : > { %v2848_v30 = vsub.s32 %v2845_v29, %v2847_v25 }
 0x2e0   : > { %v2849_v31 = vrot.slane %v2840_v26, %v2848_v30  ;;  %v2856_v32 = vrot.slane %v2841_v27, %v2848_v30  ;;  %v2863_v33 = vrot.slane %v2842_v28, %v2848_v30 }
 0x2e2   : > { %v2864_v36 = vcombine.high %v2849_v31, %v2856_v32  ;;  %v2865_v37 = vcombine.high %v2863_v33, %v2863_v33 }
 0x2e4   : > { %v2872_v39 = vrot.slane %v2864_v36, %v2848_v30  ;;  %v2879_v40 = vrot.slane %v2865_v37, %v2848_v30 }
 0x2e6   : > { %v2880_v41 = vcombine.high %v2872_v39, %v2879_v40 }
 0x2e8   : > { %v2882_v42 = vadd.f32 %v2880_v41, %v2833_v38 }
 0x2ea   : > { %2887 = vst.msk [vmem:[#allocation3 + $0x3] ss:$8 sm:$0xf] %vm2885_vm3, %v2882_v42  ;;  %2888 = vst.msk [vmem:[#allocation3 + $0x3] ss:$8 sm:$0x30] %vm2885_vm3, %v2882_v42 }
 0x2eb PF: > { %s9811_s26 = sadd.s32 512, %s11204_s13 }
 0x2ec   : > { %s2891_s0 = sadd.s32 %s9811_s26, %s11207_s23 }
 0x2ed   : > { %s2892_s1 = sld [smem:[#allocation7 + %s2891_s0]] }
 0x2f3   : > { %p9142_p1 = scmp.eq.s32.totalorder %s2892_s1, 0 }
 0x2f5   : > { %2896 = sbr.rel (%p9142_p1) target bundleno = 780 (0x30c), region = 1012 }
 0x2fa   : > { %v2913_v43 = vlaneseq  ;;  %v10851_v44 = vmov 1966171168   ;;  %v2907_v47 = vcombine.high %v11211_v1, %v11213_v2  ;;  %v2908_v48 = vcombine.high %v11215_v3, %v11217_v4  ;;  %v2898_v55 = vld [vmem:[#allocation3 + $0x4] ss:$8 sm:$0xf] }
 0x2fb   : > { %v2911_v45 = vunpack.c.l.s4 %v10851_v44  ;;  %v2909_v49 = vcombine.high %v11219_v5, %v11221_v6  ;;  %v2899_v56 = vld [vmem:[#allocation3 + $0x4] ss:$8 sm:$0x30] }
 0x2fc   : > { %v2914_v46 = vshrl.u32 %v2913_v43, 7  ;;  %v2900_v59 = vor.u32 %v2899_v56, %v2898_v55  ;;  %vm2951_vm4 = vcmp.lt.s32.totalorder %v2913_v43, 768 }
 0x2fd   : > { %v2912_v50 = vunpack.c.0.s8 %v2911_v45 }
 0x2ff   : > { %v2915_v51 = vsub.s32 %v2912_v50, %v2914_v46 }
 0x301   : > { %v2916_v52 = vrot.slane %v2907_v47, %v2915_v51  ;;  %v2923_v53 = vrot.slane %v2908_v48, %v2915_v51  ;;  %v2930_v54 = vrot.slane %v2909_v49, %v2915_v51 }
 0x303   : > { %v2931_v57 = vcombine.low %v2916_v52, %v2923_v53  ;;  %v2945_v58 = vrot.slane %v2930_v54, %v2915_v51 }
 0x305   : > { %v2938_v60 = vrot.slane %v2931_v57, %v2915_v51 }
 0x307   : > { %v2946_v61 = vcombine.low %v2938_v60, %v2945_v58 }
 0x309   : > { %v2948_v62 = vadd.f32 %v2946_v61, %v2900_v59 }
 0x30b   : > { %2953 = vst.msk [vmem:[#allocation3 + $0x4] ss:$8 sm:$0xf] %vm2951_vm4, %v2948_v62  ;;  %2954 = vst.msk [vmem:[#allocation3 + $0x4] ss:$8 sm:$0x30] %vm2951_vm4, %v2948_v62 }
 0x30c PF: > { %s9813_s30 = sadd.s32 640, %s11204_s13 }
 0x30d   : > { %s2957_s9 = sadd.s32 %s9813_s30, %s11207_s23 }
 0x30e   : > { %s2958_s10 = sld [smem:[#allocation7 + %s2957_s9]] }
 0x314   : > { %p9144_p2 = scmp.eq.s32.totalorder %s2958_s10, 0 }
 0x316   : > { %2962 = sbr.rel (%p9144_p2) target bundleno = 813 (0x32d), region = 1016 }
 0x31b   : > { %v2979_v63 = vlaneseq  ;;  %v10852_v0 = vmov 1966171168   ;;  %v2973_v15 = vcombine.high %v11211_v1, %v11213_v2  ;;  %v2974_v16 = vcombine.high %v11215_v3, %v11217_v4  ;;  %v2964_v23 = vld [vmem:[#allocation3 + $0x5] ss:$8 sm:$0xf] }
 0x31c   : > { %v2977_v13 = vunpack.c.l.s4 %v10852_v0  ;;  %v2975_v17 = vcombine.high %v11219_v5, %v11221_v6  ;;  %v2965_v24 = vld [vmem:[#allocation3 + $0x5] ss:$8 sm:$0x30] }
 0x31d   : > { %v2980_v14 = vshrl.u32 %v2979_v63, 7  ;;  %v2966_v27 = vor.u32 %v2965_v24, %v2964_v23  ;;  %vm3018_vm5 = vcmp.lt.s32.totalorder %v2979_v63, 768 }
 0x31e   : > { %v2978_v18 = vunpack.c.0.s8 %v2977_v13 }
 0x320   : > { %v2981_v19 = vsub.s32 %v2978_v18, %v2980_v14 }
 0x322   : > { %v2982_v20 = vrot.slane %v2973_v15, %v2981_v19  ;;  %v2989_v21 = vrot.slane %v2974_v16, %v2981_v19  ;;  %v2996_v22 = vrot.slane %v2975_v17, %v2981_v19 }
 0x324   : > { %v2997_v25 = vcombine.high %v2982_v20, %v2989_v21  ;;  %v2998_v26 = vcombine.high %v2996_v22, %v2996_v22 }
 0x326   : > { %v3005_v28 = vrot.slane %v2997_v25, %v2981_v19  ;;  %v3012_v29 = vrot.slane %v2998_v26, %v2981_v19 }
 0x328   : > { %v3013_v30 = vcombine.low %v3005_v28, %v3012_v29 }
 0x32a   : > { %v3015_v31 = vadd.f32 %v3013_v30, %v2966_v27 }
 0x32c   : > { %3020 = vst.msk [vmem:[#allocation3 + $0x5] ss:$8 sm:$0xf] %vm3018_vm5, %v3015_v31  ;;  %3021 = vst.msk [vmem:[#allocation3 + $0x5] ss:$8 sm:$0x30] %vm3018_vm5, %v3015_v31 }
 0x32d PF: > { %s9815_s20 = sadd.s32 768, %s11204_s13 }
 0x32e   : > { %s3024_s18 = sadd.s32 %s9815_s20, %s11207_s23 }
 0x32f   : > { %s3025_s19 = sld [smem:[#allocation7 + %s3024_s18]] }
 0x335   : > { %p9146_p3 = scmp.eq.s32.totalorder %s3025_s19, 0 }
 0x337   : > { %3029 = sbr.rel (%p9146_p3) target bundleno = 846 (0x34e), region = 1020 }
 0x33c   : > { %v3046_v32 = vlaneseq  ;;  %v10853_v33 = vmov 1966171168   ;;  %v3040_v36 = vcombine.high %v11211_v1, %v11213_v2  ;;  %v3041_v37 = vcombine.high %v11215_v3, %v11217_v4  ;;  %v3031_v44 = vld [vmem:[#allocation3 + $0x6] ss:$8 sm:$0xf] }
 0x33d   : > { %v3044_v34 = vunpack.c.l.s4 %v10853_v33  ;;  %v3042_v38 = vcombine.high %v11219_v5, %v11221_v6  ;;  %v3032_v45 = vld [vmem:[#allocation3 + $0x6] ss:$8 sm:$0x30] }
 0x33e   : > { %v3047_v35 = vshrl.u32 %v3046_v32, 7  ;;  %v3033_v48 = vor.u32 %v3032_v45, %v3031_v44  ;;  %vm3084_vm6 = vcmp.lt.s32.totalorder %v3046_v32, 768 }
 0x33f   : > { %v3045_v39 = vunpack.c.0.s8 %v3044_v34 }
 0x341   : > { %v3048_v40 = vsub.s32 %v3045_v39, %v3047_v35 }
 0x343   : > { %v3049_v41 = vrot.slane %v3040_v36, %v3048_v40  ;;  %v3056_v42 = vrot.slane %v3041_v37, %v3048_v40  ;;  %v3063_v43 = vrot.slane %v3042_v38, %v3048_v40 }
 0x345   : > { %v3064_v46 = vcombine.low %v3049_v41, %v3056_v42  ;;  %v3078_v47 = vrot.slane %v3063_v43, %v3048_v40 }
 0x347   : > { %v3071_v49 = vrot.slane %v3064_v46, %v3048_v40 }
 0x349   : > { %v3079_v50 = vcombine.high %v3071_v49, %v3078_v47 }
 0x34b   : > { %v3081_v51 = vadd.f32 %v3079_v50, %v3033_v48 }
 0x34d   : > { %3086 = vst.msk [vmem:[#allocation3 + $0x6] ss:$8 sm:$0xf] %vm3084_vm6, %v3081_v51  ;;  %3087 = vst.msk [vmem:[#allocation3 + $0x6] ss:$8 sm:$0x30] %vm3084_vm6, %v3081_v51 }
 0x34e PF: > { %s9817_s27 = sadd.s32 896, %s11204_s13 }
 0x34f   : > { %s3090_s14 = sadd.s32 %s9817_s27, %s11207_s23 }
 0x350   : > { %s3091_s12 = sld [smem:[#allocation7 + %s3090_s14]] }
 0x356   : > { %p9148_p4 = scmp.eq.s32.totalorder %s3091_s12, 0 }
 0x358   : > { %3095 = sbr.rel (%p9148_p4) target bundleno = 879 (0x36f), region = 1024 }
 0x35d   : > { %v3112_v52 = vlaneseq  ;;  %v10854_v53 = vmov 1966171168   ;;  %v3106_v56 = vcombine.high %v11211_v1, %v11213_v2  ;;  %v3107_v57 = vcombine.high %v11215_v3, %v11217_v4  ;;  %v3097_v0 = vld [vmem:[#allocation3 + $0x7] ss:$8 sm:$0xf] }
 0x35e   : > { %v3110_v54 = vunpack.c.l.s4 %v10854_v53  ;;  %v3108_v58 = vcombine.high %v11219_v5, %v11221_v6  ;;  %v3098_v13 = vld [vmem:[#allocation3 + $0x7] ss:$8 sm:$0x30] }
 0x35f   : > { %v3113_v55 = vshrl.u32 %v3112_v52, 7  ;;  %v3099_v16 = vor.u32 %v3098_v13, %v3097_v0  ;;  %vm3151_vm7 = vcmp.lt.s32.totalorder %v3112_v52, 768 }
 0x360   : > { %v3111_v59 = vunpack.c.0.s8 %v3110_v54 }
 0x362   : > { %v3114_v60 = vsub.s32 %v3111_v59, %v3113_v55 }
 0x364   : > { %v3115_v61 = vrot.slane %v3106_v56, %v3114_v60  ;;  %v3122_v62 = vrot.slane %v3107_v57, %v3114_v60  ;;  %v3129_v63 = vrot.slane %v3108_v58, %v3114_v60 }
 0x366   : > { %v3130_v14 = vcombine.high %v3115_v61, %v3122_v62  ;;  %v3131_v15 = vcombine.high %v3129_v63, %v3129_v63 }
 0x368   : > { %v3138_v17 = vrot.slane %v3130_v14, %v3114_v60  ;;  %v3145_v18 = vrot.slane %v3131_v15, %v3114_v60 }
 0x36a   : > { %v3146_v19 = vcombine.high %v3138_v17, %v3145_v18 }
 0x36c   : > { %v3148_v1 = vadd.f32 %v3146_v19, %v3099_v16 }
 0x36e   : > { %3153 = vst.msk [vmem:[#allocation3 + $0x7] ss:$8 sm:$0xf] %vm3151_vm7, %v3148_v1  ;;  %3154 = vst.msk [vmem:[#allocation3 + $0x7] ss:$8 sm:$0x30] %vm3151_vm7, %v3148_v1 }
 0x36f PF: > { %s9819_s21 = sadd.s32 1024, %s11204_s13 }
 0x370   : > { %s3157_s22 = sadd.s32 %s9819_s21, %s11207_s23 }
 0x371   : > { %s3158_s15 = sld [smem:[#allocation7 + %s3157_s22]] }
 0x377   : > { %p9150_p5 = scmp.eq.s32.totalorder %s3158_s15, 0 }
 0x379   : > { %3162 = sbr.rel (%p9150_p5) target bundleno = 912 (0x390), region = 1028 }
 0x37e   : > { %v3179_v2 = vlaneseq  ;;  %v10855_v3 = vmov 1966171168   ;;  %v3173_v6 = vcombine.low %v11223_v7, %v11225_v8  ;;  %v3174_v20 = vcombine.low %v11227_v9, %v11229_v10  ;;  %v3164_v27 = vld [vmem:[#allocation3 + $0x30] ss:$8 sm:$0xf] }
 0x37f   : > { %v3177_v4 = vunpack.c.l.s4 %v10855_v3  ;;  %v3175_v21 = vcombine.low %v11231_v11, %v11233_v12  ;;  %v3165_v28 = vld [vmem:[#allocation3 + $0x30] ss:$8 sm:$0x30] }
 0x380   : > { %v3180_v5 = vshrl.u32 %v3179_v2, 7  ;;  %v3166_v31 = vor.u32 %v3165_v28, %v3164_v27  ;;  %vm3217_vm8 = vcmp.lt.s32.totalorder %v3179_v2, 768 }
 0x381   : > { %v3178_v22 = vunpack.c.0.s8 %v3177_v4 }
 0x383   : > { %v3181_v23 = vsub.s32 %v3178_v22, %v3180_v5 }
 0x385   : > { %v3182_v24 = vrot.slane %v3173_v6, %v3181_v23  ;;  %v3189_v25 = vrot.slane %v3174_v20, %v3181_v23  ;;  %v3196_v26 = vrot.slane %v3175_v21, %v3181_v23 }
 0x387   : > { %v3197_v29 = vcombine.low %v3182_v24, %v3189_v25  ;;  %v3211_v30 = vrot.slane %v3196_v26, %v3181_v23 }
 0x389   : > { %v3204_v32 = vrot.slane %v3197_v29, %v3181_v23 }
 0x38b   : > { %v3212_v33 = vcombine.low %v3204_v32, %v3211_v30 }
 0x38d   : > { %v3214_v34 = vadd.f32 %v3212_v33, %v3166_v31 }
 0x38f   : > { %3219 = vst.msk [vmem:[#allocation3 + $0x30] ss:$8 sm:$0xf] %vm3217_vm8, %v3214_v34  ;;  %3220 = vst.msk [vmem:[#allocation3 + $0x30] ss:$8 sm:$0x30] %vm3217_vm8, %v3214_v34 }
 0x390 PF: > { %s9821_s17 = sadd.s32 1152, %s11204_s13 }
 0x391   : > { %s3223_s28 = sadd.s32 %s9821_s17, %s11207_s23 }
 0x392   : > { %s3224_s29 = sld [smem:[#allocation7 + %s3223_s28]] }
 0x398   : > { %p9152_p6 = scmp.eq.s32.totalorder %s3224_s29, 0 }
 0x39a   : > { %3228 = sbr.rel (%p9152_p6) target bundleno = 945 (0x3b1), region = 1032 }
 0x39f   : > { %v3245_v35 = vlaneseq  ;;  %v10856_v36 = vmov 1966171168   ;;  %v3239_v39 = vcombine.low %v11223_v7, %v11225_v8  ;;  %v3240_v40 = vcombine.low %v11227_v9, %v11229_v10  ;;  %v3230_v47 = vld [vmem:[#allocation3 + $0x31] ss:$8 sm:$0xf] }
 0x3a0   : > { %v3243_v37 = vunpack.c.l.s4 %v10856_v36  ;;  %v3241_v41 = vcombine.low %v11231_v11, %v11233_v12  ;;  %v3231_v48 = vld [vmem:[#allocation3 + $0x31] ss:$8 sm:$0x30] }
 0x3a1   : > { %v3246_v38 = vshrl.u32 %v3245_v35, 7  ;;  %v3232_v51 = vor.u32 %v3231_v48, %v3230_v47  ;;  %vm3284_vm9 = vcmp.lt.s32.totalorder %v3245_v35, 768 }
 0x3a2   : > { %v3244_v42 = vunpack.c.0.s8 %v3243_v37 }
 0x3a4   : > { %v3247_v43 = vsub.s32 %v3244_v42, %v3246_v38 }
 0x3a6   : > { %v3248_v44 = vrot.slane %v3239_v39, %v3247_v43  ;;  %v3255_v45 = vrot.slane %v3240_v40, %v3247_v43  ;;  %v3262_v46 = vrot.slane %v3241_v41, %v3247_v43 }
 0x3a8   : > { %v3263_v49 = vcombine.high %v3248_v44, %v3255_v45  ;;  %v3264_v50 = vcombine.high %v3262_v46, %v3262_v46 }
 0x3aa   : > { %v3271_v52 = vrot.slane %v3263_v49, %v3247_v43  ;;  %v3278_v53 = vrot.slane %v3264_v50, %v3247_v43 }
 0x3ac   : > { %v3279_v54 = vcombine.low %v3271_v52, %v3278_v53 }
 0x3ae   : > { %v3281_v55 = vadd.f32 %v3279_v54, %v3232_v51 }
 0x3b0   : > { %3286 = vst.msk [vmem:[#allocation3 + $0x31] ss:$8 sm:$0xf] %vm3284_vm9, %v3281_v55  ;;  %3287 = vst.msk [vmem:[#allocation3 + $0x31] ss:$8 sm:$0x30] %vm3284_vm9, %v3281_v55 }
 0x3b1 PF: > { %s9823_s11 = sadd.s32 1280, %s11204_s13 }
 0x3b2   : > { %s3290_s24 = sadd.s32 %s9823_s11, %s11207_s23 }
 0x3b3   : > { %s3291_s25 = sld [smem:[#allocation7 + %s3290_s24]] }
 0x3b9   : > { %p9154_p7 = scmp.eq.s32.totalorder %s3291_s25, 0 }
 0x3bb   : > { %3295 = sbr.rel (%p9154_p7) target bundleno = 978 (0x3d2), region = 1036 }
 0x3c0   : > { %v3312_v56 = vlaneseq  ;;  %v10857_v57 = vmov 1966171168   ;;  %v3306_v60 = vcombine.low %v11223_v7, %v11225_v8  ;;  %v3307_v61 = vcombine.low %v11227_v9, %v11229_v10  ;;  %v3297_v16 = vld [vmem:[#allocation3 + $0x32] ss:$8 sm:$0xf] }
 0x3c1   : > { %v3310_v58 = vunpack.c.l.s4 %v10857_v57  ;;  %v3308_v62 = vcombine.low %v11231_v11, %v11233_v12  ;;  %v3298_v17 = vld [vmem:[#allocation3 + $0x32] ss:$8 sm:$0x30] }
 0x3c2   : > { %v3313_v59 = vshrl.u32 %v3312_v56, 7  ;;  %v3299_v1 = vor.u32 %v3298_v17, %v3297_v16  ;;  %vm3350_vm10 = vcmp.lt.s32.totalorder %v3312_v56, 768 }
 0x3c3   : > { %v3311_v63 = vunpack.c.0.s8 %v3310_v58 }
 0x3c5   : > { %v3314_v0 = vsub.s32 %v3311_v63, %v3313_v59 }
 0x3c7   : > { %v3315_v13 = vrot.slane %v3306_v60, %v3314_v0  ;;  %v3322_v14 = vrot.slane %v3307_v61, %v3314_v0  ;;  %v3329_v15 = vrot.slane %v3308_v62, %v3314_v0 }
 0x3c9   : > { %v3330_v18 = vcombine.low %v3315_v13, %v3322_v14  ;;  %v3344_v19 = vrot.slane %v3329_v15, %v3314_v0 }
 0x3cb   : > { %v3337_v2 = vrot.slane %v3330_v18, %v3314_v0 }
 0x3cd   : > { %v3345_v3 = vcombine.high %v3337_v2, %v3344_v19 }
 0x3cf   : > { %v3347_v4 = vadd.f32 %v3345_v3, %v3299_v1 }
 0x3d1   : > { %3352 = vst.msk [vmem:[#allocation3 + $0x32] ss:$8 sm:$0xf] %vm3350_vm10, %v3347_v4  ;;  %3353 = vst.msk [vmem:[#allocation3 + $0x32] ss:$8 sm:$0x30] %vm3350_vm10, %v3347_v4 }
 0x3d2 PF: > { %s9825_s26 = sadd.s32 1408, %s11204_s13 }
 0x3d3   : > { %s3356_s0 = sadd.s32 %s9825_s26, %s11207_s23 }
 0x3d4   : > { %s3357_s1 = sld [smem:[#allocation7 + %s3356_s0]] }
 0x3da   : > { %p9156_p8 = scmp.eq.s32.totalorder %s3357_s1, 0 }
 0x3dc   : > { %3361 = sbr.rel (%p9156_p8) target bundleno = 1011 (0x3f3), region = 1040 }
 0x3e1   : > { %v3378_v5 = vlaneseq  ;;  %v10858_v6 = vmov 1966171168   ;;  %v3372_v22 = vcombine.low %v11223_v7, %v11225_v8  ;;  %v3373_v23 = vcombine.low %v11227_v9, %v11229_v10  ;;  %v3363_v30 = vld [vmem:[#allocation3 + $0x33] ss:$8 sm:$0xf] }
 0x3e2   : > { %v3376_v20 = vunpack.c.l.s4 %v10858_v6  ;;  %v3374_v24 = vcombine.low %v11231_v11, %v11233_v12  ;;  %v3364_v31 = vld [vmem:[#allocation3 + $0x33] ss:$8 sm:$0x30] }
 0x3e3   : > { %v3379_v21 = vshrl.u32 %v3378_v5, 7  ;;  %v3365_v34 = vor.u32 %v3364_v31, %v3363_v30  ;;  %vm3417_vm11 = vcmp.lt.s32.totalorder %v3378_v5, 768 }
 0x3e4   : > { %v3377_v25 = vunpack.c.0.s8 %v3376_v20 }
 0x3e6   : > { %v3380_v26 = vsub.s32 %v3377_v25, %v3379_v21 }
 0x3e8   : > { %v3381_v27 = vrot.slane %v3372_v22, %v3380_v26  ;;  %v3388_v28 = vrot.slane %v3373_v23, %v3380_v26  ;;  %v3395_v29 = vrot.slane %v3374_v24, %v3380_v26 }
 0x3ea   : > { %v3396_v32 = vcombine.high %v3381_v27, %v3388_v28  ;;  %v3397_v33 = vcombine.high %v3395_v29, %v3395_v29 }
 0x3ec   : > { %v3404_v35 = vrot.slane %v3396_v32, %v3380_v26  ;;  %v3411_v36 = vrot.slane %v3397_v33, %v3380_v26 }
 0x3ee   : > { %v3412_v37 = vcombine.high %v3404_v35, %v3411_v36 }
 0x3f0   : > { %v3414_v38 = vadd.f32 %v3412_v37, %v3365_v34 }
 0x3f2   : > { %3419 = vst.msk [vmem:[#allocation3 + $0x33] ss:$8 sm:$0xf] %vm3417_vm11, %v3414_v38  ;;  %3420 = vst.msk [vmem:[#allocation3 + $0x33] ss:$8 sm:$0x30] %vm3417_vm11, %v3414_v38 }
 0x3f3 PF: > { %s9827_s30 = sadd.s32 1536, %s11204_s13 }
 0x3f4   : > { %s3423_s9 = sadd.s32 %s9827_s30, %s11207_s23 }
 0x3f5   : > { %s3424_s10 = sld [smem:[#allocation7 + %s3423_s9]] }
 0x3fb   : > { %p9158_p9 = scmp.eq.s32.totalorder %s3424_s10, 0 }
 0x3fd   : > { %3428 = sbr.rel (%p9158_p9) target bundleno = 1044 (0x414), region = 1044 }
 0x402   : > { %v3445_v39 = vlaneseq  ;;  %v10859_v40 = vmov 1966171168   ;;  %v3439_v43 = vcombine.high %v11223_v7, %v11225_v8  ;;  %v3440_v44 = vcombine.high %v11227_v9, %v11229_v10  ;;  %v3430_v51 = vld [vmem:[#allocation3 + $0x34] ss:$8 sm:$0xf] }
 0x403   : > { %v3443_v41 = vunpack.c.l.s4 %v10859_v40  ;;  %v3441_v45 = vcombine.high %v11231_v11, %v11233_v12  ;;  %v3431_v52 = vld [vmem:[#allocation3 + $0x34] ss:$8 sm:$0x30] }
 0x404   : > { %v3446_v42 = vshrl.u32 %v3445_v39, 7  ;;  %v3432_v55 = vor.u32 %v3431_v52, %v3430_v51  ;;  %vm3483_vm12 = vcmp.lt.s32.totalorder %v3445_v39, 768 }
 0x405   : > { %v3444_v46 = vunpack.c.0.s8 %v3443_v41 }
 0x407   : > { %v3447_v47 = vsub.s32 %v3444_v46, %v3446_v42 }
 0x409   : > { %v3448_v48 = vrot.slane %v3439_v43, %v3447_v47  ;;  %v3455_v49 = vrot.slane %v3440_v44, %v3447_v47  ;;  %v3462_v50 = vrot.slane %v3441_v45, %v3447_v47 }
 0x40b   : > { %v3463_v53 = vcombine.low %v3448_v48, %v3455_v49  ;;  %v3477_v54 = vrot.slane %v3462_v50, %v3447_v47 }
 0x40d   : > { %v3470_v56 = vrot.slane %v3463_v53, %v3447_v47 }
 0x40f   : > { %v3478_v57 = vcombine.low %v3470_v56, %v3477_v54 }
 0x411   : > { %v3480_v58 = vadd.f32 %v3478_v57, %v3432_v55 }
 0x413   : > { %3485 = vst.msk [vmem:[#allocation3 + $0x34] ss:$8 sm:$0xf] %vm3483_vm12, %v3480_v58  ;;  %3486 = vst.msk [vmem:[#allocation3 + $0x34] ss:$8 sm:$0x30] %vm3483_vm12, %v3480_v58 }
 0x414 PF: > { %s9829_s20 = sadd.s32 1664, %s11204_s13 }
 0x415   : > { %s3489_s18 = sadd.s32 %s9829_s20, %s11207_s23 }
 0x416   : > { %s3490_s19 = sld [smem:[#allocation7 + %s3489_s18]] }
 0x41c   : > { %p9160_p11 = scmp.eq.s32.totalorder %s3490_s19, 0 }
 0x41e   : > { %3494 = sbr.rel (%p9160_p11) target bundleno = 1077 (0x435), region = 1048 }
 0x423   : > { %v3511_v59 = vlaneseq  ;;  %v10860_v60 = vmov 1966171168   ;;  %v3505_v63 = vcombine.high %v11223_v7, %v11225_v8  ;;  %v3506_v0 = vcombine.high %v11227_v9, %v11229_v10  ;;  %v3496_v19 = vld [vmem:[#allocation3 + $0x35] ss:$8 sm:$0xf] }
 0x424   : > { %v3509_v61 = vunpack.c.l.s4 %v10860_v60  ;;  %v3507_v13 = vcombine.high %v11231_v11, %v11233_v12  ;;  %v3497_v1 = vld [vmem:[#allocation3 + $0x35] ss:$8 sm:$0x30] }
 0x425   : > { %v3512_v62 = vshrl.u32 %v3511_v59, 7  ;;  %v3498_v4 = vor.u32 %v3497_v1, %v3496_v19  ;;  %vm3550_vm13 = vcmp.lt.s32.totalorder %v3511_v59, 768 }
 0x426   : > { %v3510_v14 = vunpack.c.0.s8 %v3509_v61 }
 0x428   : > { %v3513_v15 = vsub.s32 %v3510_v14, %v3512_v62 }
 0x42a   : > { %v3514_v16 = vrot.slane %v3505_v63, %v3513_v15  ;;  %v3521_v17 = vrot.slane %v3506_v0, %v3513_v15  ;;  %v3528_v18 = vrot.slane %v3507_v13, %v3513_v15 }
 0x42c   : > { %v3529_v2 = vcombine.high %v3514_v16, %v3521_v17  ;;  %v3530_v3 = vcombine.high %v3528_v18, %v3528_v18 }
 0x42e   : > { %v3537_v5 = vrot.slane %v3529_v2, %v3513_v15  ;;  %v3544_v6 = vrot.slane %v3530_v3, %v3513_v15 }
 0x430   : > { %v3545_v20 = vcombine.low %v3537_v5, %v3544_v6 }
 0x432   : > { %v3547_v21 = vadd.f32 %v3545_v20, %v3498_v4 }
 0x434   : > { %3552 = vst.msk [vmem:[#allocation3 + $0x35] ss:$8 sm:$0xf] %vm3550_vm13, %v3547_v21  ;;  %3553 = vst.msk [vmem:[#allocation3 + $0x35] ss:$8 sm:$0x30] %vm3550_vm13, %v3547_v21 }
 0x435 PF: > { %s9831_s27 = sadd.s32 1792, %s11204_s13 }
 0x436   : > { %s3556_s14 = sadd.s32 %s9831_s27, %s11207_s23 }
 0x437   : > { %s3557_s12 = sld [smem:[#allocation7 + %s3556_s14]] }
 0x43d   : > { %p9162_p12 = scmp.eq.s32.totalorder %s3557_s12, 0 }
 0x43f   : > { %3561 = sbr.rel (%p9162_p12) target bundleno = 1110 (0x456), region = 1052 }
 0x444   : > { %v3578_v22 = vlaneseq  ;;  %v10861_v23 = vmov 1966171168   ;;  %v3572_v26 = vcombine.high %v11223_v7, %v11225_v8  ;;  %v3573_v27 = vcombine.high %v11227_v9, %v11229_v10  ;;  %v3563_v34 = vld [vmem:[#allocation3 + $0x36] ss:$8 sm:$0xf] }
 0x445   : > { %v3576_v24 = vunpack.c.l.s4 %v10861_v23  ;;  %v3574_v28 = vcombine.high %v11231_v11, %v11233_v12  ;;  %v3564_v35 = vld [vmem:[#allocation3 + $0x36] ss:$8 sm:$0x30] }
 0x446   : > { %v3579_v25 = vshrl.u32 %v3578_v22, 7  ;;  %v3565_v38 = vor.u32 %v3564_v35, %v3563_v34  ;;  %vm3616_vm14 = vcmp.lt.s32.totalorder %v3578_v22, 768 }
 0x447   : > { %v3577_v29 = vunpack.c.0.s8 %v3576_v24 }
 0x449   : > { %v3580_v30 = vsub.s32 %v3577_v29, %v3579_v25 }
 0x44b   : > { %v3581_v31 = vrot.slane %v3572_v26, %v3580_v30  ;;  %v3588_v32 = vrot.slane %v3573_v27, %v3580_v30  ;;  %v3595_v33 = vrot.slane %v3574_v28, %v3580_v30 }
 0x44d   : > { %v3596_v36 = vcombine.low %v3581_v31, %v3588_v32  ;;  %v3610_v37 = vrot.slane %v3595_v33, %v3580_v30 }
 0x44f   : > { %v3603_v39 = vrot.slane %v3596_v36, %v3580_v30 }
 0x451   : > { %v3611_v40 = vcombine.high %v3603_v39, %v3610_v37 }
 0x453   : > { %v3613_v41 = vadd.f32 %v3611_v40, %v3565_v38 }
 0x455   : > { %3618 = vst.msk [vmem:[#allocation3 + $0x36] ss:$8 sm:$0xf] %vm3616_vm14, %v3613_v41  ;;  %3619 = vst.msk [vmem:[#allocation3 + $0x36] ss:$8 sm:$0x30] %vm3616_vm14, %v3613_v41 }
 0x456 PF: > { %s9833_s21 = sadd.s32 1920, %s11204_s13 }
 0x457   : > { %s3622_s22 = sadd.s32 %s9833_s21, %s11207_s23 }
 0x458   : > { %s3623_s15 = sld [smem:[#allocation7 + %s3622_s22]] }
 0x45e   : > { %p9164_p13 = scmp.eq.s32.totalorder %s3623_s15, 0 }
 0x460   : > { %3627 = sbr.rel (%p9164_p13) target bundleno = 1143 (0x477), region = 1056 }
 0x465   : > { %v3644_v42 = vlaneseq  ;;  %v10862_v43 = vmov 1966171168   ;;  %v3638_v46 = vcombine.high %v11223_v7, %v11225_v8  ;;  %v3639_v47 = vcombine.high %v11227_v9, %v11229_v10  ;;  %v3629_v54 = vld [vmem:[#allocation3 + $0x37] ss:$8 sm:$0xf] }
 0x466   : > { %v3642_v44 = vunpack.c.l.s4 %v10862_v43  ;;  %v3640_v48 = vcombine.high %v11231_v11, %v11233_v12  ;;  %v3630_v55 = vld [vmem:[#allocation3 + $0x37] ss:$8 sm:$0x30] }
 0x467   : > { %v3645_v45 = vshrl.u32 %v3644_v42, 7  ;;  %v3631_v58 = vor.u32 %v3630_v55, %v3629_v54  ;;  %vm3683_vm15 = vcmp.lt.s32.totalorder %v3644_v42, 768 }
 0x468   : > { %v3643_v49 = vunpack.c.0.s8 %v3642_v44 }
 0x46a   : > { %v3646_v50 = vsub.s32 %v3643_v49, %v3645_v45 }
 0x46c   : > { %v3647_v51 = vrot.slane %v3638_v46, %v3646_v50  ;;  %v3654_v52 = vrot.slane %v3639_v47, %v3646_v50  ;;  %v3661_v53 = vrot.slane %v3640_v48, %v3646_v50 }
 0x46e   : > { %v3662_v56 = vcombine.high %v3647_v51, %v3654_v52  ;;  %v3663_v57 = vcombine.high %v3661_v53, %v3661_v53 }
 0x470   : > { %v3670_v59 = vrot.slane %v3662_v56, %v3646_v50  ;;  %v3677_v60 = vrot.slane %v3663_v57, %v3646_v50 }
 0x472   : > { %v3678_v61 = vcombine.high %v3670_v59, %v3677_v60 }
 0x474   : > { %v3680_v7 = vadd.f32 %v3678_v61, %v3631_v58 }
 0x476   : > { %3685 = vst.msk [vmem:[#allocation3 + $0x37] ss:$8 sm:$0xf] %vm3683_vm15, %v3680_v7  ;;  %3686 = vst.msk [vmem:[#allocation3 + $0x37] ss:$8 sm:$0x30] %vm3683_vm15, %v3680_v7 }
 0x477 PF: > { %s13226_s21 = smov %s10994_s16  ;;  %1264 = sbr.rel (!%p8919_p10) target bundleno = 288 (0x120), region = 1552  ;;  %v3687_v8 = vld [vmem:[%s13219_s3] sm:$0xff] (%p8919_p10)  ;;  %vm3689_vm0 = vcmask (%p8919_p10), 64512   ;;  %v3688_v9 = vld [vmem:[%s13219_s3 + $0x8] sm:$0xff] (%p8919_p10)  ;;  %vm8047_vm1 = vcmask (%p8919_p10), 490496  }
 0x478   :  { %v3690_v10 = vsel (%p8919_p10), %vm3689_vm0, %v3687_v8, 0.0  ;;  %v9864_v11 = vld [vmem:[%s13220_s4 + $0x154] ss:$24 sps:$4 sm:$0xff] (%p8919_p10)   ;;  %v9868_v62 = vld [vmem:[%s13220_s4 + $0x150] ss:$24 sps:$4 sm:$0xff] (%p8919_p10)   ;;  %v3693_v63 = vsel (%p8919_p10), %vm3689_vm0, %v3688_v9, 0.0 }
 0x479   :  { %3691 = vadd.xlane.f32.xlu0 (%p8919_p10), %v3690_v10  ;;  %v9866_v12 = vld [vmem:[%s13220_s4 + $0x454] ss:$24 sps:$4 sm:$0xff] (%p8919_p10)   ;;  %5490 = vmatprep.subr.bf16.mxu0 (%p8919_p10), %v9864_v11  ;;  %v9869_v0 = vld [vmem:[%s13220_s4 + $0x450] ss:$24 sps:$4 sm:$0xff] (%p8919_p10)   ;;  %v9870_v13 = vld [vmem:[%s13220_s4 + $0x124] ss:$24 sps:$4 sm:$0xff] (%p8919_p10)  }
 0x47a   :  { %5533 = vmatprep.subr.bf16.mxu1 (%p8919_p10), %v9866_v12  ;;  %5491 = vmatpush1.bf16.msra.mxu0 (%p8919_p10), %v9868_v62  ;;  %v9872_v14 = vld [vmem:[%s13220_s4 + $0x424] ss:$24 sps:$4 sm:$0xff] (%p8919_p10)   ;;  %v9874_v15 = vld [vmem:[%s13220_s4 + $0x120] ss:$24 sps:$4 sm:$0xff] (%p8919_p10)   ;;  %v9876_v17 = vld [vmem:[%s13220_s4 + $0xf4] ss:$24 sps:$4 sm:$0xff] (%p8919_p10)  }
 0x47b   :  { %5534 = vmatpush1.bf16.msra.mxu1 (%p8919_p10), %v9869_v0  ;;  %v9875_v16 = vld [vmem:[%s13220_s4 + $0x420] ss:$24 sps:$4 sm:$0xff] (%p8919_p10)   ;;  %5492 = vmatprep.subr.bf16.mxu0 (%p8919_p10), %v9870_v13  ;;  %v9878_v18 = vld [vmem:[%s13220_s4 + $0x3f4] ss:$24 sps:$4 sm:$0xff] (%p8919_p10)   ;;  %v9880_v19 = vld [vmem:[%s13220_s4 + $0xf0] ss:$24 sps:$4 sm:$0xff] (%p8919_p10)  }
 0x47c   :  { %5535 = vmatprep.subr.bf16.mxu1 %v9872_v14  ;;  %v9881_v1 = vld [vmem:[%s13220_s4 + $0x3f0] ss:$24 sps:$4 sm:$0xff]   ;;  %v9882_v2 = vld [vmem:[%s13220_s4 + $0xc4] ss:$24 sps:$4 sm:$0xff]   ;;  %v9886_v4 = vld [vmem:[%s13220_s4 + $0xc0] ss:$24 sps:$4 sm:$0xff]  }
 0x47d   :  { %3694 = vadd.xlane.f32.xlu0 %v3693_v63  ;;  %v9884_v3 = vld [vmem:[%s13220_s4 + $0x3c4] ss:$24 sps:$4 sm:$0xff]   ;;  %v9887_v5 = vld [vmem:[%s13220_s4 + $0x3c0] ss:$24 sps:$4 sm:$0xff]   ;;  %v9888_v6 = vld [vmem:[%s13220_s4 + $0x94] ss:$24 sps:$4 sm:$0xff]  }
 0x47e   :  { %5493 = vmatpush1.bf16.msra.mxu0 %v9874_v15  ;;  %v9890_v20 = vld [vmem:[%s13220_s4 + $0x394] ss:$24 sps:$4 sm:$0xff]   ;;  %v9892_v21 = vld [vmem:[%s13220_s4 + $0x90] ss:$24 sps:$4 sm:$0xff]   ;;  %v9894_v23 = vld [vmem:[%s13220_s4 + $0x64] ss:$24 sps:$4 sm:$0xff]  }
 0x47f   :  { %5536 = vmatpush1.bf16.msra.mxu1 %v9875_v16  ;;  %5494 = vmatprep.subr.bf16.mxu0 %v9876_v17  ;;  %v9893_v22 = vld [vmem:[%s13220_s4 + $0x390] ss:$24 sps:$4 sm:$0xff]   ;;  %v9896_v24 = vld [vmem:[%s13220_s4 + $0x364] ss:$24 sps:$4 sm:$0xff]   ;;  %v9898_v25 = vld [vmem:[%s13220_s4 + $0x60] ss:$24 sps:$4 sm:$0xff]  }
 0x480   :  { %5537 = vmatprep.subr.bf16.mxu1 %v9878_v18  ;;  %v9899_v26 = vld [vmem:[%s13220_s4 + $0x360] ss:$24 sps:$4 sm:$0xff]   ;;  %v9900_v27 = vld [vmem:[%s13220_s4 + $0x34] ss:$24 sps:$4 sm:$0xff]   ;;  %v9904_v29 = vld [vmem:[%s13220_s4 + $0x30] ss:$24 sps:$4 sm:$0xff]  }
 0x481   :  { %v9902_v28 = vld [vmem:[%s13220_s4 + $0x334] ss:$24 sps:$4 sm:$0xff]   ;;  %v9905_v30 = vld [vmem:[%s13220_s4 + $0x330] ss:$24 sps:$4 sm:$0xff]   ;;  %v9906_v31 = vld [vmem:[%s13220_s4 + $0x4] ss:$24 sps:$4 sm:$0xff]  }
 0x482   :  { %5495 = vmatpush1.bf16.msra.mxu0 %v9880_v19  ;;  %v9908_v32 = vld [vmem:[%s13220_s4 + $0x304] ss:$24 sps:$4 sm:$0xff]   ;;  %v9910_v33 = vld [vmem:[%s13220_s4] ss:$24 sps:$4 sm:$0xff]   ;;  %v9912_v35 = vld [vmem:[%s13220_s4 + $0x2d4] ss:$24 sps:$4 sm:$0xff]  }
 0x483   :  { %5538 = vmatpush1.bf16.msra.mxu1 %v9881_v1  ;;  %5496 = vmatprep.subr.bf16.mxu0 %v9882_v2  ;;  %v9911_v34 = vld [vmem:[%s13220_s4 + $0x300] ss:$24 sps:$4 sm:$0xff]   ;;  %v9914_v36 = vld [vmem:[%s13220_s4 + $0x5d4] ss:$24 sps:$4 sm:$0xff]   ;;  %v9916_v37 = vld [vmem:[%s13220_s4 + $0x2d0] ss:$24 sps:$4 sm:$0xff]  }
 0x484   :  { %5539 = vmatprep.subr.bf16.mxu1 %v9884_v3  ;;  %v9917_v38 = vld [vmem:[%s13220_s4 + $0x5d0] ss:$24 sps:$4 sm:$0xff]   ;;  %v9918_v39 = vld [vmem:[%s13220_s4 + $0x2a4] ss:$24 sps:$4 sm:$0xff]   ;;  %v9922_v41 = vld [vmem:[%s13220_s4 + $0x2a0] ss:$24 sps:$4 sm:$0xff]  }
 0x485   :  { %v9920_v40 = vld [vmem:[%s13220_s4 + $0x5a4] ss:$24 sps:$4 sm:$0xff]   ;;  %v9923_v42 = vld [vmem:[%s13220_s4 + $0x5a0] ss:$24 sps:$4 sm:$0xff]   ;;  %v9924_v43 = vld [vmem:[%s13220_s4 + $0x274] ss:$24 sps:$4 sm:$0xff]  }
 0x486   :  { %5497 = vmatpush1.bf16.msra.mxu0 %v9886_v4  ;;  %v9926_v44 = vld [vmem:[%s13220_s4 + $0x574] ss:$24 sps:$4 sm:$0xff]   ;;  %v9928_v45 = vld [vmem:[%s13220_s4 + $0x270] ss:$24 sps:$4 sm:$0xff]   ;;  %v9930_v47 = vld [vmem:[%s13220_s4 + $0x244] ss:$24 sps:$4 sm:$0xff]  }
 0x487   :  { %5540 = vmatpush1.bf16.msra.mxu1 %v9887_v5  ;;  %5498 = vmatprep.subr.bf16.mxu0 %v9888_v6  ;;  %v9929_v46 = vld [vmem:[%s13220_s4 + $0x570] ss:$24 sps:$4 sm:$0xff]   ;;  %v9932_v48 = vld [vmem:[%s13220_s4 + $0x544] ss:$24 sps:$4 sm:$0xff]   ;;  %v9934_v49 = vld [vmem:[%s13220_s4 + $0x240] ss:$24 sps:$4 sm:$0xff]  }
 0x488   :  { %5541 = vmatprep.subr.bf16.mxu1 %v9890_v20  ;;  %v9935_v50 = vld [vmem:[%s13220_s4 + $0x540] ss:$24 sps:$4 sm:$0xff]   ;;  %v9936_v51 = vld [vmem:[%s13220_s4 + $0x214] ss:$24 sps:$4 sm:$0xff]   ;;  %v9940_v53 = vld [vmem:[%s13220_s4 + $0x210] ss:$24 sps:$4 sm:$0xff]  }
 0x489   :  { %v9938_v52 = vld [vmem:[%s13220_s4 + $0x514] ss:$24 sps:$4 sm:$0xff]   ;;  %v9941_v54 = vld [vmem:[%s13220_s4 + $0x510] ss:$24 sps:$4 sm:$0xff]   ;;  %v9942_v55 = vld [vmem:[%s13220_s4 + $0x1e4] ss:$24 sps:$4 sm:$0xff]  }
 0x48a   :  { %5499 = vmatpush1.bf16.msra.mxu0 %v9892_v21  ;;  %v9944_v56 = vld [vmem:[%s13220_s4 + $0x4e4] ss:$24 sps:$4 sm:$0xff]   ;;  %v9946_v57 = vld [vmem:[%s13220_s4 + $0x1e0] ss:$24 sps:$4 sm:$0xff]   ;;  %v9948_v59 = vld [vmem:[%s13220_s4 + $0x1b4] ss:$24 sps:$4 sm:$0xff]  }
 0x48b   :  { %5542 = vmatpush1.bf16.msra.mxu1 %v9893_v22  ;;  %5500 = vmatprep.subr.bf16.mxu0 %v9894_v23  ;;  %v9947_v58 = vld [vmem:[%s13220_s4 + $0x4e0] ss:$24 sps:$4 sm:$0xff]   ;;  %v9950_v60 = vld [vmem:[%s13220_s4 + $0x4b4] ss:$24 sps:$4 sm:$0xff]   ;;  %v9952_v61 = vld [vmem:[%s13220_s4 + $0x1b0] ss:$24 sps:$4 sm:$0xff]  }
 0x48c   :  { %5543 = vmatprep.subr.bf16.mxu1 %v9896_v24  ;;  %v9953_v7 = vld [vmem:[%s13220_s4 + $0x4b0] ss:$24 sps:$4 sm:$0xff]   ;;  %v9954_v8 = vld [vmem:[%s13220_s4 + $0x184] ss:$24 sps:$4 sm:$0xff]   ;;  %v9958_v10 = vld [vmem:[%s13220_s4 + $0x180] ss:$24 sps:$4 sm:$0xff]  }
 0x48d   :  { %v9956_v9 = vld [vmem:[%s13220_s4 + $0x484] ss:$24 sps:$4 sm:$0xff]   ;;  %v9959_v11 = vld [vmem:[%s13220_s4 + $0x480] ss:$24 sps:$4 sm:$0xff]   ;;  %v9962_v12 = vld [vmem:[%s13220_s4 + $0x754] ss:$24 sps:$4 sm:$0xff]  }
 0x48e   :  { %5501 = vmatpush1.bf16.msra.mxu0 %v9898_v25  ;;  %v9965_v62 = vld [vmem:[%s13220_s4 + $0x15c] ss:$24 sps:$4 sm:$0xff]   ;;  %v3699_v15 = vld [vmem:[#allocation3 + $0x8] sm:$0xff]  ;;  %v3698_v17 = vld [vmem:[#allocation3] sm:$0xff] }
 0x48f   :  { %5544 = vmatpush1.bf16.msra.mxu1 %v9899_v26  ;;  %5502 = vmatprep.subr.bf16.mxu0 %v9900_v27  ;;  %v3701_v16 = vld [vmem:[#allocation3 + $0x18] sm:$0xff]  ;;  %v3707_v19 = vld [vmem:[#allocation3 + $0x48] sm:$0xff]  ;;  %v3704_v1 = vld [vmem:[#allocation3 + $0x30] sm:$0xff] }
 0x490   :  { %5545 = vmatprep.subr.bf16.mxu1 %v9902_v28  ;;  %v3705_v18 = vld [vmem:[#allocation3 + $0x38] sm:$0xff]  ;;  %v3700_v2 = vld [vmem:[#allocation3 + $0x10] sm:$0xff]  ;;  %v3706_v3 = vld [vmem:[#allocation3 + $0x40] sm:$0xff] }
 0x491   :  { %v3709_v5 = vld [vmem:[#allocation3 + $0x58] sm:$0xff]  ;;  %v3702_v6 = vld [vmem:[#allocation3 + $0x20] sm:$0xff]  ;;  %v3708_v20 = vld [vmem:[#allocation3 + $0x50] sm:$0xff] }
 0x492   :  { %5503 = vmatpush1.bf16.msra.mxu0 %v9904_v29  ;;  %v9960_v28 = vld [vmem:[%s13220_s4 + $0x750] ss:$24 sps:$4 sm:$0xff]  }
 0x493   :  { %5546 = vmatpush1.bf16.msra.mxu1 %v9905_v30  ;;  %5504 = vmatprep.subr.bf16.mxu0 %v9906_v31  ;;  %v9963_v29 = vld [vmem:[%s13220_s4 + $0x158] ss:$24 sps:$4 sm:$0xff]  }
 0x494   :  { %5547 = vmatprep.subr.bf16.mxu1 %v9908_v32  ;;  %v3703_v32 = vld [vmem:[#allocation3 + $0x28] sm:$0xff] }
 0x496   :  { %5505 = vmatpush1.bf16.msra.mxu0 %v9910_v33 }
 0x497   :  { %5548 = vmatpush1.bf16.msra.mxu1 %v9911_v34  ;;  %5506 = vmatprep.subr.bf16.mxu0 %v9912_v35 }
 0x498   :  { %5549 = vmatprep.subr.bf16.mxu1 %v9914_v36 }
 0x49a   :  { %5507 = vmatpush2.bf16.msra.mxu0 %v9916_v37 }
 0x49b   :  { %5550 = vmatpush2.bf16.msra.mxu1 %v9917_v38  ;;  %5508 = vmatprep.subr.bf16.mxu0 %v9918_v39 }
 0x49c   :  { %5551 = vmatprep.subr.bf16.mxu1 %v9920_v40  ;;  %v9968_v40 = vld [vmem:[%s13220_s4 + $0x724] ss:$24 sps:$4 sm:$0xff]  }
 0x49e   :  { %5509 = vmatpush2.bf16.msra.mxu0 %v9922_v41 }
 0x49f   :  { %5552 = vmatpush2.bf16.msra.mxu1 %v9923_v42  ;;  %5510 = vmatprep.subr.bf16.mxu0 %v9924_v43  ;;  %v9966_v43 = vld [vmem:[%s13220_s4 + $0x720] ss:$24 sps:$4 sm:$0xff]  }
 0x4a0   :  { %5553 = vmatprep.subr.bf16.mxu1 %v9926_v44  ;;  %v9969_v44 = vld [vmem:[%s13220_s4 + $0x128] ss:$24 sps:$4 sm:$0xff]  }
 0x4a2   :  { %5511 = vmatpush2.bf16.msra.mxu0 %v9928_v45  ;;  %v9971_v45 = vld [vmem:[%s13220_s4 + $0x12c] ss:$24 sps:$4 sm:$0xff]  }
 0x4a3   :  { %5554 = vmatpush2.bf16.msra.mxu1 %v9929_v46  ;;  %5512 = vmatprep.subr.bf16.mxu0 %v9930_v47  ;;  %v9974_v47 = vld [vmem:[%s13220_s4 + $0x6f4] ss:$24 sps:$4 sm:$0xff]  }
 0x4a4   :  { %5555 = vmatprep.subr.bf16.mxu1 %v9932_v48  ;;  %v9977_v48 = vld [vmem:[%s13220_s4 + $0xfc] ss:$24 sps:$4 sm:$0xff]  }
 0x4a6   :  { %5513 = vmatpush2.bf16.msra.mxu0 %v9934_v49  ;;  %v9972_v49 = vld [vmem:[%s13220_s4 + $0x6f0] ss:$24 sps:$4 sm:$0xff]  }
 0x4a7   :  { %5556 = vmatpush2.bf16.msra.mxu1 %v9935_v50  ;;  %5514 = vmatprep.subr.bf16.mxu0 %v9936_v51  ;;  %v9975_v50 = vld [vmem:[%s13220_s4 + $0xf8] ss:$24 sps:$4 sm:$0xff]   ;;  %v9980_v51 = vld [vmem:[%s13220_s4 + $0x6c4] ss:$24 sps:$4 sm:$0xff]  }
 0x4a8   :  { %5557 = vmatprep.subr.bf16.mxu1 %v9938_v52  ;;  %v9983_v52 = vld [vmem:[%s13220_s4 + $0xcc] ss:$24 sps:$4 sm:$0xff]  }
 0x4aa   :  { %5515 = vmatpush2.bf16.msra.mxu0 %v9940_v53  ;;  %v9978_v53 = vld [vmem:[%s13220_s4 + $0x6c0] ss:$24 sps:$4 sm:$0xff]  }
 0x4ab   :  { %5558 = vmatpush2.bf16.msra.mxu1 %v9941_v54  ;;  %5516 = vmatprep.subr.bf16.mxu0 %v9942_v55  ;;  %v9981_v54 = vld [vmem:[%s13220_s4 + $0xc8] ss:$24 sps:$4 sm:$0xff]   ;;  %v9986_v55 = vld [vmem:[%s13220_s4 + $0x694] ss:$24 sps:$4 sm:$0xff]  }
 0x4ac   :  { %5559 = vmatprep.subr.bf16.mxu1 %v9944_v56  ;;  %v9989_v56 = vld [vmem:[%s13220_s4 + $0x9c] ss:$24 sps:$4 sm:$0xff]  }
 0x4ae   :  { %5517 = vmatpush2.bf16.msra.mxu0 %v9946_v57  ;;  %v9984_v57 = vld [vmem:[%s13220_s4 + $0x690] ss:$24 sps:$4 sm:$0xff]  }
 0x4af   :  { %5560 = vmatpush2.bf16.msra.mxu1 %v9947_v58  ;;  %5518 = vmatprep.subr.bf16.mxu0 %v9948_v59  ;;  %v9987_v58 = vld [vmem:[%s13220_s4 + $0x98] ss:$24 sps:$4 sm:$0xff]   ;;  %v9992_v59 = vld [vmem:[%s13220_s4 + $0x664] ss:$24 sps:$4 sm:$0xff]  }
 0x4b0   :  { %5561 = vmatprep.subr.bf16.mxu1 %v9950_v60  ;;  %v9995_v60 = vld [vmem:[%s13220_s4 + $0x6c] ss:$24 sps:$4 sm:$0xff]  }
 0x4b2   :  { %5519 = vmatpush2.bf16.msra.mxu0 %v9952_v61  ;;  %v9990_v61 = vld [vmem:[%s13220_s4 + $0x660] ss:$24 sps:$4 sm:$0xff]  }
 0x4b3   :  { %5562 = vmatpush2.bf16.msra.mxu1 %v9953_v7  ;;  %5520 = vmatprep.subr.bf16.mxu0 %v9954_v8  ;;  %v9993_v7 = vld [vmem:[%s13220_s4 + $0x68] ss:$24 sps:$4 sm:$0xff]   ;;  %v9998_v8 = vld [vmem:[%s13220_s4 + $0x634] ss:$24 sps:$4 sm:$0xff]  }
 0x4b4   :  { %5563 = vmatprep.subr.bf16.mxu1 %v9956_v9  ;;  %v10001_v9 = vld [vmem:[%s13220_s4 + $0x3c] ss:$24 sps:$4 sm:$0xff]  }
 0x4b6   :  { %5521 = vmatpush2.bf16.msra.mxu0 %v9958_v10  ;;  %v9996_v10 = vld [vmem:[%s13220_s4 + $0x630] ss:$24 sps:$4 sm:$0xff]  }
 0x4b7   :  { %5564 = vmatpush2.bf16.msra.mxu1 %v9959_v11  ;;  %5576 = vmatprep.subr.bf16.mxu0 %v9962_v12  ;;  %v9999_v11 = vld [vmem:[%s13220_s4 + $0x38] ss:$24 sps:$4 sm:$0xff]   ;;  %v10004_v12 = vld [vmem:[%s13220_s4 + $0x604] ss:$24 sps:$4 sm:$0xff]  }
 0x4b8   :  { %5619 = vmatprep.subr.bf16.mxu1 %v9965_v62  ;;  %v10007_v62 = vld [vmem:[%s13220_s4 + $0xc] ss:$24 sps:$4 sm:$0xff]  }
 0x502   :  { %v3692_v63 = vpop.xlane.xlu0 %3691 }
 0x503   :  { %v3696_v0 = vmax.f32 %v3692_v63, 1.0  ;;  %v10002_v63 = vld [vmem:[%s13220_s4 + $0x600] ss:$24 sps:$4 sm:$0xff]  }
 0x505   :  { %10728 = vrcp.f32 %v3696_v0  ;;  %v10005_v0 = vld [vmem:[%s13220_s4 + $0x8] ss:$24 sps:$4 sm:$0xff]  }
 0x506   :  { %v3695_v13 = vpop.xlane.xlu0 %3694 }
 0x507   :  { %v3697_v14 = vmax.f32 %v3695_v13, 1.0  ;;  %v10010_v13 = vld [vmem:[%s13220_s4 + $0x8d4] ss:$24 sps:$4 sm:$0xff]  }
 0x509   :  { %10730 = vrcp.f32 %v3697_v14  ;;  %v10013_v14 = vld [vmem:[%s13220_s4 + $0x2dc] ss:$24 sps:$4 sm:$0xff]  }
 0x512   :  { %v10729_v4 = vpop.eup %10728 }
 0x513   :  { %v3712_v22 = vmul.f32 %v10729_v4, %v3699_v15  ;;  %v3714_v23 = vmul.f32 %v10729_v4, %v3701_v16  ;;  %v3711_v24 = vmul.f32 %v10729_v4, %v3698_v17  ;;  %v3713_v25 = vmul.f32 %v10729_v4, %v3700_v2  ;;  %v10008_v15 = vld [vmem:[%s13220_s4 + $0x8d0] ss:$24 sps:$4 sm:$0xff]   ;;  %v10016_v17 = vld [vmem:[%s13220_s4 + $0x8a4] ss:$24 sps:$4 sm:$0xff]   ;;  %v10022_v2 = vld [vmem:[%s13220_s4 + $0x874] ss:$24 sps:$4 sm:$0xff]  }
 0x514   :  { %v3715_v34 = vmul.f32 %v10729_v4, %v3702_v6  ;;  %v3716_v41 = vmul.f32 %v10729_v4, %v3703_v32  ;;  %v10011_v16 = vld [vmem:[%s13220_s4 + $0x2d8] ss:$24 sps:$4 sm:$0xff]   ;;  %v10028_v6 = vld [vmem:[%s13220_s4 + $0x844] ss:$24 sps:$4 sm:$0xff]  }
 0x515   :  { %v10020_v4 = vld [vmem:[%s13220_s4 + $0x870] ss:$24 sps:$4 sm:$0xff]   ;;  %v10049_v32 = vld [vmem:[%s13220_s4 + $0x1bc] ss:$24 sps:$4 sm:$0xff]  }
 0x516   :  { %v10731_v21 = vpop.eup %10730 }
 0x517   :  { %v3719_v26 = vmul.f32 %v10731_v21, %v3705_v18  ;;  %v3721_v27 = vmul.f32 %v10731_v21, %v3707_v19  ;;  %v3718_v30 = vmul.f32 %v10731_v21, %v3704_v1  ;;  %v3720_v31 = vmul.f32 %v10731_v21, %v3706_v3  ;;  %v10019_v18 = vld [vmem:[%s13220_s4 + $0x2ac] ss:$24 sps:$4 sm:$0xff]   ;;  %v10014_v19 = vld [vmem:[%s13220_s4 + $0x8a0] ss:$24 sps:$4 sm:$0xff]   ;;  %v10025_v3 = vld [vmem:[%s13220_s4 + $0x27c] ss:$24 sps:$4 sm:$0xff]  }
 0x518   :  { %v3723_v33 = vmul.f32 %v10731_v21, %v3709_v5  ;;  %v3722_v35 = vmul.f32 %v10731_v21, %v3708_v20  ;;  %v10017_v1 = vld [vmem:[%s13220_s4 + $0x2a8] ss:$24 sps:$4 sm:$0xff]   ;;  %v10023_v5 = vld [vmem:[%s13220_s4 + $0x278] ss:$24 sps:$4 sm:$0xff]   ;;  %v10031_v20 = vld [vmem:[%s13220_s4 + $0x24c] ss:$24 sps:$4 sm:$0xff]  }
 0x519   :  { %v11576_v36 = vpack.c.bf16 %v3719_v26, %v3712_v22  ;;  %v11578_v37 = vpack.c.bf16 %v3721_v27, %v3714_v23  ;;  %v11580_v38 = vpack.c.bf16 %v3718_v30, %v3711_v24  ;;  %v11582_v39 = vpack.c.bf16 %v3720_v31, %v3713_v25  ;;  %v10026_v21 = vld [vmem:[%s13220_s4 + $0x840] ss:$24 sps:$4 sm:$0xff]   ;;  %v10034_v23 = vld [vmem:[%s13220_s4 + $0x814] ss:$24 sps:$4 sm:$0xff]   ;;  %v10032_v25 = vld [vmem:[%s13220_s4 + $0x810] ss:$24 sps:$4 sm:$0xff]  }
 0x51a   :  { %v11587_v42 = vpack.c.bf16 %v3722_v35, %v3715_v34  ;;  %v11602_v46 = vpack.c.bf16 %v3723_v33, %v3716_v41  ;;  %v10029_v22 = vld [vmem:[%s13220_s4 + $0x248] ss:$24 sps:$4 sm:$0xff]   ;;  %v10037_v24 = vld [vmem:[%s13220_s4 + $0x21c] ss:$24 sps:$4 sm:$0xff]   ;;  %v10035_v26 = vld [vmem:[%s13220_s4 + $0x218] ss:$24 sps:$4 sm:$0xff]  }
 0x51b   :  { %5522 = vmatprep.mubr.bf16.mxu0 %v11576_v36  ;;  %5565 = vmatprep.mubr.bf16.mxu1 %v11578_v37  ;;  %v10040_v27 = vld [vmem:[%s13220_s4 + $0x7e4] ss:$24 sps:$4 sm:$0xff]   ;;  %v10041_v30 = vld [vmem:[%s13220_s4 + $0x1e8] ss:$24 sps:$4 sm:$0xff]   ;;  %v10046_v31 = vld [vmem:[%s13220_s4 + $0x7b4] ss:$24 sps:$4 sm:$0xff]  }
 0x51c   :  { %5523 = vmatmul.mubr.bf16.vlgmr.msra.gmra.mxu0 %v11580_v38  ;;  %5566 = vmatmul.mubr.bf16.vlgmr.msra.gmra.mxu1 %v11582_v39  ;;  %v10044_v33 = vld [vmem:[%s13220_s4 + $0x7b0] ss:$24 sps:$4 sm:$0xff]   ;;  %v10052_v35 = vld [vmem:[%s13220_s4 + $0x784] ss:$24 sps:$4 sm:$0xff]   ;;  %v10050_v41 = vld [vmem:[%s13220_s4 + $0x780] ss:$24 sps:$4 sm:$0xff]  }
 0x51d   :  { %5577 = vmatpush1.bf16.msra.mxu0 %v9960_v28  ;;  %5620 = vmatpush1.bf16.msra.mxu1 %v9963_v29  ;;  %v10043_v28 = vld [vmem:[%s13220_s4 + $0x1ec] ss:$24 sps:$4 sm:$0xff]   ;;  %v10038_v29 = vld [vmem:[%s13220_s4 + $0x7e0] ss:$24 sps:$4 sm:$0xff]  }
 0x51e   :  { %5608 = vmatprep.mubr.bf16.mxu0 %v11602_v46  ;;  %5651 = vmatprep.mubr.bf16.mxu1 %v11576_v36  ;;  %v10047_v34 = vld [vmem:[%s13220_s4 + $0x1b8] ss:$24 sps:$4 sm:$0xff]  }
 0x51f   :  { %5578 = vmatprep.subr.bf16.mxu0 %v9968_v40  ;;  %5621 = vmatprep.subr.bf16.mxu1 %v9971_v45  ;;  %v10055_v40 = vld [vmem:[%s13220_s4 + $0x18c] ss:$24 sps:$4 sm:$0xff]   ;;  %v10061_v45 = vld [vmem:[%s13220_s4 + $0x75c] ss:$24 sps:$4 sm:$0xff]  }
 0x521   :  { %5579 = vmatpush1.bf16.msra.mxu0 %v9966_v43  ;;  %5622 = vmatpush1.bf16.msra.mxu1 %v9969_v44  ;;  %v10053_v43 = vld [vmem:[%s13220_s4 + $0x188] ss:$24 sps:$4 sm:$0xff]   ;;  %v10058_v44 = vld [vmem:[%s13220_s4 + $0x45c] ss:$24 sps:$4 sm:$0xff]  }
 0x522   :  { %5580 = vmatprep.subr.bf16.mxu0 %v9974_v47  ;;  %5623 = vmatprep.subr.bf16.mxu1 %v9977_v48  ;;  %v10056_v47 = vld [vmem:[%s13220_s4 + $0x458] ss:$24 sps:$4 sm:$0xff]  }
 0x523   :  { %v10059_v48 = vld [vmem:[%s13220_s4 + $0x758] ss:$24 sps:$4 sm:$0xff]  }
 0x525   :  { %5581 = vmatpush1.bf16.msra.mxu0 %v9972_v49  ;;  %5624 = vmatpush1.bf16.msra.mxu1 %v9975_v50  ;;  %v10064_v49 = vld [vmem:[%s13220_s4 + $0x42c] ss:$24 sps:$4 sm:$0xff]  }
 0x526   :  { %5582 = vmatprep.subr.bf16.mxu0 %v9980_v51  ;;  %5625 = vmatprep.subr.bf16.mxu1 %v9983_v52  ;;  %v10067_v50 = vld [vmem:[%s13220_s4 + $0x72c] ss:$24 sps:$4 sm:$0xff]   ;;  %v10062_v51 = vld [vmem:[%s13220_s4 + $0x428] ss:$24 sps:$4 sm:$0xff]  }
 0x527   :  { %v10065_v52 = vld [vmem:[%s13220_s4 + $0x728] ss:$24 sps:$4 sm:$0xff]  }
 0x529   :  { %5583 = vmatpush1.bf16.msra.mxu0 %v9978_v53  ;;  %5626 = vmatpush1.bf16.msra.mxu1 %v9981_v54  ;;  %v10070_v53 = vld [vmem:[%s13220_s4 + $0x3fc] ss:$24 sps:$4 sm:$0xff]  }
 0x52a   :  { %5584 = vmatprep.subr.bf16.mxu0 %v9986_v55  ;;  %5627 = vmatprep.subr.bf16.mxu1 %v9989_v56  ;;  %v10073_v54 = vld [vmem:[%s13220_s4 + $0x6fc] ss:$24 sps:$4 sm:$0xff]   ;;  %v10068_v55 = vld [vmem:[%s13220_s4 + $0x3f8] ss:$24 sps:$4 sm:$0xff]  }
 0x52b   :  { %v10071_v56 = vld [vmem:[%s13220_s4 + $0x6f8] ss:$24 sps:$4 sm:$0xff]  }
 0x52d   :  { %5585 = vmatpush1.bf16.msra.mxu0 %v9984_v57  ;;  %5628 = vmatpush1.bf16.msra.mxu1 %v9987_v58  ;;  %v10076_v57 = vld [vmem:[%s13220_s4 + $0x3cc] ss:$24 sps:$4 sm:$0xff]  }
 0x52e   :  { %5586 = vmatprep.subr.bf16.mxu0 %v9992_v59  ;;  %5629 = vmatprep.subr.bf16.mxu1 %v9995_v60  ;;  %v10079_v58 = vld [vmem:[%s13220_s4 + $0x6cc] ss:$24 sps:$4 sm:$0xff]   ;;  %v10074_v59 = vld [vmem:[%s13220_s4 + $0x3c8] ss:$24 sps:$4 sm:$0xff]  }
 0x52f   :  { %v10077_v60 = vld [vmem:[%s13220_s4 + $0x6c8] ss:$24 sps:$4 sm:$0xff]  }
 0x531   :  { %5587 = vmatpush1.bf16.msra.mxu0 %v9990_v61  ;;  %5630 = vmatpush1.bf16.msra.mxu1 %v9993_v7  ;;  %v10082_v61 = vld [vmem:[%s13220_s4 + $0x39c] ss:$24 sps:$4 sm:$0xff]  }
 0x532   :  { %5588 = vmatprep.subr.bf16.mxu0 %v9998_v8  ;;  %5631 = vmatprep.subr.bf16.mxu1 %v10001_v9  ;;  %v10085_v7 = vld [vmem:[%s13220_s4 + $0x69c] ss:$24 sps:$4 sm:$0xff]   ;;  %v10080_v8 = vld [vmem:[%s13220_s4 + $0x398] ss:$24 sps:$4 sm:$0xff]  }
 0x533   :  { %v10083_v9 = vld [vmem:[%s13220_s4 + $0x698] ss:$24 sps:$4 sm:$0xff]  }
 0x535   :  { %5589 = vmatpush1.bf16.msra.mxu0 %v9996_v10  ;;  %5632 = vmatpush1.bf16.msra.mxu1 %v9999_v11  ;;  %v10088_v10 = vld [vmem:[%s13220_s4 + $0x36c] ss:$24 sps:$4 sm:$0xff]  }
 0x536   :  { %5590 = vmatprep.subr.bf16.mxu0 %v10004_v12  ;;  %5633 = vmatprep.subr.bf16.mxu1 %v10007_v62  ;;  %v10091_v11 = vld [vmem:[%s13220_s4 + $0x66c] ss:$24 sps:$4 sm:$0xff]   ;;  %v10086_v12 = vld [vmem:[%s13220_s4 + $0x368] ss:$24 sps:$4 sm:$0xff]  }
 0x537   :  { %v10089_v62 = vld [vmem:[%s13220_s4 + $0x668] ss:$24 sps:$4 sm:$0xff]  }
 0x539   :  { %5591 = vmatpush1.bf16.msra.mxu0 %v10002_v63  ;;  %5634 = vmatpush1.bf16.msra.mxu1 %v10005_v0  ;;  %v10094_v63 = vld [vmem:[%s13220_s4 + $0x33c] ss:$24 sps:$4 sm:$0xff]  }
 0x53a   :  { %5592 = vmatprep.subr.bf16.mxu0 %v10010_v13  ;;  %5635 = vmatprep.subr.bf16.mxu1 %v10013_v14  ;;  %v10097_v0 = vld [vmem:[%s13220_s4 + $0x63c] ss:$24 sps:$4 sm:$0xff]   ;;  %v10092_v13 = vld [vmem:[%s13220_s4 + $0x338] ss:$24 sps:$4 sm:$0xff]  }
 0x53b   :  { %v10095_v14 = vld [vmem:[%s13220_s4 + $0x638] ss:$24 sps:$4 sm:$0xff]  }
 0x53d   :  { %5593 = vmatpush2.bf16.msra.mxu0 %v10008_v15  ;;  %5636 = vmatpush2.bf16.msra.mxu1 %v10011_v16  ;;  %v10100_v15 = vld [vmem:[%s13220_s4 + $0x30c] ss:$24 sps:$4 sm:$0xff]  }
 0x53e   :  { %5594 = vmatprep.subr.bf16.mxu0 %v10016_v17  ;;  %5637 = vmatprep.subr.bf16.mxu1 %v10019_v18  ;;  %v10103_v16 = vld [vmem:[%s13220_s4 + $0x60c] ss:$24 sps:$4 sm:$0xff]   ;;  %v10098_v17 = vld [vmem:[%s13220_s4 + $0x308] ss:$24 sps:$4 sm:$0xff]  }
 0x53f   :  { %v10101_v18 = vld [vmem:[%s13220_s4 + $0x608] ss:$24 sps:$4 sm:$0xff]  }
 0x541   :  { %5595 = vmatpush2.bf16.msra.mxu0 %v10014_v19  ;;  %5638 = vmatpush2.bf16.msra.mxu1 %v10017_v1  ;;  %v10106_v19 = vld [vmem:[%s13220_s4 + $0x5dc] ss:$24 sps:$4 sm:$0xff]  }
 0x542   :  { %5596 = vmatprep.subr.bf16.mxu0 %v10022_v2  ;;  %5639 = vmatprep.subr.bf16.mxu1 %v10025_v3  ;;  %v10109_v1 = vld [vmem:[%s13220_s4 + $0x8dc] ss:$24 sps:$4 sm:$0xff]   ;;  %v10104_v2 = vld [vmem:[%s13220_s4 + $0x5d8] ss:$24 sps:$4 sm:$0xff]  }
 0x543   :  { %v10107_v3 = vld [vmem:[%s13220_s4 + $0x8d8] ss:$24 sps:$4 sm:$0xff]  }
 0x545   :  { %5597 = vmatpush2.bf16.msra.mxu0 %v10020_v4  ;;  %5640 = vmatpush2.bf16.msra.mxu1 %v10023_v5  ;;  %v10112_v4 = vld [vmem:[%s13220_s4 + $0x5ac] ss:$24 sps:$4 sm:$0xff]  }
 0x546   :  { %5598 = vmatprep.subr.bf16.mxu0 %v10028_v6  ;;  %5641 = vmatprep.subr.bf16.mxu1 %v10031_v20  ;;  %v10115_v5 = vld [vmem:[%s13220_s4 + $0x8ac] ss:$24 sps:$4 sm:$0xff]   ;;  %v10110_v6 = vld [vmem:[%s13220_s4 + $0x5a8] ss:$24 sps:$4 sm:$0xff]  }
 0x547   :  { %v10113_v20 = vld [vmem:[%s13220_s4 + $0x8a8] ss:$24 sps:$4 sm:$0xff]  }
 0x549   :  { %5599 = vmatpush2.bf16.msra.mxu0 %v10026_v21  ;;  %5642 = vmatpush2.bf16.msra.mxu1 %v10029_v22  ;;  %v10118_v21 = vld [vmem:[%s13220_s4 + $0x57c] ss:$24 sps:$4 sm:$0xff]  }
 0x54a   :  { %5600 = vmatprep.subr.bf16.mxu0 %v10034_v23  ;;  %5643 = vmatprep.subr.bf16.mxu1 %v10037_v24  ;;  %v10121_v22 = vld [vmem:[%s13220_s4 + $0x87c] ss:$24 sps:$4 sm:$0xff]   ;;  %v10116_v23 = vld [vmem:[%s13220_s4 + $0x578] ss:$24 sps:$4 sm:$0xff]  }
 0x54b   :  { %v10119_v24 = vld [vmem:[%s13220_s4 + $0x878] ss:$24 sps:$4 sm:$0xff]  }
 0x54d   :  { %5601 = vmatpush2.bf16.msra.mxu0 %v10032_v25  ;;  %5644 = vmatpush2.bf16.msra.mxu1 %v10035_v26  ;;  %v10124_v25 = vld [vmem:[%s13220_s4 + $0x54c] ss:$24 sps:$4 sm:$0xff]  }
 0x54e   :  { %5602 = vmatprep.subr.bf16.mxu0 %v10040_v27  ;;  %5645 = vmatprep.subr.bf16.mxu1 %v10043_v28  ;;  %v10127_v26 = vld [vmem:[%s13220_s4 + $0x84c] ss:$24 sps:$4 sm:$0xff]   ;;  %v10122_v27 = vld [vmem:[%s13220_s4 + $0x548] ss:$24 sps:$4 sm:$0xff]  }
 0x54f   :  { %v10125_v28 = vld [vmem:[%s13220_s4 + $0x848] ss:$24 sps:$4 sm:$0xff]  }
 0x551   :  { %5603 = vmatpush2.bf16.msra.mxu0 %v10038_v29  ;;  %5646 = vmatpush2.bf16.msra.mxu1 %v10041_v30  ;;  %v10130_v29 = vld [vmem:[%s13220_s4 + $0x51c] ss:$24 sps:$4 sm:$0xff]  }
 0x552   :  { %5604 = vmatprep.subr.bf16.mxu0 %v10046_v31  ;;  %5647 = vmatprep.subr.bf16.mxu1 %v10049_v32  ;;  %v10133_v30 = vld [vmem:[%s13220_s4 + $0x81c] ss:$24 sps:$4 sm:$0xff]   ;;  %v10128_v31 = vld [vmem:[%s13220_s4 + $0x518] ss:$24 sps:$4 sm:$0xff]  }
 0x553   :  { %v10131_v32 = vld [vmem:[%s13220_s4 + $0x818] ss:$24 sps:$4 sm:$0xff]  }
 0x555   :  { %5605 = vmatpush2.bf16.msra.mxu0 %v10044_v33  ;;  %5648 = vmatpush2.bf16.msra.mxu1 %v10047_v34  ;;  %v10136_v33 = vld [vmem:[%s13220_s4 + $0x4ec] ss:$24 sps:$4 sm:$0xff]  }
 0x556   :  { %5606 = vmatprep.subr.bf16.mxu0 %v10052_v35  ;;  %5649 = vmatprep.subr.bf16.mxu1 %v10055_v40  ;;  %v10139_v34 = vld [vmem:[%s13220_s4 + $0x7ec] ss:$24 sps:$4 sm:$0xff]   ;;  %v10134_v35 = vld [vmem:[%s13220_s4 + $0x4e8] ss:$24 sps:$4 sm:$0xff]  }
 0x557   :  { %v10137_v40 = vld [vmem:[%s13220_s4 + $0x7e8] ss:$24 sps:$4 sm:$0xff]  }
 0x559   :  { %5607 = vmatpush2.bf16.msra.mxu0 %v10050_v41  ;;  %5650 = vmatpush2.bf16.msra.mxu1 %v10053_v43  ;;  %v10142_v41 = vld [vmem:[%s13220_s4 + $0x4bc] ss:$24 sps:$4 sm:$0xff]  }
 0x55a   :  { %5662 = vmatprep.subr.bf16.mxu0 %v10058_v44  ;;  %5705 = vmatprep.subr.bf16.mxu1 %v10061_v45  ;;  %v10145_v43 = vld [vmem:[%s13220_s4 + $0x7bc] ss:$24 sps:$4 sm:$0xff]   ;;  %v10140_v44 = vld [vmem:[%s13220_s4 + $0x4b8] ss:$24 sps:$4 sm:$0xff]  }
 0x55b   :  { %v10143_v45 = vld [vmem:[%s13220_s4 + $0x7b8] ss:$24 sps:$4 sm:$0xff]  }
 0x55c   :  { %5609 = vmatmul.mubr.bf16.vlgmr.msra.gmra.mxu0 %v11587_v42  ;;  %5652 = vmatmul.mubr.bf16.vlgmr.msra.gmra.mxu1 %v11580_v38 }
 0x55d   :  { %5663 = vmatpush1.bf16.msra.mxu0 %v10056_v47  ;;  %5694 = vmatprep.mubr.bf16.mxu0 %v11578_v37  ;;  %v10148_v47 = vld [vmem:[%s13220_s4 + $0x48c] ss:$24 sps:$4 sm:$0xff]  }
 0x55e   :  { %5706 = vmatpush1.bf16.msra.mxu1 %v10059_v48  ;;  %5737 = vmatprep.mubr.bf16.mxu1 %v11602_v46  ;;  %v10151_v48 = vld [vmem:[%s13220_s4 + $0x78c] ss:$24 sps:$4 sm:$0xff]  }
 0x55f   :  { %5664 = vmatprep.subr.bf16.mxu0 %v10064_v49  ;;  %5707 = vmatprep.subr.bf16.mxu1 %v10067_v50  ;;  %v10146_v49 = vld [vmem:[%s13220_s4 + $0x488] ss:$24 sps:$4 sm:$0xff]  }
 0x560   :  { %v10149_v50 = vld [vmem:[%s13220_s4 + $0x788] ss:$24 sps:$4 sm:$0xff]  }
 0x561   :  { %5665 = vmatpush1.bf16.msra.mxu0 %v10062_v51  ;;  %v10154_v51 = vld [vmem:[%s13220_s4 + $0x164] ss:$24 sps:$4 sm:$0xff]  }
 0x562   :  { %5708 = vmatpush1.bf16.msra.mxu1 %v10065_v52  ;;  %5666 = vmatprep.subr.bf16.mxu0 %v10070_v53  ;;  %v10157_v52 = vld [vmem:[%s13220_s4 + $0x464] ss:$24 sps:$4 sm:$0xff]   ;;  %v10152_v53 = vld [vmem:[%s13220_s4 + $0x160] ss:$24 sps:$4 sm:$0xff]  }
 0x563   :  { %5709 = vmatprep.subr.bf16.mxu1 %v10073_v54  ;;  %v10155_v54 = vld [vmem:[%s13220_s4 + $0x460] ss:$24 sps:$4 sm:$0xff]  }
 0x565   :  { %5667 = vmatpush1.bf16.msra.mxu0 %v10068_v55  ;;  %v10160_v55 = vld [vmem:[%s13220_s4 + $0x134] ss:$24 sps:$4 sm:$0xff]  }
 0x566   :  { %5710 = vmatpush1.bf16.msra.mxu1 %v10071_v56  ;;  %5668 = vmatprep.subr.bf16.mxu0 %v10076_v57  ;;  %v10163_v56 = vld [vmem:[%s13220_s4 + $0x434] ss:$24 sps:$4 sm:$0xff]   ;;  %v10158_v57 = vld [vmem:[%s13220_s4 + $0x130] ss:$24 sps:$4 sm:$0xff]  }
 0x567   :  { %5711 = vmatprep.subr.bf16.mxu1 %v10079_v58  ;;  %v10161_v58 = vld [vmem:[%s13220_s4 + $0x430] ss:$24 sps:$4 sm:$0xff]  }
 0x569   :  { %5669 = vmatpush1.bf16.msra.mxu0 %v10074_v59  ;;  %v10166_v59 = vld [vmem:[%s13220_s4 + $0x104] ss:$24 sps:$4 sm:$0xff]  }
 0x56a   :  { %5712 = vmatpush1.bf16.msra.mxu1 %v10077_v60  ;;  %5670 = vmatprep.subr.bf16.mxu0 %v10082_v61  ;;  %v10164_v60 = vld [vmem:[%s13220_s4 + $0x100] ss:$24 sps:$4 sm:$0xff]   ;;  %v10169_v61 = vld [vmem:[%s13220_s4 + $0x404] ss:$24 sps:$4 sm:$0xff]  }
 0x56b   :  { %5713 = vmatprep.subr.bf16.mxu1 %v10085_v7  ;;  %v10175_v7 = vld [vmem:[%s13220_s4 + $0x3d4] ss:$24 sps:$4 sm:$0xff]  }
 0x56d   :  { %5671 = vmatpush1.bf16.msra.mxu0 %v10080_v8  ;;  %v10170_v8 = vld [vmem:[%s13220_s4 + $0xd0] ss:$24 sps:$4 sm:$0xff]  }
 0x56e   :  { %5714 = vmatpush1.bf16.msra.mxu1 %v10083_v9  ;;  %5672 = vmatprep.subr.bf16.mxu0 %v10088_v10  ;;  %v10173_v9 = vld [vmem:[%s13220_s4 + $0x3d0] ss:$24 sps:$4 sm:$0xff]   ;;  %v10178_v10 = vld [vmem:[%s13220_s4 + $0xa4] ss:$24 sps:$4 sm:$0xff]  }
 0x56f   :  { %5715 = vmatprep.subr.bf16.mxu1 %v10091_v11  ;;  %v10181_v11 = vld [vmem:[%s13220_s4 + $0x3a4] ss:$24 sps:$4 sm:$0xff]  }
 0x571   :  { %5673 = vmatpush1.bf16.msra.mxu0 %v10086_v12  ;;  %v10176_v12 = vld [vmem:[%s13220_s4 + $0xa0] ss:$24 sps:$4 sm:$0xff]  }
 0x572   :  { %5716 = vmatpush1.bf16.msra.mxu1 %v10089_v62  ;;  %5674 = vmatprep.subr.bf16.mxu0 %v10094_v63  ;;  %v10179_v62 = vld [vmem:[%s13220_s4 + $0x3a0] ss:$24 sps:$4 sm:$0xff]   ;;  %v10184_v63 = vld [vmem:[%s13220_s4 + $0x74] ss:$24 sps:$4 sm:$0xff]  }
 0x573   :  { %5717 = vmatprep.subr.bf16.mxu1 %v10097_v0  ;;  %v10187_v0 = vld [vmem:[%s13220_s4 + $0x374] ss:$24 sps:$4 sm:$0xff]  }
 0x575   :  { %5675 = vmatpush1.bf16.msra.mxu0 %v10092_v13  ;;  %v10182_v13 = vld [vmem:[%s13220_s4 + $0x70] ss:$24 sps:$4 sm:$0xff]  }
 0x576   :  { %5718 = vmatpush1.bf16.msra.mxu1 %v10095_v14  ;;  %5676 = vmatprep.subr.bf16.mxu0 %v10100_v15  ;;  %v10185_v14 = vld [vmem:[%s13220_s4 + $0x370] ss:$24 sps:$4 sm:$0xff]   ;;  %v10190_v15 = vld [vmem:[%s13220_s4 + $0x44] ss:$24 sps:$4 sm:$0xff]  }
 0x577   :  { %5719 = vmatprep.subr.bf16.mxu1 %v10103_v16  ;;  %v10193_v16 = vld [vmem:[%s13220_s4 + $0x344] ss:$24 sps:$4 sm:$0xff]  }
 0x579   :  { %5677 = vmatpush1.bf16.msra.mxu0 %v10098_v17  ;;  %v10188_v17 = vld [vmem:[%s13220_s4 + $0x40] ss:$24 sps:$4 sm:$0xff]  }
 0x57a   :  { %5720 = vmatpush1.bf16.msra.mxu1 %v10101_v18  ;;  %5678 = vmatprep.subr.bf16.mxu0 %v10106_v19  ;;  %v10191_v18 = vld [vmem:[%s13220_s4 + $0x340] ss:$24 sps:$4 sm:$0xff]   ;;  %v10196_v19 = vld [vmem:[%s13220_s4 + $0x14] ss:$24 sps:$4 sm:$0xff]  }
 0x57b   :  { %5721 = vmatprep.subr.bf16.mxu1 %v10109_v1  ;;  %v10199_v1 = vld [vmem:[%s13220_s4 + $0x314] ss:$24 sps:$4 sm:$0xff]  }
 0x57d   :  { %5679 = vmatpush2.bf16.msra.mxu0 %v10104_v2  ;;  %v10194_v2 = vld [vmem:[%s13220_s4 + $0x10] ss:$24 sps:$4 sm:$0xff]  }
 0x57e   :  { %5722 = vmatpush2.bf16.msra.mxu1 %v10107_v3  ;;  %5680 = vmatprep.subr.bf16.mxu0 %v10112_v4  ;;  %v10197_v3 = vld [vmem:[%s13220_s4 + $0x310] ss:$24 sps:$4 sm:$0xff]   ;;  %v10202_v4 = vld [vmem:[%s13220_s4 + $0x2e4] ss:$24 sps:$4 sm:$0xff]  }
 0x57f   :  { %5723 = vmatprep.subr.bf16.mxu1 %v10115_v5  ;;  %v10205_v5 = vld [vmem:[%s13220_s4 + $0x5e4] ss:$24 sps:$4 sm:$0xff]  }
 0x581   :  { %5681 = vmatpush2.bf16.msra.mxu0 %v10110_v6  ;;  %v10200_v6 = vld [vmem:[%s13220_s4 + $0x2e0] ss:$24 sps:$4 sm:$0xff]  }
 0x582   :  { %5724 = vmatpush2.bf16.msra.mxu1 %v10113_v20  ;;  %5682 = vmatprep.subr.bf16.mxu0 %v10118_v21  ;;  %v10203_v20 = vld [vmem:[%s13220_s4 + $0x5e0] ss:$24 sps:$4 sm:$0xff]   ;;  %v10208_v21 = vld [vmem:[%s13220_s4 + $0x2b4] ss:$24 sps:$4 sm:$0xff]  }
 0x583   :  { %5725 = vmatprep.subr.bf16.mxu1 %v10121_v22  ;;  %v10211_v22 = vld [vmem:[%s13220_s4 + $0x5b4] ss:$24 sps:$4 sm:$0xff]  }
 0x585   :  { %5683 = vmatpush2.bf16.msra.mxu0 %v10116_v23  ;;  %v10206_v23 = vld [vmem:[%s13220_s4 + $0x2b0] ss:$24 sps:$4 sm:$0xff]  }
 0x586   :  { %5726 = vmatpush2.bf16.msra.mxu1 %v10119_v24  ;;  %5684 = vmatprep.subr.bf16.mxu0 %v10124_v25  ;;  %v10209_v24 = vld [vmem:[%s13220_s4 + $0x5b0] ss:$24 sps:$4 sm:$0xff]   ;;  %v10214_v25 = vld [vmem:[%s13220_s4 + $0x284] ss:$24 sps:$4 sm:$0xff]  }
 0x587   :  { %5727 = vmatprep.subr.bf16.mxu1 %v10127_v26  ;;  %v10217_v26 = vld [vmem:[%s13220_s4 + $0x584] ss:$24 sps:$4 sm:$0xff]  }
 0x589   :  { %5685 = vmatpush2.bf16.msra.mxu0 %v10122_v27  ;;  %v10212_v27 = vld [vmem:[%s13220_s4 + $0x280] ss:$24 sps:$4 sm:$0xff]  }
 0x58a   :  { %5728 = vmatpush2.bf16.msra.mxu1 %v10125_v28  ;;  %5686 = vmatprep.subr.bf16.mxu0 %v10130_v29  ;;  %v10215_v28 = vld [vmem:[%s13220_s4 + $0x580] ss:$24 sps:$4 sm:$0xff]   ;;  %v10220_v29 = vld [vmem:[%s13220_s4 + $0x254] ss:$24 sps:$4 sm:$0xff]  }
 0x58b   :  { %5729 = vmatprep.subr.bf16.mxu1 %v10133_v30  ;;  %v10223_v30 = vld [vmem:[%s13220_s4 + $0x554] ss:$24 sps:$4 sm:$0xff]  }
 0x58d   :  { %5687 = vmatpush2.bf16.msra.mxu0 %v10128_v31  ;;  %v10218_v31 = vld [vmem:[%s13220_s4 + $0x250] ss:$24 sps:$4 sm:$0xff]  }
 0x58e   :  { %5730 = vmatpush2.bf16.msra.mxu1 %v10131_v32  ;;  %5688 = vmatprep.subr.bf16.mxu0 %v10136_v33  ;;  %v10221_v32 = vld [vmem:[%s13220_s4 + $0x550] ss:$24 sps:$4 sm:$0xff]   ;;  %v10226_v33 = vld [vmem:[%s13220_s4 + $0x224] ss:$24 sps:$4 sm:$0xff]  }
 0x58f   :  { %5731 = vmatprep.subr.bf16.mxu1 %v10139_v34  ;;  %v10229_v34 = vld [vmem:[%s13220_s4 + $0x524] ss:$24 sps:$4 sm:$0xff]  }
 0x591   :  { %5689 = vmatpush2.bf16.msra.mxu0 %v10134_v35  ;;  %v10224_v35 = vld [vmem:[%s13220_s4 + $0x220] ss:$24 sps:$4 sm:$0xff]  }
 0x592   :  { %5732 = vmatpush2.bf16.msra.mxu1 %v10137_v40  ;;  %5690 = vmatprep.subr.bf16.mxu0 %v10142_v41  ;;  %v10227_v40 = vld [vmem:[%s13220_s4 + $0x520] ss:$24 sps:$4 sm:$0xff]   ;;  %v10232_v41 = vld [vmem:[%s13220_s4 + $0x1f4] ss:$24 sps:$4 sm:$0xff]  }
 0x593   :  { %5733 = vmatprep.subr.bf16.mxu1 %v10145_v43  ;;  %v10235_v43 = vld [vmem:[%s13220_s4 + $0x4f4] ss:$24 sps:$4 sm:$0xff]  }
 0x595   :  { %5691 = vmatpush2.bf16.msra.mxu0 %v10140_v44  ;;  %v10230_v44 = vld [vmem:[%s13220_s4 + $0x1f0] ss:$24 sps:$4 sm:$0xff]  }
 0x596   :  { %5734 = vmatpush2.bf16.msra.mxu1 %v10143_v45  ;;  %5692 = vmatprep.subr.bf16.mxu0 %v10148_v47  ;;  %v10233_v45 = vld [vmem:[%s13220_s4 + $0x4f0] ss:$24 sps:$4 sm:$0xff]   ;;  %v10238_v47 = vld [vmem:[%s13220_s4 + $0x1c4] ss:$24 sps:$4 sm:$0xff]  }
 0x597   :  { %5735 = vmatprep.subr.bf16.mxu1 %v10151_v48  ;;  %v10241_v48 = vld [vmem:[%s13220_s4 + $0x4c4] ss:$24 sps:$4 sm:$0xff]  }
 0x599   :  { %5693 = vmatpush2.bf16.msra.mxu0 %v10146_v49  ;;  %v10236_v49 = vld [vmem:[%s13220_s4 + $0x1c0] ss:$24 sps:$4 sm:$0xff]  }
 0x59a   :  { %5736 = vmatpush2.bf16.msra.mxu1 %v10149_v50  ;;  %5748 = vmatprep.subr.bf16.mxu0 %v10154_v51  ;;  %v10239_v50 = vld [vmem:[%s13220_s4 + $0x4c0] ss:$24 sps:$4 sm:$0xff]   ;;  %v10244_v51 = vld [vmem:[%s13220_s4 + $0x194] ss:$24 sps:$4 sm:$0xff]  }
 0x59b   :  { %5791 = vmatprep.subr.bf16.mxu1 %v10157_v52  ;;  %v10247_v52 = vld [vmem:[%s13220_s4 + $0x494] ss:$24 sps:$4 sm:$0xff]  }
 0x59c   :  { %5695 = vmatmul.mubr.bf16.vlgmr.msra.gmra.mxu0 %v11582_v39 }
 0x59d   :  { %5738 = vmatmul.mubr.bf16.vlgmr.msra.gmra.mxu1 %v11587_v42  ;;  %5749 = vmatpush1.bf16.msra.mxu0 %v10152_v53  ;;  %v10242_v53 = vld [vmem:[%s13220_s4 + $0x190] ss:$24 sps:$4 sm:$0xff]  }
 0x59e   :  { %5780 = vmatprep.mubr.bf16.mxu0 %v11576_v36  ;;  %5792 = vmatpush1.bf16.msra.mxu1 %v10155_v54  ;;  %v10167_v36 = vld [vmem:[%s13220_s4 + $0x400] ss:$24 sps:$4 sm:$0xff]   ;;  %v10245_v54 = vld [vmem:[%s13220_s4 + $0x490] ss:$24 sps:$4 sm:$0xff]  }
 0x59f   :  { %5823 = vmatprep.mubr.bf16.mxu1 %v11578_v37  ;;  %5750 = vmatprep.subr.bf16.mxu0 %v10160_v55  ;;  %v10172_v37 = vld [vmem:[%s13220_s4 + $0xd4] ss:$24 sps:$4 sm:$0xff]   ;;  %v10250_v55 = vld [vmem:[%s13220_s4 + $0x764] ss:$24 sps:$4 sm:$0xff]  }
 0x5a0   :  { %5793 = vmatprep.subr.bf16.mxu1 %v10163_v56  ;;  %v10271_v56 = vld [vmem:[%s13222_s6 + $0x154] ss:$24 sps:$4 sm:$0xff]  }
 0x5a1   :  { %5751 = vmatpush1.bf16.msra.mxu0 %v10158_v57  ;;  %v10248_v57 = vld [vmem:[%s13220_s4 + $0x760] ss:$24 sps:$4 sm:$0xff]  }
 0x5a2   :  { %5794 = vmatpush1.bf16.msra.mxu1 %v10161_v58  ;;  %5752 = vmatprep.subr.bf16.mxu0 %v10166_v59  ;;  %v10253_v58 = vld [vmem:[%s13220_s4 + $0x734] ss:$24 sps:$4 sm:$0xff]   ;;  %v10269_v59 = vld [vmem:[%s13222_s6 + $0x150] ss:$24 sps:$4 sm:$0xff]  }
 0x5a3   :  { %5795 = vmatprep.subr.bf16.mxu1 %v10169_v61  ;;  %v10251_v61 = vld [vmem:[%s13220_s4 + $0x730] ss:$24 sps:$4 sm:$0xff]  }
 0x5a5   :  { %5753 = vmatpush1.bf16.msra.mxu0 %v10164_v60  ;;  %v10277_v60 = vld [vmem:[%s13222_s6 + $0x124] ss:$24 sps:$4 sm:$0xff]  }
 0x5a6   :  { %5796 = vmatpush1.bf16.msra.mxu1 %v10167_v36  ;;  %5754 = vmatprep.subr.bf16.mxu0 %v10172_v37  ;;  %v10256_v36 = vld [vmem:[%s13220_s4 + $0x704] ss:$24 sps:$4 sm:$0xff]   ;;  %v10259_v37 = vld [vmem:[%s13220_s4 + $0x6d4] ss:$24 sps:$4 sm:$0xff]  }
 0x5a7   :  { %5797 = vmatprep.subr.bf16.mxu1 %v10175_v7  ;;  %v10281_v7 = vld [vmem:[%s13222_s6 + $0xf0] ss:$24 sps:$4 sm:$0xff]  }
 0x5a9   :  { %5755 = vmatpush1.bf16.msra.mxu0 %v10170_v8  ;;  %v10289_v8 = vld [vmem:[%s13222_s6 + $0xc4] ss:$24 sps:$4 sm:$0xff]  }
 0x5aa   :  { %5798 = vmatpush1.bf16.msra.mxu1 %v10173_v9  ;;  %5756 = vmatprep.subr.bf16.mxu0 %v10178_v10  ;;  %v10257_v9 = vld [vmem:[%s13220_s4 + $0x6d0] ss:$24 sps:$4 sm:$0xff]   ;;  %v10262_v10 = vld [vmem:[%s13220_s4 + $0x6a4] ss:$24 sps:$4 sm:$0xff]  }
 0x5ab   :  { %5799 = vmatprep.subr.bf16.mxu1 %v10181_v11  ;;  %v10287_v11 = vld [vmem:[%s13222_s6 + $0xc0] ss:$24 sps:$4 sm:$0xff]  }
 0x5ad   :  { %5757 = vmatpush1.bf16.msra.mxu0 %v10176_v12  ;;  %v10295_v12 = vld [vmem:[%s13222_s6 + $0x94] ss:$24 sps:$4 sm:$0xff]  }
 0x5ae   :  { %5800 = vmatpush1.bf16.msra.mxu1 %v10179_v62  ;;  %5758 = vmatprep.subr.bf16.mxu0 %v10184_v63  ;;  %v10260_v62 = vld [vmem:[%s13220_s4 + $0x6a0] ss:$24 sps:$4 sm:$0xff]   ;;  %v10265_v63 = vld [vmem:[%s13220_s4 + $0x674] ss:$24 sps:$4 sm:$0xff]  }
 0x5af   :  { %5801 = vmatprep.subr.bf16.mxu1 %v10187_v0  ;;  %v10293_v0 = vld [vmem:[%s13222_s6 + $0x90] ss:$24 sps:$4 sm:$0xff]  }
 0x5b1   :  { %5759 = vmatpush1.bf16.msra.mxu0 %v10182_v13  ;;  %v10301_v13 = vld [vmem:[%s13222_s6 + $0x64] ss:$24 sps:$4 sm:$0xff]  }
 0x5b2   :  { %5802 = vmatpush1.bf16.msra.mxu1 %v10185_v14  ;;  %5760 = vmatprep.subr.bf16.mxu0 %v10190_v15  ;;  %v10263_v14 = vld [vmem:[%s13220_s4 + $0x670] ss:$24 sps:$4 sm:$0xff]   ;;  %v10268_v15 = vld [vmem:[%s13220_s4 + $0x644] ss:$24 sps:$4 sm:$0xff]  }
 0x5b3   :  { %5803 = vmatprep.subr.bf16.mxu1 %v10193_v16  ;;  %v10299_v16 = vld [vmem:[%s13222_s6 + $0x60] ss:$24 sps:$4 sm:$0xff]  }
 0x5b5   :  { %5761 = vmatpush1.bf16.msra.mxu0 %v10188_v17  ;;  %v10307_v17 = vld [vmem:[%s13222_s6 + $0x34] ss:$24 sps:$4 sm:$0xff]  }
 0x5b6   :  { %5804 = vmatpush1.bf16.msra.mxu1 %v10191_v18  ;;  %5762 = vmatprep.subr.bf16.mxu0 %v10196_v19  ;;  %v10266_v18 = vld [vmem:[%s13220_s4 + $0x640] ss:$24 sps:$4 sm:$0xff]   ;;  %v10274_v19 = vld [vmem:[%s13220_s4 + $0x614] ss:$24 sps:$4 sm:$0xff]  }
 0x5b7   :  { %5805 = vmatprep.subr.bf16.mxu1 %v10199_v1  ;;  %v10305_v1 = vld [vmem:[%s13222_s6 + $0x30] ss:$24 sps:$4 sm:$0xff]  }
 0x5b9   :  { %5763 = vmatpush1.bf16.msra.mxu0 %v10194_v2  ;;  %v10313_v2 = vld [vmem:[%s13222_s6 + $0x4] ss:$24 sps:$4 sm:$0xff]  }
 0x5ba   :  { %5806 = vmatpush1.bf16.msra.mxu1 %v10197_v3  ;;  %5764 = vmatprep.subr.bf16.mxu0 %v10202_v4  ;;  %v10272_v3 = vld [vmem:[%s13220_s4 + $0x610] ss:$24 sps:$4 sm:$0xff]   ;;  %v10280_v4 = vld [vmem:[%s13220_s4 + $0x8e4] ss:$24 sps:$4 sm:$0xff]  }
 0x5bb   :  { %5807 = vmatprep.subr.bf16.mxu1 %v10205_v5  ;;  %v10311_v5 = vld [vmem:[%s13222_s6] ss:$24 sps:$4 sm:$0xff]  }
 0x5bd   :  { %5765 = vmatpush2.bf16.msra.mxu0 %v10200_v6  ;;  %v10319_v6 = vld [vmem:[%s13222_s6 + $0x2d4] ss:$24 sps:$4 sm:$0xff]  }
 0x5be   :  { %5808 = vmatpush2.bf16.msra.mxu1 %v10203_v20  ;;  %5766 = vmatprep.subr.bf16.mxu0 %v10208_v21  ;;  %v10278_v20 = vld [vmem:[%s13220_s4 + $0x8e0] ss:$24 sps:$4 sm:$0xff]   ;;  %v10286_v21 = vld [vmem:[%s13220_s4 + $0x8b4] ss:$24 sps:$4 sm:$0xff]  }
 0x5bf   :  { %5809 = vmatprep.subr.bf16.mxu1 %v10211_v22  ;;  %v10317_v22 = vld [vmem:[%s13222_s6 + $0x2d0] ss:$24 sps:$4 sm:$0xff]  }
 0x5c1   :  { %5767 = vmatpush2.bf16.msra.mxu0 %v10206_v23  ;;  %v10325_v23 = vld [vmem:[%s13222_s6 + $0x2a4] ss:$24 sps:$4 sm:$0xff]  }
 0x5c2   :  { %5810 = vmatpush2.bf16.msra.mxu1 %v10209_v24  ;;  %5768 = vmatprep.subr.bf16.mxu0 %v10214_v25  ;;  %v10284_v24 = vld [vmem:[%s13220_s4 + $0x8b0] ss:$24 sps:$4 sm:$0xff]   ;;  %v10292_v25 = vld [vmem:[%s13220_s4 + $0x884] ss:$24 sps:$4 sm:$0xff]  }
 0x5c3   :  { %5811 = vmatprep.subr.bf16.mxu1 %v10217_v26  ;;  %v10323_v26 = vld [vmem:[%s13222_s6 + $0x2a0] ss:$24 sps:$4 sm:$0xff]  }
 0x5c5   :  { %5769 = vmatpush2.bf16.msra.mxu0 %v10212_v27  ;;  %v10328_v27 = vld [vmem:[%s13222_s6 + $0x274] ss:$24 sps:$4 sm:$0xff]  }
 0x5c6   :  { %5812 = vmatpush2.bf16.msra.mxu1 %v10215_v28  ;;  %5770 = vmatprep.subr.bf16.mxu0 %v10220_v29  ;;  %v10290_v28 = vld [vmem:[%s13220_s4 + $0x880] ss:$24 sps:$4 sm:$0xff]   ;;  %v10298_v29 = vld [vmem:[%s13220_s4 + $0x854] ss:$24 sps:$4 sm:$0xff]  }
 0x5c7   :  { %5813 = vmatprep.subr.bf16.mxu1 %v10223_v30  ;;  %v10326_v30 = vld [vmem:[%s13222_s6 + $0x270] ss:$24 sps:$4 sm:$0xff]  }
 0x5c9   :  { %5771 = vmatpush2.bf16.msra.mxu0 %v10218_v31  ;;  %v10331_v31 = vld [vmem:[%s13222_s6 + $0x244] ss:$24 sps:$4 sm:$0xff]  }
 0x5ca   :  { %5814 = vmatpush2.bf16.msra.mxu1 %v10221_v32  ;;  %5772 = vmatprep.subr.bf16.mxu0 %v10226_v33  ;;  %v10296_v32 = vld [vmem:[%s13220_s4 + $0x850] ss:$24 sps:$4 sm:$0xff]   ;;  %v10304_v33 = vld [vmem:[%s13220_s4 + $0x824] ss:$24 sps:$4 sm:$0xff]  }
 0x5cb   :  { %5815 = vmatprep.subr.bf16.mxu1 %v10229_v34  ;;  %v10329_v34 = vld [vmem:[%s13222_s6 + $0x240] ss:$24 sps:$4 sm:$0xff]  }
 0x5cd   :  { %5773 = vmatpush2.bf16.msra.mxu0 %v10224_v35  ;;  %v10334_v35 = vld [vmem:[%s13222_s6 + $0x214] ss:$24 sps:$4 sm:$0xff]  }
 0x5ce   :  { %5816 = vmatpush2.bf16.msra.mxu1 %v10227_v40  ;;  %5774 = vmatprep.subr.bf16.mxu0 %v10232_v41  ;;  %v10302_v40 = vld [vmem:[%s13220_s4 + $0x820] ss:$24 sps:$4 sm:$0xff]   ;;  %v10310_v41 = vld [vmem:[%s13220_s4 + $0x7f4] ss:$24 sps:$4 sm:$0xff]  }
 0x5cf   :  { %5817 = vmatprep.subr.bf16.mxu1 %v10235_v43  ;;  %v4020_v43 = vlaneseq }
 0x5d1   :  { %5775 = vmatpush2.bf16.msra.mxu0 %v10230_v44  ;;  %v10332_v44 = vld [vmem:[%s13222_s6 + $0x210] ss:$24 sps:$4 sm:$0xff]  }
 0x5d2   :  { %5818 = vmatpush2.bf16.msra.mxu1 %v10233_v45  ;;  %5776 = vmatprep.subr.bf16.mxu0 %v10238_v47  ;;  %v10337_v45 = vld [vmem:[%s13222_s6 + $0x1e4] ss:$24 sps:$4 sm:$0xff]   ;;  %v10308_v47 = vld [vmem:[%s13220_s4 + $0x7f0] ss:$24 sps:$4 sm:$0xff]  }
 0x5d3   :  { %5819 = vmatprep.subr.bf16.mxu1 %v10241_v48 }
 0x5d5   :  { %5777 = vmatpush2.bf16.msra.mxu0 %v10236_v49  ;;  %v10316_v49 = vld [vmem:[%s13220_s4 + $0x7c4] ss:$24 sps:$4 sm:$0xff]  }
 0x5d6   :  { %5820 = vmatpush2.bf16.msra.mxu1 %v10239_v50  ;;  %5778 = vmatprep.subr.bf16.mxu0 %v10244_v51  ;;  %v12337_v50 = vshrl.u32 %v4020_v43, 7  ;;  %v10335_v51 = vld [vmem:[%s13222_s6 + $0x1e0] ss:$24 sps:$4 sm:$0xff]  }
 0x5d7   :  { %5821 = vmatprep.subr.bf16.mxu1 %v10247_v52  ;;  %v10340_v52 = vld [vmem:[%s13222_s6 + $0x1b4] ss:$24 sps:$4 sm:$0xff]   ;;  %v10365_v43 = vld [vmem:[%s13222_s6 + $0x300] ss:$24 sps:$4 sm:$0xff]  }
 0x5d9   :  { %5779 = vmatpush2.bf16.msra.mxu0 %v10242_v53  ;;  %v4026_v53 = vsub.s32 1, %v12337_v50 }
 0x5da   :  { %5822 = vmatpush2.bf16.msra.mxu1 %v10245_v54  ;;  %5834 = vmatprep.subr.bf16.mxu0 %v10250_v55  ;;  %v10314_v54 = vld [vmem:[%s13220_s4 + $0x7c0] ss:$24 sps:$4 sm:$0xff]  }
 0x5db   :  { %7655 = vmatprep.subr.bf16.mxu1 %v10271_v56  ;;  %v10322_v56 = vld [vmem:[%s13220_s4 + $0x794] ss:$24 sps:$4 sm:$0xff]  }
 0x5dc   :  { %5781 = vmatmul.mubr.bf16.vlgmr.msra.gmra.mxu0 %v11580_v38  ;;  %v10275_v38 = vld [vmem:[%s13222_s6 + $0x120] ss:$24 sps:$4 sm:$0xff]   ;;  %v5524_v48 = vpop.f32.mrf.mxu0 }
 0x5dd   :  { %5824 = vmatmul.mubr.bf16.vlgmr.msra.gmra.mxu1 %v11582_v39  ;;  %5835 = vmatpush1.bf16.msra.mxu0 %v10248_v57  ;;  %v10283_v39 = vld [vmem:[%s13222_s6 + $0xf4] ss:$24 sps:$4 sm:$0xff]   ;;  %v10338_v57 = vld [vmem:[%s13222_s6 + $0x1b0] ss:$24 sps:$4 sm:$0xff]  }
 0x5de   :  { %5866 = vmatprep.mubr.bf16.mxu0 %v11602_v46  ;;  %5836 = vmatprep.subr.bf16.mxu0 %v10253_v58  ;;  %v10254_v46 = vld [vmem:[%s13220_s4 + $0x700] ss:$24 sps:$4 sm:$0xff]   ;;  %v5526_v55 = vpop.f32.mrf.mxu0 }
 0x5df   :  { %7656 = vmatpush1.bf16.msra.mxu1 %v10269_v59  ;;  %v12358_v58 = vld [vmem:[%s13221_s5] sm:$0x3f]  ;;  %v4022_v59 = vsub.s32 0, %v12337_v50 }
 0x5e0   :  { %7657 = vmatprep.subr.bf16.mxu1 %v10277_v60  ;;  %v5567_v60 = vpop.f32.mrf.mxu1 }
 0x5e1   :  { %5837 = vmatpush1.bf16.msra.mxu0 %v10251_v61  ;;  %v10343_v61 = vld [vmem:[%s13222_s6 + $0x184] ss:$24 sps:$4 sm:$0xff]  }
 0x5e2   :  { %5838 = vmatprep.subr.bf16.mxu0 %v10256_v36  ;;  %v4027_v36 = vrot.slane %v12358_v58, %v4026_v53 }
 0x5e3   :  { %7658 = vmatpush1.bf16.msra.mxu1 %v10275_v38  ;;  %v10320_v38 = vld [vmem:[%s13220_s4 + $0x790] ss:$24 sps:$4 sm:$0xff]  }
 0x5e4   :  { %7659 = vmatprep.subr.bf16.mxu1 %v10283_v39  ;;  %v5528_v39 = vpop.f32.mrf.mxu0 }
 0x5e5   :  { %5839 = vmatpush1.bf16.msra.mxu0 %v10254_v46  ;;  %v10346_v46 = vld [vmem:[%s13222_s6 + $0x454] ss:$24 sps:$4 sm:$0xff]  }
 0x5e6   :  { %5840 = vmatprep.subr.bf16.mxu0 %v10259_v37  ;;  %v10341_v37 = vld [vmem:[%s13222_s6 + $0x180] ss:$24 sps:$4 sm:$0xff]  }
 0x5e7   :  { %7660 = vmatpush1.bf16.msra.mxu1 %v10281_v7  ;;  %v4023_v7 = vrot.slane %v12358_v58, %v4022_v59 }
 0x5e8   :  { %7661 = vmatprep.subr.bf16.mxu1 %v10289_v8  ;;  %v5569_v8 = vpop.f32.mrf.mxu1 }
 0x5e9   :  { %5841 = vmatpush1.bf16.msra.mxu0 %v10257_v9  ;;  %v5527_v9 = vadd.f32 %v5526_v55, %v4027_v36  ;;  %v10452_v55 = vld [vmem:[%s13222_s6 + $0x6f0] ss:$24 sps:$4 sm:$0xff]  }
 0x5ea   :  { %5842 = vmatprep.subr.bf16.mxu0 %v10262_v10  ;;  %v10344_v10 = vld [vmem:[%s13222_s6 + $0x450] ss:$24 sps:$4 sm:$0xff]  }
 0x5eb   :  { %7662 = vmatpush1.bf16.msra.mxu1 %v10287_v11  ;;  %v5530_v11 = vpop.f32.mrf.mxu0 }
 0x5ec   :  { %7663 = vmatprep.subr.bf16.mxu1 %v10295_v12  ;;  %v10349_v12 = vld [vmem:[%s13222_s6 + $0x424] ss:$24 sps:$4 sm:$0xff]  }
 0x5ed   :  { %5843 = vmatpush1.bf16.msra.mxu0 %v10260_v62  ;;  %v5529_v62 = vadd.f32 %v5528_v39, %v4023_v7  ;;  %v10377_v39 = vld [vmem:[%s13222_s6 + $0x540] ss:$24 sps:$4 sm:$0xff]  }
 0x5ee   :  { %5844 = vmatprep.subr.bf16.mxu0 %v10265_v63  ;;  %v5525_v63 = vadd.f32 %v5524_v48, %v4023_v7  ;;  %v10368_v48 = vld [vmem:[%s13222_s6 + $0x5d0] ss:$24 sps:$4 sm:$0xff]   ;;  %v10382_v7 = vld [vmem:[%s13222_s6 + $0x514] ss:$24 sps:$4 sm:$0xff]  }
 0x5ef   :  { %7664 = vmatpush1.bf16.msra.mxu1 %v10293_v0  ;;  %v5571_v0 = vpop.f32.mrf.mxu1 }
 0x5f0   :  { %7665 = vmatprep.subr.bf16.mxu1 %v10301_v13 }
 0x5f1   :  { %5845 = vmatpush1.bf16.msra.mxu0 %v10263_v14  ;;  %v5570_v14 = vadd.f32 %v5569_v8, %v5527_v9  ;;  %v10380_v8 = vld [vmem:[%s13222_s6 + $0x510] ss:$24 sps:$4 sm:$0xff]   ;;  %v10470_v9 = vld [vmem:[%s13222_s6 + $0x660] ss:$24 sps:$4 sm:$0xff]  }
 0x5f2   :  { %5846 = vmatprep.subr.bf16.mxu0 %v10268_v15  ;;  %v5531_v15 = vadd.f32 %v5530_v11, %v4027_v36  ;;  %v10460_v36 = vld [vmem:[%s13222_s6 + $0x6c4] ss:$24 sps:$4 sm:$0xff]  }
 0x5f3   :  { %7666 = vmatpush1.bf16.msra.mxu1 %v10299_v16  ;;  %v10347_v16 = vld [vmem:[%s13222_s6 + $0x420] ss:$24 sps:$4 sm:$0xff]   ;;  %v10385_v11 = vld [vmem:[%s13222_s6 + $0x4e4] ss:$24 sps:$4 sm:$0xff]  }
 0x5f4   :  { %7667 = vmatprep.subr.bf16.mxu1 %v10307_v17 }
 0x5f5   :  { %5847 = vmatpush1.bf16.msra.mxu0 %v10266_v18  ;;  %v10352_v18 = vld [vmem:[%s13222_s6 + $0x3f4] ss:$24 sps:$4 sm:$0xff]  }
 0x5f6   :  { %5848 = vmatprep.subr.bf16.mxu0 %v10274_v19  ;;  %v5572_v19 = vadd.f32 %v5571_v0, %v5529_v62  ;;  %v10476_v62 = vld [vmem:[%s13222_s6 + $0x630] ss:$24 sps:$4 sm:$0xff]   ;;  %v10388_v0 = vld [vmem:[%s13222_s6 + $0x4b4] ss:$24 sps:$4 sm:$0xff]  }
 0x5f7   :  { %7668 = vmatpush1.bf16.msra.mxu1 %v10305_v1 }
 0x5f8   :  { %7669 = vmatprep.subr.bf16.mxu1 %v10313_v2  ;;  %v5568_v2 = vadd.f32 %v5567_v60, %v5525_v63  ;;  %v10374_v60 = vld [vmem:[%s13222_s6 + $0x570] ss:$24 sps:$4 sm:$0xff]   ;;  %v10478_v63 = vld [vmem:[%s13222_s6 + $0x634] ss:$24 sps:$4 sm:$0xff]  }
 0x5f9   :  { %5849 = vmatpush1.bf16.msra.mxu0 %v10272_v3  ;;  %v5573_v3 = vpop.f32.mrf.mxu1 }
 0x5fa   :  { %5850 = vmatprep.subr.bf16.mxu0 %v10280_v4 }
 0x5fb   :  { %7670 = vmatpush1.bf16.msra.mxu1 %v10311_v5  ;;  %v5574_v5 = vadd.f32 %v5573_v3, %v5531_v15  ;;  %v10482_v15 = vld [vmem:[%s13222_s6 + $0x600] ss:$24 sps:$4 sm:$0xff]   ;;  %v10490_v3 = vld [vmem:[%s13222_s6 + $0x8d4] ss:$24 sps:$4 sm:$0xff]  }
 0x5fc   :  { %7671 = vmatprep.subr.bf16.mxu1 %v10319_v6  ;;  %v10350_v6 = vld [vmem:[%s13222_s6 + $0x3f0] ss:$24 sps:$4 sm:$0xff]  }
 0x5fd   :  { %5851 = vmatpush2.bf16.msra.mxu0 %v10278_v20 }
 0x5fe   :  { %5852 = vmatprep.subr.bf16.mxu0 %v10286_v21 }
 0x5ff   :  { %7672 = vmatpush2.bf16.msra.mxu1 %v10317_v22  ;;  %v10355_v22 = vld [vmem:[%s13222_s6 + $0x3c4] ss:$24 sps:$4 sm:$0xff]  }
 0x600   :  { %7673 = vmatprep.subr.bf16.mxu1 %v10325_v23 }
 0x601   :  { %5853 = vmatpush2.bf16.msra.mxu0 %v10284_v24  ;;  %v10353_v24 = vld [vmem:[%s13222_s6 + $0x3c0] ss:$24 sps:$4 sm:$0xff]  }
 0x602   :  { %5854 = vmatprep.subr.bf16.mxu0 %v10292_v25  ;;  %v10358_v25 = vld [vmem:[%s13222_s6 + $0x394] ss:$24 sps:$4 sm:$0xff]  }
 0x603   :  { %7674 = vmatpush2.bf16.msra.mxu1 %v10323_v26  ;;  %v10356_v26 = vld [vmem:[%s13222_s6 + $0x390] ss:$24 sps:$4 sm:$0xff]  }
 0x604   :  { %7675 = vmatprep.subr.bf16.mxu1 %v10328_v27  ;;  %v10361_v27 = vld [vmem:[%s13222_s6 + $0x364] ss:$24 sps:$4 sm:$0xff]  }
 0x605   :  { %5855 = vmatpush2.bf16.msra.mxu0 %v10290_v28  ;;  %v10359_v28 = vld [vmem:[%s13222_s6 + $0x360] ss:$24 sps:$4 sm:$0xff]  }
 0x606   :  { %5856 = vmatprep.subr.bf16.mxu0 %v10298_v29  ;;  %v10364_v29 = vld [vmem:[%s13222_s6 + $0x334] ss:$24 sps:$4 sm:$0xff]  }
 0x607   :  { %7676 = vmatpush2.bf16.msra.mxu1 %v10326_v30 }
 0x608   :  { %7677 = vmatprep.subr.bf16.mxu1 %v10331_v31 }
 0x609   :  { %5857 = vmatpush2.bf16.msra.mxu0 %v10296_v32  ;;  %v10362_v32 = vld [vmem:[%s13222_s6 + $0x330] ss:$24 sps:$4 sm:$0xff]  }
 0x60a   :  { %5858 = vmatprep.subr.bf16.mxu0 %v10304_v33 }
 0x60b   :  { %7678 = vmatpush2.bf16.msra.mxu1 %v10329_v34  ;;  %v10367_v34 = vld [vmem:[%s13222_s6 + $0x304] ss:$24 sps:$4 sm:$0xff]  }
 0x60c   :  { %7679 = vmatprep.subr.bf16.mxu1 %v10334_v35 }
 0x60d   :  { %5859 = vmatpush2.bf16.msra.mxu0 %v10302_v40 }
 0x60e   :  { %5860 = vmatprep.subr.bf16.mxu0 %v10310_v41 }
 0x60f   :  { %7680 = vmatpush2.bf16.msra.mxu1 %v10332_v44  ;;  %v10440_v44 = vld [vmem:[%s13222_s6 + $0x750] ss:$24 sps:$4 sm:$0xff]  }
 0x610   :  { %7681 = vmatprep.subr.bf16.mxu1 %v10337_v45  ;;  %v10442_v45 = vld [vmem:[%s13222_s6 + $0x754] ss:$24 sps:$4 sm:$0xff]  }
 0x611   :  { %5861 = vmatpush2.bf16.msra.mxu0 %v10308_v47  ;;  %v10370_v47 = vld [vmem:[%s13222_s6 + $0x5d4] ss:$24 sps:$4 sm:$0xff]  }
 0x612   :  { %5862 = vmatprep.subr.bf16.mxu0 %v10316_v49  ;;  %v10446_v49 = vld [vmem:[%s13222_s6 + $0x720] ss:$24 sps:$4 sm:$0xff]  }
 0x613   :  { %7682 = vmatpush2.bf16.msra.mxu1 %v10335_v51  ;;  %v10448_v51 = vld [vmem:[%s13222_s6 + $0x724] ss:$24 sps:$4 sm:$0xff]  }
 0x614   :  { %7683 = vmatprep.subr.bf16.mxu1 %v10340_v52  ;;  %v10373_v52 = vld [vmem:[%s13222_s6 + $0x5a4] ss:$24 sps:$4 sm:$0xff]  }
 0x615   :  { %5863 = vmatpush2.bf16.msra.mxu0 %v10314_v54  ;;  %v10371_v54 = vld [vmem:[%s13222_s6 + $0x5a0] ss:$24 sps:$4 sm:$0xff]  }
 0x616   :  { %5864 = vmatprep.subr.bf16.mxu0 %v10322_v56  ;;  %v10454_v56 = vld [vmem:[%s13222_s6 + $0x6f4] ss:$24 sps:$4 sm:$0xff]  }
 0x617   :  { %7684 = vmatpush2.bf16.msra.mxu1 %v10338_v57  ;;  %v10376_v57 = vld [vmem:[%s13222_s6 + $0x574] ss:$24 sps:$4 sm:$0xff]  }
 0x618   :  { %7685 = vmatprep.subr.bf16.mxu1 %v10343_v61  ;;  %v10458_v61 = vld [vmem:[%s13222_s6 + $0x6c0] ss:$24 sps:$4 sm:$0xff]  }
 0x619   :  { %5865 = vmatpush2.bf16.msra.mxu0 %v10320_v38  ;;  %v10379_v38 = vld [vmem:[%s13222_s6 + $0x544] ss:$24 sps:$4 sm:$0xff]  }
 0x61a   :  { %7698 = vmatprep.subr.bf16.mxu0 %v10346_v46  ;;  %v10464_v46 = vld [vmem:[%s13222_s6 + $0x690] ss:$24 sps:$4 sm:$0xff]  }
 0x61b   :  { %7686 = vmatpush2.bf16.msra.mxu1 %v10341_v37  ;;  %v10466_v37 = vld [vmem:[%s13222_s6 + $0x694] ss:$24 sps:$4 sm:$0xff]  }
 0x61c   :  { %v5610_v13 = vpop.f32.mrf.mxu0  ;;  %5867 = vmatmul.mubr.bf16.vlgmr.msra.gmra.mxu0 %v11587_v42  ;;  %7741 = vmatprep.subr.bf16.mxu1 %v10442_v45 }
 0x61d   :  { %7699 = vmatpush1.bf16.msra.mxu0 %v10344_v10  ;;  %v5611_v20 = vadd.f32 %v5610_v13, %v5568_v2  ;;  %v10472_v10 = vld [vmem:[%s13222_s6 + $0x664] ss:$24 sps:$4 sm:$0xff]   ;;  %v5653_v13 = vpop.f32.mrf.mxu1  ;;  %v10488_v2 = vld [vmem:[%s13222_s6 + $0x8d0] ss:$24 sps:$4 sm:$0xff]  }
 0x61e   :  { %v5612_v17 = vpop.f32.mrf.mxu0  ;;  %7700 = vmatprep.subr.bf16.mxu0 %v10349_v12  ;;  %v10383_v12 = vld [vmem:[%s13222_s6 + $0x4e0] ss:$24 sps:$4 sm:$0xff]  }
 0x61f   :  { %v5613_v1 = vadd.f32 %v5612_v17, %v5570_v14  ;;  %v10386_v14 = vld [vmem:[%s13222_s6 + $0x4b0] ss:$24 sps:$4 sm:$0xff]   ;;  %v10391_v17 = vld [vmem:[%s13222_s6 + $0x484] ss:$24 sps:$4 sm:$0xff]  }
 0x620   :  { %v5614_v4 = vpop.f32.mrf.mxu0 }
 0x621   :  { %v5615_v42 = vadd.f32 %v5614_v4, %v5572_v19  ;;  %7701 = vmatpush1.bf16.msra.mxu0 %v10347_v16  ;;  %10732 = vtanh.f32 %v5613_v1  ;;  %v10484_v16 = vld [vmem:[%s13222_s6 + $0x604] ss:$24 sps:$4 sm:$0xff]   ;;  %v4034_v19 = vsub.s32 3, %v12337_v50  ;;  %v10389_v1 = vld [vmem:[%s13222_s6 + $0x480] ss:$24 sps:$4 sm:$0xff]   ;;  %v4030_v4 = vsub.s32 2, %v12337_v50 }
 0x622   :  { %v5616_v21 = vpop.f32.mrf.mxu0  ;;  %7702 = vmatprep.subr.bf16.mxu0 %v10352_v18  ;;  %v5655_v18 = vpop.f32.mrf.mxu1 }
 0x623   :  { %v5617_v23 = vadd.f32 %v5616_v21, %v5574_v5  ;;  %10734 = vtanh.f32 %v5615_v42  ;;  %v10394_v5 = vld [vmem:[%s13222_s6 + $0x15c] ss:$24 sps:$4 sm:$0xff]  }
 0x624   :  { %v5657_v42 = vpop.f32.mrf.mxu1  ;;  %v10496_v21 = vld [vmem:[%s13222_s6 + $0x8a4] ss:$24 sps:$4 sm:$0xff]  }
 0x625   :  { %10736 = vtanh.f32 %v5617_v23  ;;  %7703 = vmatpush1.bf16.msra.mxu0 %v10350_v6  ;;  %v4035_v6 = vrot.slane %v12358_v58, %v4034_v19 }
 0x626   :  { %10738 = vtanh.f32 %v5611_v20  ;;  %7704 = vmatprep.subr.bf16.mxu0 %v10355_v22  ;;  %v10494_v20 = vld [vmem:[%s13222_s6 + $0x8a0] ss:$24 sps:$4 sm:$0xff]   ;;  %v4031_v22 = vrot.slane %v12358_v58, %v4030_v4  ;;  %v5659_v23 = vpop.f32.mrf.mxu1 }
 0x629   :  { %7705 = vmatpush1.bf16.msra.mxu0 %v10353_v24 }
 0x62a   :  { %7706 = vmatprep.subr.bf16.mxu0 %v10358_v25  ;;  %v5656_v25 = vadd.f32 %v5655_v18, %v4035_v6  ;;  %v10401_v18 = vld [vmem:[%s13222_s6 + $0xc8] ss:$24 sps:$4 sm:$0xff]  }
 0x62d   :  { %7707 = vmatpush1.bf16.msra.mxu0 %v10356_v26 }
 0x62e   :  { %7708 = vmatprep.subr.bf16.mxu0 %v10361_v27  ;;  %v10733_v30 = vpop.eup %10732  ;;  %v10502_v27 = vld [vmem:[%s13222_s6 + $0x874] ss:$24 sps:$4 sm:$0xff]  }
 0x630   :  { %v10735_v31 = vpop.eup %10734 }
 0x631   :  { %7709 = vmatpush1.bf16.msra.mxu0 %v10359_v28  ;;  %v5654_v28 = vadd.f32 %v5653_v13, %v4031_v22  ;;  %v10397_v13 = vld [vmem:[%s13222_s6 + $0x12c] ss:$24 sps:$4 sm:$0xff]  }
 0x632   :  { %v10737_v33 = vpop.eup %10736  ;;  %7710 = vmatprep.subr.bf16.mxu0 %v10364_v29 }
 0x633   :  { %v10739_v35 = vpop.eup %10738  ;;  %v12422_v40 = vpack.c.bf16 %v10737_v33, %v10733_v30  ;;  %v10500_v30 = vld [vmem:[%s13222_s6 + $0x870] ss:$24 sps:$4 sm:$0xff]  }
 0x634   :  { %v12424_v41 = vpack.c.bf16 %v10735_v31, %v10739_v35  ;;  %v5658_v31 = vadd.f32 %v5657_v42, %v4031_v22  ;;  %v10412_v42 = vld [vmem:[%s13222_s6 + $0x3c] ss:$24 sps:$4 sm:$0xff]  }
 0x635   :  { %7687 = vmatprep.mubr.bf16.mxu1 %v12422_v40  ;;  %7711 = vmatpush1.bf16.msra.mxu0 %v10362_v32  ;;  %v10418_v22 = vld [vmem:[%s13222_s6 + $0x2dc] ss:$24 sps:$4 sm:$0xff]  }
 0x636   :  { %7688 = vmatmul.mubr.bf16.vlgmr.msra.gmra.mxu1 %v12424_v41  ;;  %7712 = vmatprep.subr.bf16.mxu0 %v10367_v34 }
 0x637   :  { %7742 = vmatpush1.bf16.msra.mxu1 %v10440_v44 }
 0x638   :  { %7743 = vmatprep.subr.bf16.mxu1 %v10448_v51  ;;  %v10506_v51 = vld [vmem:[%s13222_s6 + $0x840] ss:$24 sps:$4 sm:$0xff]  }
 0x639   :  { %7713 = vmatpush1.bf16.msra.mxu0 %v10365_v43  ;;  %v5660_v43 = vadd.f32 %v5659_v23, %v4035_v6  ;;  %v10410_v6 = vld [vmem:[%s13222_s6 + $0x38] ss:$24 sps:$4 sm:$0xff]  }
 0x63a   :  { %7714 = vmatprep.subr.bf16.mxu0 %v10370_v47  ;;  %v10416_v23 = vld [vmem:[%s13222_s6 + $0x2d8] ss:$24 sps:$4 sm:$0xff]  }
 0x63b   :  { %7744 = vmatpush1.bf16.msra.mxu1 %v10446_v49 }
 0x63c   :  { %7745 = vmatprep.subr.bf16.mxu1 %v10454_v56 }
 0x63d   :  { %7715 = vmatpush2.bf16.msra.mxu0 %v10368_v48  ;;  %v10508_v48 = vld [vmem:[%s13222_s6 + $0x844] ss:$24 sps:$4 sm:$0xff]  }
 0x63e   :  { %7716 = vmatprep.subr.bf16.mxu0 %v10373_v52 }
 0x63f   :  { %7746 = vmatpush1.bf16.msra.mxu1 %v10452_v55 }
 0x640   :  { %7747 = vmatprep.subr.bf16.mxu1 %v10460_v36  ;;  %v10518_v36 = vld [vmem:[%s13222_s6 + $0x7e0] ss:$24 sps:$4 sm:$0xff]  }
 0x641   :  { %7717 = vmatpush2.bf16.msra.mxu0 %v10371_v54 }
 0x642   :  { %7718 = vmatprep.subr.bf16.mxu0 %v10376_v57 }
 0x643   :  { %7748 = vmatpush1.bf16.msra.mxu1 %v10458_v61  ;;  %v10514_v61 = vld [vmem:[%s13222_s6 + $0x814] ss:$24 sps:$4 sm:$0xff]  }
 0x644   :  { %7749 = vmatprep.subr.bf16.mxu1 %v10466_v37  ;;  %v10530_v37 = vld [vmem:[%s13222_s6 + $0x780] ss:$24 sps:$4 sm:$0xff]  }
 0x645   :  { %7719 = vmatpush2.bf16.msra.mxu0 %v10374_v60  ;;  %v10512_v60 = vld [vmem:[%s13222_s6 + $0x810] ss:$24 sps:$4 sm:$0xff]  }
 0x646   :  { %7720 = vmatprep.subr.bf16.mxu0 %v10379_v38  ;;  %v10520_v38 = vld [vmem:[%s13222_s6 + $0x7e4] ss:$24 sps:$4 sm:$0xff]  }
 0x647   :  { %7750 = vmatpush1.bf16.msra.mxu1 %v10464_v46  ;;  %v10526_v46 = vld [vmem:[%s13222_s6 + $0x7b4] ss:$24 sps:$4 sm:$0xff]  }
 0x648   :  { %7751 = vmatprep.subr.bf16.mxu1 %v10472_v10 }
 0x649   :  { %7721 = vmatpush2.bf16.msra.mxu0 %v10377_v39  ;;  %v10524_v39 = vld [vmem:[%s13222_s6 + $0x7b0] ss:$24 sps:$4 sm:$0xff]  }
 0x64a   :  { %7722 = vmatprep.subr.bf16.mxu0 %v10382_v7  ;;  %v10532_v7 = vld [vmem:[%s13222_s6 + $0x784] ss:$24 sps:$4 sm:$0xff]  }
 0x64b   :  { %7752 = vmatpush1.bf16.msra.mxu1 %v10470_v9 }
 0x64c   :  { %7753 = vmatprep.subr.bf16.mxu1 %v10478_v63  ;;  %v10538_v63 = vld [vmem:[%s13222_s6 + $0x45c] ss:$24 sps:$4 sm:$0xff]  }
 0x64d   :  { %7723 = vmatpush2.bf16.msra.mxu0 %v10380_v8 }
 0x64e   :  { %7724 = vmatprep.subr.bf16.mxu0 %v10385_v11 }
 0x64f   :  { %7754 = vmatpush1.bf16.msra.mxu1 %v10476_v62  ;;  %v10392_v62 = vld [vmem:[%s13222_s6 + $0x158] ss:$24 sps:$4 sm:$0xff]  }
 0x650   :  { %7755 = vmatprep.subr.bf16.mxu1 %v10484_v16  ;;  %v10398_v16 = vld [vmem:[%s13222_s6 + $0xf8] ss:$24 sps:$4 sm:$0xff]  }
 0x651   :  { %7725 = vmatpush2.bf16.msra.mxu0 %v10383_v12 }
 0x652   :  { %7726 = vmatprep.subr.bf16.mxu0 %v10388_v0 }
 0x653   :  { %7756 = vmatpush1.bf16.msra.mxu1 %v10482_v15  ;;  %v10400_v15 = vld [vmem:[%s13222_s6 + $0xfc] ss:$24 sps:$4 sm:$0xff]  }
 0x654   :  { %7757 = vmatprep.subr.bf16.mxu1 %v10490_v3  ;;  %v10409_v3 = vld [vmem:[%s13222_s6 + $0x6c] ss:$24 sps:$4 sm:$0xff]  }
 0x655   :  { %7727 = vmatpush2.bf16.msra.mxu0 %v10386_v14  ;;  %v10395_v14 = vld [vmem:[%s13222_s6 + $0x128] ss:$24 sps:$4 sm:$0xff]  }
 0x656   :  { %7728 = vmatprep.subr.bf16.mxu0 %v10391_v17  ;;  %v10403_v17 = vld [vmem:[%s13222_s6 + $0xcc] ss:$24 sps:$4 sm:$0xff]  }
 0x657   :  { %7758 = vmatpush2.bf16.msra.mxu1 %v10488_v2  ;;  %v10404_v2 = vld [vmem:[%s13222_s6 + $0x98] ss:$24 sps:$4 sm:$0xff]  }
 0x658   :  { %7759 = vmatprep.subr.bf16.mxu1 %v10496_v21  ;;  %v10413_v21 = vld [vmem:[%s13222_s6 + $0x8] ss:$24 sps:$4 sm:$0xff]  }
 0x659   :  { %7729 = vmatpush2.bf16.msra.mxu0 %v10389_v1  ;;  %v10406_v1 = vld [vmem:[%s13222_s6 + $0x9c] ss:$24 sps:$4 sm:$0xff]  }
 0x65a   :  { %7784 = vmatprep.subr.bf16.mxu0 %v10394_v5  ;;  %v10407_v5 = vld [vmem:[%s13222_s6 + $0x68] ss:$24 sps:$4 sm:$0xff]  }
 0x65b   :  { %7760 = vmatpush2.bf16.msra.mxu1 %v10494_v20  ;;  %v10415_v20 = vld [vmem:[%s13222_s6 + $0xc] ss:$24 sps:$4 sm:$0xff]  }
 0x65c   :  { %v5696_v24 = vpop.f32.mrf.mxu0  ;;  %7761 = vmatprep.subr.bf16.mxu1 %v10502_v27  ;;  %v10422_v27 = vld [vmem:[%s13222_s6 + $0x278] ss:$24 sps:$4 sm:$0xff]  }
 0x65d   :  { %v5739_v26 = vpop.f32.mrf.mxu1  ;;  %v5697_v34 = vadd.f32 %v5696_v24, %v5654_v28  ;;  %v10421_v24 = vld [vmem:[%s13222_s6 + $0x2ac] ss:$24 sps:$4 sm:$0xff]  }
 0x65e   :  { %v5698_v29 = vpop.f32.mrf.mxu0  ;;  %v10427_v28 = vld [vmem:[%s13222_s6 + $0x24c] ss:$24 sps:$4 sm:$0xff]  }
 0x65f   :  { %v5699_v32 = vadd.f32 %v5698_v29, %v5656_v25  ;;  %v5741_v33 = vpop.f32.mrf.mxu1  ;;  %7762 = vmatpush2.bf16.msra.mxu1 %v10500_v30  ;;  %v5740_v55 = vadd.f32 %v5739_v26, %v5697_v34  ;;  %v10419_v25 = vld [vmem:[%s13222_s6 + $0x2a8] ss:$24 sps:$4 sm:$0xff]   ;;  %v10424_v26 = vld [vmem:[%s13222_s6 + $0x27c] ss:$24 sps:$4 sm:$0xff]  }
 0x660   :  { %v5700_v35 = vpop.f32.mrf.mxu0  ;;  %7763 = vmatprep.subr.bf16.mxu1 %v10508_v48  ;;  %v10425_v29 = vld [vmem:[%s13222_s6 + $0x248] ss:$24 sps:$4 sm:$0xff]   ;;  %v10430_v30 = vld [vmem:[%s13222_s6 + $0x21c] ss:$24 sps:$4 sm:$0xff]   ;;  %v10451_v48 = vld [vmem:[%s13222_s6 + $0x72c] ss:$24 sps:$4 sm:$0xff]  }
 0x661   :  { %v5742_v44 = vadd.f32 %v5741_v33, %v5699_v32  ;;  %v5701_v45 = vadd.f32 %v5700_v35, %v5658_v31  ;;  %v5743_v47 = vpop.f32.mrf.mxu1  ;;  %v10428_v31 = vld [vmem:[%s13222_s6 + $0x218] ss:$24 sps:$4 sm:$0xff]   ;;  %v10433_v32 = vld [vmem:[%s13222_s6 + $0x1ec] ss:$24 sps:$4 sm:$0xff]   ;;  %v10431_v33 = vld [vmem:[%s13222_s6 + $0x1e8] ss:$24 sps:$4 sm:$0xff]  }
 0x662   :  { %v5702_v49 = vpop.f32.mrf.mxu0  ;;  %v10436_v34 = vld [vmem:[%s13222_s6 + $0x1bc] ss:$24 sps:$4 sm:$0xff]   ;;  %v10434_v35 = vld [vmem:[%s13222_s6 + $0x1b8] ss:$24 sps:$4 sm:$0xff]  }
 0x663   :  { %v5744_v52 = vadd.f32 %v5743_v47, %v5701_v45  ;;  %v5703_v54 = vadd.f32 %v5702_v49, %v5660_v43  ;;  %v5745_v56 = vpop.f32.mrf.mxu1  ;;  %7764 = vmatpush2.bf16.msra.mxu1 %v10506_v51  ;;  %10740 = vtanh.f32 %v5742_v44  ;;  %v10439_v43 = vld [vmem:[%s13222_s6 + $0x18c] ss:$24 sps:$4 sm:$0xff]   ;;  %v10437_v44 = vld [vmem:[%s13222_s6 + $0x188] ss:$24 sps:$4 sm:$0xff]   ;;  %v10445_v45 = vld [vmem:[%s13222_s6 + $0x75c] ss:$24 sps:$4 sm:$0xff]  }
 0x664   :  { %7765 = vmatprep.subr.bf16.mxu1 %v10514_v61  ;;  %v10443_v47 = vld [vmem:[%s13222_s6 + $0x758] ss:$24 sps:$4 sm:$0xff]   ;;  %v10449_v49 = vld [vmem:[%s13222_s6 + $0x728] ss:$24 sps:$4 sm:$0xff]   ;;  %v10457_v51 = vld [vmem:[%s13222_s6 + $0x6fc] ss:$24 sps:$4 sm:$0xff]  }
 0x665   :  { %v5746_v57 = vadd.f32 %v5745_v56, %v5703_v54  ;;  %10742 = vtanh.f32 %v5744_v52  ;;  %v10455_v52 = vld [vmem:[%s13222_s6 + $0x6f8] ss:$24 sps:$4 sm:$0xff]   ;;  %v10463_v54 = vld [vmem:[%s13222_s6 + $0x6cc] ss:$24 sps:$4 sm:$0xff]   ;;  %v10469_v56 = vld [vmem:[%s13222_s6 + $0x69c] ss:$24 sps:$4 sm:$0xff]  }
 0x666   :  { %v10473_v61 = vld [vmem:[%s13222_s6 + $0x668] ss:$24 sps:$4 sm:$0xff]  }
 0x667   :  { %10744 = vtanh.f32 %v5746_v57  ;;  %7766 = vmatpush2.bf16.msra.mxu1 %v10512_v60  ;;  %v10467_v57 = vld [vmem:[%s13222_s6 + $0x698] ss:$24 sps:$4 sm:$0xff]   ;;  %v10475_v60 = vld [vmem:[%s13222_s6 + $0x66c] ss:$24 sps:$4 sm:$0xff]  }
 0x668   :  { %10746 = vtanh.f32 %v5740_v55  ;;  %7767 = vmatprep.subr.bf16.mxu1 %v10520_v38  ;;  %v10461_v55 = vld [vmem:[%s13222_s6 + $0x6c8] ss:$24 sps:$4 sm:$0xff]   ;;  %v10479_v38 = vld [vmem:[%s13222_s6 + $0x638] ss:$24 sps:$4 sm:$0xff]  }
 0x66b   :  { %7768 = vmatpush2.bf16.msra.mxu1 %v10518_v36  ;;  %v10481_v36 = vld [vmem:[%s13222_s6 + $0x63c] ss:$24 sps:$4 sm:$0xff]  }
 0x66c   :  { %7769 = vmatprep.subr.bf16.mxu1 %v10526_v46  ;;  %v10487_v46 = vld [vmem:[%s13222_s6 + $0x60c] ss:$24 sps:$4 sm:$0xff]  }
 0x66f   :  { %7770 = vmatpush2.bf16.msra.mxu1 %v10524_v39 }
 0x670   :  { %v10741_v8 = vpop.eup %10740  ;;  %7771 = vmatprep.subr.bf16.mxu1 %v10532_v7  ;;  %v10485_v7 = vld [vmem:[%s13222_s6 + $0x608] ss:$24 sps:$4 sm:$0xff]  }
 0x672   :  { %v10743_v9 = vpop.eup %10742 }
 0x673   :  { %7772 = vmatpush2.bf16.msra.mxu1 %v10530_v37  ;;  %v4042_v37 = vsub.s32 5, %v12337_v50 }
 0x674   :  { %v10745_v10 = vpop.eup %10744  ;;  %7827 = vmatprep.subr.bf16.mxu1 %v10538_v63  ;;  %v10491_v63 = vld [vmem:[%s13222_s6 + $0x8d8] ss:$24 sps:$4 sm:$0xff]  }
 0x675   :  { %v10747_v11 = vpop.eup %10746  ;;  %v12586_v12 = vpack.c.bf16 %v10745_v10, %v10741_v8  ;;  %v4038_v10 = vsub.s32 4, %v12337_v50 }
 0x676   :  { %v12594_v0 = vpack.c.bf16 %v10743_v9, %v10747_v11  ;;  %v10493_v9 = vld [vmem:[%s13222_s6 + $0x8dc] ss:$24 sps:$4 sm:$0xff]  }
 0x677   :  { %7730 = vmatprep.mubr.bf16.mxu0 %v12586_v12 }
 0x678   :  { %7731 = vmatmul.mubr.bf16.vlgmr.msra.gmra.mxu0 %v12594_v0 }
 0x679   :  { %7785 = vmatpush1.bf16.msra.mxu0 %v10392_v62  ;;  %7816 = vmatprep.mubr.bf16.mxu0 %v12422_v40  ;;  %v4043_v62 = vrot.slane %v12358_v58, %v4042_v37 }
 0x67a   :  { %7786 = vmatprep.subr.bf16.mxu0 %v10397_v13 }
 0x67d   :  { %7787 = vmatpush1.bf16.msra.mxu0 %v10395_v14  ;;  %v10499_v14 = vld [vmem:[%s13222_s6 + $0x8ac] ss:$24 sps:$4 sm:$0xff]  }
 0x67e   :  { %7788 = vmatprep.subr.bf16.mxu0 %v10400_v15  ;;  %v4039_v15 = vrot.slane %v12358_v58, %v4038_v10  ;;  %v10503_v58 = vld [vmem:[%s13222_s6 + $0x878] ss:$24 sps:$4 sm:$0xff]  }
 0x681   :  { %7789 = vmatpush1.bf16.msra.mxu0 %v10398_v16 }
 0x682   :  { %7790 = vmatprep.subr.bf16.mxu0 %v10403_v17 }
 0x685   :  { %7791 = vmatpush1.bf16.msra.mxu0 %v10401_v18  ;;  %v10497_v18 = vld [vmem:[%s13222_s6 + $0x8a8] ss:$24 sps:$4 sm:$0xff]  }
 0x686   :  { %7792 = vmatprep.subr.bf16.mxu0 %v10406_v1 }
 0x689   :  { %7793 = vmatpush1.bf16.msra.mxu0 %v10404_v2  ;;  %v10505_v2 = vld [vmem:[%s13222_s6 + $0x87c] ss:$24 sps:$4 sm:$0xff]  }
 0x68a   :  { %7794 = vmatprep.subr.bf16.mxu0 %v10409_v3 }
 0x68d   :  { %7795 = vmatpush1.bf16.msra.mxu0 %v10407_v5 }
 0x68e   :  { %7796 = vmatprep.subr.bf16.mxu0 %v10412_v42 }
 0x691   :  { %7797 = vmatpush1.bf16.msra.mxu0 %v10410_v6 }
 0x692   :  { %7798 = vmatprep.subr.bf16.mxu0 %v10415_v20 }
 0x695   :  { %7799 = vmatpush1.bf16.msra.mxu0 %v10413_v21 }
 0x696   :  { %7800 = vmatprep.subr.bf16.mxu0 %v10418_v22 }
 0x699   :  { %7801 = vmatpush2.bf16.msra.mxu0 %v10416_v23  ;;  %v10511_v23 = vld [vmem:[%s13222_s6 + $0x84c] ss:$24 sps:$4 sm:$0xff]  }
 0x69a   :  { %7802 = vmatprep.subr.bf16.mxu0 %v10421_v24 }
 0x69c   :  { %v5782_v39 = vpop.f32.mrf.mxu0 }
 0x69d   :  { %7803 = vmatpush2.bf16.msra.mxu0 %v10419_v25  ;;  %v5825_v11 = vpop.f32.mrf.mxu1  ;;  %v5783_v5 = vadd.f32 %v5782_v39, %v4039_v15  ;;  %v10544_v39 = vld [vmem:[%s13222_s6 + $0x42c] ss:$24 sps:$4 sm:$0xff]  }
 0x69e   :  { %7804 = vmatprep.subr.bf16.mxu0 %v10424_v26  ;;  %v5784_v8 = vpop.f32.mrf.mxu0 }
 0x69f   :  { %v5827_v16 = vpop.f32.mrf.mxu1  ;;  %v5785_v17 = vadd.f32 %v5784_v8, %v4043_v62  ;;  %v5826_v26 = vadd.f32 %v5825_v11, %v5783_v5  ;;  %v10550_v8 = vld [vmem:[%s13222_s6 + $0x3fc] ss:$24 sps:$4 sm:$0xff]   ;;  %v10566_v5 = vld [vmem:[%s13222_s6 + $0x368] ss:$24 sps:$4 sm:$0xff]  }
 0x6a0   :  { %v5786_v13 = vpop.f32.mrf.mxu0  ;;  %v10553_v11 = vld [vmem:[%s13222_s6 + $0x404] ss:$24 sps:$4 sm:$0xff]  }
 0x6a1   :  { %7805 = vmatpush2.bf16.msra.mxu0 %v10422_v27  ;;  %v5787_v3 = vadd.f32 %v5786_v13, %v4039_v15  ;;  %v5829_v42 = vpop.f32.mrf.mxu1  ;;  %v5828_v20 = vadd.f32 %v5827_v16, %v5785_v17  ;;  %v10559_v13 = vld [vmem:[%s13222_s6 + $0x3d4] ss:$24 sps:$4 sm:$0xff]   ;;  %v10557_v16 = vld [vmem:[%s13222_s6 + $0x3d0] ss:$24 sps:$4 sm:$0xff]   ;;  %v10565_v17 = vld [vmem:[%s13222_s6 + $0x3a4] ss:$24 sps:$4 sm:$0xff]  }
 0x6a2   :  { %7806 = vmatprep.subr.bf16.mxu0 %v10427_v28  ;;  %v5788_v1 = vpop.f32.mrf.mxu0  ;;  %v10562_v15 = vld [vmem:[%s13222_s6 + $0x39c] ss:$24 sps:$4 sm:$0xff]  }
 0x6a3   :  { %v5789_v21 = vadd.f32 %v5788_v1, %v4043_v62  ;;  %v5830_v24 = vadd.f32 %v5829_v42, %v5787_v3  ;;  %v5831_v27 = vpop.f32.mrf.mxu1  ;;  %v10548_v62 = vld [vmem:[%s13222_s6 + $0x3f8] ss:$24 sps:$4 sm:$0xff]   ;;  %v10568_v1 = vld [vmem:[%s13222_s6 + $0x36c] ss:$24 sps:$4 sm:$0xff]   ;;  %v10574_v42 = vld [vmem:[%s13222_s6 + $0x33c] ss:$24 sps:$4 sm:$0xff]  }
 0x6a4   :  { %v10571_v3 = vld [vmem:[%s13222_s6 + $0x374] ss:$24 sps:$4 sm:$0xff]  }
 0x6a5   :  { %7807 = vmatpush2.bf16.msra.mxu0 %v10425_v29  ;;  %v5832_v29 = vadd.f32 %v5831_v27, %v5789_v21  ;;  %v10572_v21 = vld [vmem:[%s13222_s6 + $0x338] ss:$24 sps:$4 sm:$0xff]   ;;  %v10589_v27 = vld [vmem:[%s13222_s6 + $0x5e4] ss:$24 sps:$4 sm:$0xff]  }
 0x6a6   :  { %7808 = vmatprep.subr.bf16.mxu0 %v10430_v30 }
 0x6a9   :  { %7809 = vmatpush2.bf16.msra.mxu0 %v10428_v31  ;;  %v10509_v31 = vld [vmem:[%s13222_s6 + $0x848] ss:$24 sps:$4 sm:$0xff]  }
 0x6aa   :  { %7810 = vmatprep.subr.bf16.mxu0 %v10433_v32 }
 0x6ad   :  { %7811 = vmatpush2.bf16.msra.mxu0 %v10431_v33 }
 0x6ae   :  { %7812 = vmatprep.subr.bf16.mxu0 %v10436_v34  ;;  %v10517_v34 = vld [vmem:[%s13222_s6 + $0x81c] ss:$24 sps:$4 sm:$0xff]  }
 0x6b1   :  { %7813 = vmatpush2.bf16.msra.mxu0 %v10434_v35 }
 0x6b2   :  { %7814 = vmatprep.subr.bf16.mxu0 %v10439_v43  ;;  %v10515_v43 = vld [vmem:[%s13222_s6 + $0x818] ss:$24 sps:$4 sm:$0xff]  }
 0x6b5   :  { %7815 = vmatpush2.bf16.msra.mxu0 %v10437_v44  ;;  %v10523_v44 = vld [vmem:[%s13222_s6 + $0x7ec] ss:$24 sps:$4 sm:$0xff]  }
 0x6b6   :  { %7870 = vmatprep.subr.bf16.mxu0 %v10445_v45  ;;  %v10521_v45 = vld [vmem:[%s13222_s6 + $0x7e8] ss:$24 sps:$4 sm:$0xff]  }
 0x6b8   :  { %7817 = vmatmul.mubr.bf16.vlgmr.msra.gmra.mxu0 %v12424_v41 }
 0x6b9   :  { %7871 = vmatpush1.bf16.msra.mxu0 %v10443_v47  ;;  %v10529_v47 = vld [vmem:[%s13222_s6 + $0x7bc] ss:$24 sps:$4 sm:$0xff]  }
 0x6ba   :  { %7872 = vmatprep.subr.bf16.mxu0 %v10451_v48  ;;  %v10527_v48 = vld [vmem:[%s13222_s6 + $0x7b8] ss:$24 sps:$4 sm:$0xff]  }
 0x6bd   :  { %7873 = vmatpush1.bf16.msra.mxu0 %v10449_v49  ;;  %v10535_v49 = vld [vmem:[%s13222_s6 + $0x78c] ss:$24 sps:$4 sm:$0xff]  }
 0x6be   :  { %7874 = vmatprep.subr.bf16.mxu0 %v10457_v51 }
 0x6c1   :  { %7875 = vmatpush1.bf16.msra.mxu0 %v10455_v52 }
 0x6c2   :  { %7876 = vmatprep.subr.bf16.mxu0 %v10463_v54  ;;  %v10533_v54 = vld [vmem:[%s13222_s6 + $0x788] ss:$24 sps:$4 sm:$0xff]  }
 0x6c5   :  { %7877 = vmatpush1.bf16.msra.mxu0 %v10461_v55 }
 0x6c6   :  { %7878 = vmatprep.subr.bf16.mxu0 %v10469_v56 }
 0x6c9   :  { %7879 = vmatpush1.bf16.msra.mxu0 %v10467_v57 }
 0x6ca   :  { %7880 = vmatprep.subr.bf16.mxu0 %v10475_v60  ;;  %v10536_v60 = vld [vmem:[%s13222_s6 + $0x458] ss:$24 sps:$4 sm:$0xff]  }
 0x6cd   :  { %7881 = vmatpush1.bf16.msra.mxu0 %v10473_v61 }
 0x6ce   :  { %7882 = vmatprep.subr.bf16.mxu0 %v10481_v36  ;;  %v10541_v36 = vld [vmem:[%s13222_s6 + $0x464] ss:$24 sps:$4 sm:$0xff]  }
 0x6d1   :  { %7883 = vmatpush1.bf16.msra.mxu0 %v10479_v38  ;;  %v10539_v38 = vld [vmem:[%s13222_s6 + $0x460] ss:$24 sps:$4 sm:$0xff]  }
 0x6d2   :  { %7884 = vmatprep.subr.bf16.mxu0 %v10487_v46  ;;  %v10547_v46 = vld [vmem:[%s13222_s6 + $0x434] ss:$24 sps:$4 sm:$0xff]  }
 0x6d5   :  { %7885 = vmatpush1.bf16.msra.mxu0 %v10485_v7  ;;  %v10542_v7 = vld [vmem:[%s13222_s6 + $0x428] ss:$24 sps:$4 sm:$0xff]  }
 0x6d6   :  { %7886 = vmatprep.subr.bf16.mxu0 %v10493_v9  ;;  %v10545_v9 = vld [vmem:[%s13222_s6 + $0x430] ss:$24 sps:$4 sm:$0xff]  }
 0x6d9   :  { %7887 = vmatpush2.bf16.msra.mxu0 %v10491_v63  ;;  %v10551_v63 = vld [vmem:[%s13222_s6 + $0x400] ss:$24 sps:$4 sm:$0xff]  }
 0x6da   :  { %7888 = vmatprep.subr.bf16.mxu0 %v10499_v14  ;;  %v10554_v14 = vld [vmem:[%s13222_s6 + $0x3c8] ss:$24 sps:$4 sm:$0xff]  }
 0x6dc   :  { %v5868_v6 = vpop.f32.mrf.mxu0 }
 0x6dd   :  { %7889 = vmatpush2.bf16.msra.mxu0 %v10497_v18  ;;  %v5869_v32 = vadd.f32 %v5868_v6, %v5826_v26  ;;  %v10560_v18 = vld [vmem:[%s13222_s6 + $0x398] ss:$24 sps:$4 sm:$0xff]  }
 0x6de   :  { %v5870_v22 = vpop.f32.mrf.mxu0  ;;  %7890 = vmatprep.subr.bf16.mxu0 %v10505_v2  ;;  %v10563_v2 = vld [vmem:[%s13222_s6 + $0x3a0] ss:$24 sps:$4 sm:$0xff]   ;;  %v10569_v6 = vld [vmem:[%s13222_s6 + $0x370] ss:$24 sps:$4 sm:$0xff]  }
 0x6df   :  { %v5871_v25 = vadd.f32 %v5870_v22, %v5828_v20  ;;  %v10577_v20 = vld [vmem:[%s13222_s6 + $0x344] ss:$24 sps:$4 sm:$0xff]   ;;  %v10575_v22 = vld [vmem:[%s13222_s6 + $0x340] ss:$24 sps:$4 sm:$0xff]   ;;  %v10581_v26 = vld [vmem:[%s13222_s6 + $0x310] ss:$24 sps:$4 sm:$0xff]  }
 0x6e0   :  { %v5872_v28 = vpop.f32.mrf.mxu0 }
 0x6e1   :  { %v5873_v30 = vadd.f32 %v5872_v28, %v5830_v24  ;;  %7891 = vmatpush2.bf16.msra.mxu0 %v10503_v58  ;;  %10748 = vtanh.f32 %v5871_v25  ;;  %v10580_v58 = vld [vmem:[%s13222_s6 + $0x30c] ss:$24 sps:$4 sm:$0xff]   ;;  %v10578_v24 = vld [vmem:[%s13222_s6 + $0x308] ss:$24 sps:$4 sm:$0xff]   ;;  %v10586_v25 = vld [vmem:[%s13222_s6 + $0x5dc] ss:$24 sps:$4 sm:$0xff]  }
 0x6e2   :  { %v5874_v33 = vpop.f32.mrf.mxu0  ;;  %7892 = vmatprep.subr.bf16.mxu0 %v10511_v23  ;;  %v10583_v23 = vld [vmem:[%s13222_s6 + $0x314] ss:$24 sps:$4 sm:$0xff]   ;;  %v10584_v28 = vld [vmem:[%s13222_s6 + $0x5d8] ss:$24 sps:$4 sm:$0xff]  }
 0x6e3   :  { %v5875_v35 = vadd.f32 %v5874_v33, %v5832_v29  ;;  %10750 = vtanh.f32 %v5873_v30  ;;  %v10592_v29 = vld [vmem:[%s13222_s6 + $0x5ac] ss:$24 sps:$4 sm:$0xff]   ;;  %v10587_v30 = vld [vmem:[%s13222_s6 + $0x5e0] ss:$24 sps:$4 sm:$0xff]   ;;  %v10598_v33 = vld [vmem:[%s13222_s6 + $0x57c] ss:$24 sps:$4 sm:$0xff]  }
 0x6e5   :  { %10752 = vtanh.f32 %v5875_v35  ;;  %7893 = vmatpush2.bf16.msra.mxu0 %v10509_v31  ;;  %v10595_v31 = vld [vmem:[%s13222_s6 + $0x5b4] ss:$24 sps:$4 sm:$0xff]   ;;  %v10601_v35 = vld [vmem:[%s13222_s6 + $0x584] ss:$24 sps:$4 sm:$0xff]  }
 0x6e6   :  { %10754 = vtanh.f32 %v5869_v32  ;;  %7894 = vmatprep.subr.bf16.mxu0 %v10517_v34  ;;  %v10590_v32 = vld [vmem:[%s13222_s6 + $0x5a8] ss:$24 sps:$4 sm:$0xff]  }
 0x6e7   :  { %v10593_v34 = vld [vmem:[%s13222_s6 + $0x5b0] ss:$24 sps:$4 sm:$0xff]  }
 0x6e9   :  { %7895 = vmatpush2.bf16.msra.mxu0 %v10515_v43  ;;  %v10596_v43 = vld [vmem:[%s13222_s6 + $0x578] ss:$24 sps:$4 sm:$0xff]  }
 0x6ea   :  { %7896 = vmatprep.subr.bf16.mxu0 %v10523_v44  ;;  %v10604_v44 = vld [vmem:[%s13222_s6 + $0x54c] ss:$24 sps:$4 sm:$0xff]  }
 0x6ed   :  { %7897 = vmatpush2.bf16.msra.mxu0 %v10521_v45  ;;  %v10599_v45 = vld [vmem:[%s13222_s6 + $0x580] ss:$24 sps:$4 sm:$0xff]  }
 0x6ee   :  { %7898 = vmatprep.subr.bf16.mxu0 %v10529_v47  ;;  %v10749_v51 = vpop.eup %10748  ;;  %v10607_v47 = vld [vmem:[%s13222_s6 + $0x554] ss:$24 sps:$4 sm:$0xff]  }
 0x6f0   :  { %v10751_v52 = vpop.eup %10750 }
 0x6f1   :  { %7899 = vmatpush2.bf16.msra.mxu0 %v10527_v48  ;;  %v10602_v48 = vld [vmem:[%s13222_s6 + $0x548] ss:$24 sps:$4 sm:$0xff]  }
 0x6f2   :  { %v10753_v55 = vpop.eup %10752  ;;  %7900 = vmatprep.subr.bf16.mxu0 %v10535_v49  ;;  %v10610_v49 = vld [vmem:[%s13222_s6 + $0x51c] ss:$24 sps:$4 sm:$0xff]  }
 0x6f3   :  { %v10755_v56 = vpop.eup %10754  ;;  %v12794_v57 = vpack.c.bf16 %v10753_v55, %v10749_v51  ;;  %v10605_v51 = vld [vmem:[%s13222_s6 + $0x550] ss:$24 sps:$4 sm:$0xff]   ;;  %v10616_v55 = vld [vmem:[%s13222_s6 + $0x4ec] ss:$24 sps:$4 sm:$0xff]  }
 0x6f4   :  { %v12799_v61 = vpack.c.bf16 %v10751_v52, %v10755_v56  ;;  %v10613_v52 = vld [vmem:[%s13222_s6 + $0x524] ss:$24 sps:$4 sm:$0xff]   ;;  %v10611_v56 = vld [vmem:[%s13222_s6 + $0x520] ss:$24 sps:$4 sm:$0xff]  }
 0x6f5   :  { %7901 = vmatpush2.bf16.msra.mxu0 %v10533_v54  ;;  %7773 = vmatprep.mubr.bf16.mxu1 %v12794_v57  ;;  %v10608_v54 = vld [vmem:[%s13222_s6 + $0x518] ss:$24 sps:$4 sm:$0xff]  }
 0x6f6   :  { %7902 = vmatprep.mubr.bf16.mxu0 %v12794_v57  ;;  %7774 = vmatmul.mubr.bf16.vlgmr.msra.gmra.mxu1 %v12799_v61 }
 0x6f7   :  { %7828 = vmatpush1.bf16.msra.mxu1 %v10536_v60  ;;  %7859 = vmatprep.mubr.bf16.mxu1 %v12586_v12  ;;  %v10619_v60 = vld [vmem:[%s13222_s6 + $0x4f4] ss:$24 sps:$4 sm:$0xff]  }
 0x6f8   :  { %7903 = vmatmul.mubr.bf16.vlgmr.msra.gmra.mxu0 %v12799_v61  ;;  %7956 = vmatprep.subr.bf16.mxu0 %v10541_v36  ;;  %v10614_v36 = vld [vmem:[%s13222_s6 + $0x4e8] ss:$24 sps:$4 sm:$0xff]  }
 0x6f9   :  { %7957 = vmatpush1.bf16.msra.mxu0 %v10539_v38  ;;  %7988 = vmatprep.mubr.bf16.mxu0 %v12586_v12  ;;  %v10556_v12 = vld [vmem:[%s13222_s6 + $0x3cc] ss:$24 sps:$4 sm:$0xff]   ;;  %v10622_v38 = vld [vmem:[%s13222_s6 + $0x4bc] ss:$24 sps:$4 sm:$0xff]  }
 0x6fa   :  { %7829 = vmatprep.subr.bf16.mxu1 %v10544_v39  ;;  %7958 = vmatprep.subr.bf16.mxu0 %v10547_v46  ;;  %v10617_v39 = vld [vmem:[%s13222_s6 + $0x4f0] ss:$24 sps:$4 sm:$0xff]   ;;  %v10625_v46 = vld [vmem:[%s13222_s6 + $0x4c4] ss:$24 sps:$4 sm:$0xff]  }
 0x6fb   :  { %7830 = vmatpush1.bf16.msra.mxu1 %v10542_v7  ;;  %v10620_v7 = vld [vmem:[%s13222_s6 + $0x4b8] ss:$24 sps:$4 sm:$0xff]  }
 0x6fc   :  { %7831 = vmatprep.subr.bf16.mxu1 %v10550_v8  ;;  %v10628_v8 = vld [vmem:[%s13222_s6 + $0x48c] ss:$24 sps:$4 sm:$0xff]  }
 0x6fd   :  { %7959 = vmatpush1.bf16.msra.mxu0 %v10545_v9  ;;  %v10623_v9 = vld [vmem:[%s13222_s6 + $0x4c0] ss:$24 sps:$4 sm:$0xff]  }
 0x6fe   :  { %7960 = vmatprep.subr.bf16.mxu0 %v10553_v11  ;;  %v10631_v11 = vld [vmem:[%s13222_s6 + $0x494] ss:$24 sps:$4 sm:$0xff]  }
 0x6ff   :  { %7832 = vmatpush1.bf16.msra.mxu1 %v10548_v62  ;;  %v10626_v62 = vld [vmem:[%s13222_s6 + $0x488] ss:$24 sps:$4 sm:$0xff]  }
 0x700   :  { %7833 = vmatprep.subr.bf16.mxu1 %v10556_v12  ;;  %v10634_v12 = vld [vmem:[%s13222_s6 + $0x164] ss:$24 sps:$4 sm:$0xff]  }
 0x701   :  { %7961 = vmatpush1.bf16.msra.mxu0 %v10551_v63  ;;  %v10629_v63 = vld [vmem:[%s13222_s6 + $0x490] ss:$24 sps:$4 sm:$0xff]  }
 0x702   :  { %7962 = vmatprep.subr.bf16.mxu0 %v10559_v13  ;;  %v10632_v13 = vld [vmem:[%s13222_s6 + $0x160] ss:$24 sps:$4 sm:$0xff]  }
 0x703   :  { %7834 = vmatpush1.bf16.msra.mxu1 %v10554_v14  ;;  %v10637_v14 = vld [vmem:[%s13222_s6 + $0x134] ss:$24 sps:$4 sm:$0xff]  }
 0x704   :  { %7835 = vmatprep.subr.bf16.mxu1 %v10562_v15  ;;  %v10635_v15 = vld [vmem:[%s13222_s6 + $0x130] ss:$24 sps:$4 sm:$0xff]  }
 0x705   :  { %7963 = vmatpush1.bf16.msra.mxu0 %v10557_v16  ;;  %v10640_v16 = vld [vmem:[%s13222_s6 + $0x104] ss:$24 sps:$4 sm:$0xff]  }
 0x706   :  { %7964 = vmatprep.subr.bf16.mxu0 %v10565_v17  ;;  %v10638_v17 = vld [vmem:[%s13222_s6 + $0x100] ss:$24 sps:$4 sm:$0xff]  }
 0x707   :  { %7836 = vmatpush1.bf16.msra.mxu1 %v10560_v18  ;;  %v10646_v18 = vld [vmem:[%s13222_s6 + $0xa4] ss:$24 sps:$4 sm:$0xff]  }
 0x708   :  { %7837 = vmatprep.subr.bf16.mxu1 %v10568_v1  ;;  %v10644_v1 = vld [vmem:[%s13222_s6 + $0xa0] ss:$24 sps:$4 sm:$0xff]  }
 0x709   :  { %7965 = vmatpush1.bf16.msra.mxu0 %v10563_v2  ;;  %v10649_v2 = vld [vmem:[%s13222_s6 + $0x74] ss:$24 sps:$4 sm:$0xff]  }
 0x70a   :  { %7966 = vmatprep.subr.bf16.mxu0 %v10571_v3  ;;  %v10647_v3 = vld [vmem:[%s13222_s6 + $0x70] ss:$24 sps:$4 sm:$0xff]  }
 0x70b   :  { %7838 = vmatpush1.bf16.msra.mxu1 %v10566_v5  ;;  %v10652_v5 = vld [vmem:[%s13222_s6 + $0x44] ss:$24 sps:$4 sm:$0xff]  }
 0x70c   :  { %7839 = vmatprep.subr.bf16.mxu1 %v10574_v42  ;;  %v10650_v42 = vld [vmem:[%s13222_s6 + $0x40] ss:$24 sps:$4 sm:$0xff]  }
 0x70d   :  { %7967 = vmatpush1.bf16.msra.mxu0 %v10569_v6  ;;  %v10655_v6 = vld [vmem:[%s13222_s6 + $0x14] ss:$24 sps:$4 sm:$0xff]  }
 0x70e   :  { %7968 = vmatprep.subr.bf16.mxu0 %v10577_v20  ;;  %v10653_v20 = vld [vmem:[%s13222_s6 + $0x10] ss:$24 sps:$4 sm:$0xff]  }
 0x70f   :  { %7840 = vmatpush1.bf16.msra.mxu1 %v10572_v21  ;;  %v10658_v21 = vld [vmem:[%s13222_s6 + $0x2e4] ss:$24 sps:$4 sm:$0xff]  }
 0x710   :  { %7841 = vmatprep.subr.bf16.mxu1 %v10580_v58  ;;  %v10656_v58 = vld [vmem:[%s13222_s6 + $0x2e0] ss:$24 sps:$4 sm:$0xff]  }
 0x711   :  { %7969 = vmatpush1.bf16.msra.mxu0 %v10575_v22  ;;  %v10661_v22 = vld [vmem:[%s13222_s6 + $0x2b4] ss:$24 sps:$4 sm:$0xff]  }
 0x712   :  { %7970 = vmatprep.subr.bf16.mxu0 %v10583_v23  ;;  %v10659_v23 = vld [vmem:[%s13222_s6 + $0x2b0] ss:$24 sps:$4 sm:$0xff]  }
 0x713   :  { %7842 = vmatpush1.bf16.msra.mxu1 %v10578_v24  ;;  %v10664_v24 = vld [vmem:[%s13222_s6 + $0x284] ss:$24 sps:$4 sm:$0xff]  }
 0x714   :  { %7843 = vmatprep.subr.bf16.mxu1 %v10586_v25  ;;  %v10662_v25 = vld [vmem:[%s13222_s6 + $0x280] ss:$24 sps:$4 sm:$0xff]  }
 0x715   :  { %7971 = vmatpush1.bf16.msra.mxu0 %v10581_v26  ;;  %v10667_v26 = vld [vmem:[%s13222_s6 + $0x254] ss:$24 sps:$4 sm:$0xff]  }
 0x716   :  { %7972 = vmatprep.subr.bf16.mxu0 %v10589_v27  ;;  %v10665_v27 = vld [vmem:[%s13222_s6 + $0x250] ss:$24 sps:$4 sm:$0xff]  }
 0x717   :  { %7844 = vmatpush2.bf16.msra.mxu1 %v10584_v28  ;;  %v10670_v28 = vld [vmem:[%s13222_s6 + $0x224] ss:$24 sps:$4 sm:$0xff]  }
 0x718   :  { %7845 = vmatprep.subr.bf16.mxu1 %v10592_v29  ;;  %v10668_v29 = vld [vmem:[%s13222_s6 + $0x220] ss:$24 sps:$4 sm:$0xff]  }
 0x719   :  { %7973 = vmatpush2.bf16.msra.mxu0 %v10587_v30  ;;  %v10673_v30 = vld [vmem:[%s13222_s6 + $0x1f4] ss:$24 sps:$4 sm:$0xff]  }
 0x71a   :  { %7974 = vmatprep.subr.bf16.mxu0 %v10595_v31  ;;  %v10671_v31 = vld [vmem:[%s13222_s6 + $0x1f0] ss:$24 sps:$4 sm:$0xff]  }
 0x71b   :  { %7846 = vmatpush2.bf16.msra.mxu1 %v10590_v32  ;;  %v10676_v32 = vld [vmem:[%s13222_s6 + $0x1c4] ss:$24 sps:$4 sm:$0xff]  }
 0x71c   :  { %7847 = vmatprep.subr.bf16.mxu1 %v10598_v33  ;;  %v10674_v33 = vld [vmem:[%s13222_s6 + $0x1c0] ss:$24 sps:$4 sm:$0xff]  }
 0x71d   :  { %7975 = vmatpush2.bf16.msra.mxu0 %v10593_v34  ;;  %v10679_v34 = vld [vmem:[%s13222_s6 + $0x194] ss:$24 sps:$4 sm:$0xff]  }
 0x71e   :  { %7976 = vmatprep.subr.bf16.mxu0 %v10601_v35  ;;  %v10677_v35 = vld [vmem:[%s13222_s6 + $0x190] ss:$24 sps:$4 sm:$0xff]  }
 0x71f   :  { %7848 = vmatpush2.bf16.msra.mxu1 %v10596_v43  ;;  %v10682_v43 = vld [vmem:[%s13222_s6 + $0x764] ss:$24 sps:$4 sm:$0xff]  }
 0x720   :  { %7849 = vmatprep.subr.bf16.mxu1 %v10604_v44  ;;  %v10680_v44 = vld [vmem:[%s13222_s6 + $0x760] ss:$24 sps:$4 sm:$0xff]  }
 0x721   :  { %7977 = vmatpush2.bf16.msra.mxu0 %v10599_v45  ;;  %v10685_v45 = vld [vmem:[%s13222_s6 + $0x734] ss:$24 sps:$4 sm:$0xff]  }
 0x722   :  { %7978 = vmatprep.subr.bf16.mxu0 %v10607_v47  ;;  %v10683_v47 = vld [vmem:[%s13222_s6 + $0x730] ss:$24 sps:$4 sm:$0xff]  }
 0x723   :  { %7850 = vmatpush2.bf16.msra.mxu1 %v10602_v48  ;;  %v10688_v48 = vld [vmem:[%s13222_s6 + $0x704] ss:$24 sps:$4 sm:$0xff]  }
 0x724   :  { %7851 = vmatprep.subr.bf16.mxu1 %v10610_v49  ;;  %v10686_v49 = vld [vmem:[%s13222_s6 + $0x700] ss:$24 sps:$4 sm:$0xff]  }
 0x725   :  { %7979 = vmatpush2.bf16.msra.mxu0 %v10605_v51  ;;  %v10694_v51 = vld [vmem:[%s13222_s6 + $0x6a4] ss:$24 sps:$4 sm:$0xff]  }
 0x726   :  { %7980 = vmatprep.subr.bf16.mxu0 %v10613_v52  ;;  %v10692_v52 = vld [vmem:[%s13222_s6 + $0x6a0] ss:$24 sps:$4 sm:$0xff]  }
 0x727   :  { %7852 = vmatpush2.bf16.msra.mxu1 %v10608_v54  ;;  %v10697_v54 = vld [vmem:[%s13222_s6 + $0x674] ss:$24 sps:$4 sm:$0xff]  }
 0x728   :  { %7853 = vmatprep.subr.bf16.mxu1 %v10616_v55  ;;  %v10695_v55 = vld [vmem:[%s13222_s6 + $0x670] ss:$24 sps:$4 sm:$0xff]  }
 0x729   :  { %7981 = vmatpush2.bf16.msra.mxu0 %v10611_v56  ;;  %v10700_v56 = vld [vmem:[%s13222_s6 + $0x644] ss:$24 sps:$4 sm:$0xff]  }
 0x72a   :  { %7982 = vmatprep.subr.bf16.mxu0 %v10619_v60  ;;  %v10698_v60 = vld [vmem:[%s13222_s6 + $0x640] ss:$24 sps:$4 sm:$0xff]  }
 0x72b   :  { %7854 = vmatpush2.bf16.msra.mxu1 %v10614_v36  ;;  %v10703_v36 = vld [vmem:[%s13222_s6 + $0x614] ss:$24 sps:$4 sm:$0xff]  }
 0x72c   :  { %7855 = vmatprep.subr.bf16.mxu1 %v10622_v38  ;;  %v10701_v38 = vld [vmem:[%s13222_s6 + $0x610] ss:$24 sps:$4 sm:$0xff]  }
 0x72d   :  { %7983 = vmatpush2.bf16.msra.mxu0 %v10617_v39  ;;  %v10706_v39 = vld [vmem:[%s13222_s6 + $0x8e4] ss:$24 sps:$4 sm:$0xff]  }
 0x72e   :  { %7984 = vmatprep.subr.bf16.mxu0 %v10625_v46  ;;  %v10704_v46 = vld [vmem:[%s13222_s6 + $0x8e0] ss:$24 sps:$4 sm:$0xff]  }
 0x72f   :  { %7856 = vmatpush2.bf16.msra.mxu1 %v10620_v7  ;;  %v10709_v7 = vld [vmem:[%s13222_s6 + $0x8b4] ss:$24 sps:$4 sm:$0xff]  }
 0x730   :  { %7857 = vmatprep.subr.bf16.mxu1 %v10628_v8  ;;  %v10707_v8 = vld [vmem:[%s13222_s6 + $0x8b0] ss:$24 sps:$4 sm:$0xff]  }
 0x731   :  { %7985 = vmatpush2.bf16.msra.mxu0 %v10623_v9  ;;  %v10712_v9 = vld [vmem:[%s13222_s6 + $0x884] ss:$24 sps:$4 sm:$0xff]  }
 0x732   :  { %7986 = vmatprep.subr.bf16.mxu0 %v10631_v11  ;;  %v10710_v11 = vld [vmem:[%s13222_s6 + $0x880] ss:$24 sps:$4 sm:$0xff]  }
 0x733   :  { %7858 = vmatpush2.bf16.msra.mxu1 %v10626_v62  ;;  %v10715_v62 = vld [vmem:[%s13222_s6 + $0x854] ss:$24 sps:$4 sm:$0xff]  }
 0x734   :  { %7913 = vmatprep.subr.bf16.mxu1 %v10634_v12  ;;  %v10713_v12 = vld [vmem:[%s13222_s6 + $0x850] ss:$24 sps:$4 sm:$0xff]  }
 0x735   :  { %7987 = vmatpush2.bf16.msra.mxu0 %v10629_v63  ;;  %v10718_v63 = vld [vmem:[%s13222_s6 + $0x824] ss:$24 sps:$4 sm:$0xff]  }
 0x736   :  { %7860 = vmatmul.mubr.bf16.vlgmr.msra.gmra.mxu1 %v12594_v0 }
 0x737   :  { %7914 = vmatpush1.bf16.msra.mxu1 %v10632_v13  ;;  %7945 = vmatprep.mubr.bf16.mxu1 %v12422_v40  ;;  %v10643_v40 = vld [vmem:[%s13222_s6 + $0xd4] ss:$24 sps:$4 sm:$0xff]   ;;  %v10716_v13 = vld [vmem:[%s13222_s6 + $0x820] ss:$24 sps:$4 sm:$0xff]  }
 0x738   :  { %7989 = vmatmul.mubr.bf16.vlgmr.msra.gmra.mxu0 %v12594_v0  ;;  %7915 = vmatprep.subr.bf16.mxu1 %v10637_v14  ;;  %v10641_v0 = vld [vmem:[%s13222_s6 + $0xd0] ss:$24 sps:$4 sm:$0xff]   ;;  %v10721_v14 = vld [vmem:[%s13222_s6 + $0x7f4] ss:$24 sps:$4 sm:$0xff]  }
 0x73b   :  { %7916 = vmatpush1.bf16.msra.mxu1 %v10635_v15  ;;  %v10719_v15 = vld [vmem:[%s13222_s6 + $0x7f0] ss:$24 sps:$4 sm:$0xff]  }
 0x73c   :  { %7917 = vmatprep.subr.bf16.mxu1 %v10640_v16  ;;  %v7689_v16 = vpop.f32.mrf.mxu1 }
 0x73f   :  { %7918 = vmatpush1.bf16.msra.mxu1 %v10638_v17  ;;  %v10724_v17 = vld [vmem:[%s13222_s6 + $0x7c4] ss:$24 sps:$4 sm:$0xff]  }
 0x740   :  { %7919 = vmatprep.subr.bf16.mxu1 %v10643_v40  ;;  %v10722_v40 = vld [vmem:[%s13222_s6 + $0x7c0] ss:$24 sps:$4 sm:$0xff]  }
 0x743   :  { %7920 = vmatpush1.bf16.msra.mxu1 %v10641_v0  ;;  %v13187_v0 = vld [vmem:[%s13223_s7] sm:$0x3f] }
 0x744   :  { %7921 = vmatprep.subr.bf16.mxu1 %v10646_v18  ;;  %v7691_v18 = vpop.f32.mrf.mxu1 }
 0x747   :  { %7922 = vmatpush1.bf16.msra.mxu1 %v10644_v1  ;;  %v7732_v1 = vpop.f32.mrf.mxu0 }
 0x748   :  { %7923 = vmatprep.subr.bf16.mxu1 %v10649_v2  ;;  %v10727_v2 = vld [vmem:[%s13222_s6 + $0x794] ss:$24 sps:$4 sm:$0xff]  }
 0x74b   :  { %7924 = vmatpush1.bf16.msra.mxu1 %v10647_v3  ;;  %v6188_v3 = vrot.slane %v13187_v0, %v4022_v59 }
 0x74c   :  { %7925 = vmatprep.subr.bf16.mxu1 %v10652_v5  ;;  %v10725_v5 = vld [vmem:[%s13222_s6 + $0x790] ss:$24 sps:$4 sm:$0xff]  }
 0x74f   :  { %7926 = vmatpush1.bf16.msra.mxu1 %v10650_v42  ;;  %v7693_v42 = vpop.f32.mrf.mxu1 }
 0x750   :  { %7927 = vmatprep.subr.bf16.mxu1 %v10655_v6  ;;  %v7734_v6 = vpop.f32.mrf.mxu0 }
 0x753   :  { %7928 = vmatpush1.bf16.msra.mxu1 %v10653_v20  ;;  %v6192_v20 = vrot.slane %v13187_v0, %v4026_v53 }
 0x754   :  { %7929 = vmatprep.subr.bf16.mxu1 %v10658_v21  ;;  %v7690_v21 = vadd.f32 %v7689_v16, %v6188_v3  ;;  %v6208_v16 = vrot.slane %v13187_v0, %v4042_v37 }
 0x757   :  { %7930 = vmatpush2.bf16.msra.mxu1 %v10656_v58  ;;  %v7695_v58 = vpop.f32.mrf.mxu1 }
 0x758   :  { %7931 = vmatprep.subr.bf16.mxu1 %v10661_v22  ;;  %v7736_v22 = vpop.f32.mrf.mxu0 }
 0x75b   :  { %7932 = vmatpush2.bf16.msra.mxu1 %v10659_v23  ;;  %v7692_v23 = vadd.f32 %v7691_v18, %v6192_v20 }
 0x75c   :  { %7933 = vmatprep.subr.bf16.mxu1 %v10664_v24  ;;  %v7733_v24 = vadd.f32 %v7732_v1, %v7690_v21 }
 0x75f   :  { %7934 = vmatpush2.bf16.msra.mxu1 %v10662_v25  ;;  %v7694_v25 = vadd.f32 %v7693_v42, %v6188_v3 }
 0x760   :  { %7935 = vmatprep.subr.bf16.mxu1 %v10667_v26  ;;  %v7735_v26 = vadd.f32 %v7734_v6, %v7692_v23 }
 0x763   :  { %7936 = vmatpush2.bf16.msra.mxu1 %v10665_v27 }
 0x764   :  { %7937 = vmatprep.subr.bf16.mxu1 %v10670_v28  ;;  %v7738_v28 = vpop.f32.mrf.mxu0 }
 0x767   :  { %7938 = vmatpush2.bf16.msra.mxu1 %v10668_v29 }
 0x768   :  { %7939 = vmatprep.subr.bf16.mxu1 %v10673_v30  ;;  %v7696_v30 = vadd.f32 %v7695_v58, %v6192_v20 }
 0x76a   :  { %v7739_v53 = vadd.f32 %v7738_v28, %v7696_v30 }
 0x76b   :  { %7940 = vmatpush2.bf16.msra.mxu1 %v10671_v31  ;;  %v7737_v31 = vadd.f32 %v7736_v22, %v7694_v25 }
 0x76c   :  { %7941 = vmatprep.subr.bf16.mxu1 %v10676_v32 }
 0x76f   :  { %7942 = vmatpush2.bf16.msra.mxu1 %v10674_v33 }
 0x770   :  { %7943 = vmatprep.subr.bf16.mxu1 %v10679_v34 }
 0x773   :  { %7944 = vmatpush2.bf16.msra.mxu1 %v10677_v35 }
 0x774   :  { %7999 = vmatprep.subr.bf16.mxu1 %v10682_v43 }
 0x776   :  { %7946 = vmatmul.mubr.bf16.vlgmr.msra.gmra.mxu1 %v12424_v41  ;;  %v10691_v41 = vld [vmem:[%s13222_s6 + $0x6d4] ss:$24 sps:$4 sm:$0xff]  }
 0x777   :  { %8000 = vmatpush1.bf16.msra.mxu1 %v10680_v44  ;;  %8031 = vmatprep.mubr.bf16.mxu1 %v12794_v57  ;;  %v10689_v57 = vld [vmem:[%s13222_s6 + $0x6d0] ss:$24 sps:$4 sm:$0xff]   ;;  %s10863_s6 = smov [#allocation8]  }
 0x778   :  { %8001 = vmatprep.subr.bf16.mxu1 %v10685_v45  ;;  %v7818_v44 = vpop.f32.mrf.mxu0  ;;  %s8060_s7 = sshll.u32 %s10863_s6, 4  ;;  %s8061_s7 = int_to_ptr.vmem [resolvable:$true] %s8060_s7 }
 0x779   :  { %s10780_s29 = scalar_lea.vmem %s8061_s7, 1536  ;;  %p10785_p0 = scmp.lt.s32.totalorder %s8061_s7, %s8061_s7 }
 0x77a   :  { %p10781_p10 = scmp.ne.s32.totalorder %s8061_s7, %s10780_s29  ;;  %p10786_p1 = scmp.lt.s32.totalorder %s10780_s29, %s10780_s29 }
 0x77b   :  { %8002 = vmatpush1.bf16.msra.mxu1 %v10683_v47 }
 0x77c   :  { %8003 = vmatprep.subr.bf16.mxu1 %v10688_v48  ;;  %v6196_v48 = vrot.slane %v13187_v0, %v4030_v4  ;;  %p10787_p2 = por %p10786_p1, %p10785_p0 }
 0x77e   :  { %p10788_p3 = pnand %p10787_p2, %p10781_p10 }
 0x77f   :  { %8004 = vmatpush1.bf16.msra.mxu1 %v10686_v49 }
 0x780   :  { %8005 = vmatprep.subr.bf16.mxu1 %v10691_v41  ;;  %v6200_v41 = vrot.slane %v13187_v0, %v4034_v19 }
 0x783   :  { %8006 = vmatpush1.bf16.msra.mxu1 %v10689_v57  ;;  %v7819_v57 = vadd.f32 %v7818_v44, %v6196_v48 }
 0x784   :  { %8007 = vmatprep.subr.bf16.mxu1 %v10694_v51 }
 0x787   :  { %8008 = vmatpush1.bf16.msra.mxu1 %v10692_v52 }
 0x788   :  { %8009 = vmatprep.subr.bf16.mxu1 %v10697_v54 }
 0x78b   :  { %8010 = vmatpush1.bf16.msra.mxu1 %v10695_v55 }
 0x78c   :  { %8011 = vmatprep.subr.bf16.mxu1 %v10700_v56 }
 0x78f   :  { %8012 = vmatpush1.bf16.msra.mxu1 %v10698_v60 }
 0x790   :  { %8013 = vmatprep.subr.bf16.mxu1 %v10703_v36 }
 0x793   :  { %8014 = vmatpush1.bf16.msra.mxu1 %v10701_v38 }
 0x794   :  { %8015 = vmatprep.subr.bf16.mxu1 %v10706_v39 }
 0x797   :  { %8016 = vmatpush2.bf16.msra.mxu1 %v10704_v46 }
 0x798   :  { %8017 = vmatprep.subr.bf16.mxu1 %v10709_v7 }
 0x79b   :  { %8018 = vmatpush2.bf16.msra.mxu1 %v10707_v8 }
 0x79c   :  { %8019 = vmatprep.subr.bf16.mxu1 %v10712_v9 }
 0x79f   :  { %8020 = vmatpush2.bf16.msra.mxu1 %v10710_v11 }
 0x7a0   :  { %8021 = vmatprep.subr.bf16.mxu1 %v10715_v62 }
 0x7a3   :  { %8022 = vmatpush2.bf16.msra.mxu1 %v10713_v12 }
 0x7a4   :  { %8023 = vmatprep.subr.bf16.mxu1 %v10718_v63 }
 0x7a7   :  { %8024 = vmatpush2.bf16.msra.mxu1 %v10716_v13 }
 0x7a8   :  { %8025 = vmatprep.subr.bf16.mxu1 %v10721_v14  ;;  %v6204_v14 = vrot.slane %v13187_v0, %v4038_v10 }
 0x7ab   :  { %8026 = vmatpush2.bf16.msra.mxu1 %v10719_v15 }
 0x7ac   :  { %8027 = vmatprep.subr.bf16.mxu1 %v10724_v17 }
 0x7af   :  { %8028 = vmatpush2.bf16.msra.mxu1 %v10722_v40 }
 0x7b0   :  { %8029 = vmatprep.subr.bf16.mxu1 %v10727_v2 }
 0x7b3   :  { %8030 = vmatpush2.bf16.msra.mxu1 %v10725_v5 }
 0x7b6   :  { %8032 = vmatmul.mubr.bf16.vlgmr.msra.gmra.mxu1 %v12799_v61  ;;  %v7775_v59 = vpop.f32.mrf.mxu1  ;;  %v7820_v61 = vpop.f32.mrf.mxu0 }
 0x7b7   :  { %v7776_v27 = vadd.f32 %v7775_v59, %v7733_v24  ;;  %v7821_v54 = vadd.f32 %v7820_v61, %v6200_v41 }
 0x7b8   :  { %v7777_v29 = vpop.f32.mrf.mxu1  ;;  %v7822_v45 = vpop.f32.mrf.mxu0 }
 0x7b9   :  { %8042 = vst [vmem:[#allocation8] sm:$0xff] %v7776_v27  ;;  %v7778_v32 = vadd.f32 %v7777_v29, %v7735_v26  ;;  %v7823_v60 = vadd.f32 %v7822_v45, %v6196_v48 }
 0x7ba   :  { %v7779_v33 = vpop.f32.mrf.mxu1  ;;  %v7824_v47 = vpop.f32.mrf.mxu0 }
 0x7bb   :  { %8043 = vst [vmem:[#allocation8 + $0x8] sm:$0xff] %v7778_v32  ;;  %v7780_v34 = vadd.f32 %v7779_v33, %v7737_v31  ;;  %v7825_v7 = vadd.f32 %v7824_v47, %v6200_v41 }
 0x7bc   :  { %v7781_v35 = vpop.f32.mrf.mxu1  ;;  %v7904_v49 = vpop.f32.mrf.mxu0 }
 0x7bd   :  { %8049 = vst [vmem:[#allocation8 + $0x30] sm:$0xff] %v7780_v34  ;;  %v7782_v43 = vadd.f32 %v7781_v35, %v7739_v53 }
 0x7be   :  { %v7906_v51 = vpop.f32.mrf.mxu0 }
 0x7bf   :  { %8050 = vst [vmem:[#allocation8 + $0x38] sm:$0xff] %v7782_v43 }
 0x7c0   :  { %v7908_v39 = vpop.f32.mrf.mxu0 }
 0x7c2   :  { %v7910_v19 = vpop.f32.mrf.mxu0 }
 0x7f6   :  { %v7861_v52 = vpop.f32.mrf.mxu1 }
 0x7f7   :  { %v7862_v55 = vadd.f32 %v7861_v52, %v7819_v57 }
 0x7f8   :  { %v7863_v56 = vpop.f32.mrf.mxu1  ;;  %v7990_v15 = vpop.f32.mrf.mxu0 }
 0x7f9   :  { %v7905_v36 = vadd.f32 %v7904_v49, %v7862_v55  ;;  %v7864_v38 = vadd.f32 %v7863_v56, %v7821_v54 }
 0x7fa   :  { %v7865_v46 = vpop.f32.mrf.mxu1  ;;  %v7992_v18 = vpop.f32.mrf.mxu0 }
 0x7fb   :  { %8044 = vst [vmem:[#allocation8 + $0x10] sm:$0xff] %v7905_v36  ;;  %v7907_v8 = vadd.f32 %v7906_v51, %v7864_v38  ;;  %v7866_v4 = vadd.f32 %v7865_v46, %v7823_v60 }
 0x7fc   :  { %v7867_v9 = vpop.f32.mrf.mxu1  ;;  %v7994_v42 = vpop.f32.mrf.mxu0 }
 0x7fd   :  { %8045 = vst [vmem:[#allocation8 + $0x18] sm:$0xff] %v7907_v8  ;;  %v7909_v11 = vadd.f32 %v7908_v39, %v7866_v4  ;;  %v7868_v62 = vadd.f32 %v7867_v9, %v7825_v7 }
 0x7fe   :  { %v7996_v50 = vpop.f32.mrf.mxu0 }
 0x7ff   :  { %8051 = vst [vmem:[#allocation8 + $0x40] sm:$0xff] %v7909_v11  ;;  %v7911_v12 = vadd.f32 %v7910_v19, %v7868_v62 }
 0x801   :  { %8052 = vst [vmem:[#allocation8 + $0x48] sm:$0xff] %v7911_v12 }
 0x836   :  { %v7947_v63 = vpop.f32.mrf.mxu1 }
 0x837   :  { %v7948_v40 = vadd.f32 %v7947_v63, %v6204_v14 }
 0x838   :  { %v7949_v13 = vpop.f32.mrf.mxu1 }
 0x839   :  { %v7950_v1 = vadd.f32 %v7949_v13, %v6208_v16  ;;  %v7991_v5 = vadd.f32 %v7990_v15, %v7948_v40 }
 0x83a   :  { %v7951_v17 = vpop.f32.mrf.mxu1 }
 0x83b   :  { %v7952_v3 = vadd.f32 %v7951_v17, %v6204_v14  ;;  %v7993_v58 = vadd.f32 %v7992_v18, %v7950_v1 }
 0x83c   :  { %v7953_v2 = vpop.f32.mrf.mxu1 }
 0x83d   :  { %v7954_v20 = vadd.f32 %v7953_v2, %v6208_v16  ;;  %v7995_v23 = vadd.f32 %v7994_v42, %v7952_v3 }
 0x83f   :  { %v7997_v0 = vadd.f32 %v7996_v50, %v7954_v20 }
 0x876   :  { %v8033_v6 = vpop.f32.mrf.mxu1 }
 0x877   :  { %v8034_v21 = vadd.f32 %v8033_v6, %v7991_v5 }
 0x878   :  { %v8035_v22 = vpop.f32.mrf.mxu1 }
 0x879   :  { %8046 = vst [vmem:[#allocation8 + $0x20] sm:$0xff] %v8034_v21  ;;  %v8036_v10 = vadd.f32 %v8035_v22, %v7993_v58 }
 0x87a   :  { %v8037_v24 = vpop.f32.mrf.mxu1 }
 0x87b   :  { %8048 = vst.msk [vmem:[#allocation8 + $0x28] sm:$0xff] %vm8047_vm1, %v8036_v10  ;;  %v8038_v37 = vadd.f32 %v8037_v24, %v7995_v23 }
 0x87c   :  { %v8039_v59 = vpop.f32.mrf.mxu1 }
 0x87d   :  { %8053 = vst [vmem:[#allocation8 + $0x50] sm:$0xff] %v8038_v37  ;;  %v8040_v25 = vadd.f32 %v8039_v59, %v7997_v0 }
 0x87f   :  { %8054 = vst.msk [vmem:[#allocation8 + $0x58] sm:$0xff] %vm8047_vm1, %v8040_v25 }
 0x880   :  { %10791 = shalt.err (!%p10788_p3)
}
 0x881   :  { %s10864_s11 = smov 768   ;;  %s10865_s24 = smov 48  }
 0x882   :  { %8066 = dma.vmem_to_hbm [thread:$0]  %s8061_s7, 1536, %s13224_s8, [#allocation9], %s10864_s11, %s10864_s11, %s10865_s24  }
 0x883   :  { %10838 = dma.done.wait [#allocation9], 1536  }
 0x884   :  { %10839 = vsyncadd [#allocation9], 4294965760 }
 0x885   :  { %8070 = vsyncpa [#allocation9], 1 }
 0x886   :  { %8071 = vsyncmov [#allocation4] }
 0x889   :  { %s8072_s2 = vpop.sfrf %8071 }
 0x88a   :  { %p9741_p4 = scmp.ne.s32.totalorder %s8072_s2, 0 }
 0x88c   :  { %8076 = shalt.err (%p9741_p4)  }
 0x88d   :  { %8078 = vsyncmov [#allocation4 + $0x1] }
 0x890   :  { %s8079_s26 = vpop.sfrf %8078 }
 0x891   :  { %p9742_p5 = scmp.ne.s32.totalorder %s8079_s26, 0 }
 0x893   :  { %8083 = shalt.err (%p9742_p5)  }
 0x894   :  { %8085 = vsyncmov [#allocation4 + $0x2] }
 0x897   :  { %s8086_s0 = vpop.sfrf %8085 }
 0x898   :  { %p9743_p6 = scmp.ne.s32.totalorder %s8086_s0, 0 }
 0x89a   :  { %8090 = shalt.err (%p9743_p6)  }
 0x89b   :  { %8092 = vsyncmov [#allocation4 + $0x3] }
 0x89e   :  { %s8093_s3 = vpop.sfrf %8092 }
 0x89f   :  { %p9744_p7 = scmp.ne.s32.totalorder %s8093_s3, 0 }
 0x8a1   :  { %8097 = shalt.err (%p9744_p7)  }
 0x8a2   :  { %8099 = vsyncmov [#allocation4 + $0x4] }
 0x8a5   :  { %s8100_s8 = vpop.sfrf %8099 }
 0x8a6   :  { %p9745_p8 = scmp.ne.s32.totalorder %s8100_s8, 0 }
 0x8a8   :  { %8104 = shalt.err (%p9745_p8)  }
 0x8a9   :  { %8106 = vsyncmov [#allocation4 + $0x5] }
 0x8ac   :  { %s8107_s1 = vpop.sfrf %8106 }
 0x8ad   :  { %p9746_p9 = scmp.ne.s32.totalorder %s8107_s1, 0 }
 0x8af   :  { %8111 = shalt.err (%p9746_p9)  }
 0x8b0   :  { %8113 = vsyncmov [#allocation4 + $0x6] }
 0x8b3   :  { %s8114_s30 = vpop.sfrf %8113 }
 0x8b4   :  { %p9747_p11 = scmp.ne.s32.totalorder %s8114_s30, 0 }
 0x8b6   :  { %8118 = shalt.err (%p9747_p11)  }
 0x8b7   :  { %8120 = vsyncmov [#allocation4 + $0x7] }
 0x8ba   :  { %s8121_s9 = vpop.sfrf %8120 }
 0x8bb   :  { %p9748_p12 = scmp.ne.s32.totalorder %s8121_s9, 0 }
 0x8bd   :  { %8125 = shalt.err (%p9748_p12)  }
 0x8be   :  { %8127 = vsyncmov [#allocation4 + $0x8] }
 0x8c1   :  { %s8128_s10 = vpop.sfrf %8127 }
 0x8c2   :  { %p9749_p13 = scmp.ne.s32.totalorder %s8128_s10, 0 }
 0x8c4   :  { %8132 = shalt.err (%p9749_p13)  }
 0x8c5   :  { %8134 = vsyncmov [#allocation4 + $0x9] }
 0x8c8   :  { %s8135_s20 = vpop.sfrf %8134 }
 0x8c9   :  { %p9750_p10 = scmp.ne.s32.totalorder %s8135_s20, 0 }
 0x8cb   :  { %8139 = shalt.err (%p9750_p10)  }
 0x8cc   :  { %8141 = vsyncmov [#allocation4 + $0xa] }
 0x8cf   :  { %s8142_s18 = vpop.sfrf %8141 }
 0x8d0   :  { %p9751_p0 = scmp.ne.s32.totalorder %s8142_s18, 0 }
 0x8d2   :  { %8146 = shalt.err (%p9751_p0)  }
 0x8d3   :  { %8148 = vsyncmov [#allocation4 + $0xb] }
 0x8d6   :  { %s8149_s19 = vpop.sfrf %8148 }
 0x8d7   :  { %p9752_p1 = scmp.ne.s32.totalorder %s8149_s19, 0 }
 0x8d9   :  { %8153 = shalt.err (%p9752_p1)  }
 0x8da   :  { %8155 = vsyncmov [#allocation4 + $0xc] }
 0x8dd   :  { %s8156_s5 = vpop.sfrf %8155 }
 0x8de   :  { %p9753_p2 = scmp.ne.s32.totalorder %s8156_s5, 0 }
 0x8e0   :  { %8160 = shalt.err (%p9753_p2)  }
 0x8e1   :  { %8162 = vsyncmov [#allocation4 + $0xd] }
 0x8e4   :  { %s8163_s27 = vpop.sfrf %8162 }
 0x8e5   :  { %p9754_p3 = scmp.ne.s32.totalorder %s8163_s27, 0 }
 0x8e7   :  { %8167 = shalt.err (%p9754_p3)  }
 0x8e8   :  { %8169 = vsyncmov [#allocation4 + $0xe] }
 0x8eb   :  { %s8170_s14 = vpop.sfrf %8169 }
 0x8ec   :  { %p9755_p4 = scmp.ne.s32.totalorder %s8170_s14, 0 }
 0x8ee   :  { %8174 = shalt.err (%p9755_p4)  }
 0x8ef   :  { %8176 = vsyncmov [#allocation4 + $0xf] }
 0x8f2   :  { %s8177_s12 = vpop.sfrf %8176 }
 0x8f3   :  { %p9756_p5 = scmp.ne.s32.totalorder %s8177_s12, 0 }
 0x8f5   :  { %8181 = shalt.err (%p9756_p5)  }
 0x8f6   :  { %8183 = vsyncmov [#allocation4 + $0x10] }
 0x8f9   :  { %s8184_s4 = vpop.sfrf %8183 }
 0x8fa   :  { %p9757_p6 = scmp.ne.s32.totalorder %s8184_s4, 0 }
 0x8fc   :  { %8188 = shalt.err (%p9757_p6)  }
 0x8fd   :  { %8190 = vsyncmov [#allocation4 + $0x11] }
 0x900   :  { %s8191_s21 = vpop.sfrf %8190 }
 0x901   :  { %p9758_p7 = scmp.ne.s32.totalorder %s8191_s21, 0 }
 0x903   :  { %8195 = shalt.err (%p9758_p7)  }
 0x904   :  { %8197 = vsyncmov [#allocation4 + $0x12] }
 0x907   :  { %s8198_s22 = vpop.sfrf %8197 }
 0x908   :  { %p9759_p8 = scmp.ne.s32.totalorder %s8198_s22, 0 }
 0x90a   :  { %8202 = shalt.err (%p9759_p8)  }
 0x90b   :  { %8204 = vsyncmov [#allocation4 + $0x13] }
 0x90e   :  { %s8205_s15 = vpop.sfrf %8204 }
 0x90f   :  { %p9760_p9 = scmp.ne.s32.totalorder %s8205_s15, 0 }
 0x911   :  { %8209 = shalt.err (%p9760_p9)  }
 0x912   :  { %8211 = vsyncmov [#allocation4 + $0x14] }
 0x915   :  { %s8212_s13 = vpop.sfrf %8211 }
 0x916   :  { %p9761_p11 = scmp.ne.s32.totalorder %s8212_s13, 0 }
 0x918   :  { %8216 = shalt.err (%p9761_p11)  }
 0x919   :  { %8218 = vsyncmov [#allocation4 + $0x15] }
 0x91c   :  { %s8219_s23 = vpop.sfrf %8218 }
 0x91d   :  { %p9762_p12 = scmp.ne.s32.totalorder %s8219_s23, 0 }
 0x91f   :  { %8223 = shalt.err (%p9762_p12)  }
 0x920   :  { %8225 = vsyncmov [#allocation4 + $0x16] }
 0x923   :  { %s8226_s17 = vpop.sfrf %8225 }
 0x924   :  { %p9763_p13 = scmp.ne.s32.totalorder %s8226_s17, 0 }
 0x926   :  { %8230 = shalt.err (%p9763_p13)  }
 0x927   :  { %8232 = vsyncmov [#allocation4 + $0x17] }
 0x92a   :  { %s8233_s28 = vpop.sfrf %8232 }
 0x92b   :  { %p9764_p10 = scmp.ne.s32.totalorder %s8233_s28, 0 }
 0x92d   :  { %8237 = shalt.err (%p9764_p10)  }
 0x92e   :  { %8239 = vsyncmov [#allocation4 + $0x18] }
 0x931   :  { %s8240_s6 = vpop.sfrf %8239 }
 0x932   :  { %p9765_p0 = scmp.ne.s32.totalorder %s8240_s6, 0 }
 0x934   :  { %8244 = shalt.err (%p9765_p0)  }
 0x935   :  { %8246 = vsyncmov [#allocation4 + $0x19] }
 0x938   :  { %s8247_s7 = vpop.sfrf %8246 }
 0x939   :  { %p9766_p1 = scmp.ne.s32.totalorder %s8247_s7, 0 }
 0x93b   :  { %8251 = shalt.err (%p9766_p1)  }
 0x93c   :  { %8253 = vsyncmov [#allocation4 + $0x1a] }
 0x93f   :  { %s8254_s29 = vpop.sfrf %8253 }
 0x940   :  { %p9767_p2 = scmp.ne.s32.totalorder %s8254_s29, 0 }
 0x942   :  { %8258 = shalt.err (%p9767_p2)  }
 0x943   :  { %8260 = vsyncmov [#allocation4 + $0x1b] }
 0x946   :  { %s8261_s11 = vpop.sfrf %8260 }
 0x947   :  { %p9768_p3 = scmp.ne.s32.totalorder %s8261_s11, 0 }
 0x949   :  { %8265 = shalt.err (%p9768_p3)  }
 0x94a   :  { %8267 = vsyncmov [#allocation4 + $0x1c] }
 0x94d   :  { %s8268_s24 = vpop.sfrf %8267 }
 0x94e   :  { %p9769_p4 = scmp.ne.s32.totalorder %s8268_s24, 0 }
 0x950   :  { %8272 = shalt.err (%p9769_p4)  }
 0x951   :  { %8274 = vsyncmov [#allocation4 + $0x1d] }
 0x954   :  { %s8275_s25 = vpop.sfrf %8274 }
 0x955   :  { %p9770_p5 = scmp.ne.s32.totalorder %s8275_s25, 0 }
 0x957   :  { %8279 = shalt.err (%p9770_p5)  }
 0x958   :  { %8281 = vsyncmov [#allocation4 + $0x1e] }
 0x95b   :  { %s8282_s16 = vpop.sfrf %8281 }
 0x95c   :  { %p9771_p6 = scmp.ne.s32.totalorder %s8282_s16, 0 }
 0x95e   :  { %8286 = shalt.err (%p9771_p6)  }
 0x95f   :  { %8288 = vsyncmov [#allocation4 + $0x1f] }
 0x962   :  { %s8289_s2 = vpop.sfrf %8288 }
 0x963   :  { %p9772_p7 = scmp.ne.s32.totalorder %s8289_s2, 0 }
 0x965   :  { %8293 = shalt.err (%p9772_p7)  }

</bundles_post_ra>
